<compile_context>
chip_gen: v5e
topology: v5e:2x2
jax: 0.10.0
libtpu: 0.0.40
codegen_flags: <defaults>
</compile_context>

<pallas_src>
import jax
import jax.numpy as jnp
from jax.experimental import pallas as pl
from jax.experimental.pallas import tpu as pltpu

CLAMP_MIN = -0.3   # mathematically a no-op after relu; kept for documentation
CLAMP_MAX = 1.8

CIN, COUT, KH, KW, PAD = 3, 4, 5, 5, 2


def conv_act_kernel(x_ref, w_ref, b_ref, o_ref):
    """Direct 5x5 conv + fused activation for one batch element.

    x_ref: (1, CIN, H+2P, W+2P)  VMEM  padded input
    w_ref: (COUT*CIN*KH*KW,)     SMEM  conv weight, flattened OIHW order
    b_ref: (COUT,)               SMEM  bias
    o_ref: (1, COUT, H, W)       VMEM  NCHW output block
    """
    h = o_ref.shape[2]
    w = o_ref.shape[3]

    # One accumulator per output channel, initialised with the bias.
    accs = [jnp.zeros((h, w), jnp.float32) + b_ref[co] for co in range(COUT)]

    for ci in range(CIN):
        xc = x_ref[0, ci]                           # (H+2P, W+2P)
        for kh in range(KH):
            for kw in range(KW):
                tap = xc[kh:kh + h, kw:kw + w]      # shifted (H, W) window
                base = ci * (KH * KW) + kh * KW + kw
                for co in range(COUT):
                    wv = w_ref[co * (CIN * KH * KW) + base]
                    accs[co] = accs[co] + wv * tap

    # relu -> relu -> clamp_min(-0.3) -> relu -> clamp_max(1.8) == clip(v1, 0, 1.8)
    for co in range(COUT):
        o_ref[0, co] = jnp.minimum(jnp.maximum(accs[co], 0.0), CLAMP_MAX)


def model_forward(x, weight, bias):
    """x: (N, 3, H, W) f32; weight: (4, 3, 5, 5); bias: (4,). Returns NCHW."""
    n, c, h, w = x.shape
    hp, wp = h + 2 * PAD, w + 2 * PAD
    xp = jnp.pad(x, ((0, 0), (0, 0), (PAD, PAD), (PAD, PAD)))
    w_flat = weight.reshape(-1).astype(jnp.float32)    # (300,) OIHW row-major
    b_flat = bias.astype(jnp.float32)                  # (4,)

    return pl.pallas_call(
        conv_act_kernel,
        out_shape=jax.ShapeDtypeStruct((n, COUT, h, w), jnp.float32),
        grid=(n,),
        in_specs=[
            pl.BlockSpec((1, c, hp, wp), lambda i: (i, 0, 0, 0)),
            pl.BlockSpec(memory_space=pltpu.MemorySpace.SMEM),
            pl.BlockSpec(memory_space=pltpu.MemorySpace.SMEM),
        ],
        out_specs=pl.BlockSpec((1, COUT, h, w), lambda i: (i, 0, 0, 0)),
        compiler_params=pltpu.CompilerParams(
            dimension_semantics=("parallel",)),
    )(xp, w_flat, b_flat)


def reference_forward(x, weight, bias):
    v1 = jax.lax.conv_general_dilated(
        x, weight, window_strides=(1, 1), padding=((PAD, PAD), (PAD, PAD)),
        dimension_numbers=("NCHW", "OIHW", "NCHW"))
    v1 = v1 + bias.reshape(1, COUT, 1, 1)
    v3 = jnp.maximum(v1, 0.0)
    v4 = jnp.maximum(v3, 0.0)
    v5 = jnp.maximum(v4, CLAMP_MIN)
    v6 = jnp.maximum(v5, 0.0)
    return jnp.minimum(v6, CLAMP_MAX)


if __name__ == "__main__":
    key = jax.random.PRNGKey(0)
    kx, kw, kb = jax.random.split(key, 3)

    # Same layer shapes as torch Conv2d(3, 4, 5, padding=2); batch=2 so the
    # parallel grid axis has >= 2 blocks (both v7x TensorCores used).
    x1 = jax.random.normal(kx, (2, 3, 20, 20), dtype=jnp.float32)
    weight = jax.random.normal(kw, (COUT, CIN, KH, KW), dtype=jnp.float32) * 0.1
    bias = jax.random.normal(kb, (COUT,), dtype=jnp.float32) * 0.1

    out = model_forward(x1, weight, bias)
    jax.block_until_ready(out)

    ref = reference_forward(x1, weight, bias)
    assert out.shape == (2, 4, 20, 20)
    assert jnp.allclose(out, ref, atol=1e-4, rtol=1e-4)

    print("KERNEL_OK")
</pallas_src>

<mosaic_0001>
module attributes {stable_mosaic.version = 11 : i64} {
  func.func @conv_act_kernel(%arg0: i32, %arg1: memref<1x3x24x24xf32, #tpu.memory_space<vmem>>, %arg2: memref<300xf32, #tpu.memory_space<smem>>, %arg3: memref<4xf32, #tpu.memory_space<smem>>, %arg4: memref<1x4x20x20xf32, #tpu.memory_space<vmem>>) attributes {dimension_semantics = [#tpu.dimension_semantics<parallel>], iteration_bounds = array<i64: 2>, scalar_prefetch = 0 : i64, scratch_operands = 0 : i64, tpu.core_type = #tpu.core_type<tc>, window_params = [{transform_indices = @transform_0, window_bounds = array<i64: 1, 3, 24, 24>}, {transform_indices = @transform_1, window_bounds = array<i64: 300>}, {transform_indices = @transform_2, window_bounds = array<i64: 4>}, {transform_indices = @transform_3, window_bounds = array<i64: 1, 4, 20, 20>}]} {
    %cst = arith.constant 0.000000e+00 : f32
    %0 = vector.broadcast %cst : f32 to vector<20x20xf32>
    %c0 = arith.constant 0 : index
    %1 = memref.load %arg3[%c0] : memref<4xf32, #tpu.memory_space<smem>>
    %2 = vector.broadcast %1 : f32 to vector<20x20xf32>
    %3 = arith.addf %0, %2 : vector<20x20xf32>
    %cst_0 = arith.constant 0.000000e+00 : f32
    %4 = vector.broadcast %cst_0 : f32 to vector<20x20xf32>
    %c1 = arith.constant 1 : index
    %5 = memref.load %arg3[%c1] : memref<4xf32, #tpu.memory_space<smem>>
    %6 = vector.broadcast %5 : f32 to vector<20x20xf32>
    %7 = arith.addf %4, %6 : vector<20x20xf32>
    %cst_1 = arith.constant 0.000000e+00 : f32
    %8 = vector.broadcast %cst_1 : f32 to vector<20x20xf32>
    %c2 = arith.constant 2 : index
    %9 = memref.load %arg3[%c2] : memref<4xf32, #tpu.memory_space<smem>>
    %10 = vector.broadcast %9 : f32 to vector<20x20xf32>
    %11 = arith.addf %8, %10 : vector<20x20xf32>
    %cst_2 = arith.constant 0.000000e+00 : f32
    %12 = vector.broadcast %cst_2 : f32 to vector<20x20xf32>
    %c3 = arith.constant 3 : index
    %13 = memref.load %arg3[%c3] : memref<4xf32, #tpu.memory_space<smem>>
    %14 = vector.broadcast %13 : f32 to vector<20x20xf32>
    %15 = arith.addf %12, %14 : vector<20x20xf32>
    %c0_3 = arith.constant 0 : index
    %c0_4 = arith.constant 0 : index
    %c0_5 = arith.constant 0 : index
    %c0_6 = arith.constant 0 : index
    %16 = vector.load %arg1[%c0_3, %c0_4, %c0_5, %c0_6] : memref<1x3x24x24xf32, #tpu.memory_space<vmem>>, vector<1x1x24x24xf32>
    %17 = vector.shape_cast %16 : vector<1x1x24x24xf32> to vector<24x24xf32>
    %18 = vector.extract_strided_slice %17 {offsets = [0, 0], sizes = [20, 20], strides = [1, 1]} : vector<24x24xf32> to vector<20x20xf32>
    %c0_7 = arith.constant 0 : index
    %19 = memref.load %arg2[%c0_7] : memref<300xf32, #tpu.memory_space<smem>>
    %20 = vector.broadcast %19 : f32 to vector<20x20xf32>
    %21 = arith.mulf %20, %18 : vector<20x20xf32>
    %22 = arith.addf %3, %21 : vector<20x20xf32>
    %c75 = arith.constant 75 : index
    %23 = memref.load %arg2[%c75] : memref<300xf32, #tpu.memory_space<smem>>
    %24 = vector.broadcast %23 : f32 to vector<20x20xf32>
    %25 = arith.mulf %24, %18 : vector<20x20xf32>
    %26 = arith.addf %7, %25 : vector<20x20xf32>
    %c150 = arith.constant 150 : index
    %27 = memref.load %arg2[%c150] : memref<300xf32, #tpu.memory_space<smem>>
    %28 = vector.broadcast %27 : f32 to vector<20x20xf32>
    %29 = arith.mulf %28, %18 : vector<20x20xf32>
    %30 = arith.addf %11, %29 : vector<20x20xf32>
    %c225 = arith.constant 225 : index
    %31 = memref.load %arg2[%c225] : memref<300xf32, #tpu.memory_space<smem>>
    %32 = vector.broadcast %31 : f32 to vector<20x20xf32>
    %33 = arith.mulf %32, %18 : vector<20x20xf32>
    %34 = arith.addf %15, %33 : vector<20x20xf32>
    %35 = vector.extract_strided_slice %17 {offsets = [0, 1], sizes = [20, 20], strides = [1, 1]} : vector<24x24xf32> to vector<20x20xf32>
    %c1_8 = arith.constant 1 : index
    %36 = memref.load %arg2[%c1_8] : memref<300xf32, #tpu.memory_space<smem>>
    %37 = vector.broadcast %36 : f32 to vector<20x20xf32>
    %38 = arith.mulf %37, %35 : vector<20x20xf32>
    %39 = arith.addf %22, %38 : vector<20x20xf32>
    %c76 = arith.constant 76 : index
    %40 = memref.load %arg2[%c76] : memref<300xf32, #tpu.memory_space<smem>>
    %41 = vector.broadcast %40 : f32 to vector<20x20xf32>
    %42 = arith.mulf %41, %35 : vector<20x20xf32>
    %43 = arith.addf %26, %42 : vector<20x20xf32>
    %c151 = arith.constant 151 : index
    %44 = memref.load %arg2[%c151] : memref<300xf32, #tpu.memory_space<smem>>
    %45 = vector.broadcast %44 : f32 to vector<20x20xf32>
    %46 = arith.mulf %45, %35 : vector<20x20xf32>
    %47 = arith.addf %30, %46 : vector<20x20xf32>
    %c226 = arith.constant 226 : index
    %48 = memref.load %arg2[%c226] : memref<300xf32, #tpu.memory_space<smem>>
    %49 = vector.broadcast %48 : f32 to vector<20x20xf32>
    %50 = arith.mulf %49, %35 : vector<20x20xf32>
    %51 = arith.addf %34, %50 : vector<20x20xf32>
    %52 = vector.extract_strided_slice %17 {offsets = [0, 2], sizes = [20, 20], strides = [1, 1]} : vector<24x24xf32> to vector<20x20xf32>
    %c2_9 = arith.constant 2 : index
    %53 = memref.load %arg2[%c2_9] : memref<300xf32, #tpu.memory_space<smem>>
    %54 = vector.broadcast %53 : f32 to vector<20x20xf32>
    %55 = arith.mulf %54, %52 : vector<20x20xf32>
    %56 = arith.addf %39, %55 : vector<20x20xf32>
    %c77 = arith.constant 77 : index
    %57 = memref.load %arg2[%c77] : memref<300xf32, #tpu.memory_space<smem>>
    %58 = vector.broadcast %57 : f32 to vector<20x20xf32>
    %59 = arith.mulf %58, %52 : vector<20x20xf32>
    %60 = arith.addf %43, %59 : vector<20x20xf32>
    %c152 = arith.constant 152 : index
    %61 = memref.load %arg2[%c152] : memref<300xf32, #tpu.memory_space<smem>>
    %62 = vector.broadcast %61 : f32 to vector<20x20xf32>
    %63 = arith.mulf %62, %52 : vector<20x20xf32>
    %64 = arith.addf %47, %63 : vector<20x20xf32>
    %c227 = arith.constant 227 : index
    %65 = memref.load %arg2[%c227] : memref<300xf32, #tpu.memory_space<smem>>
    %66 = vector.broadcast %65 : f32 to vector<20x20xf32>
    %67 = arith.mulf %66, %52 : vector<20x20xf32>
    %68 = arith.addf %51, %67 : vector<20x20xf32>
    %69 = vector.extract_strided_slice %17 {offsets = [0, 3], sizes = [20, 20], strides = [1, 1]} : vector<24x24xf32> to vector<20x20xf32>
    %c3_10 = arith.constant 3 : index
    %70 = memref.load %arg2[%c3_10] : memref<300xf32, #tpu.memory_space<smem>>
    %71 = vector.broadcast %70 : f32 to vector<20x20xf32>
    %72 = arith.mulf %71, %69 : vector<20x20xf32>
    %73 = arith.addf %56, %72 : vector<20x20xf32>
    %c78 = arith.constant 78 : index
    %74 = memref.load %arg2[%c78] : memref<300xf32, #tpu.memory_space<smem>>
    %75 = vector.broadcast %74 : f32 to vector<20x20xf32>
    %76 = arith.mulf %75, %69 : vector<20x20xf32>
    %77 = arith.addf %60, %76 : vector<20x20xf32>
    %c153 = arith.constant 153 : index
    %78 = memref.load %arg2[%c153] : memref<300xf32, #tpu.memory_space<smem>>
    %79 = vector.broadcast %78 : f32 to vector<20x20xf32>
    %80 = arith.mulf %79, %69 : vector<20x20xf32>
    %81 = arith.addf %64, %80 : vector<20x20xf32>
    %c228 = arith.constant 228 : index
    %82 = memref.load %arg2[%c228] : memref<300xf32, #tpu.memory_space<smem>>
    %83 = vector.broadcast %82 : f32 to vector<20x20xf32>
    %84 = arith.mulf %83, %69 : vector<20x20xf32>
    %85 = arith.addf %68, %84 : vector<20x20xf32>
    %86 = vector.extract_strided_slice %17 {offsets = [0, 4], sizes = [20, 20], strides = [1, 1]} : vector<24x24xf32> to vector<20x20xf32>
    %c4 = arith.constant 4 : index
    %87 = memref.load %arg2[%c4] : memref<300xf32, #tpu.memory_space<smem>>
    %88 = vector.broadcast %87 : f32 to vector<20x20xf32>
    %89 = arith.mulf %88, %86 : vector<20x20xf32>
    %90 = arith.addf %73, %89 : vector<20x20xf32>
    %c79 = arith.constant 79 : index
    %91 = memref.load %arg2[%c79] : memref<300xf32, #tpu.memory_space<smem>>
    %92 = vector.broadcast %91 : f32 to vector<20x20xf32>
    %93 = arith.mulf %92, %86 : vector<20x20xf32>
    %94 = arith.addf %77, %93 : vector<20x20xf32>
    %c154 = arith.constant 154 : index
    %95 = memref.load %arg2[%c154] : memref<300xf32, #tpu.memory_space<smem>>
    %96 = vector.broadcast %95 : f32 to vector<20x20xf32>
    %97 = arith.mulf %96, %86 : vector<20x20xf32>
    %98 = arith.addf %81, %97 : vector<20x20xf32>
    %c229 = arith.constant 229 : index
    %99 = memref.load %arg2[%c229] : memref<300xf32, #tpu.memory_space<smem>>
    %100 = vector.broadcast %99 : f32 to vector<20x20xf32>
    %101 = arith.mulf %100, %86 : vector<20x20xf32>
    %102 = arith.addf %85, %101 : vector<20x20xf32>
    %103 = vector.extract_strided_slice %17 {offsets = [1, 0], sizes = [20, 20], strides = [1, 1]} : vector<24x24xf32> to vector<20x20xf32>
    %c5 = arith.constant 5 : index
    %104 = memref.load %arg2[%c5] : memref<300xf32, #tpu.memory_space<smem>>
    %105 = vector.broadcast %104 : f32 to vector<20x20xf32>
    %106 = arith.mulf %105, %103 : vector<20x20xf32>
    %107 = arith.addf %90, %106 : vector<20x20xf32>
    %c80 = arith.constant 80 : index
    %108 = memref.load %arg2[%c80] : memref<300xf32, #tpu.memory_space<smem>>
    %109 = vector.broadcast %108 : f32 to vector<20x20xf32>
    %110 = arith.mulf %109, %103 : vector<20x20xf32>
    %111 = arith.addf %94, %110 : vector<20x20xf32>
    %c155 = arith.constant 155 : index
    %112 = memref.load %arg2[%c155] : memref<300xf32, #tpu.memory_space<smem>>
    %113 = vector.broadcast %112 : f32 to vector<20x20xf32>
    %114 = arith.mulf %113, %103 : vector<20x20xf32>
    %115 = arith.addf %98, %114 : vector<20x20xf32>
    %c230 = arith.constant 230 : index
    %116 = memref.load %arg2[%c230] : memref<300xf32, #tpu.memory_space<smem>>
    %117 = vector.broadcast %116 : f32 to vector<20x20xf32>
    %118 = arith.mulf %117, %103 : vector<20x20xf32>
    %119 = arith.addf %102, %118 : vector<20x20xf32>
    %120 = vector.extract_strided_slice %17 {offsets = [1, 1], sizes = [20, 20], strides = [1, 1]} : vector<24x24xf32> to vector<20x20xf32>
    %c6 = arith.constant 6 : index
    %121 = memref.load %arg2[%c6] : memref<300xf32, #tpu.memory_space<smem>>
    %122 = vector.broadcast %121 : f32 to vector<20x20xf32>
    %123 = arith.mulf %122, %120 : vector<20x20xf32>
    %124 = arith.addf %107, %123 : vector<20x20xf32>
    %c81 = arith.constant 81 : index
    %125 = memref.load %arg2[%c81] : memref<300xf32, #tpu.memory_space<smem>>
    %126 = vector.broadcast %125 : f32 to vector<20x20xf32>
    %127 = arith.mulf %126, %120 : vector<20x20xf32>
    %128 = arith.addf %111, %127 : vector<20x20xf32>
    %c156 = arith.constant 156 : index
    %129 = memref.load %arg2[%c156] : memref<300xf32, #tpu.memory_space<smem>>
    %130 = vector.broadcast %129 : f32 to vector<20x20xf32>
    %131 = arith.mulf %130, %120 : vector<20x20xf32>
    %132 = arith.addf %115, %131 : vector<20x20xf32>
    %c231 = arith.constant 231 : index
    %133 = memref.load %arg2[%c231] : memref<300xf32, #tpu.memory_space<smem>>
    %134 = vector.broadcast %133 : f32 to vector<20x20xf32>
    %135 = arith.mulf %134, %120 : vector<20x20xf32>
    %136 = arith.addf %119, %135 : vector<20x20xf32>
    %137 = vector.extract_strided_slice %17 {offsets = [1, 2], sizes = [20, 20], strides = [1, 1]} : vector<24x24xf32> to vector<20x20xf32>
    %c7 = arith.constant 7 : index
    %138 = memref.load %arg2[%c7] : memref<300xf32, #tpu.memory_space<smem>>
    %139 = vector.broadcast %138 : f32 to vector<20x20xf32>
    %140 = arith.mulf %139, %137 : vector<20x20xf32>
    %141 = arith.addf %124, %140 : vector<20x20xf32>
    %c82 = arith.constant 82 : index
    %142 = memref.load %arg2[%c82] : memref<300xf32, #tpu.memory_space<smem>>
    %143 = vector.broadcast %142 : f32 to vector<20x20xf32>
    %144 = arith.mulf %143, %137 : vector<20x20xf32>
    %145 = arith.addf %128, %144 : vector<20x20xf32>
    %c157 = arith.constant 157 : index
    %146 = memref.load %arg2[%c157] : memref<300xf32, #tpu.memory_space<smem>>
    %147 = vector.broadcast %146 : f32 to vector<20x20xf32>
    %148 = arith.mulf %147, %137 : vector<20x20xf32>
    %149 = arith.addf %132, %148 : vector<20x20xf32>
    %c232 = arith.constant 232 : index
    %150 = memref.load %arg2[%c232] : memref<300xf32, #tpu.memory_space<smem>>
    %151 = vector.broadcast %150 : f32 to vector<20x20xf32>
    %152 = arith.mulf %151, %137 : vector<20x20xf32>
    %153 = arith.addf %136, %152 : vector<20x20xf32>
    %154 = vector.extract_strided_slice %17 {offsets = [1, 3], sizes = [20, 20], strides = [1, 1]} : vector<24x24xf32> to vector<20x20xf32>
    %c8 = arith.constant 8 : index
    %155 = memref.load %arg2[%c8] : memref<300xf32, #tpu.memory_space<smem>>
    %156 = vector.broadcast %155 : f32 to vector<20x20xf32>
    %157 = arith.mulf %156, %154 : vector<20x20xf32>
    %158 = arith.addf %141, %157 : vector<20x20xf32>
    %c83 = arith.constant 83 : index
    %159 = memref.load %arg2[%c83] : memref<300xf32, #tpu.memory_space<smem>>
    %160 = vector.broadcast %159 : f32 to vector<20x20xf32>
    %161 = arith.mulf %160, %154 : vector<20x20xf32>
    %162 = arith.addf %145, %161 : vector<20x20xf32>
    %c158 = arith.constant 158 : index
    %163 = memref.load %arg2[%c158] : memref<300xf32, #tpu.memory_space<smem>>
    %164 = vector.broadcast %163 : f32 to vector<20x20xf32>
    %165 = arith.mulf %164, %154 : vector<20x20xf32>
    %166 = arith.addf %149, %165 : vector<20x20xf32>
    %c233 = arith.constant 233 : index
    %167 = memref.load %arg2[%c233] : memref<300xf32, #tpu.memory_space<smem>>
    %168 = vector.broadcast %167 : f32 to vector<20x20xf32>
    %169 = arith.mulf %168, %154 : vector<20x20xf32>
    %170 = arith.addf %153, %169 : vector<20x20xf32>
    %171 = vector.extract_strided_slice %17 {offsets = [1, 4], sizes = [20, 20], strides = [1, 1]} : vector<24x24xf32> to vector<20x20xf32>
    %c9 = arith.constant 9 : index
    %172 = memref.load %arg2[%c9] : memref<300xf32, #tpu.memory_space<smem>>
    %173 = vector.broadcast %172 : f32 to vector<20x20xf32>
    %174 = arith.mulf %173, %171 : vector<20x20xf32>
    %175 = arith.addf %158, %174 : vector<20x20xf32>
    %c84 = arith.constant 84 : index
    %176 = memref.load %arg2[%c84] : memref<300xf32, #tpu.memory_space<smem>>
    %177 = vector.broadcast %176 : f32 to vector<20x20xf32>
    %178 = arith.mulf %177, %171 : vector<20x20xf32>
    %179 = arith.addf %162, %178 : vector<20x20xf32>
    %c159 = arith.constant 159 : index
    %180 = memref.load %arg2[%c159] : memref<300xf32, #tpu.memory_space<smem>>
    %181 = vector.broadcast %180 : f32 to vector<20x20xf32>
    %182 = arith.mulf %181, %171 : vector<20x20xf32>
    %183 = arith.addf %166, %182 : vector<20x20xf32>
    %c234 = arith.constant 234 : index
    %184 = memref.load %arg2[%c234] : memref<300xf32, #tpu.memory_space<smem>>
    %185 = vector.broadcast %184 : f32 to vector<20x20xf32>
    %186 = arith.mulf %185, %171 : vector<20x20xf32>
    %187 = arith.addf %170, %186 : vector<20x20xf32>
    %188 = vector.extract_strided_slice %17 {offsets = [2, 0], sizes = [20, 20], strides = [1, 1]} : vector<24x24xf32> to vector<20x20xf32>
    %c10 = arith.constant 10 : index
    %189 = memref.load %arg2[%c10] : memref<300xf32, #tpu.memory_space<smem>>
    %190 = vector.broadcast %189 : f32 to vector<20x20xf32>
    %191 = arith.mulf %190, %188 : vector<20x20xf32>
    %192 = arith.addf %175, %191 : vector<20x20xf32>
    %c85 = arith.constant 85 : index
    %193 = memref.load %arg2[%c85] : memref<300xf32, #tpu.memory_space<smem>>
    %194 = vector.broadcast %193 : f32 to vector<20x20xf32>
    %195 = arith.mulf %194, %188 : vector<20x20xf32>
    %196 = arith.addf %179, %195 : vector<20x20xf32>
    %c160 = arith.constant 160 : index
    %197 = memref.load %arg2[%c160] : memref<300xf32, #tpu.memory_space<smem>>
    %198 = vector.broadcast %197 : f32 to vector<20x20xf32>
    %199 = arith.mulf %198, %188 : vector<20x20xf32>
    %200 = arith.addf %183, %199 : vector<20x20xf32>
    %c235 = arith.constant 235 : index
    %201 = memref.load %arg2[%c235] : memref<300xf32, #tpu.memory_space<smem>>
    %202 = vector.broadcast %201 : f32 to vector<20x20xf32>
    %203 = arith.mulf %202, %188 : vector<20x20xf32>
    %204 = arith.addf %187, %203 : vector<20x20xf32>
    %205 = vector.extract_strided_slice %17 {offsets = [2, 1], sizes = [20, 20], strides = [1, 1]} : vector<24x24xf32> to vector<20x20xf32>
    %c11 = arith.constant 11 : index
    %206 = memref.load %arg2[%c11] : memref<300xf32, #tpu.memory_space<smem>>
    %207 = vector.broadcast %206 : f32 to vector<20x20xf32>
    %208 = arith.mulf %207, %205 : vector<20x20xf32>
    %209 = arith.addf %192, %208 : vector<20x20xf32>
    %c86 = arith.constant 86 : index
    %210 = memref.load %arg2[%c86] : memref<300xf32, #tpu.memory_space<smem>>
    %211 = vector.broadcast %210 : f32 to vector<20x20xf32>
    %212 = arith.mulf %211, %205 : vector<20x20xf32>
    %213 = arith.addf %196, %212 : vector<20x20xf32>
    %c161 = arith.constant 161 : index
    %214 = memref.load %arg2[%c161] : memref<300xf32, #tpu.memory_space<smem>>
    %215 = vector.broadcast %214 : f32 to vector<20x20xf32>
    %216 = arith.mulf %215, %205 : vector<20x20xf32>
    %217 = arith.addf %200, %216 : vector<20x20xf32>
    %c236 = arith.constant 236 : index
    %218 = memref.load %arg2[%c236] : memref<300xf32, #tpu.memory_space<smem>>
    %219 = vector.broadcast %218 : f32 to vector<20x20xf32>
    %220 = arith.mulf %219, %205 : vector<20x20xf32>
    %221 = arith.addf %204, %220 : vector<20x20xf32>
    %222 = vector.extract_strided_slice %17 {offsets = [2, 2], sizes = [20, 20], strides = [1, 1]} : vector<24x24xf32> to vector<20x20xf32>
    %c12 = arith.constant 12 : index
    %223 = memref.load %arg2[%c12] : memref<300xf32, #tpu.memory_space<smem>>
    %224 = vector.broadcast %223 : f32 to vector<20x20xf32>
    %225 = arith.mulf %224, %222 : vector<20x20xf32>
    %226 = arith.addf %209, %225 : vector<20x20xf32>
    %c87 = arith.constant 87 : index
    %227 = memref.load %arg2[%c87] : memref<300xf32, #tpu.memory_space<smem>>
    %228 = vector.broadcast %227 : f32 to vector<20x20xf32>
    %229 = arith.mulf %228, %222 : vector<20x20xf32>
    %230 = arith.addf %213, %229 : vector<20x20xf32>
    %c162 = arith.constant 162 : index
    %231 = memref.load %arg2[%c162] : memref<300xf32, #tpu.memory_space<smem>>
    %232 = vector.broadcast %231 : f32 to vector<20x20xf32>
    %233 = arith.mulf %232, %222 : vector<20x20xf32>
    %234 = arith.addf %217, %233 : vector<20x20xf32>
    %c237 = arith.constant 237 : index
    %235 = memref.load %arg2[%c237] : memref<300xf32, #tpu.memory_space<smem>>
    %236 = vector.broadcast %235 : f32 to vector<20x20xf32>
    %237 = arith.mulf %236, %222 : vector<20x20xf32>
    %238 = arith.addf %221, %237 : vector<20x20xf32>
    %239 = vector.extract_strided_slice %17 {offsets = [2, 3], sizes = [20, 20], strides = [1, 1]} : vector<24x24xf32> to vector<20x20xf32>
    %c13 = arith.constant 13 : index
    %240 = memref.load %arg2[%c13] : memref<300xf32, #tpu.memory_space<smem>>
    %241 = vector.broadcast %240 : f32 to vector<20x20xf32>
    %242 = arith.mulf %241, %239 : vector<20x20xf32>
    %243 = arith.addf %226, %242 : vector<20x20xf32>
    %c88 = arith.constant 88 : index
    %244 = memref.load %arg2[%c88] : memref<300xf32, #tpu.memory_space<smem>>
    %245 = vector.broadcast %244 : f32 to vector<20x20xf32>
    %246 = arith.mulf %245, %239 : vector<20x20xf32>
    %247 = arith.addf %230, %246 : vector<20x20xf32>
    %c163 = arith.constant 163 : index
    %248 = memref.load %arg2[%c163] : memref<300xf32, #tpu.memory_space<smem>>
    %249 = vector.broadcast %248 : f32 to vector<20x20xf32>
    %250 = arith.mulf %249, %239 : vector<20x20xf32>
    %251 = arith.addf %234, %250 : vector<20x20xf32>
    %c238 = arith.constant 238 : index
    %252 = memref.load %arg2[%c238] : memref<300xf32, #tpu.memory_space<smem>>
    %253 = vector.broadcast %252 : f32 to vector<20x20xf32>
    %254 = arith.mulf %253, %239 : vector<20x20xf32>
    %255 = arith.addf %238, %254 : vector<20x20xf32>
    %256 = vector.extract_strided_slice %17 {offsets = [2, 4], sizes = [20, 20], strides = [1, 1]} : vector<24x24xf32> to vector<20x20xf32>
    %c14 = arith.constant 14 : index
    %257 = memref.load %arg2[%c14] : memref<300xf32, #tpu.memory_space<smem>>
    %258 = vector.broadcast %257 : f32 to vector<20x20xf32>
    %259 = arith.mulf %258, %256 : vector<20x20xf32>
    %260 = arith.addf %243, %259 : vector<20x20xf32>
    %c89 = arith.constant 89 : index
    %261 = memref.load %arg2[%c89] : memref<300xf32, #tpu.memory_space<smem>>
    %262 = vector.broadcast %261 : f32 to vector<20x20xf32>
    %263 = arith.mulf %262, %256 : vector<20x20xf32>
    %264 = arith.addf %247, %263 : vector<20x20xf32>
    %c164 = arith.constant 164 : index
    %265 = memref.load %arg2[%c164] : memref<300xf32, #tpu.memory_space<smem>>
    %266 = vector.broadcast %265 : f32 to vector<20x20xf32>
    %267 = arith.mulf %266, %256 : vector<20x20xf32>
    %268 = arith.addf %251, %267 : vector<20x20xf32>
    %c239 = arith.constant 239 : index
    %269 = memref.load %arg2[%c239] : memref<300xf32, #tpu.memory_space<smem>>
    %270 = vector.broadcast %269 : f32 to vector<20x20xf32>
    %271 = arith.mulf %270, %256 : vector<20x20xf32>
    %272 = arith.addf %255, %271 : vector<20x20xf32>
    %273 = vector.extract_strided_slice %17 {offsets = [3, 0], sizes = [20, 20], strides = [1, 1]} : vector<24x24xf32> to vector<20x20xf32>
    %c15 = arith.constant 15 : index
    %274 = memref.load %arg2[%c15] : memref<300xf32, #tpu.memory_space<smem>>
    %275 = vector.broadcast %274 : f32 to vector<20x20xf32>
    %276 = arith.mulf %275, %273 : vector<20x20xf32>
    %277 = arith.addf %260, %276 : vector<20x20xf32>
    %c90 = arith.constant 90 : index
    %278 = memref.load %arg2[%c90] : memref<300xf32, #tpu.memory_space<smem>>
    %279 = vector.broadcast %278 : f32 to vector<20x20xf32>
    %280 = arith.mulf %279, %273 : vector<20x20xf32>
    %281 = arith.addf %264, %280 : vector<20x20xf32>
    %c165 = arith.constant 165 : index
    %282 = memref.load %arg2[%c165] : memref<300xf32, #tpu.memory_space<smem>>
    %283 = vector.broadcast %282 : f32 to vector<20x20xf32>
    %284 = arith.mulf %283, %273 : vector<20x20xf32>
    %285 = arith.addf %268, %284 : vector<20x20xf32>
    %c240 = arith.constant 240 : index
    %286 = memref.load %arg2[%c240] : memref<300xf32, #tpu.memory_space<smem>>
    %287 = vector.broadcast %286 : f32 to vector<20x20xf32>
    %288 = arith.mulf %287, %273 : vector<20x20xf32>
    %289 = arith.addf %272, %288 : vector<20x20xf32>
    %290 = vector.extract_strided_slice %17 {offsets = [3, 1], sizes = [20, 20], strides = [1, 1]} : vector<24x24xf32> to vector<20x20xf32>
    %c16 = arith.constant 16 : index
    %291 = memref.load %arg2[%c16] : memref<300xf32, #tpu.memory_space<smem>>
    %292 = vector.broadcast %291 : f32 to vector<20x20xf32>
    %293 = arith.mulf %292, %290 : vector<20x20xf32>
    %294 = arith.addf %277, %293 : vector<20x20xf32>
    %c91 = arith.constant 91 : index
    %295 = memref.load %arg2[%c91] : memref<300xf32, #tpu.memory_space<smem>>
    %296 = vector.broadcast %295 : f32 to vector<20x20xf32>
    %297 = arith.mulf %296, %290 : vector<20x20xf32>
    %298 = arith.addf %281, %297 : vector<20x20xf32>
    %c166 = arith.constant 166 : index
    %299 = memref.load %arg2[%c166] : memref<300xf32, #tpu.memory_space<smem>>
    %300 = vector.broadcast %299 : f32 to vector<20x20xf32>
    %301 = arith.mulf %300, %290 : vector<20x20xf32>
    %302 = arith.addf %285, %301 : vector<20x20xf32>
    %c241 = arith.constant 241 : index
    %303 = memref.load %arg2[%c241] : memref<300xf32, #tpu.memory_space<smem>>
    %304 = vector.broadcast %303 : f32 to vector<20x20xf32>
    %305 = arith.mulf %304, %290 : vector<20x20xf32>
    %306 = arith.addf %289, %305 : vector<20x20xf32>
    %307 = vector.extract_strided_slice %17 {offsets = [3, 2], sizes = [20, 20], strides = [1, 1]} : vector<24x24xf32> to vector<20x20xf32>
    %c17 = arith.constant 17 : index
    %308 = memref.load %arg2[%c17] : memref<300xf32, #tpu.memory_space<smem>>
    %309 = vector.broadcast %308 : f32 to vector<20x20xf32>
    %310 = arith.mulf %309, %307 : vector<20x20xf32>
    %311 = arith.addf %294, %310 : vector<20x20xf32>
    %c92 = arith.constant 92 : index
    %312 = memref.load %arg2[%c92] : memref<300xf32, #tpu.memory_space<smem>>
    %313 = vector.broadcast %312 : f32 to vector<20x20xf32>
    %314 = arith.mulf %313, %307 : vector<20x20xf32>
    %315 = arith.addf %298, %314 : vector<20x20xf32>
    %c167 = arith.constant 167 : index
    %316 = memref.load %arg2[%c167] : memref<300xf32, #tpu.memory_space<smem>>
    %317 = vector.broadcast %316 : f32 to vector<20x20xf32>
    %318 = arith.mulf %317, %307 : vector<20x20xf32>
    %319 = arith.addf %302, %318 : vector<20x20xf32>
    %c242 = arith.constant 242 : index
    %320 = memref.load %arg2[%c242] : memref<300xf32, #tpu.memory_space<smem>>
    %321 = vector.broadcast %320 : f32 to vector<20x20xf32>
    %322 = arith.mulf %321, %307 : vector<20x20xf32>
    %323 = arith.addf %306, %322 : vector<20x20xf32>
    %324 = vector.extract_strided_slice %17 {offsets = [3, 3], sizes = [20, 20], strides = [1, 1]} : vector<24x24xf32> to vector<20x20xf32>
    %c18 = arith.constant 18 : index
    %325 = memref.load %arg2[%c18] : memref<300xf32, #tpu.memory_space<smem>>
    %326 = vector.broadcast %325 : f32 to vector<20x20xf32>
    %327 = arith.mulf %326, %324 : vector<20x20xf32>
    %328 = arith.addf %311, %327 : vector<20x20xf32>
    %c93 = arith.constant 93 : index
    %329 = memref.load %arg2[%c93] : memref<300xf32, #tpu.memory_space<smem>>
    %330 = vector.broadcast %329 : f32 to vector<20x20xf32>
    %331 = arith.mulf %330, %324 : vector<20x20xf32>
    %332 = arith.addf %315, %331 : vector<20x20xf32>
    %c168 = arith.constant 168 : index
    %333 = memref.load %arg2[%c168] : memref<300xf32, #tpu.memory_space<smem>>
    %334 = vector.broadcast %333 : f32 to vector<20x20xf32>
    %335 = arith.mulf %334, %324 : vector<20x20xf32>
    %336 = arith.addf %319, %335 : vector<20x20xf32>
    %c243 = arith.constant 243 : index
    %337 = memref.load %arg2[%c243] : memref<300xf32, #tpu.memory_space<smem>>
    %338 = vector.broadcast %337 : f32 to vector<20x20xf32>
    %339 = arith.mulf %338, %324 : vector<20x20xf32>
    %340 = arith.addf %323, %339 : vector<20x20xf32>
    %341 = vector.extract_strided_slice %17 {offsets = [3, 4], sizes = [20, 20], strides = [1, 1]} : vector<24x24xf32> to vector<20x20xf32>
    %c19 = arith.constant 19 : index
    %342 = memref.load %arg2[%c19] : memref<300xf32, #tpu.memory_space<smem>>
    %343 = vector.broadcast %342 : f32 to vector<20x20xf32>
    %344 = arith.mulf %343, %341 : vector<20x20xf32>
    %345 = arith.addf %328, %344 : vector<20x20xf32>
    %c94 = arith.constant 94 : index
    %346 = memref.load %arg2[%c94] : memref<300xf32, #tpu.memory_space<smem>>
    %347 = vector.broadcast %346 : f32 to vector<20x20xf32>
    %348 = arith.mulf %347, %341 : vector<20x20xf32>
    %349 = arith.addf %332, %348 : vector<20x20xf32>
    %c169 = arith.constant 169 : index
    %350 = memref.load %arg2[%c169] : memref<300xf32, #tpu.memory_space<smem>>
    %351 = vector.broadcast %350 : f32 to vector<20x20xf32>
    %352 = arith.mulf %351, %341 : vector<20x20xf32>
    %353 = arith.addf %336, %352 : vector<20x20xf32>
    %c244 = arith.constant 244 : index
    %354 = memref.load %arg2[%c244] : memref<300xf32, #tpu.memory_space<smem>>
    %355 = vector.broadcast %354 : f32 to vector<20x20xf32>
    %356 = arith.mulf %355, %341 : vector<20x20xf32>
    %357 = arith.addf %340, %356 : vector<20x20xf32>
    %358 = vector.extract_strided_slice %17 {offsets = [4, 0], sizes = [20, 20], strides = [1, 1]} : vector<24x24xf32> to vector<20x20xf32>
    %c20 = arith.constant 20 : index
    %359 = memref.load %arg2[%c20] : memref<300xf32, #tpu.memory_space<smem>>
    %360 = vector.broadcast %359 : f32 to vector<20x20xf32>
    %361 = arith.mulf %360, %358 : vector<20x20xf32>
    %362 = arith.addf %345, %361 : vector<20x20xf32>
    %c95 = arith.constant 95 : index
    %363 = memref.load %arg2[%c95] : memref<300xf32, #tpu.memory_space<smem>>
    %364 = vector.broadcast %363 : f32 to vector<20x20xf32>
    %365 = arith.mulf %364, %358 : vector<20x20xf32>
    %366 = arith.addf %349, %365 : vector<20x20xf32>
    %c170 = arith.constant 170 : index
    %367 = memref.load %arg2[%c170] : memref<300xf32, #tpu.memory_space<smem>>
    %368 = vector.broadcast %367 : f32 to vector<20x20xf32>
    %369 = arith.mulf %368, %358 : vector<20x20xf32>
    %370 = arith.addf %353, %369 : vector<20x20xf32>
    %c245 = arith.constant 245 : index
    %371 = memref.load %arg2[%c245] : memref<300xf32, #tpu.memory_space<smem>>
    %372 = vector.broadcast %371 : f32 to vector<20x20xf32>
    %373 = arith.mulf %372, %358 : vector<20x20xf32>
    %374 = arith.addf %357, %373 : vector<20x20xf32>
    %375 = vector.extract_strided_slice %17 {offsets = [4, 1], sizes = [20, 20], strides = [1, 1]} : vector<24x24xf32> to vector<20x20xf32>
    %c21 = arith.constant 21 : index
    %376 = memref.load %arg2[%c21] : memref<300xf32, #tpu.memory_space<smem>>
    %377 = vector.broadcast %376 : f32 to vector<20x20xf32>
    %378 = arith.mulf %377, %375 : vector<20x20xf32>
    %379 = arith.addf %362, %378 : vector<20x20xf32>
    %c96 = arith.constant 96 : index
    %380 = memref.load %arg2[%c96] : memref<300xf32, #tpu.memory_space<smem>>
    %381 = vector.broadcast %380 : f32 to vector<20x20xf32>
    %382 = arith.mulf %381, %375 : vector<20x20xf32>
    %383 = arith.addf %366, %382 : vector<20x20xf32>
    %c171 = arith.constant 171 : index
    %384 = memref.load %arg2[%c171] : memref<300xf32, #tpu.memory_space<smem>>
    %385 = vector.broadcast %384 : f32 to vector<20x20xf32>
    %386 = arith.mulf %385, %375 : vector<20x20xf32>
    %387 = arith.addf %370, %386 : vector<20x20xf32>
    %c246 = arith.constant 246 : index
    %388 = memref.load %arg2[%c246] : memref<300xf32, #tpu.memory_space<smem>>
    %389 = vector.broadcast %388 : f32 to vector<20x20xf32>
    %390 = arith.mulf %389, %375 : vector<20x20xf32>
    %391 = arith.addf %374, %390 : vector<20x20xf32>
    %392 = vector.extract_strided_slice %17 {offsets = [4, 2], sizes = [20, 20], strides = [1, 1]} : vector<24x24xf32> to vector<20x20xf32>
    %c22 = arith.constant 22 : index
    %393 = memref.load %arg2[%c22] : memref<300xf32, #tpu.memory_space<smem>>
    %394 = vector.broadcast %393 : f32 to vector<20x20xf32>
    %395 = arith.mulf %394, %392 : vector<20x20xf32>
    %396 = arith.addf %379, %395 : vector<20x20xf32>
    %c97 = arith.constant 97 : index
    %397 = memref.load %arg2[%c97] : memref<300xf32, #tpu.memory_space<smem>>
    %398 = vector.broadcast %397 : f32 to vector<20x20xf32>
    %399 = arith.mulf %398, %392 : vector<20x20xf32>
    %400 = arith.addf %383, %399 : vector<20x20xf32>
    %c172 = arith.constant 172 : index
    %401 = memref.load %arg2[%c172] : memref<300xf32, #tpu.memory_space<smem>>
    %402 = vector.broadcast %401 : f32 to vector<20x20xf32>
    %403 = arith.mulf %402, %392 : vector<20x20xf32>
    %404 = arith.addf %387, %403 : vector<20x20xf32>
    %c247 = arith.constant 247 : index
    %405 = memref.load %arg2[%c247] : memref<300xf32, #tpu.memory_space<smem>>
    %406 = vector.broadcast %405 : f32 to vector<20x20xf32>
    %407 = arith.mulf %406, %392 : vector<20x20xf32>
    %408 = arith.addf %391, %407 : vector<20x20xf32>
    %409 = vector.extract_strided_slice %17 {offsets = [4, 3], sizes = [20, 20], strides = [1, 1]} : vector<24x24xf32> to vector<20x20xf32>
    %c23 = arith.constant 23 : index
    %410 = memref.load %arg2[%c23] : memref<300xf32, #tpu.memory_space<smem>>
    %411 = vector.broadcast %410 : f32 to vector<20x20xf32>
    %412 = arith.mulf %411, %409 : vector<20x20xf32>
    %413 = arith.addf %396, %412 : vector<20x20xf32>
    %c98 = arith.constant 98 : index
    %414 = memref.load %arg2[%c98] : memref<300xf32, #tpu.memory_space<smem>>
    %415 = vector.broadcast %414 : f32 to vector<20x20xf32>
    %416 = arith.mulf %415, %409 : vector<20x20xf32>
    %417 = arith.addf %400, %416 : vector<20x20xf32>
    %c173 = arith.constant 173 : index
    %418 = memref.load %arg2[%c173] : memref<300xf32, #tpu.memory_space<smem>>
    %419 = vector.broadcast %418 : f32 to vector<20x20xf32>
    %420 = arith.mulf %419, %409 : vector<20x20xf32>
    %421 = arith.addf %404, %420 : vector<20x20xf32>
    %c248 = arith.constant 248 : index
    %422 = memref.load %arg2[%c248] : memref<300xf32, #tpu.memory_space<smem>>
    %423 = vector.broadcast %422 : f32 to vector<20x20xf32>
    %424 = arith.mulf %423, %409 : vector<20x20xf32>
    %425 = arith.addf %408, %424 : vector<20x20xf32>
    %426 = vector.extract_strided_slice %17 {offsets = [4, 4], sizes = [20, 20], strides = [1, 1]} : vector<24x24xf32> to vector<20x20xf32>
    %c24 = arith.constant 24 : index
    %427 = memref.load %arg2[%c24] : memref<300xf32, #tpu.memory_space<smem>>
    %428 = vector.broadcast %427 : f32 to vector<20x20xf32>
    %429 = arith.mulf %428, %426 : vector<20x20xf32>
    %430 = arith.addf %413, %429 : vector<20x20xf32>
    %c99 = arith.constant 99 : index
    %431 = memref.load %arg2[%c99] : memref<300xf32, #tpu.memory_space<smem>>
    %432 = vector.broadcast %431 : f32 to vector<20x20xf32>
    %433 = arith.mulf %432, %426 : vector<20x20xf32>
    %434 = arith.addf %417, %433 : vector<20x20xf32>
    %c174 = arith.constant 174 : index
    %435 = memref.load %arg2[%c174] : memref<300xf32, #tpu.memory_space<smem>>
    %436 = vector.broadcast %435 : f32 to vector<20x20xf32>
    %437 = arith.mulf %436, %426 : vector<20x20xf32>
    %438 = arith.addf %421, %437 : vector<20x20xf32>
    %c249 = arith.constant 249 : index
    %439 = memref.load %arg2[%c249] : memref<300xf32, #tpu.memory_space<smem>>
    %440 = vector.broadcast %439 : f32 to vector<20x20xf32>
    %441 = arith.mulf %440, %426 : vector<20x20xf32>
    %442 = arith.addf %425, %441 : vector<20x20xf32>
    %c0_11 = arith.constant 0 : index
    %c1_12 = arith.constant 1 : index
    %c0_13 = arith.constant 0 : index
    %c0_14 = arith.constant 0 : index
    %443 = vector.load %arg1[%c0_11, %c1_12, %c0_13, %c0_14] : memref<1x3x24x24xf32, #tpu.memory_space<vmem>>, vector<1x1x24x24xf32>
    %444 = vector.shape_cast %443 : vector<1x1x24x24xf32> to vector<24x24xf32>
    %445 = vector.extract_strided_slice %444 {offsets = [0, 0], sizes = [20, 20], strides = [1, 1]} : vector<24x24xf32> to vector<20x20xf32>
    %c25 = arith.constant 25 : index
    %446 = memref.load %arg2[%c25] : memref<300xf32, #tpu.memory_space<smem>>
    %447 = vector.broadcast %446 : f32 to vector<20x20xf32>
    %448 = arith.mulf %447, %445 : vector<20x20xf32>
    %449 = arith.addf %430, %448 : vector<20x20xf32>
    %c100 = arith.constant 100 : index
    %450 = memref.load %arg2[%c100] : memref<300xf32, #tpu.memory_space<smem>>
    %451 = vector.broadcast %450 : f32 to vector<20x20xf32>
    %452 = arith.mulf %451, %445 : vector<20x20xf32>
    %453 = arith.addf %434, %452 : vector<20x20xf32>
    %c175 = arith.constant 175 : index
    %454 = memref.load %arg2[%c175] : memref<300xf32, #tpu.memory_space<smem>>
    %455 = vector.broadcast %454 : f32 to vector<20x20xf32>
    %456 = arith.mulf %455, %445 : vector<20x20xf32>
    %457 = arith.addf %438, %456 : vector<20x20xf32>
    %c250 = arith.constant 250 : index
    %458 = memref.load %arg2[%c250] : memref<300xf32, #tpu.memory_space<smem>>
    %459 = vector.broadcast %458 : f32 to vector<20x20xf32>
    %460 = arith.mulf %459, %445 : vector<20x20xf32>
    %461 = arith.addf %442, %460 : vector<20x20xf32>
    %462 = vector.extract_strided_slice %444 {offsets = [0, 1], sizes = [20, 20], strides = [1, 1]} : vector<24x24xf32> to vector<20x20xf32>
    %c26 = arith.constant 26 : index
    %463 = memref.load %arg2[%c26] : memref<300xf32, #tpu.memory_space<smem>>
    %464 = vector.broadcast %463 : f32 to vector<20x20xf32>
    %465 = arith.mulf %464, %462 : vector<20x20xf32>
    %466 = arith.addf %449, %465 : vector<20x20xf32>
    %c101 = arith.constant 101 : index
    %467 = memref.load %arg2[%c101] : memref<300xf32, #tpu.memory_space<smem>>
    %468 = vector.broadcast %467 : f32 to vector<20x20xf32>
    %469 = arith.mulf %468, %462 : vector<20x20xf32>
    %470 = arith.addf %453, %469 : vector<20x20xf32>
    %c176 = arith.constant 176 : index
    %471 = memref.load %arg2[%c176] : memref<300xf32, #tpu.memory_space<smem>>
    %472 = vector.broadcast %471 : f32 to vector<20x20xf32>
    %473 = arith.mulf %472, %462 : vector<20x20xf32>
    %474 = arith.addf %457, %473 : vector<20x20xf32>
    %c251 = arith.constant 251 : index
    %475 = memref.load %arg2[%c251] : memref<300xf32, #tpu.memory_space<smem>>
    %476 = vector.broadcast %475 : f32 to vector<20x20xf32>
    %477 = arith.mulf %476, %462 : vector<20x20xf32>
    %478 = arith.addf %461, %477 : vector<20x20xf32>
    %479 = vector.extract_strided_slice %444 {offsets = [0, 2], sizes = [20, 20], strides = [1, 1]} : vector<24x24xf32> to vector<20x20xf32>
    %c27 = arith.constant 27 : index
    %480 = memref.load %arg2[%c27] : memref<300xf32, #tpu.memory_space<smem>>
    %481 = vector.broadcast %480 : f32 to vector<20x20xf32>
    %482 = arith.mulf %481, %479 : vector<20x20xf32>
    %483 = arith.addf %466, %482 : vector<20x20xf32>
    %c102 = arith.constant 102 : index
    %484 = memref.load %arg2[%c102] : memref<300xf32, #tpu.memory_space<smem>>
    %485 = vector.broadcast %484 : f32 to vector<20x20xf32>
    %486 = arith.mulf %485, %479 : vector<20x20xf32>
    %487 = arith.addf %470, %486 : vector<20x20xf32>
    %c177 = arith.constant 177 : index
    %488 = memref.load %arg2[%c177] : memref<300xf32, #tpu.memory_space<smem>>
    %489 = vector.broadcast %488 : f32 to vector<20x20xf32>
    %490 = arith.mulf %489, %479 : vector<20x20xf32>
    %491 = arith.addf %474, %490 : vector<20x20xf32>
    %c252 = arith.constant 252 : index
    %492 = memref.load %arg2[%c252] : memref<300xf32, #tpu.memory_space<smem>>
    %493 = vector.broadcast %492 : f32 to vector<20x20xf32>
    %494 = arith.mulf %493, %479 : vector<20x20xf32>
    %495 = arith.addf %478, %494 : vector<20x20xf32>
    %496 = vector.extract_strided_slice %444 {offsets = [0, 3], sizes = [20, 20], strides = [1, 1]} : vector<24x24xf32> to vector<20x20xf32>
    %c28 = arith.constant 28 : index
    %497 = memref.load %arg2[%c28] : memref<300xf32, #tpu.memory_space<smem>>
    %498 = vector.broadcast %497 : f32 to vector<20x20xf32>
    %499 = arith.mulf %498, %496 : vector<20x20xf32>
    %500 = arith.addf %483, %499 : vector<20x20xf32>
    %c103 = arith.constant 103 : index
    %501 = memref.load %arg2[%c103] : memref<300xf32, #tpu.memory_space<smem>>
    %502 = vector.broadcast %501 : f32 to vector<20x20xf32>
    %503 = arith.mulf %502, %496 : vector<20x20xf32>
    %504 = arith.addf %487, %503 : vector<20x20xf32>
    %c178 = arith.constant 178 : index
    %505 = memref.load %arg2[%c178] : memref<300xf32, #tpu.memory_space<smem>>
    %506 = vector.broadcast %505 : f32 to vector<20x20xf32>
    %507 = arith.mulf %506, %496 : vector<20x20xf32>
    %508 = arith.addf %491, %507 : vector<20x20xf32>
    %c253 = arith.constant 253 : index
    %509 = memref.load %arg2[%c253] : memref<300xf32, #tpu.memory_space<smem>>
    %510 = vector.broadcast %509 : f32 to vector<20x20xf32>
    %511 = arith.mulf %510, %496 : vector<20x20xf32>
    %512 = arith.addf %495, %511 : vector<20x20xf32>
    %513 = vector.extract_strided_slice %444 {offsets = [0, 4], sizes = [20, 20], strides = [1, 1]} : vector<24x24xf32> to vector<20x20xf32>
    %c29 = arith.constant 29 : index
    %514 = memref.load %arg2[%c29] : memref<300xf32, #tpu.memory_space<smem>>
    %515 = vector.broadcast %514 : f32 to vector<20x20xf32>
    %516 = arith.mulf %515, %513 : vector<20x20xf32>
    %517 = arith.addf %500, %516 : vector<20x20xf32>
    %c104 = arith.constant 104 : index
    %518 = memref.load %arg2[%c104] : memref<300xf32, #tpu.memory_space<smem>>
    %519 = vector.broadcast %518 : f32 to vector<20x20xf32>
    %520 = arith.mulf %519, %513 : vector<20x20xf32>
    %521 = arith.addf %504, %520 : vector<20x20xf32>
    %c179 = arith.constant 179 : index
    %522 = memref.load %arg2[%c179] : memref<300xf32, #tpu.memory_space<smem>>
    %523 = vector.broadcast %522 : f32 to vector<20x20xf32>
    %524 = arith.mulf %523, %513 : vector<20x20xf32>
    %525 = arith.addf %508, %524 : vector<20x20xf32>
    %c254 = arith.constant 254 : index
    %526 = memref.load %arg2[%c254] : memref<300xf32, #tpu.memory_space<smem>>
    %527 = vector.broadcast %526 : f32 to vector<20x20xf32>
    %528 = arith.mulf %527, %513 : vector<20x20xf32>
    %529 = arith.addf %512, %528 : vector<20x20xf32>
    %530 = vector.extract_strided_slice %444 {offsets = [1, 0], sizes = [20, 20], strides = [1, 1]} : vector<24x24xf32> to vector<20x20xf32>
    %c30 = arith.constant 30 : index
    %531 = memref.load %arg2[%c30] : memref<300xf32, #tpu.memory_space<smem>>
    %532 = vector.broadcast %531 : f32 to vector<20x20xf32>
    %533 = arith.mulf %532, %530 : vector<20x20xf32>
    %534 = arith.addf %517, %533 : vector<20x20xf32>
    %c105 = arith.constant 105 : index
    %535 = memref.load %arg2[%c105] : memref<300xf32, #tpu.memory_space<smem>>
    %536 = vector.broadcast %535 : f32 to vector<20x20xf32>
    %537 = arith.mulf %536, %530 : vector<20x20xf32>
    %538 = arith.addf %521, %537 : vector<20x20xf32>
    %c180 = arith.constant 180 : index
    %539 = memref.load %arg2[%c180] : memref<300xf32, #tpu.memory_space<smem>>
    %540 = vector.broadcast %539 : f32 to vector<20x20xf32>
    %541 = arith.mulf %540, %530 : vector<20x20xf32>
    %542 = arith.addf %525, %541 : vector<20x20xf32>
    %c255 = arith.constant 255 : index
    %543 = memref.load %arg2[%c255] : memref<300xf32, #tpu.memory_space<smem>>
    %544 = vector.broadcast %543 : f32 to vector<20x20xf32>
    %545 = arith.mulf %544, %530 : vector<20x20xf32>
    %546 = arith.addf %529, %545 : vector<20x20xf32>
    %547 = vector.extract_strided_slice %444 {offsets = [1, 1], sizes = [20, 20], strides = [1, 1]} : vector<24x24xf32> to vector<20x20xf32>
    %c31 = arith.constant 31 : index
    %548 = memref.load %arg2[%c31] : memref<300xf32, #tpu.memory_space<smem>>
    %549 = vector.broadcast %548 : f32 to vector<20x20xf32>
    %550 = arith.mulf %549, %547 : vector<20x20xf32>
    %551 = arith.addf %534, %550 : vector<20x20xf32>
    %c106 = arith.constant 106 : index
    %552 = memref.load %arg2[%c106] : memref<300xf32, #tpu.memory_space<smem>>
    %553 = vector.broadcast %552 : f32 to vector<20x20xf32>
    %554 = arith.mulf %553, %547 : vector<20x20xf32>
    %555 = arith.addf %538, %554 : vector<20x20xf32>
    %c181 = arith.constant 181 : index
    %556 = memref.load %arg2[%c181] : memref<300xf32, #tpu.memory_space<smem>>
    %557 = vector.broadcast %556 : f32 to vector<20x20xf32>
    %558 = arith.mulf %557, %547 : vector<20x20xf32>
    %559 = arith.addf %542, %558 : vector<20x20xf32>
    %c256 = arith.constant 256 : index
    %560 = memref.load %arg2[%c256] : memref<300xf32, #tpu.memory_space<smem>>
    %561 = vector.broadcast %560 : f32 to vector<20x20xf32>
    %562 = arith.mulf %561, %547 : vector<20x20xf32>
    %563 = arith.addf %546, %562 : vector<20x20xf32>
    %564 = vector.extract_strided_slice %444 {offsets = [1, 2], sizes = [20, 20], strides = [1, 1]} : vector<24x24xf32> to vector<20x20xf32>
    %c32 = arith.constant 32 : index
    %565 = memref.load %arg2[%c32] : memref<300xf32, #tpu.memory_space<smem>>
    %566 = vector.broadcast %565 : f32 to vector<20x20xf32>
    %567 = arith.mulf %566, %564 : vector<20x20xf32>
    %568 = arith.addf %551, %567 : vector<20x20xf32>
    %c107 = arith.constant 107 : index
    %569 = memref.load %arg2[%c107] : memref<300xf32, #tpu.memory_space<smem>>
    %570 = vector.broadcast %569 : f32 to vector<20x20xf32>
    %571 = arith.mulf %570, %564 : vector<20x20xf32>
    %572 = arith.addf %555, %571 : vector<20x20xf32>
    %c182 = arith.constant 182 : index
    %573 = memref.load %arg2[%c182] : memref<300xf32, #tpu.memory_space<smem>>
    %574 = vector.broadcast %573 : f32 to vector<20x20xf32>
    %575 = arith.mulf %574, %564 : vector<20x20xf32>
    %576 = arith.addf %559, %575 : vector<20x20xf32>
    %c257 = arith.constant 257 : index
    %577 = memref.load %arg2[%c257] : memref<300xf32, #tpu.memory_space<smem>>
    %578 = vector.broadcast %577 : f32 to vector<20x20xf32>
    %579 = arith.mulf %578, %564 : vector<20x20xf32>
    %580 = arith.addf %563, %579 : vector<20x20xf32>
    %581 = vector.extract_strided_slice %444 {offsets = [1, 3], sizes = [20, 20], strides = [1, 1]} : vector<24x24xf32> to vector<20x20xf32>
    %c33 = arith.constant 33 : index
    %582 = memref.load %arg2[%c33] : memref<300xf32, #tpu.memory_space<smem>>
    %583 = vector.broadcast %582 : f32 to vector<20x20xf32>
    %584 = arith.mulf %583, %581 : vector<20x20xf32>
    %585 = arith.addf %568, %584 : vector<20x20xf32>
    %c108 = arith.constant 108 : index
    %586 = memref.load %arg2[%c108] : memref<300xf32, #tpu.memory_space<smem>>
    %587 = vector.broadcast %586 : f32 to vector<20x20xf32>
    %588 = arith.mulf %587, %581 : vector<20x20xf32>
    %589 = arith.addf %572, %588 : vector<20x20xf32>
    %c183 = arith.constant 183 : index
    %590 = memref.load %arg2[%c183] : memref<300xf32, #tpu.memory_space<smem>>
    %591 = vector.broadcast %590 : f32 to vector<20x20xf32>
    %592 = arith.mulf %591, %581 : vector<20x20xf32>
    %593 = arith.addf %576, %592 : vector<20x20xf32>
    %c258 = arith.constant 258 : index
    %594 = memref.load %arg2[%c258] : memref<300xf32, #tpu.memory_space<smem>>
    %595 = vector.broadcast %594 : f32 to vector<20x20xf32>
    %596 = arith.mulf %595, %581 : vector<20x20xf32>
    %597 = arith.addf %580, %596 : vector<20x20xf32>
    %598 = vector.extract_strided_slice %444 {offsets = [1, 4], sizes = [20, 20], strides = [1, 1]} : vector<24x24xf32> to vector<20x20xf32>
    %c34 = arith.constant 34 : index
    %599 = memref.load %arg2[%c34] : memref<300xf32, #tpu.memory_space<smem>>
    %600 = vector.broadcast %599 : f32 to vector<20x20xf32>
    %601 = arith.mulf %600, %598 : vector<20x20xf32>
    %602 = arith.addf %585, %601 : vector<20x20xf32>
    %c109 = arith.constant 109 : index
    %603 = memref.load %arg2[%c109] : memref<300xf32, #tpu.memory_space<smem>>
    %604 = vector.broadcast %603 : f32 to vector<20x20xf32>
    %605 = arith.mulf %604, %598 : vector<20x20xf32>
    %606 = arith.addf %589, %605 : vector<20x20xf32>
    %c184 = arith.constant 184 : index
    %607 = memref.load %arg2[%c184] : memref<300xf32, #tpu.memory_space<smem>>
    %608 = vector.broadcast %607 : f32 to vector<20x20xf32>
    %609 = arith.mulf %608, %598 : vector<20x20xf32>
    %610 = arith.addf %593, %609 : vector<20x20xf32>
    %c259 = arith.constant 259 : index
    %611 = memref.load %arg2[%c259] : memref<300xf32, #tpu.memory_space<smem>>
    %612 = vector.broadcast %611 : f32 to vector<20x20xf32>
    %613 = arith.mulf %612, %598 : vector<20x20xf32>
    %614 = arith.addf %597, %613 : vector<20x20xf32>
    %615 = vector.extract_strided_slice %444 {offsets = [2, 0], sizes = [20, 20], strides = [1, 1]} : vector<24x24xf32> to vector<20x20xf32>
    %c35 = arith.constant 35 : index
    %616 = memref.load %arg2[%c35] : memref<300xf32, #tpu.memory_space<smem>>
    %617 = vector.broadcast %616 : f32 to vector<20x20xf32>
    %618 = arith.mulf %617, %615 : vector<20x20xf32>
    %619 = arith.addf %602, %618 : vector<20x20xf32>
    %c110 = arith.constant 110 : index
    %620 = memref.load %arg2[%c110] : memref<300xf32, #tpu.memory_space<smem>>
    %621 = vector.broadcast %620 : f32 to vector<20x20xf32>
    %622 = arith.mulf %621, %615 : vector<20x20xf32>
    %623 = arith.addf %606, %622 : vector<20x20xf32>
    %c185 = arith.constant 185 : index
    %624 = memref.load %arg2[%c185] : memref<300xf32, #tpu.memory_space<smem>>
    %625 = vector.broadcast %624 : f32 to vector<20x20xf32>
    %626 = arith.mulf %625, %615 : vector<20x20xf32>
    %627 = arith.addf %610, %626 : vector<20x20xf32>
    %c260 = arith.constant 260 : index
    %628 = memref.load %arg2[%c260] : memref<300xf32, #tpu.memory_space<smem>>
    %629 = vector.broadcast %628 : f32 to vector<20x20xf32>
    %630 = arith.mulf %629, %615 : vector<20x20xf32>
    %631 = arith.addf %614, %630 : vector<20x20xf32>
    %632 = vector.extract_strided_slice %444 {offsets = [2, 1], sizes = [20, 20], strides = [1, 1]} : vector<24x24xf32> to vector<20x20xf32>
    %c36 = arith.constant 36 : index
    %633 = memref.load %arg2[%c36] : memref<300xf32, #tpu.memory_space<smem>>
    %634 = vector.broadcast %633 : f32 to vector<20x20xf32>
    %635 = arith.mulf %634, %632 : vector<20x20xf32>
    %636 = arith.addf %619, %635 : vector<20x20xf32>
    %c111 = arith.constant 111 : index
    %637 = memref.load %arg2[%c111] : memref<300xf32, #tpu.memory_space<smem>>
    %638 = vector.broadcast %637 : f32 to vector<20x20xf32>
    %639 = arith.mulf %638, %632 : vector<20x20xf32>
    %640 = arith.addf %623, %639 : vector<20x20xf32>
    %c186 = arith.constant 186 : index
    %641 = memref.load %arg2[%c186] : memref<300xf32, #tpu.memory_space<smem>>
    %642 = vector.broadcast %641 : f32 to vector<20x20xf32>
    %643 = arith.mulf %642, %632 : vector<20x20xf32>
    %644 = arith.addf %627, %643 : vector<20x20xf32>
    %c261 = arith.constant 261 : index
    %645 = memref.load %arg2[%c261] : memref<300xf32, #tpu.memory_space<smem>>
    %646 = vector.broadcast %645 : f32 to vector<20x20xf32>
    %647 = arith.mulf %646, %632 : vector<20x20xf32>
    %648 = arith.addf %631, %647 : vector<20x20xf32>
    %649 = vector.extract_strided_slice %444 {offsets = [2, 2], sizes = [20, 20], strides = [1, 1]} : vector<24x24xf32> to vector<20x20xf32>
    %c37 = arith.constant 37 : index
    %650 = memref.load %arg2[%c37] : memref<300xf32, #tpu.memory_space<smem>>
    %651 = vector.broadcast %650 : f32 to vector<20x20xf32>
    %652 = arith.mulf %651, %649 : vector<20x20xf32>
    %653 = arith.addf %636, %652 : vector<20x20xf32>
    %c112 = arith.constant 112 : index
    %654 = memref.load %arg2[%c112] : memref<300xf32, #tpu.memory_space<smem>>
    %655 = vector.broadcast %654 : f32 to vector<20x20xf32>
    %656 = arith.mulf %655, %649 : vector<20x20xf32>
    %657 = arith.addf %640, %656 : vector<20x20xf32>
    %c187 = arith.constant 187 : index
    %658 = memref.load %arg2[%c187] : memref<300xf32, #tpu.memory_space<smem>>
    %659 = vector.broadcast %658 : f32 to vector<20x20xf32>
    %660 = arith.mulf %659, %649 : vector<20x20xf32>
    %661 = arith.addf %644, %660 : vector<20x20xf32>
    %c262 = arith.constant 262 : index
    %662 = memref.load %arg2[%c262] : memref<300xf32, #tpu.memory_space<smem>>
    %663 = vector.broadcast %662 : f32 to vector<20x20xf32>
    %664 = arith.mulf %663, %649 : vector<20x20xf32>
    %665 = arith.addf %648, %664 : vector<20x20xf32>
    %666 = vector.extract_strided_slice %444 {offsets = [2, 3], sizes = [20, 20], strides = [1, 1]} : vector<24x24xf32> to vector<20x20xf32>
    %c38 = arith.constant 38 : index
    %667 = memref.load %arg2[%c38] : memref<300xf32, #tpu.memory_space<smem>>
    %668 = vector.broadcast %667 : f32 to vector<20x20xf32>
    %669 = arith.mulf %668, %666 : vector<20x20xf32>
    %670 = arith.addf %653, %669 : vector<20x20xf32>
    %c113 = arith.constant 113 : index
    %671 = memref.load %arg2[%c113] : memref<300xf32, #tpu.memory_space<smem>>
    %672 = vector.broadcast %671 : f32 to vector<20x20xf32>
    %673 = arith.mulf %672, %666 : vector<20x20xf32>
    %674 = arith.addf %657, %673 : vector<20x20xf32>
    %c188 = arith.constant 188 : index
    %675 = memref.load %arg2[%c188] : memref<300xf32, #tpu.memory_space<smem>>
    %676 = vector.broadcast %675 : f32 to vector<20x20xf32>
    %677 = arith.mulf %676, %666 : vector<20x20xf32>
    %678 = arith.addf %661, %677 : vector<20x20xf32>
    %c263 = arith.constant 263 : index
    %679 = memref.load %arg2[%c263] : memref<300xf32, #tpu.memory_space<smem>>
    %680 = vector.broadcast %679 : f32 to vector<20x20xf32>
    %681 = arith.mulf %680, %666 : vector<20x20xf32>
    %682 = arith.addf %665, %681 : vector<20x20xf32>
    %683 = vector.extract_strided_slice %444 {offsets = [2, 4], sizes = [20, 20], strides = [1, 1]} : vector<24x24xf32> to vector<20x20xf32>
    %c39 = arith.constant 39 : index
    %684 = memref.load %arg2[%c39] : memref<300xf32, #tpu.memory_space<smem>>
    %685 = vector.broadcast %684 : f32 to vector<20x20xf32>
    %686 = arith.mulf %685, %683 : vector<20x20xf32>
    %687 = arith.addf %670, %686 : vector<20x20xf32>
    %c114 = arith.constant 114 : index
    %688 = memref.load %arg2[%c114] : memref<300xf32, #tpu.memory_space<smem>>
    %689 = vector.broadcast %688 : f32 to vector<20x20xf32>
    %690 = arith.mulf %689, %683 : vector<20x20xf32>
    %691 = arith.addf %674, %690 : vector<20x20xf32>
    %c189 = arith.constant 189 : index
    %692 = memref.load %arg2[%c189] : memref<300xf32, #tpu.memory_space<smem>>
    %693 = vector.broadcast %692 : f32 to vector<20x20xf32>
    %694 = arith.mulf %693, %683 : vector<20x20xf32>
    %695 = arith.addf %678, %694 : vector<20x20xf32>
    %c264 = arith.constant 264 : index
    %696 = memref.load %arg2[%c264] : memref<300xf32, #tpu.memory_space<smem>>
    %697 = vector.broadcast %696 : f32 to vector<20x20xf32>
    %698 = arith.mulf %697, %683 : vector<20x20xf32>
    %699 = arith.addf %682, %698 : vector<20x20xf32>
    %700 = vector.extract_strided_slice %444 {offsets = [3, 0], sizes = [20, 20], strides = [1, 1]} : vector<24x24xf32> to vector<20x20xf32>
    %c40 = arith.constant 40 : index
    %701 = memref.load %arg2[%c40] : memref<300xf32, #tpu.memory_space<smem>>
    %702 = vector.broadcast %701 : f32 to vector<20x20xf32>
    %703 = arith.mulf %702, %700 : vector<20x20xf32>
    %704 = arith.addf %687, %703 : vector<20x20xf32>
    %c115 = arith.constant 115 : index
    %705 = memref.load %arg2[%c115] : memref<300xf32, #tpu.memory_space<smem>>
    %706 = vector.broadcast %705 : f32 to vector<20x20xf32>
    %707 = arith.mulf %706, %700 : vector<20x20xf32>
    %708 = arith.addf %691, %707 : vector<20x20xf32>
    %c190 = arith.constant 190 : index
    %709 = memref.load %arg2[%c190] : memref<300xf32, #tpu.memory_space<smem>>
    %710 = vector.broadcast %709 : f32 to vector<20x20xf32>
    %711 = arith.mulf %710, %700 : vector<20x20xf32>
    %712 = arith.addf %695, %711 : vector<20x20xf32>
    %c265 = arith.constant 265 : index
    %713 = memref.load %arg2[%c265] : memref<300xf32, #tpu.memory_space<smem>>
    %714 = vector.broadcast %713 : f32 to vector<20x20xf32>
    %715 = arith.mulf %714, %700 : vector<20x20xf32>
    %716 = arith.addf %699, %715 : vector<20x20xf32>
    %717 = vector.extract_strided_slice %444 {offsets = [3, 1], sizes = [20, 20], strides = [1, 1]} : vector<24x24xf32> to vector<20x20xf32>
    %c41 = arith.constant 41 : index
    %718 = memref.load %arg2[%c41] : memref<300xf32, #tpu.memory_space<smem>>
    %719 = vector.broadcast %718 : f32 to vector<20x20xf32>
    %720 = arith.mulf %719, %717 : vector<20x20xf32>
    %721 = arith.addf %704, %720 : vector<20x20xf32>
    %c116 = arith.constant 116 : index
    %722 = memref.load %arg2[%c116] : memref<300xf32, #tpu.memory_space<smem>>
    %723 = vector.broadcast %722 : f32 to vector<20x20xf32>
    %724 = arith.mulf %723, %717 : vector<20x20xf32>
    %725 = arith.addf %708, %724 : vector<20x20xf32>
    %c191 = arith.constant 191 : index
    %726 = memref.load %arg2[%c191] : memref<300xf32, #tpu.memory_space<smem>>
    %727 = vector.broadcast %726 : f32 to vector<20x20xf32>
    %728 = arith.mulf %727, %717 : vector<20x20xf32>
    %729 = arith.addf %712, %728 : vector<20x20xf32>
    %c266 = arith.constant 266 : index
    %730 = memref.load %arg2[%c266] : memref<300xf32, #tpu.memory_space<smem>>
    %731 = vector.broadcast %730 : f32 to vector<20x20xf32>
    %732 = arith.mulf %731, %717 : vector<20x20xf32>
    %733 = arith.addf %716, %732 : vector<20x20xf32>
    %734 = vector.extract_strided_slice %444 {offsets = [3, 2], sizes = [20, 20], strides = [1, 1]} : vector<24x24xf32> to vector<20x20xf32>
    %c42 = arith.constant 42 : index
    %735 = memref.load %arg2[%c42] : memref<300xf32, #tpu.memory_space<smem>>
    %736 = vector.broadcast %735 : f32 to vector<20x20xf32>
    %737 = arith.mulf %736, %734 : vector<20x20xf32>
    %738 = arith.addf %721, %737 : vector<20x20xf32>
    %c117 = arith.constant 117 : index
    %739 = memref.load %arg2[%c117] : memref<300xf32, #tpu.memory_space<smem>>
    %740 = vector.broadcast %739 : f32 to vector<20x20xf32>
    %741 = arith.mulf %740, %734 : vector<20x20xf32>
    %742 = arith.addf %725, %741 : vector<20x20xf32>
    %c192 = arith.constant 192 : index
    %743 = memref.load %arg2[%c192] : memref<300xf32, #tpu.memory_space<smem>>
    %744 = vector.broadcast %743 : f32 to vector<20x20xf32>
    %745 = arith.mulf %744, %734 : vector<20x20xf32>
    %746 = arith.addf %729, %745 : vector<20x20xf32>
    %c267 = arith.constant 267 : index
    %747 = memref.load %arg2[%c267] : memref<300xf32, #tpu.memory_space<smem>>
    %748 = vector.broadcast %747 : f32 to vector<20x20xf32>
    %749 = arith.mulf %748, %734 : vector<20x20xf32>
    %750 = arith.addf %733, %749 : vector<20x20xf32>
    %751 = vector.extract_strided_slice %444 {offsets = [3, 3], sizes = [20, 20], strides = [1, 1]} : vector<24x24xf32> to vector<20x20xf32>
    %c43 = arith.constant 43 : index
    %752 = memref.load %arg2[%c43] : memref<300xf32, #tpu.memory_space<smem>>
    %753 = vector.broadcast %752 : f32 to vector<20x20xf32>
    %754 = arith.mulf %753, %751 : vector<20x20xf32>
    %755 = arith.addf %738, %754 : vector<20x20xf32>
    %c118 = arith.constant 118 : index
    %756 = memref.load %arg2[%c118] : memref<300xf32, #tpu.memory_space<smem>>
    %757 = vector.broadcast %756 : f32 to vector<20x20xf32>
    %758 = arith.mulf %757, %751 : vector<20x20xf32>
    %759 = arith.addf %742, %758 : vector<20x20xf32>
    %c193 = arith.constant 193 : index
    %760 = memref.load %arg2[%c193] : memref<300xf32, #tpu.memory_space<smem>>
    %761 = vector.broadcast %760 : f32 to vector<20x20xf32>
    %762 = arith.mulf %761, %751 : vector<20x20xf32>
    %763 = arith.addf %746, %762 : vector<20x20xf32>
    %c268 = arith.constant 268 : index
    %764 = memref.load %arg2[%c268] : memref<300xf32, #tpu.memory_space<smem>>
    %765 = vector.broadcast %764 : f32 to vector<20x20xf32>
    %766 = arith.mulf %765, %751 : vector<20x20xf32>
    %767 = arith.addf %750, %766 : vector<20x20xf32>
    %768 = vector.extract_strided_slice %444 {offsets = [3, 4], sizes = [20, 20], strides = [1, 1]} : vector<24x24xf32> to vector<20x20xf32>
    %c44 = arith.constant 44 : index
    %769 = memref.load %arg2[%c44] : memref<300xf32, #tpu.memory_space<smem>>
    %770 = vector.broadcast %769 : f32 to vector<20x20xf32>
    %771 = arith.mulf %770, %768 : vector<20x20xf32>
    %772 = arith.addf %755, %771 : vector<20x20xf32>
    %c119 = arith.constant 119 : index
    %773 = memref.load %arg2[%c119] : memref<300xf32, #tpu.memory_space<smem>>
    %774 = vector.broadcast %773 : f32 to vector<20x20xf32>
    %775 = arith.mulf %774, %768 : vector<20x20xf32>
    %776 = arith.addf %759, %775 : vector<20x20xf32>
    %c194 = arith.constant 194 : index
    %777 = memref.load %arg2[%c194] : memref<300xf32, #tpu.memory_space<smem>>
    %778 = vector.broadcast %777 : f32 to vector<20x20xf32>
    %779 = arith.mulf %778, %768 : vector<20x20xf32>
    %780 = arith.addf %763, %779 : vector<20x20xf32>
    %c269 = arith.constant 269 : index
    %781 = memref.load %arg2[%c269] : memref<300xf32, #tpu.memory_space<smem>>
    %782 = vector.broadcast %781 : f32 to vector<20x20xf32>
    %783 = arith.mulf %782, %768 : vector<20x20xf32>
    %784 = arith.addf %767, %783 : vector<20x20xf32>
    %785 = vector.extract_strided_slice %444 {offsets = [4, 0], sizes = [20, 20], strides = [1, 1]} : vector<24x24xf32> to vector<20x20xf32>
    %c45 = arith.constant 45 : index
    %786 = memref.load %arg2[%c45] : memref<300xf32, #tpu.memory_space<smem>>
    %787 = vector.broadcast %786 : f32 to vector<20x20xf32>
    %788 = arith.mulf %787, %785 : vector<20x20xf32>
    %789 = arith.addf %772, %788 : vector<20x20xf32>
    %c120 = arith.constant 120 : index
    %790 = memref.load %arg2[%c120] : memref<300xf32, #tpu.memory_space<smem>>
    %791 = vector.broadcast %790 : f32 to vector<20x20xf32>
    %792 = arith.mulf %791, %785 : vector<20x20xf32>
    %793 = arith.addf %776, %792 : vector<20x20xf32>
    %c195 = arith.constant 195 : index
    %794 = memref.load %arg2[%c195] : memref<300xf32, #tpu.memory_space<smem>>
    %795 = vector.broadcast %794 : f32 to vector<20x20xf32>
    %796 = arith.mulf %795, %785 : vector<20x20xf32>
    %797 = arith.addf %780, %796 : vector<20x20xf32>
    %c270 = arith.constant 270 : index
    %798 = memref.load %arg2[%c270] : memref<300xf32, #tpu.memory_space<smem>>
    %799 = vector.broadcast %798 : f32 to vector<20x20xf32>
    %800 = arith.mulf %799, %785 : vector<20x20xf32>
    %801 = arith.addf %784, %800 : vector<20x20xf32>
    %802 = vector.extract_strided_slice %444 {offsets = [4, 1], sizes = [20, 20], strides = [1, 1]} : vector<24x24xf32> to vector<20x20xf32>
    %c46 = arith.constant 46 : index
    %803 = memref.load %arg2[%c46] : memref<300xf32, #tpu.memory_space<smem>>
    %804 = vector.broadcast %803 : f32 to vector<20x20xf32>
    %805 = arith.mulf %804, %802 : vector<20x20xf32>
    %806 = arith.addf %789, %805 : vector<20x20xf32>
    %c121 = arith.constant 121 : index
    %807 = memref.load %arg2[%c121] : memref<300xf32, #tpu.memory_space<smem>>
    %808 = vector.broadcast %807 : f32 to vector<20x20xf32>
    %809 = arith.mulf %808, %802 : vector<20x20xf32>
    %810 = arith.addf %793, %809 : vector<20x20xf32>
    %c196 = arith.constant 196 : index
    %811 = memref.load %arg2[%c196] : memref<300xf32, #tpu.memory_space<smem>>
    %812 = vector.broadcast %811 : f32 to vector<20x20xf32>
    %813 = arith.mulf %812, %802 : vector<20x20xf32>
    %814 = arith.addf %797, %813 : vector<20x20xf32>
    %c271 = arith.constant 271 : index
    %815 = memref.load %arg2[%c271] : memref<300xf32, #tpu.memory_space<smem>>
    %816 = vector.broadcast %815 : f32 to vector<20x20xf32>
    %817 = arith.mulf %816, %802 : vector<20x20xf32>
    %818 = arith.addf %801, %817 : vector<20x20xf32>
    %819 = vector.extract_strided_slice %444 {offsets = [4, 2], sizes = [20, 20], strides = [1, 1]} : vector<24x24xf32> to vector<20x20xf32>
    %c47 = arith.constant 47 : index
    %820 = memref.load %arg2[%c47] : memref<300xf32, #tpu.memory_space<smem>>
    %821 = vector.broadcast %820 : f32 to vector<20x20xf32>
    %822 = arith.mulf %821, %819 : vector<20x20xf32>
    %823 = arith.addf %806, %822 : vector<20x20xf32>
    %c122 = arith.constant 122 : index
    %824 = memref.load %arg2[%c122] : memref<300xf32, #tpu.memory_space<smem>>
    %825 = vector.broadcast %824 : f32 to vector<20x20xf32>
    %826 = arith.mulf %825, %819 : vector<20x20xf32>
    %827 = arith.addf %810, %826 : vector<20x20xf32>
    %c197 = arith.constant 197 : index
    %828 = memref.load %arg2[%c197] : memref<300xf32, #tpu.memory_space<smem>>
    %829 = vector.broadcast %828 : f32 to vector<20x20xf32>
    %830 = arith.mulf %829, %819 : vector<20x20xf32>
    %831 = arith.addf %814, %830 : vector<20x20xf32>
    %c272 = arith.constant 272 : index
    %832 = memref.load %arg2[%c272] : memref<300xf32, #tpu.memory_space<smem>>
    %833 = vector.broadcast %832 : f32 to vector<20x20xf32>
    %834 = arith.mulf %833, %819 : vector<20x20xf32>
    %835 = arith.addf %818, %834 : vector<20x20xf32>
    %836 = vector.extract_strided_slice %444 {offsets = [4, 3], sizes = [20, 20], strides = [1, 1]} : vector<24x24xf32> to vector<20x20xf32>
    %c48 = arith.constant 48 : index
    %837 = memref.load %arg2[%c48] : memref<300xf32, #tpu.memory_space<smem>>
    %838 = vector.broadcast %837 : f32 to vector<20x20xf32>
    %839 = arith.mulf %838, %836 : vector<20x20xf32>
    %840 = arith.addf %823, %839 : vector<20x20xf32>
    %c123 = arith.constant 123 : index
    %841 = memref.load %arg2[%c123] : memref<300xf32, #tpu.memory_space<smem>>
    %842 = vector.broadcast %841 : f32 to vector<20x20xf32>
    %843 = arith.mulf %842, %836 : vector<20x20xf32>
    %844 = arith.addf %827, %843 : vector<20x20xf32>
    %c198 = arith.constant 198 : index
    %845 = memref.load %arg2[%c198] : memref<300xf32, #tpu.memory_space<smem>>
    %846 = vector.broadcast %845 : f32 to vector<20x20xf32>
    %847 = arith.mulf %846, %836 : vector<20x20xf32>
    %848 = arith.addf %831, %847 : vector<20x20xf32>
    %c273 = arith.constant 273 : index
    %849 = memref.load %arg2[%c273] : memref<300xf32, #tpu.memory_space<smem>>
    %850 = vector.broadcast %849 : f32 to vector<20x20xf32>
    %851 = arith.mulf %850, %836 : vector<20x20xf32>
    %852 = arith.addf %835, %851 : vector<20x20xf32>
    %853 = vector.extract_strided_slice %444 {offsets = [4, 4], sizes = [20, 20], strides = [1, 1]} : vector<24x24xf32> to vector<20x20xf32>
    %c49 = arith.constant 49 : index
    %854 = memref.load %arg2[%c49] : memref<300xf32, #tpu.memory_space<smem>>
    %855 = vector.broadcast %854 : f32 to vector<20x20xf32>
    %856 = arith.mulf %855, %853 : vector<20x20xf32>
    %857 = arith.addf %840, %856 : vector<20x20xf32>
    %c124 = arith.constant 124 : index
    %858 = memref.load %arg2[%c124] : memref<300xf32, #tpu.memory_space<smem>>
    %859 = vector.broadcast %858 : f32 to vector<20x20xf32>
    %860 = arith.mulf %859, %853 : vector<20x20xf32>
    %861 = arith.addf %844, %860 : vector<20x20xf32>
    %c199 = arith.constant 199 : index
    %862 = memref.load %arg2[%c199] : memref<300xf32, #tpu.memory_space<smem>>
    %863 = vector.broadcast %862 : f32 to vector<20x20xf32>
    %864 = arith.mulf %863, %853 : vector<20x20xf32>
    %865 = arith.addf %848, %864 : vector<20x20xf32>
    %c274 = arith.constant 274 : index
    %866 = memref.load %arg2[%c274] : memref<300xf32, #tpu.memory_space<smem>>
    %867 = vector.broadcast %866 : f32 to vector<20x20xf32>
    %868 = arith.mulf %867, %853 : vector<20x20xf32>
    %869 = arith.addf %852, %868 : vector<20x20xf32>
    %c0_15 = arith.constant 0 : index
    %c2_16 = arith.constant 2 : index
    %c0_17 = arith.constant 0 : index
    %c0_18 = arith.constant 0 : index
    %870 = vector.load %arg1[%c0_15, %c2_16, %c0_17, %c0_18] : memref<1x3x24x24xf32, #tpu.memory_space<vmem>>, vector<1x1x24x24xf32>
    %871 = vector.shape_cast %870 : vector<1x1x24x24xf32> to vector<24x24xf32>
    %872 = vector.extract_strided_slice %871 {offsets = [0, 0], sizes = [20, 20], strides = [1, 1]} : vector<24x24xf32> to vector<20x20xf32>
    %c50 = arith.constant 50 : index
    %873 = memref.load %arg2[%c50] : memref<300xf32, #tpu.memory_space<smem>>
    %874 = vector.broadcast %873 : f32 to vector<20x20xf32>
    %875 = arith.mulf %874, %872 : vector<20x20xf32>
    %876 = arith.addf %857, %875 : vector<20x20xf32>
    %c125 = arith.constant 125 : index
    %877 = memref.load %arg2[%c125] : memref<300xf32, #tpu.memory_space<smem>>
    %878 = vector.broadcast %877 : f32 to vector<20x20xf32>
    %879 = arith.mulf %878, %872 : vector<20x20xf32>
    %880 = arith.addf %861, %879 : vector<20x20xf32>
    %c200 = arith.constant 200 : index
    %881 = memref.load %arg2[%c200] : memref<300xf32, #tpu.memory_space<smem>>
    %882 = vector.broadcast %881 : f32 to vector<20x20xf32>
    %883 = arith.mulf %882, %872 : vector<20x20xf32>
    %884 = arith.addf %865, %883 : vector<20x20xf32>
    %c275 = arith.constant 275 : index
    %885 = memref.load %arg2[%c275] : memref<300xf32, #tpu.memory_space<smem>>
    %886 = vector.broadcast %885 : f32 to vector<20x20xf32>
    %887 = arith.mulf %886, %872 : vector<20x20xf32>
    %888 = arith.addf %869, %887 : vector<20x20xf32>
    %889 = vector.extract_strided_slice %871 {offsets = [0, 1], sizes = [20, 20], strides = [1, 1]} : vector<24x24xf32> to vector<20x20xf32>
    %c51 = arith.constant 51 : index
    %890 = memref.load %arg2[%c51] : memref<300xf32, #tpu.memory_space<smem>>
    %891 = vector.broadcast %890 : f32 to vector<20x20xf32>
    %892 = arith.mulf %891, %889 : vector<20x20xf32>
    %893 = arith.addf %876, %892 : vector<20x20xf32>
    %c126 = arith.constant 126 : index
    %894 = memref.load %arg2[%c126] : memref<300xf32, #tpu.memory_space<smem>>
    %895 = vector.broadcast %894 : f32 to vector<20x20xf32>
    %896 = arith.mulf %895, %889 : vector<20x20xf32>
    %897 = arith.addf %880, %896 : vector<20x20xf32>
    %c201 = arith.constant 201 : index
    %898 = memref.load %arg2[%c201] : memref<300xf32, #tpu.memory_space<smem>>
    %899 = vector.broadcast %898 : f32 to vector<20x20xf32>
    %900 = arith.mulf %899, %889 : vector<20x20xf32>
    %901 = arith.addf %884, %900 : vector<20x20xf32>
    %c276 = arith.constant 276 : index
    %902 = memref.load %arg2[%c276] : memref<300xf32, #tpu.memory_space<smem>>
    %903 = vector.broadcast %902 : f32 to vector<20x20xf32>
    %904 = arith.mulf %903, %889 : vector<20x20xf32>
    %905 = arith.addf %888, %904 : vector<20x20xf32>
    %906 = vector.extract_strided_slice %871 {offsets = [0, 2], sizes = [20, 20], strides = [1, 1]} : vector<24x24xf32> to vector<20x20xf32>
    %c52 = arith.constant 52 : index
    %907 = memref.load %arg2[%c52] : memref<300xf32, #tpu.memory_space<smem>>
    %908 = vector.broadcast %907 : f32 to vector<20x20xf32>
    %909 = arith.mulf %908, %906 : vector<20x20xf32>
    %910 = arith.addf %893, %909 : vector<20x20xf32>
    %c127 = arith.constant 127 : index
    %911 = memref.load %arg2[%c127] : memref<300xf32, #tpu.memory_space<smem>>
    %912 = vector.broadcast %911 : f32 to vector<20x20xf32>
    %913 = arith.mulf %912, %906 : vector<20x20xf32>
    %914 = arith.addf %897, %913 : vector<20x20xf32>
    %c202 = arith.constant 202 : index
    %915 = memref.load %arg2[%c202] : memref<300xf32, #tpu.memory_space<smem>>
    %916 = vector.broadcast %915 : f32 to vector<20x20xf32>
    %917 = arith.mulf %916, %906 : vector<20x20xf32>
    %918 = arith.addf %901, %917 : vector<20x20xf32>
    %c277 = arith.constant 277 : index
    %919 = memref.load %arg2[%c277] : memref<300xf32, #tpu.memory_space<smem>>
    %920 = vector.broadcast %919 : f32 to vector<20x20xf32>
    %921 = arith.mulf %920, %906 : vector<20x20xf32>
    %922 = arith.addf %905, %921 : vector<20x20xf32>
    %923 = vector.extract_strided_slice %871 {offsets = [0, 3], sizes = [20, 20], strides = [1, 1]} : vector<24x24xf32> to vector<20x20xf32>
    %c53 = arith.constant 53 : index
    %924 = memref.load %arg2[%c53] : memref<300xf32, #tpu.memory_space<smem>>
    %925 = vector.broadcast %924 : f32 to vector<20x20xf32>
    %926 = arith.mulf %925, %923 : vector<20x20xf32>
    %927 = arith.addf %910, %926 : vector<20x20xf32>
    %c128 = arith.constant 128 : index
    %928 = memref.load %arg2[%c128] : memref<300xf32, #tpu.memory_space<smem>>
    %929 = vector.broadcast %928 : f32 to vector<20x20xf32>
    %930 = arith.mulf %929, %923 : vector<20x20xf32>
    %931 = arith.addf %914, %930 : vector<20x20xf32>
    %c203 = arith.constant 203 : index
    %932 = memref.load %arg2[%c203] : memref<300xf32, #tpu.memory_space<smem>>
    %933 = vector.broadcast %932 : f32 to vector<20x20xf32>
    %934 = arith.mulf %933, %923 : vector<20x20xf32>
    %935 = arith.addf %918, %934 : vector<20x20xf32>
    %c278 = arith.constant 278 : index
    %936 = memref.load %arg2[%c278] : memref<300xf32, #tpu.memory_space<smem>>
    %937 = vector.broadcast %936 : f32 to vector<20x20xf32>
    %938 = arith.mulf %937, %923 : vector<20x20xf32>
    %939 = arith.addf %922, %938 : vector<20x20xf32>
    %940 = vector.extract_strided_slice %871 {offsets = [0, 4], sizes = [20, 20], strides = [1, 1]} : vector<24x24xf32> to vector<20x20xf32>
    %c54 = arith.constant 54 : index
    %941 = memref.load %arg2[%c54] : memref<300xf32, #tpu.memory_space<smem>>
    %942 = vector.broadcast %941 : f32 to vector<20x20xf32>
    %943 = arith.mulf %942, %940 : vector<20x20xf32>
    %944 = arith.addf %927, %943 : vector<20x20xf32>
    %c129 = arith.constant 129 : index
    %945 = memref.load %arg2[%c129] : memref<300xf32, #tpu.memory_space<smem>>
    %946 = vector.broadcast %945 : f32 to vector<20x20xf32>
    %947 = arith.mulf %946, %940 : vector<20x20xf32>
    %948 = arith.addf %931, %947 : vector<20x20xf32>
    %c204 = arith.constant 204 : index
    %949 = memref.load %arg2[%c204] : memref<300xf32, #tpu.memory_space<smem>>
    %950 = vector.broadcast %949 : f32 to vector<20x20xf32>
    %951 = arith.mulf %950, %940 : vector<20x20xf32>
    %952 = arith.addf %935, %951 : vector<20x20xf32>
    %c279 = arith.constant 279 : index
    %953 = memref.load %arg2[%c279] : memref<300xf32, #tpu.memory_space<smem>>
    %954 = vector.broadcast %953 : f32 to vector<20x20xf32>
    %955 = arith.mulf %954, %940 : vector<20x20xf32>
    %956 = arith.addf %939, %955 : vector<20x20xf32>
    %957 = vector.extract_strided_slice %871 {offsets = [1, 0], sizes = [20, 20], strides = [1, 1]} : vector<24x24xf32> to vector<20x20xf32>
    %c55 = arith.constant 55 : index
    %958 = memref.load %arg2[%c55] : memref<300xf32, #tpu.memory_space<smem>>
    %959 = vector.broadcast %958 : f32 to vector<20x20xf32>
    %960 = arith.mulf %959, %957 : vector<20x20xf32>
    %961 = arith.addf %944, %960 : vector<20x20xf32>
    %c130 = arith.constant 130 : index
    %962 = memref.load %arg2[%c130] : memref<300xf32, #tpu.memory_space<smem>>
    %963 = vector.broadcast %962 : f32 to vector<20x20xf32>
    %964 = arith.mulf %963, %957 : vector<20x20xf32>
    %965 = arith.addf %948, %964 : vector<20x20xf32>
    %c205 = arith.constant 205 : index
    %966 = memref.load %arg2[%c205] : memref<300xf32, #tpu.memory_space<smem>>
    %967 = vector.broadcast %966 : f32 to vector<20x20xf32>
    %968 = arith.mulf %967, %957 : vector<20x20xf32>
    %969 = arith.addf %952, %968 : vector<20x20xf32>
    %c280 = arith.constant 280 : index
    %970 = memref.load %arg2[%c280] : memref<300xf32, #tpu.memory_space<smem>>
    %971 = vector.broadcast %970 : f32 to vector<20x20xf32>
    %972 = arith.mulf %971, %957 : vector<20x20xf32>
    %973 = arith.addf %956, %972 : vector<20x20xf32>
    %974 = vector.extract_strided_slice %871 {offsets = [1, 1], sizes = [20, 20], strides = [1, 1]} : vector<24x24xf32> to vector<20x20xf32>
    %c56 = arith.constant 56 : index
    %975 = memref.load %arg2[%c56] : memref<300xf32, #tpu.memory_space<smem>>
    %976 = vector.broadcast %975 : f32 to vector<20x20xf32>
    %977 = arith.mulf %976, %974 : vector<20x20xf32>
    %978 = arith.addf %961, %977 : vector<20x20xf32>
    %c131 = arith.constant 131 : index
    %979 = memref.load %arg2[%c131] : memref<300xf32, #tpu.memory_space<smem>>
    %980 = vector.broadcast %979 : f32 to vector<20x20xf32>
    %981 = arith.mulf %980, %974 : vector<20x20xf32>
    %982 = arith.addf %965, %981 : vector<20x20xf32>
    %c206 = arith.constant 206 : index
    %983 = memref.load %arg2[%c206] : memref<300xf32, #tpu.memory_space<smem>>
    %984 = vector.broadcast %983 : f32 to vector<20x20xf32>
    %985 = arith.mulf %984, %974 : vector<20x20xf32>
    %986 = arith.addf %969, %985 : vector<20x20xf32>
    %c281 = arith.constant 281 : index
    %987 = memref.load %arg2[%c281] : memref<300xf32, #tpu.memory_space<smem>>
    %988 = vector.broadcast %987 : f32 to vector<20x20xf32>
    %989 = arith.mulf %988, %974 : vector<20x20xf32>
    %990 = arith.addf %973, %989 : vector<20x20xf32>
    %991 = vector.extract_strided_slice %871 {offsets = [1, 2], sizes = [20, 20], strides = [1, 1]} : vector<24x24xf32> to vector<20x20xf32>
    %c57 = arith.constant 57 : index
    %992 = memref.load %arg2[%c57] : memref<300xf32, #tpu.memory_space<smem>>
    %993 = vector.broadcast %992 : f32 to vector<20x20xf32>
    %994 = arith.mulf %993, %991 : vector<20x20xf32>
    %995 = arith.addf %978, %994 : vector<20x20xf32>
    %c132 = arith.constant 132 : index
    %996 = memref.load %arg2[%c132] : memref<300xf32, #tpu.memory_space<smem>>
    %997 = vector.broadcast %996 : f32 to vector<20x20xf32>
    %998 = arith.mulf %997, %991 : vector<20x20xf32>
    %999 = arith.addf %982, %998 : vector<20x20xf32>
    %c207 = arith.constant 207 : index
    %1000 = memref.load %arg2[%c207] : memref<300xf32, #tpu.memory_space<smem>>
    %1001 = vector.broadcast %1000 : f32 to vector<20x20xf32>
    %1002 = arith.mulf %1001, %991 : vector<20x20xf32>
    %1003 = arith.addf %986, %1002 : vector<20x20xf32>
    %c282 = arith.constant 282 : index
    %1004 = memref.load %arg2[%c282] : memref<300xf32, #tpu.memory_space<smem>>
    %1005 = vector.broadcast %1004 : f32 to vector<20x20xf32>
    %1006 = arith.mulf %1005, %991 : vector<20x20xf32>
    %1007 = arith.addf %990, %1006 : vector<20x20xf32>
    %1008 = vector.extract_strided_slice %871 {offsets = [1, 3], sizes = [20, 20], strides = [1, 1]} : vector<24x24xf32> to vector<20x20xf32>
    %c58 = arith.constant 58 : index
    %1009 = memref.load %arg2[%c58] : memref<300xf32, #tpu.memory_space<smem>>
    %1010 = vector.broadcast %1009 : f32 to vector<20x20xf32>
    %1011 = arith.mulf %1010, %1008 : vector<20x20xf32>
    %1012 = arith.addf %995, %1011 : vector<20x20xf32>
    %c133 = arith.constant 133 : index
    %1013 = memref.load %arg2[%c133] : memref<300xf32, #tpu.memory_space<smem>>
    %1014 = vector.broadcast %1013 : f32 to vector<20x20xf32>
    %1015 = arith.mulf %1014, %1008 : vector<20x20xf32>
    %1016 = arith.addf %999, %1015 : vector<20x20xf32>
    %c208 = arith.constant 208 : index
    %1017 = memref.load %arg2[%c208] : memref<300xf32, #tpu.memory_space<smem>>
    %1018 = vector.broadcast %1017 : f32 to vector<20x20xf32>
    %1019 = arith.mulf %1018, %1008 : vector<20x20xf32>
    %1020 = arith.addf %1003, %1019 : vector<20x20xf32>
    %c283 = arith.constant 283 : index
    %1021 = memref.load %arg2[%c283] : memref<300xf32, #tpu.memory_space<smem>>
    %1022 = vector.broadcast %1021 : f32 to vector<20x20xf32>
    %1023 = arith.mulf %1022, %1008 : vector<20x20xf32>
    %1024 = arith.addf %1007, %1023 : vector<20x20xf32>
    %1025 = vector.extract_strided_slice %871 {offsets = [1, 4], sizes = [20, 20], strides = [1, 1]} : vector<24x24xf32> to vector<20x20xf32>
    %c59 = arith.constant 59 : index
    %1026 = memref.load %arg2[%c59] : memref<300xf32, #tpu.memory_space<smem>>
    %1027 = vector.broadcast %1026 : f32 to vector<20x20xf32>
    %1028 = arith.mulf %1027, %1025 : vector<20x20xf32>
    %1029 = arith.addf %1012, %1028 : vector<20x20xf32>
    %c134 = arith.constant 134 : index
    %1030 = memref.load %arg2[%c134] : memref<300xf32, #tpu.memory_space<smem>>
    %1031 = vector.broadcast %1030 : f32 to vector<20x20xf32>
    %1032 = arith.mulf %1031, %1025 : vector<20x20xf32>
    %1033 = arith.addf %1016, %1032 : vector<20x20xf32>
    %c209 = arith.constant 209 : index
    %1034 = memref.load %arg2[%c209] : memref<300xf32, #tpu.memory_space<smem>>
    %1035 = vector.broadcast %1034 : f32 to vector<20x20xf32>
    %1036 = arith.mulf %1035, %1025 : vector<20x20xf32>
    %1037 = arith.addf %1020, %1036 : vector<20x20xf32>
    %c284 = arith.constant 284 : index
    %1038 = memref.load %arg2[%c284] : memref<300xf32, #tpu.memory_space<smem>>
    %1039 = vector.broadcast %1038 : f32 to vector<20x20xf32>
    %1040 = arith.mulf %1039, %1025 : vector<20x20xf32>
    %1041 = arith.addf %1024, %1040 : vector<20x20xf32>
    %1042 = vector.extract_strided_slice %871 {offsets = [2, 0], sizes = [20, 20], strides = [1, 1]} : vector<24x24xf32> to vector<20x20xf32>
    %c60 = arith.constant 60 : index
    %1043 = memref.load %arg2[%c60] : memref<300xf32, #tpu.memory_space<smem>>
    %1044 = vector.broadcast %1043 : f32 to vector<20x20xf32>
    %1045 = arith.mulf %1044, %1042 : vector<20x20xf32>
    %1046 = arith.addf %1029, %1045 : vector<20x20xf32>
    %c135 = arith.constant 135 : index
    %1047 = memref.load %arg2[%c135] : memref<300xf32, #tpu.memory_space<smem>>
    %1048 = vector.broadcast %1047 : f32 to vector<20x20xf32>
    %1049 = arith.mulf %1048, %1042 : vector<20x20xf32>
    %1050 = arith.addf %1033, %1049 : vector<20x20xf32>
    %c210 = arith.constant 210 : index
    %1051 = memref.load %arg2[%c210] : memref<300xf32, #tpu.memory_space<smem>>
    %1052 = vector.broadcast %1051 : f32 to vector<20x20xf32>
    %1053 = arith.mulf %1052, %1042 : vector<20x20xf32>
    %1054 = arith.addf %1037, %1053 : vector<20x20xf32>
    %c285 = arith.constant 285 : index
    %1055 = memref.load %arg2[%c285] : memref<300xf32, #tpu.memory_space<smem>>
    %1056 = vector.broadcast %1055 : f32 to vector<20x20xf32>
    %1057 = arith.mulf %1056, %1042 : vector<20x20xf32>
    %1058 = arith.addf %1041, %1057 : vector<20x20xf32>
    %1059 = vector.extract_strided_slice %871 {offsets = [2, 1], sizes = [20, 20], strides = [1, 1]} : vector<24x24xf32> to vector<20x20xf32>
    %c61 = arith.constant 61 : index
    %1060 = memref.load %arg2[%c61] : memref<300xf32, #tpu.memory_space<smem>>
    %1061 = vector.broadcast %1060 : f32 to vector<20x20xf32>
    %1062 = arith.mulf %1061, %1059 : vector<20x20xf32>
    %1063 = arith.addf %1046, %1062 : vector<20x20xf32>
    %c136 = arith.constant 136 : index
    %1064 = memref.load %arg2[%c136] : memref<300xf32, #tpu.memory_space<smem>>
    %1065 = vector.broadcast %1064 : f32 to vector<20x20xf32>
    %1066 = arith.mulf %1065, %1059 : vector<20x20xf32>
    %1067 = arith.addf %1050, %1066 : vector<20x20xf32>
    %c211 = arith.constant 211 : index
    %1068 = memref.load %arg2[%c211] : memref<300xf32, #tpu.memory_space<smem>>
    %1069 = vector.broadcast %1068 : f32 to vector<20x20xf32>
    %1070 = arith.mulf %1069, %1059 : vector<20x20xf32>
    %1071 = arith.addf %1054, %1070 : vector<20x20xf32>
    %c286 = arith.constant 286 : index
    %1072 = memref.load %arg2[%c286] : memref<300xf32, #tpu.memory_space<smem>>
    %1073 = vector.broadcast %1072 : f32 to vector<20x20xf32>
    %1074 = arith.mulf %1073, %1059 : vector<20x20xf32>
    %1075 = arith.addf %1058, %1074 : vector<20x20xf32>
    %1076 = vector.extract_strided_slice %871 {offsets = [2, 2], sizes = [20, 20], strides = [1, 1]} : vector<24x24xf32> to vector<20x20xf32>
    %c62 = arith.constant 62 : index
    %1077 = memref.load %arg2[%c62] : memref<300xf32, #tpu.memory_space<smem>>
    %1078 = vector.broadcast %1077 : f32 to vector<20x20xf32>
    %1079 = arith.mulf %1078, %1076 : vector<20x20xf32>
    %1080 = arith.addf %1063, %1079 : vector<20x20xf32>
    %c137 = arith.constant 137 : index
    %1081 = memref.load %arg2[%c137] : memref<300xf32, #tpu.memory_space<smem>>
    %1082 = vector.broadcast %1081 : f32 to vector<20x20xf32>
    %1083 = arith.mulf %1082, %1076 : vector<20x20xf32>
    %1084 = arith.addf %1067, %1083 : vector<20x20xf32>
    %c212 = arith.constant 212 : index
    %1085 = memref.load %arg2[%c212] : memref<300xf32, #tpu.memory_space<smem>>
    %1086 = vector.broadcast %1085 : f32 to vector<20x20xf32>
    %1087 = arith.mulf %1086, %1076 : vector<20x20xf32>
    %1088 = arith.addf %1071, %1087 : vector<20x20xf32>
    %c287 = arith.constant 287 : index
    %1089 = memref.load %arg2[%c287] : memref<300xf32, #tpu.memory_space<smem>>
    %1090 = vector.broadcast %1089 : f32 to vector<20x20xf32>
    %1091 = arith.mulf %1090, %1076 : vector<20x20xf32>
    %1092 = arith.addf %1075, %1091 : vector<20x20xf32>
    %1093 = vector.extract_strided_slice %871 {offsets = [2, 3], sizes = [20, 20], strides = [1, 1]} : vector<24x24xf32> to vector<20x20xf32>
    %c63 = arith.constant 63 : index
    %1094 = memref.load %arg2[%c63] : memref<300xf32, #tpu.memory_space<smem>>
    %1095 = vector.broadcast %1094 : f32 to vector<20x20xf32>
    %1096 = arith.mulf %1095, %1093 : vector<20x20xf32>
    %1097 = arith.addf %1080, %1096 : vector<20x20xf32>
    %c138 = arith.constant 138 : index
    %1098 = memref.load %arg2[%c138] : memref<300xf32, #tpu.memory_space<smem>>
    %1099 = vector.broadcast %1098 : f32 to vector<20x20xf32>
    %1100 = arith.mulf %1099, %1093 : vector<20x20xf32>
    %1101 = arith.addf %1084, %1100 : vector<20x20xf32>
    %c213 = arith.constant 213 : index
    %1102 = memref.load %arg2[%c213] : memref<300xf32, #tpu.memory_space<smem>>
    %1103 = vector.broadcast %1102 : f32 to vector<20x20xf32>
    %1104 = arith.mulf %1103, %1093 : vector<20x20xf32>
    %1105 = arith.addf %1088, %1104 : vector<20x20xf32>
    %c288 = arith.constant 288 : index
    %1106 = memref.load %arg2[%c288] : memref<300xf32, #tpu.memory_space<smem>>
    %1107 = vector.broadcast %1106 : f32 to vector<20x20xf32>
    %1108 = arith.mulf %1107, %1093 : vector<20x20xf32>
    %1109 = arith.addf %1092, %1108 : vector<20x20xf32>
    %1110 = vector.extract_strided_slice %871 {offsets = [2, 4], sizes = [20, 20], strides = [1, 1]} : vector<24x24xf32> to vector<20x20xf32>
    %c64 = arith.constant 64 : index
    %1111 = memref.load %arg2[%c64] : memref<300xf32, #tpu.memory_space<smem>>
    %1112 = vector.broadcast %1111 : f32 to vector<20x20xf32>
    %1113 = arith.mulf %1112, %1110 : vector<20x20xf32>
    %1114 = arith.addf %1097, %1113 : vector<20x20xf32>
    %c139 = arith.constant 139 : index
    %1115 = memref.load %arg2[%c139] : memref<300xf32, #tpu.memory_space<smem>>
    %1116 = vector.broadcast %1115 : f32 to vector<20x20xf32>
    %1117 = arith.mulf %1116, %1110 : vector<20x20xf32>
    %1118 = arith.addf %1101, %1117 : vector<20x20xf32>
    %c214 = arith.constant 214 : index
    %1119 = memref.load %arg2[%c214] : memref<300xf32, #tpu.memory_space<smem>>
    %1120 = vector.broadcast %1119 : f32 to vector<20x20xf32>
    %1121 = arith.mulf %1120, %1110 : vector<20x20xf32>
    %1122 = arith.addf %1105, %1121 : vector<20x20xf32>
    %c289 = arith.constant 289 : index
    %1123 = memref.load %arg2[%c289] : memref<300xf32, #tpu.memory_space<smem>>
    %1124 = vector.broadcast %1123 : f32 to vector<20x20xf32>
    %1125 = arith.mulf %1124, %1110 : vector<20x20xf32>
    %1126 = arith.addf %1109, %1125 : vector<20x20xf32>
    %1127 = vector.extract_strided_slice %871 {offsets = [3, 0], sizes = [20, 20], strides = [1, 1]} : vector<24x24xf32> to vector<20x20xf32>
    %c65 = arith.constant 65 : index
    %1128 = memref.load %arg2[%c65] : memref<300xf32, #tpu.memory_space<smem>>
    %1129 = vector.broadcast %1128 : f32 to vector<20x20xf32>
    %1130 = arith.mulf %1129, %1127 : vector<20x20xf32>
    %1131 = arith.addf %1114, %1130 : vector<20x20xf32>
    %c140 = arith.constant 140 : index
    %1132 = memref.load %arg2[%c140] : memref<300xf32, #tpu.memory_space<smem>>
    %1133 = vector.broadcast %1132 : f32 to vector<20x20xf32>
    %1134 = arith.mulf %1133, %1127 : vector<20x20xf32>
    %1135 = arith.addf %1118, %1134 : vector<20x20xf32>
    %c215 = arith.constant 215 : index
    %1136 = memref.load %arg2[%c215] : memref<300xf32, #tpu.memory_space<smem>>
    %1137 = vector.broadcast %1136 : f32 to vector<20x20xf32>
    %1138 = arith.mulf %1137, %1127 : vector<20x20xf32>
    %1139 = arith.addf %1122, %1138 : vector<20x20xf32>
    %c290 = arith.constant 290 : index
    %1140 = memref.load %arg2[%c290] : memref<300xf32, #tpu.memory_space<smem>>
    %1141 = vector.broadcast %1140 : f32 to vector<20x20xf32>
    %1142 = arith.mulf %1141, %1127 : vector<20x20xf32>
    %1143 = arith.addf %1126, %1142 : vector<20x20xf32>
    %1144 = vector.extract_strided_slice %871 {offsets = [3, 1], sizes = [20, 20], strides = [1, 1]} : vector<24x24xf32> to vector<20x20xf32>
    %c66 = arith.constant 66 : index
    %1145 = memref.load %arg2[%c66] : memref<300xf32, #tpu.memory_space<smem>>
    %1146 = vector.broadcast %1145 : f32 to vector<20x20xf32>
    %1147 = arith.mulf %1146, %1144 : vector<20x20xf32>
    %1148 = arith.addf %1131, %1147 : vector<20x20xf32>
    %c141 = arith.constant 141 : index
    %1149 = memref.load %arg2[%c141] : memref<300xf32, #tpu.memory_space<smem>>
    %1150 = vector.broadcast %1149 : f32 to vector<20x20xf32>
    %1151 = arith.mulf %1150, %1144 : vector<20x20xf32>
    %1152 = arith.addf %1135, %1151 : vector<20x20xf32>
    %c216 = arith.constant 216 : index
    %1153 = memref.load %arg2[%c216] : memref<300xf32, #tpu.memory_space<smem>>
    %1154 = vector.broadcast %1153 : f32 to vector<20x20xf32>
    %1155 = arith.mulf %1154, %1144 : vector<20x20xf32>
    %1156 = arith.addf %1139, %1155 : vector<20x20xf32>
    %c291 = arith.constant 291 : index
    %1157 = memref.load %arg2[%c291] : memref<300xf32, #tpu.memory_space<smem>>
    %1158 = vector.broadcast %1157 : f32 to vector<20x20xf32>
    %1159 = arith.mulf %1158, %1144 : vector<20x20xf32>
    %1160 = arith.addf %1143, %1159 : vector<20x20xf32>
    %1161 = vector.extract_strided_slice %871 {offsets = [3, 2], sizes = [20, 20], strides = [1, 1]} : vector<24x24xf32> to vector<20x20xf32>
    %c67 = arith.constant 67 : index
    %1162 = memref.load %arg2[%c67] : memref<300xf32, #tpu.memory_space<smem>>
    %1163 = vector.broadcast %1162 : f32 to vector<20x20xf32>
    %1164 = arith.mulf %1163, %1161 : vector<20x20xf32>
    %1165 = arith.addf %1148, %1164 : vector<20x20xf32>
    %c142 = arith.constant 142 : index
    %1166 = memref.load %arg2[%c142] : memref<300xf32, #tpu.memory_space<smem>>
    %1167 = vector.broadcast %1166 : f32 to vector<20x20xf32>
    %1168 = arith.mulf %1167, %1161 : vector<20x20xf32>
    %1169 = arith.addf %1152, %1168 : vector<20x20xf32>
    %c217 = arith.constant 217 : index
    %1170 = memref.load %arg2[%c217] : memref<300xf32, #tpu.memory_space<smem>>
    %1171 = vector.broadcast %1170 : f32 to vector<20x20xf32>
    %1172 = arith.mulf %1171, %1161 : vector<20x20xf32>
    %1173 = arith.addf %1156, %1172 : vector<20x20xf32>
    %c292 = arith.constant 292 : index
    %1174 = memref.load %arg2[%c292] : memref<300xf32, #tpu.memory_space<smem>>
    %1175 = vector.broadcast %1174 : f32 to vector<20x20xf32>
    %1176 = arith.mulf %1175, %1161 : vector<20x20xf32>
    %1177 = arith.addf %1160, %1176 : vector<20x20xf32>
    %1178 = vector.extract_strided_slice %871 {offsets = [3, 3], sizes = [20, 20], strides = [1, 1]} : vector<24x24xf32> to vector<20x20xf32>
    %c68 = arith.constant 68 : index
    %1179 = memref.load %arg2[%c68] : memref<300xf32, #tpu.memory_space<smem>>
    %1180 = vector.broadcast %1179 : f32 to vector<20x20xf32>
    %1181 = arith.mulf %1180, %1178 : vector<20x20xf32>
    %1182 = arith.addf %1165, %1181 : vector<20x20xf32>
    %c143 = arith.constant 143 : index
    %1183 = memref.load %arg2[%c143] : memref<300xf32, #tpu.memory_space<smem>>
    %1184 = vector.broadcast %1183 : f32 to vector<20x20xf32>
    %1185 = arith.mulf %1184, %1178 : vector<20x20xf32>
    %1186 = arith.addf %1169, %1185 : vector<20x20xf32>
    %c218 = arith.constant 218 : index
    %1187 = memref.load %arg2[%c218] : memref<300xf32, #tpu.memory_space<smem>>
    %1188 = vector.broadcast %1187 : f32 to vector<20x20xf32>
    %1189 = arith.mulf %1188, %1178 : vector<20x20xf32>
    %1190 = arith.addf %1173, %1189 : vector<20x20xf32>
    %c293 = arith.constant 293 : index
    %1191 = memref.load %arg2[%c293] : memref<300xf32, #tpu.memory_space<smem>>
    %1192 = vector.broadcast %1191 : f32 to vector<20x20xf32>
    %1193 = arith.mulf %1192, %1178 : vector<20x20xf32>
    %1194 = arith.addf %1177, %1193 : vector<20x20xf32>
    %1195 = vector.extract_strided_slice %871 {offsets = [3, 4], sizes = [20, 20], strides = [1, 1]} : vector<24x24xf32> to vector<20x20xf32>
    %c69 = arith.constant 69 : index
    %1196 = memref.load %arg2[%c69] : memref<300xf32, #tpu.memory_space<smem>>
    %1197 = vector.broadcast %1196 : f32 to vector<20x20xf32>
    %1198 = arith.mulf %1197, %1195 : vector<20x20xf32>
    %1199 = arith.addf %1182, %1198 : vector<20x20xf32>
    %c144 = arith.constant 144 : index
    %1200 = memref.load %arg2[%c144] : memref<300xf32, #tpu.memory_space<smem>>
    %1201 = vector.broadcast %1200 : f32 to vector<20x20xf32>
    %1202 = arith.mulf %1201, %1195 : vector<20x20xf32>
    %1203 = arith.addf %1186, %1202 : vector<20x20xf32>
    %c219 = arith.constant 219 : index
    %1204 = memref.load %arg2[%c219] : memref<300xf32, #tpu.memory_space<smem>>
    %1205 = vector.broadcast %1204 : f32 to vector<20x20xf32>
    %1206 = arith.mulf %1205, %1195 : vector<20x20xf32>
    %1207 = arith.addf %1190, %1206 : vector<20x20xf32>
    %c294 = arith.constant 294 : index
    %1208 = memref.load %arg2[%c294] : memref<300xf32, #tpu.memory_space<smem>>
    %1209 = vector.broadcast %1208 : f32 to vector<20x20xf32>
    %1210 = arith.mulf %1209, %1195 : vector<20x20xf32>
    %1211 = arith.addf %1194, %1210 : vector<20x20xf32>
    %1212 = vector.extract_strided_slice %871 {offsets = [4, 0], sizes = [20, 20], strides = [1, 1]} : vector<24x24xf32> to vector<20x20xf32>
    %c70 = arith.constant 70 : index
    %1213 = memref.load %arg2[%c70] : memref<300xf32, #tpu.memory_space<smem>>
    %1214 = vector.broadcast %1213 : f32 to vector<20x20xf32>
    %1215 = arith.mulf %1214, %1212 : vector<20x20xf32>
    %1216 = arith.addf %1199, %1215 : vector<20x20xf32>
    %c145 = arith.constant 145 : index
    %1217 = memref.load %arg2[%c145] : memref<300xf32, #tpu.memory_space<smem>>
    %1218 = vector.broadcast %1217 : f32 to vector<20x20xf32>
    %1219 = arith.mulf %1218, %1212 : vector<20x20xf32>
    %1220 = arith.addf %1203, %1219 : vector<20x20xf32>
    %c220 = arith.constant 220 : index
    %1221 = memref.load %arg2[%c220] : memref<300xf32, #tpu.memory_space<smem>>
    %1222 = vector.broadcast %1221 : f32 to vector<20x20xf32>
    %1223 = arith.mulf %1222, %1212 : vector<20x20xf32>
    %1224 = arith.addf %1207, %1223 : vector<20x20xf32>
    %c295 = arith.constant 295 : index
    %1225 = memref.load %arg2[%c295] : memref<300xf32, #tpu.memory_space<smem>>
    %1226 = vector.broadcast %1225 : f32 to vector<20x20xf32>
    %1227 = arith.mulf %1226, %1212 : vector<20x20xf32>
    %1228 = arith.addf %1211, %1227 : vector<20x20xf32>
    %1229 = vector.extract_strided_slice %871 {offsets = [4, 1], sizes = [20, 20], strides = [1, 1]} : vector<24x24xf32> to vector<20x20xf32>
    %c71 = arith.constant 71 : index
    %1230 = memref.load %arg2[%c71] : memref<300xf32, #tpu.memory_space<smem>>
    %1231 = vector.broadcast %1230 : f32 to vector<20x20xf32>
    %1232 = arith.mulf %1231, %1229 : vector<20x20xf32>
    %1233 = arith.addf %1216, %1232 : vector<20x20xf32>
    %c146 = arith.constant 146 : index
    %1234 = memref.load %arg2[%c146] : memref<300xf32, #tpu.memory_space<smem>>
    %1235 = vector.broadcast %1234 : f32 to vector<20x20xf32>
    %1236 = arith.mulf %1235, %1229 : vector<20x20xf32>
    %1237 = arith.addf %1220, %1236 : vector<20x20xf32>
    %c221 = arith.constant 221 : index
    %1238 = memref.load %arg2[%c221] : memref<300xf32, #tpu.memory_space<smem>>
    %1239 = vector.broadcast %1238 : f32 to vector<20x20xf32>
    %1240 = arith.mulf %1239, %1229 : vector<20x20xf32>
    %1241 = arith.addf %1224, %1240 : vector<20x20xf32>
    %c296 = arith.constant 296 : index
    %1242 = memref.load %arg2[%c296] : memref<300xf32, #tpu.memory_space<smem>>
    %1243 = vector.broadcast %1242 : f32 to vector<20x20xf32>
    %1244 = arith.mulf %1243, %1229 : vector<20x20xf32>
    %1245 = arith.addf %1228, %1244 : vector<20x20xf32>
    %1246 = vector.extract_strided_slice %871 {offsets = [4, 2], sizes = [20, 20], strides = [1, 1]} : vector<24x24xf32> to vector<20x20xf32>
    %c72 = arith.constant 72 : index
    %1247 = memref.load %arg2[%c72] : memref<300xf32, #tpu.memory_space<smem>>
    %1248 = vector.broadcast %1247 : f32 to vector<20x20xf32>
    %1249 = arith.mulf %1248, %1246 : vector<20x20xf32>
    %1250 = arith.addf %1233, %1249 : vector<20x20xf32>
    %c147 = arith.constant 147 : index
    %1251 = memref.load %arg2[%c147] : memref<300xf32, #tpu.memory_space<smem>>
    %1252 = vector.broadcast %1251 : f32 to vector<20x20xf32>
    %1253 = arith.mulf %1252, %1246 : vector<20x20xf32>
    %1254 = arith.addf %1237, %1253 : vector<20x20xf32>
    %c222 = arith.constant 222 : index
    %1255 = memref.load %arg2[%c222] : memref<300xf32, #tpu.memory_space<smem>>
    %1256 = vector.broadcast %1255 : f32 to vector<20x20xf32>
    %1257 = arith.mulf %1256, %1246 : vector<20x20xf32>
    %1258 = arith.addf %1241, %1257 : vector<20x20xf32>
    %c297 = arith.constant 297 : index
    %1259 = memref.load %arg2[%c297] : memref<300xf32, #tpu.memory_space<smem>>
    %1260 = vector.broadcast %1259 : f32 to vector<20x20xf32>
    %1261 = arith.mulf %1260, %1246 : vector<20x20xf32>
    %1262 = arith.addf %1245, %1261 : vector<20x20xf32>
    %1263 = vector.extract_strided_slice %871 {offsets = [4, 3], sizes = [20, 20], strides = [1, 1]} : vector<24x24xf32> to vector<20x20xf32>
    %c73 = arith.constant 73 : index
    %1264 = memref.load %arg2[%c73] : memref<300xf32, #tpu.memory_space<smem>>
    %1265 = vector.broadcast %1264 : f32 to vector<20x20xf32>
    %1266 = arith.mulf %1265, %1263 : vector<20x20xf32>
    %1267 = arith.addf %1250, %1266 : vector<20x20xf32>
    %c148 = arith.constant 148 : index
    %1268 = memref.load %arg2[%c148] : memref<300xf32, #tpu.memory_space<smem>>
    %1269 = vector.broadcast %1268 : f32 to vector<20x20xf32>
    %1270 = arith.mulf %1269, %1263 : vector<20x20xf32>
    %1271 = arith.addf %1254, %1270 : vector<20x20xf32>
    %c223 = arith.constant 223 : index
    %1272 = memref.load %arg2[%c223] : memref<300xf32, #tpu.memory_space<smem>>
    %1273 = vector.broadcast %1272 : f32 to vector<20x20xf32>
    %1274 = arith.mulf %1273, %1263 : vector<20x20xf32>
    %1275 = arith.addf %1258, %1274 : vector<20x20xf32>
    %c298 = arith.constant 298 : index
    %1276 = memref.load %arg2[%c298] : memref<300xf32, #tpu.memory_space<smem>>
    %1277 = vector.broadcast %1276 : f32 to vector<20x20xf32>
    %1278 = arith.mulf %1277, %1263 : vector<20x20xf32>
    %1279 = arith.addf %1262, %1278 : vector<20x20xf32>
    %1280 = vector.extract_strided_slice %871 {offsets = [4, 4], sizes = [20, 20], strides = [1, 1]} : vector<24x24xf32> to vector<20x20xf32>
    %c74 = arith.constant 74 : index
    %1281 = memref.load %arg2[%c74] : memref<300xf32, #tpu.memory_space<smem>>
    %1282 = vector.broadcast %1281 : f32 to vector<20x20xf32>
    %1283 = arith.mulf %1282, %1280 : vector<20x20xf32>
    %1284 = arith.addf %1267, %1283 : vector<20x20xf32>
    %c149 = arith.constant 149 : index
    %1285 = memref.load %arg2[%c149] : memref<300xf32, #tpu.memory_space<smem>>
    %1286 = vector.broadcast %1285 : f32 to vector<20x20xf32>
    %1287 = arith.mulf %1286, %1280 : vector<20x20xf32>
    %1288 = arith.addf %1271, %1287 : vector<20x20xf32>
    %c224 = arith.constant 224 : index
    %1289 = memref.load %arg2[%c224] : memref<300xf32, #tpu.memory_space<smem>>
    %1290 = vector.broadcast %1289 : f32 to vector<20x20xf32>
    %1291 = arith.mulf %1290, %1280 : vector<20x20xf32>
    %1292 = arith.addf %1275, %1291 : vector<20x20xf32>
    %c299 = arith.constant 299 : index
    %1293 = memref.load %arg2[%c299] : memref<300xf32, #tpu.memory_space<smem>>
    %1294 = vector.broadcast %1293 : f32 to vector<20x20xf32>
    %1295 = arith.mulf %1294, %1280 : vector<20x20xf32>
    %1296 = arith.addf %1279, %1295 : vector<20x20xf32>
    %cst_19 = arith.constant 0.000000e+00 : f32
    %1297 = vector.broadcast %cst_19 : f32 to vector<20x20xf32>
    %1298 = arith.maximumf %1284, %1297 : vector<20x20xf32>
    %cst_20 = arith.constant 1.800000e+00 : f32
    %1299 = vector.broadcast %cst_20 : f32 to vector<20x20xf32>
    %1300 = arith.minimumf %1298, %1299 : vector<20x20xf32>
    %c0_21 = arith.constant 0 : index
    %c0_22 = arith.constant 0 : index
    %c0_23 = arith.constant 0 : index
    %c0_24 = arith.constant 0 : index
    %1301 = vector.load %arg4[%c0_21, %c0_22, %c0_23, %c0_24] : memref<1x4x20x20xf32, #tpu.memory_space<vmem>>, vector<1x1x20x20xf32>
    %1302 = vector.shape_cast %1301 : vector<1x1x20x20xf32> to vector<20x20xf32>
    %1303 = vector.shape_cast %1300 : vector<20x20xf32> to vector<1x1x20x20xf32>
    tpu.vector_store %arg4[%c0_21, %c0_22, %c0_23, %c0_24], %1303 {strides = array<i32>} : memref<1x4x20x20xf32, #tpu.memory_space<vmem>>, vector<1x1x20x20xf32>,
    %cst_25 = arith.constant 0.000000e+00 : f32
    %1304 = vector.broadcast %cst_25 : f32 to vector<20x20xf32>
    %1305 = arith.maximumf %1288, %1304 : vector<20x20xf32>
    %cst_26 = arith.constant 1.800000e+00 : f32
    %1306 = vector.broadcast %cst_26 : f32 to vector<20x20xf32>
    %1307 = arith.minimumf %1305, %1306 : vector<20x20xf32>
    %c0_27 = arith.constant 0 : index
    %c1_28 = arith.constant 1 : index
    %c0_29 = arith.constant 0 : index
    %c0_30 = arith.constant 0 : index
    %1308 = vector.load %arg4[%c0_27, %c1_28, %c0_29, %c0_30] : memref<1x4x20x20xf32, #tpu.memory_space<vmem>>, vector<1x1x20x20xf32>
    %1309 = vector.shape_cast %1308 : vector<1x1x20x20xf32> to vector<20x20xf32>
    %1310 = vector.shape_cast %1307 : vector<20x20xf32> to vector<1x1x20x20xf32>
    tpu.vector_store %arg4[%c0_27, %c1_28, %c0_29, %c0_30], %1310 {strides = array<i32>} : memref<1x4x20x20xf32, #tpu.memory_space<vmem>>, vector<1x1x20x20xf32>,
    %cst_31 = arith.constant 0.000000e+00 : f32
    %1311 = vector.broadcast %cst_31 : f32 to vector<20x20xf32>
    %1312 = arith.maximumf %1292, %1311 : vector<20x20xf32>
    %cst_32 = arith.constant 1.800000e+00 : f32
    %1313 = vector.broadcast %cst_32 : f32 to vector<20x20xf32>
    %1314 = arith.minimumf %1312, %1313 : vector<20x20xf32>
    %c0_33 = arith.constant 0 : index
    %c2_34 = arith.constant 2 : index
    %c0_35 = arith.constant 0 : index
    %c0_36 = arith.constant 0 : index
    %1315 = vector.load %arg4[%c0_33, %c2_34, %c0_35, %c0_36] : memref<1x4x20x20xf32, #tpu.memory_space<vmem>>, vector<1x1x20x20xf32>
    %1316 = vector.shape_cast %1315 : vector<1x1x20x20xf32> to vector<20x20xf32>
    %1317 = vector.shape_cast %1314 : vector<20x20xf32> to vector<1x1x20x20xf32>
    tpu.vector_store %arg4[%c0_33, %c2_34, %c0_35, %c0_36], %1317 {strides = array<i32>} : memref<1x4x20x20xf32, #tpu.memory_space<vmem>>, vector<1x1x20x20xf32>,
    %cst_37 = arith.constant 0.000000e+00 : f32
    %1318 = vector.broadcast %cst_37 : f32 to vector<20x20xf32>
    %1319 = arith.maximumf %1296, %1318 : vector<20x20xf32>
    %cst_38 = arith.constant 1.800000e+00 : f32
    %1320 = vector.broadcast %cst_38 : f32 to vector<20x20xf32>
    %1321 = arith.minimumf %1319, %1320 : vector<20x20xf32>
    %c0_39 = arith.constant 0 : index
    %c3_40 = arith.constant 3 : index
    %c0_41 = arith.constant 0 : index
    %c0_42 = arith.constant 0 : index
    %1322 = vector.load %arg4[%c0_39, %c3_40, %c0_41, %c0_42] : memref<1x4x20x20xf32, #tpu.memory_space<vmem>>, vector<1x1x20x20xf32>
    %1323 = vector.shape_cast %1322 : vector<1x1x20x20xf32> to vector<20x20xf32>
    %1324 = vector.shape_cast %1321 : vector<20x20xf32> to vector<1x1x20x20xf32>
    tpu.vector_store %arg4[%c0_39, %c3_40, %c0_41, %c0_42], %1324 {strides = array<i32>} : memref<1x4x20x20xf32, #tpu.memory_space<vmem>>, vector<1x1x20x20xf32>,
    return
  }
  func.func @transform_0(%arg0: i32) -> (i32, i32, i32, i32) {
    %c0_i32 = arith.constant 0 : i32
    %c0_i32_0 = arith.constant 0 : i32
    %c0_i32_1 = arith.constant 0 : i32
    %c0_i32_2 = arith.constant 0 : i32
    return %arg0, %c0_i32, %c0_i32_0, %c0_i32_1 : i32, i32, i32, i32
  }
  func.func @transform_1(%arg0: i32) -> i32 {
    %c0_i32 = arith.constant 0 : i32
    %c0_i32_0 = arith.constant 0 : i32
    return %c0_i32 : i32
  }
  func.func @transform_2(%arg0: i32) -> i32 {
    %c0_i32 = arith.constant 0 : i32
    %c0_i32_0 = arith.constant 0 : i32
    return %c0_i32 : i32
  }
  func.func @transform_3(%arg0: i32) -> (i32, i32, i32, i32) {
    %c0_i32 = arith.constant 0 : i32
    %c0_i32_0 = arith.constant 0 : i32
    %c0_i32_1 = arith.constant 0 : i32
    %c0_i32_2 = arith.constant 0 : i32
    return %arg0, %c0_i32, %c0_i32_0, %c0_i32_1 : i32, i32, i32, i32
  }
}

</mosaic_0001>

<bundles_post_ra>
// kernel: tpu_custom_call.1
= control target key start
LH: loop header
LB: loop body
LE: loop exit
PB: predicated region body
PF: predicated region fallthrough
CT: control target
= control target key end

     0   :  { %8 = vsyncpa [#allocation3], 0  ;;  %s12832_s0 = inlined_call_operand.hbm [shape: f32[2,3,24,24], index: 0, kind: input, shape index: {}]   ;;  %s12833_s1 = inlined_call_operand.hbm [shape: f32[300], index: 1, kind: input, shape index: {}]   ;;  %s12834_s2 = inlined_call_operand.vmem [shape: f32[4], index: 2, kind: input, shape index: {}]   ;;  %s12835_s3 = inlined_call_operand.vmem [shape: f32[2,4,20,20], index: 3, kind: output, shape index: {}]  }
   0x1   :  { %10 = vsyncpa [#allocation3 + $0x1], 0 }
   0x2   :  { %11 = vsyncpa [#allocation4], 0 }
   0x3   :  { %12 = vsyncpa [#allocation5], 0  ;;  %s7716_s12 = smov 0   ;;  %s7718_s13 = smov 0  }
   0x4   :  { %s7720_s14 = smov 0   ;;  %s7722_s15 = smov 0  }
   0x5 LB: > { %s7735_s16 = sadd.s32 4294967295, %s7686_s15   ;;  %s7738_s17 = sadd.s32 1, %s7686_s15   ;;  %s7686_s15 = sphi %s7722_s15, %s13909_s15   ;;  %s7682_s14 = sphi %s7720_s14, %s13908_s14   ;;  %s7678_s13 = sphi %s7718_s13, %s13907_s13   ;;  %s7674_s12 = sphi %s7716_s12, %s13906_s12  }
   0x6   : > { %s22_s18 = ssub.s32 %s7686_s15, %s7738_s17  ;;  %s25_s19 = sadd.s32 1, %s7682_s14 }
   0x7   : > { %p23_p0 = scmp.eq.s32.totalorder %s22_s18, 0  ;;  %p32_p1 = scmp.ne.s32.totalorder %s7682_s14, %s7678_s13 }
   0x8   : > { %p33_p2 = scmp.eq.s32.totalorder %s7686_s15, 0  ;;  %p38_p3 = scmp.ne.s32.totalorder %s7678_s13, %s7674_s12 }
   0x9   : > { %s7748_s20 = scalar_select %p23_p0, %s7682_s14, %s25_s19  }
   0xa   : > { %p7750_p4 = por %p33_p2, %p32_p1  ;;  %p39_p5 = scmp.eq.s32.totalorder %s7735_s16, 0 }
   0xb   : > { %p7148_p6 = scmp.ge.s32.totalorder %s7686_s15, 1  ;;  %p117_p7 = scmp.lt.s32.totalorder %s7686_s15, 3 }
   0xc   : > { %p7759_p8 = por %p39_p5, %p38_p3  ;;  %s129_s26 = sshll.u32 %s12833_s1, 4  ;;  %s130_s26 = int_to_ptr.hbm [resolvable:$true] %s129_s26 }
   0xd   : > { %p7763_p9 = pnand %p7148_p6, %p117_p7  ;;  %p7503_p11 = scmp.lt.s32.totalorder %s7686_s15, 2 }
   0xe   : > { %s139_s29 = sshll.u32 %s12834_s2, 4  ;;  %s150_s4 = sand.u32 1, %s7682_s14   ;;  %s140_s29 = int_to_ptr.vmem [resolvable:$true] %s139_s29 }
   0xf   : > { %p7490_p10 = pneg %p7763_p9  ;;  %p7780_p13 = pnand %p7503_p11, %p7750_p4 }
  0x10   : > { %s7688_s5 = smov [#allocation6]   ;;  %s7689_s6 = smov [#allocation7]  }
  0x11   : > { %p7491_p12 = pnand %p7490_p10, %p39_p5  ;;  %s7476_s7 = smul.u32 72, %s150_s4 }
  0x12   : > { %s7477_s8 = smul.u32 72, %s7686_s15  ;;  %s151_s21 = scalar_lea.sflag [#allocation3], %s150_s4 }
  0x13   : > { %7493 = dma.hbm_to_smem (!%p7491_p12), %s130_s26, 48, %s7688_s5, [#allocation4]  }
  0x14   : > { %7496 = dma.vmem_to_smem (!%p7491_p12), %s140_s29, 16, %s7689_s6, [#allocation5]  }
  0x15   : > { %s159_s11 = scalar_lea.hbm %s12832_s0, %s7477_s8  ;;  %s154_s12 = scalar_lea.vmem [#allocation2], %s7476_s7 }
  0x16   : > { %s162_s18 = sshll.u32 %s154_s12, 4  ;;  %s160_s19 = sshll.u32 %s159_s11, 4  ;;  %s163_s18 = int_to_ptr.vmem [resolvable:$true] %s162_s18  ;;  %s161_s19 = int_to_ptr.hbm [resolvable:$true] %s160_s19 }
  0x17   : > { %s7614_s24 = sshra.s32 %s161_s19, 4  ;;  %p7618_p1 = pneg %p7780_p13  ;;  %s7615_s24 = int_to_ptr.hbm [resolvable:$true] %s7614_s24 }
  0x18   : > { %s7616_s25 = scalar_lea.hbm %s7615_s24, 72  ;;  %s7621_s27 = scalar_lea.hbm %s12832_s0, 144 }
  0x19   : > { %p7617_p0 = scmp.ne.s32.totalorder %s7615_s24, %s7616_s25  ;;  %p7622_p4 = scmp.lt.s32.totalorder %s7615_s24, %s12832_s0 }
  0x1a   : > { %p7623_p6 = scmp.lt.s32.totalorder %s7621_s27, %s7616_s25 }
  0x1b   : > { %p7619_p2 = pnand %p7618_p1, %p7617_p0 }
  0x1c   : > { %p7624_p7 = por %p7623_p6, %p7622_p4 }
  0x1d   : > { %p7620_p3 = pneg %p7619_p2 }
  0x1f   : > { %p7625_p10 = pnand %p7624_p7, %p7620_p3 }
  0x21   : > { %7628 = shalt.err (!%p7625_p10)
}
  0x22   : > { %s7690_s4 = smov 128   ;;  %s7691_s5 = smov 8  }
  0x23   : > { %7500 = dma.hbm_to_vmem [thread:$0]  (!%p7780_p13), %s161_s19, 1152, %s163_s18, %s151_s21, %s7690_s4, %s7690_s4, %s7691_s5  }
  0x24   : > { %174 = sbr.rel (%p7763_p9) target bundleno = 2096 (0x830), region = 32 }
  0x29   : > { %s176_s6 = sand.u32 1, %s7678_s13  }
  0x2a   : > { %s7478_s7 = smul.u32 72, %s176_s6  ;;  %s177_s8 = scalar_lea.sflag [#allocation3], %s176_s6 }
  0x2c   : > { %s7802_s9 = scalar_lea.vmem [#allocation2], %s7478_s7 }
  0x2d   : > { %7661 = dma.done.wait (%p7759_p8), %s177_s8, 1152  }
  0x2e   : > { %7663 = vsyncadd (%p7759_p8), %s177_s8, 4294966144 }
  0x2f   : > { %7665 = dma.done.wait (%p39_p5), [#allocation4], 48  }
  0x30   : > { %7667 = vsyncadd (%p39_p5), [#allocation4], 4294967248 }
  0x31   : > { %7669 = dma.done.wait (%p39_p5), [#allocation5], 16  }
  0x32   : > { %7671 = vsyncadd (%p39_p5), [#allocation5], 4294967280 }
  0x33   : > { %196 = sfence }
  0x34   : > { %s7163_s23 = sld [smem:[#allocation6 + $0x1]]  ;;  %v7817_v0 = vld [vmem:[%s7802_s9 + $0x10] sm:$0xff]  ;;  %v7820_v1 = vld [vmem:[%s7802_s9] sm:$0xff]  ;;  %v7823_v2 = vld [vmem:[%s7802_s9 + $0x8] sm:$0xff]  ;;  %s7692_s22 = smov 127   ;;  %vm595_vm0 = vcmask 1046528  }
  0x35   : > { %s7164_s30 = sld [smem:[#allocation6 + $0x4c]]  ;;  %s7693_s19 = smov 126   ;;  %vm1072_vm1 = vcmask 1045504   ;;  %vm1549_vm2 = vcmask 1044480   ;;  %vm2026_vm3 = vcmask 1043456   ;;  %vm7024_vm4 = vcmask 158720  }
  0x36   : > { %s7165_s10 = sld [smem:[#allocation6 + $0x97]]  ;;  %s7694_s15 = smov 125   ;;  %vm7021_vm5 = vcmask 162816  }
  0x37   : > { %s7166_s11 = sld [smem:[#allocation6 + $0xe2]]  ;;  %s7695_s5 = smov 124  }
  0x38   : > { %s7167_s12 = sld [smem:[#allocation6 + $0x2]]  ;;  %p215_p5 = scmp.lt.s32.totalorder %s7735_s16, 1 }
  0x39   : > { %s7168_s18 = sld [smem:[#allocation6 + $0x4d]] }
  0x3a   : > { %v268_v3 = vstv %s7163_s23  ;;  %s7169_s21 = sld [smem:[#allocation6 + $0x98]]  ;;  %s13911_s16 = smov (!%p215_p5, %s7735_s16), 1 }
  0x3b   : > { %v271_v4 = vmul.f32 %v268_v3, %v7817_v0  ;;  %v288_v5 = vstv %s7164_s30  ;;  %v269_v6 = vmul.f32 %v268_v3, %v7820_v1  ;;  %v270_v9 = vmul.f32 %v268_v3, %v7823_v2  ;;  %s7170_s24 = sld [smem:[#allocation6 + $0xe3]] }
  0x3c   : > { %v290_v7 = vmul.f32 %v288_v5, %v7823_v2  ;;  %v289_v8 = vmul.f32 %v288_v5, %v7820_v1  ;;  %v291_v10 = vmul.f32 %v288_v5, %v7817_v0  ;;  %v308_v11 = vstv %s7165_s10  ;;  %s7171_s25 = sld [smem:[#allocation6 + $0x3]] }
  0x3d   : > { %279 = vrot.lane.b32.xlu1 %v271_v4, %s7692_s22  ;;  %275 = vrot.lane.b32.xlu0 %v269_v6, %s7692_s22  ;;  %v310_v12 = vmul.f32 %v308_v11, %v7823_v2  ;;  %v309_v13 = vmul.f32 %v308_v11, %v7820_v1  ;;  %v311_v14 = vmul.f32 %v308_v11, %v7817_v0  ;;  %v328_v15 = vstv %s7166_s11  ;;  %s7172_s26 = sld [smem:[#allocation6 + $0x4e]] }
  0x3e   : > { %297 = vrot.lane.b32.xlu2 %v290_v7, %s7692_s22  ;;  %v330_v16 = vmul.f32 %v328_v15, %v7823_v2  ;;  %v329_v17 = vmul.f32 %v328_v15, %v7820_v1  ;;  %v331_v18 = vmul.f32 %v328_v15, %v7817_v0  ;;  %v348_v19 = vstv %s7167_s12  ;;  %s7173_s27 = sld [smem:[#allocation6 + $0x99]] }
  0x3f   : > { %v350_v20 = vmul.f32 %v348_v19, %v7823_v2  ;;  %v349_v21 = vmul.f32 %v348_v19, %v7820_v1  ;;  %v351_v22 = vmul.f32 %v348_v19, %v7817_v0  ;;  %v368_v23 = vstv %s7168_s18  ;;  %s7174_s28 = sld [smem:[#allocation6 + $0xe4]] }
  0x40   : > { %v370_v24 = vmul.f32 %v368_v23, %v7823_v2  ;;  %v369_v25 = vmul.f32 %v368_v23, %v7820_v1  ;;  %v371_v26 = vmul.f32 %v368_v23, %v7817_v0  ;;  %v388_v27 = vstv %s7169_s21  ;;  %s7175_s29 = sld [smem:[#allocation6 + $0x4]] }
  0x41   : > { %v390_v28 = vmul.f32 %v388_v27, %v7823_v2  ;;  %v389_v29 = vmul.f32 %v388_v27, %v7820_v1  ;;  %v391_v30 = vmul.f32 %v388_v27, %v7817_v0  ;;  %v408_v31 = vstv %s7170_s24  ;;  %s7176_s4 = sld [smem:[#allocation6 + $0x4f]] }
  0x42   : > { %v410_v32 = vmul.f32 %v408_v31, %v7823_v2  ;;  %v409_v33 = vmul.f32 %v408_v31, %v7820_v1  ;;  %v411_v34 = vmul.f32 %v408_v31, %v7817_v0  ;;  %v428_v35 = vstv %s7171_s25  ;;  %s7177_s6 = sld [smem:[#allocation6 + $0x9a]] }
  0x43   : > { %v430_v36 = vmul.f32 %v428_v35, %v7823_v2  ;;  %v429_v37 = vmul.f32 %v428_v35, %v7820_v1  ;;  %v431_v38 = vmul.f32 %v428_v35, %v7817_v0  ;;  %v448_v39 = vstv %s7172_s26  ;;  %s7178_s7 = sld [smem:[#allocation6 + $0xe5]] }
  0x44   : > { %v450_v40 = vmul.f32 %v448_v39, %v7823_v2  ;;  %v449_v41 = vmul.f32 %v448_v39, %v7820_v1  ;;  %v451_v42 = vmul.f32 %v448_v39, %v7817_v0  ;;  %v468_v43 = vstv %s7173_s27  ;;  %s7183_s8 = sld [smem:[#allocation6 + $0x6]] }
  0x45   : > { %295 = vrot.lane.b32.xlu1 %v289_v8, %s7692_s22  ;;  %277 = vrot.lane.b32.xlu0 %v270_v9, %s7692_s22  ;;  %v470_v44 = vmul.f32 %v468_v43, %v7823_v2  ;;  %v469_v45 = vmul.f32 %v468_v43, %v7820_v1  ;;  %v471_v46 = vmul.f32 %v468_v43, %v7817_v0  ;;  %v488_v47 = vstv %s7174_s28  ;;  %s7184_s23 = sld [smem:[#allocation6 + $0x51]] }
  0x46   : > { %299 = vrot.lane.b32.xlu2 %v291_v10, %s7692_s22  ;;  %v490_v48 = vmul.f32 %v488_v47, %v7823_v2  ;;  %v489_v49 = vmul.f32 %v488_v47, %v7820_v1  ;;  %v491_v50 = vmul.f32 %v488_v47, %v7817_v0  ;;  %v508_v51 = vstv %s7175_s29  ;;  %s7185_s30 = sld [smem:[#allocation6 + $0x9c]] }
  0x47   : > { %v510_v53 = vmul.f32 %v508_v51, %v7823_v2  ;;  %v509_v54 = vmul.f32 %v508_v51, %v7820_v1  ;;  %v511_v55 = vmul.f32 %v508_v51, %v7817_v0  ;;  %v528_v56 = vstv %s7176_s4  ;;  %s7186_s10 = sld [smem:[#allocation6 + $0xe7]] }
  0x48   : > { %v530_v58 = vmul.f32 %v528_v56, %v7823_v2  ;;  %v529_v59 = vmul.f32 %v528_v56, %v7820_v1  ;;  %v531_v60 = vmul.f32 %v528_v56, %v7817_v0  ;;  %v548_v61 = vstv %s7177_s6  ;;  %s7187_s11 = sld [smem:[#allocation6 + $0x7]] }
  0x49   : > { %v550_v63 = vmul.f32 %v548_v61, %v7823_v2  ;;  %v549_v3 = vmul.f32 %v548_v61, %v7820_v1  ;;  %v551_v4 = vmul.f32 %v548_v61, %v7817_v0  ;;  %v568_v5 = vstv %s7178_s7  ;;  %s7188_s12 = sld [smem:[#allocation6 + $0x52]] }
  0x4a   : > { %v665_v6 = vstv %s7183_s8  ;;  %v570_v10 = vmul.f32 %v568_v5, %v7823_v2  ;;  %v569_v11 = vmul.f32 %v568_v5, %v7820_v1  ;;  %s7189_s18 = sld [smem:[#allocation6 + $0x9d]] }
  0x4b   : > { %v666_v15 = vmul.f32 %v665_v6, %v7820_v1  ;;  %s7190_s21 = sld [smem:[#allocation6 + $0xe8]] }
  0x4c   : > { %v715_v31 = vstv %s7185_s30  ;;  %s7191_s24 = sld [smem:[#allocation6 + $0x8]] }
  0x4d   : > { %317 = vrot.lane.b32.xlu1 %v310_v12, %s7692_s22  ;;  %315 = vrot.lane.b32.xlu0 %v309_v13, %s7692_s22  ;;  %v668_v12 = vmul.f32 %v665_v6, %v7817_v0  ;;  %v667_v13 = vmul.f32 %v665_v6, %v7823_v2  ;;  %v718_v35 = vmul.f32 %v715_v31, %v7817_v0  ;;  %s7192_s25 = sld [smem:[#allocation6 + $0x53]] }
  0x4e   : > { %319 = vrot.lane.b32.xlu2 %v311_v14, %s7692_s22  ;;  %v571_v14 = vmul.f32 %v568_v5, %v7817_v0  ;;  %v716_v39 = vmul.f32 %v715_v31, %v7820_v1  ;;  %v765_v56 = vstv %s7187_s11  ;;  %s7193_s26 = sld [smem:[#allocation6 + $0x9e]] }
  0x4f   : > { %v768_v61 = vmul.f32 %v765_v56, %v7817_v0  ;;  %v766_v5 = vmul.f32 %v765_v56, %v7820_v1  ;;  %s7194_s27 = sld [smem:[#allocation6 + $0xe9]] }
  0x50   : > { %s7195_s28 = sld [smem:[#allocation6 + $0x9]] }
  0x51   : > { %v775_v6 = vrot.slane %v768_v61, 1  ;;  %s7196_s29 = sld [smem:[#allocation6 + $0x54]] }
  0x52   : > { %s7197_s4 = sld [smem:[#allocation6 + $0x9f]] }
  0x53   : > { %s7198_s6 = sld [smem:[#allocation6 + $0xea]] }
  0x54   : > { %s7203_s7 = sld [smem:[#allocation6 + $0xb]] }
  0x55   : > { %337 = vrot.lane.b32.xlu1 %v330_v16, %s7692_s22  ;;  %335 = vrot.lane.b32.xlu0 %v329_v17, %s7692_s22  ;;  %v675_v16 = vrot.slane %v668_v12, 1  ;;  %v673_v17 = vrot.slane %v667_v13, 1  ;;  %s7204_s8 = sld [smem:[#allocation6 + $0x56]] }
  0x56   : > { %339 = vrot.lane.b32.xlu2 %v331_v18, %s7692_s22  ;;  %v672_v18 = vrot.slane %v666_v15, 1  ;;  %s7206_s30 = sld [smem:[#allocation6 + $0xec]] }
  0x57   : > { %v676_v23 = vsel %vm595_vm0, %v673_v17, %v675_v16  ;;  %s7208_s11 = sld [smem:[#allocation6 + $0x57]] }
  0x5d   : > { %357 = vrot.lane.b32.xlu1 %v350_v20, %s7693_s19  ;;  %355 = vrot.lane.b32.xlu0 %v349_v21, %s7693_s19  ;;  %v690_v21 = vstv %s7184_s23  ;;  %s7205_s23 = sld [smem:[#allocation6 + $0xa1]] }
  0x5e   : > { %359 = vrot.lane.b32.xlu2 %v351_v22, %s7693_s19  ;;  %v691_v27 = vmul.f32 %v690_v21, %v7820_v1 }
  0x65   : > { %377 = vrot.lane.b32.xlu1 %v370_v24, %s7693_s19  ;;  %375 = vrot.lane.b32.xlu0 %v369_v25, %s7693_s19  ;;  %v674_v24 = vsel %vm595_vm0, %v672_v18, %v673_v17  ;;  %v693_v25 = vmul.f32 %v690_v21, %v7817_v0 }
  0x66   : > { %379 = vrot.lane.b32.xlu2 %v371_v26, %s7693_s19  ;;  %v692_v26 = vmul.f32 %v690_v21, %v7823_v2 }
  0x6d   : > { %397 = vrot.lane.b32.xlu1 %v390_v28, %s7693_s19  ;;  %395 = vrot.lane.b32.xlu0 %v389_v29, %s7693_s19  ;;  %v700_v28 = vrot.slane %v693_v25, 1  ;;  %v698_v29 = vrot.slane %v692_v26, 1 }
  0x6e   : > { %399 = vrot.lane.b32.xlu2 %v391_v30, %s7693_s19  ;;  %v697_v30 = vrot.slane %v691_v27, 1  ;;  %v815_v27 = vstv %s7189_s18  ;;  %s7210_s18 = sld [smem:[#allocation6 + $0xed]] }
  0x75   : > { %417 = vrot.lane.b32.xlu1 %v410_v32, %s7693_s19  ;;  %415 = vrot.lane.b32.xlu0 %v409_v33, %s7693_s19 }
  0x76   : > { %419 = vrot.lane.b32.xlu2 %v411_v34, %s7693_s19 }
  0x7d   : > { %437 = vrot.lane.b32.xlu1 %v430_v36, %s7694_s15  ;;  %435 = vrot.lane.b32.xlu0 %v429_v37, %s7694_s15  ;;  %v717_v36 = vmul.f32 %v715_v31, %v7823_v2  ;;  %v701_v37 = vsel %vm595_vm0, %v698_v29, %v700_v28  ;;  %v818_v31 = vmul.f32 %v815_v27, %v7817_v0 }
  0x7e   : > { %439 = vrot.lane.b32.xlu2 %v431_v38, %s7694_s15  ;;  %v699_v38 = vsel %vm595_vm0, %v697_v30, %v698_v29 }
  0x85   : > { %457 = vrot.lane.b32.xlu1 %v450_v40, %s7694_s15  ;;  %455 = vrot.lane.b32.xlu0 %v449_v41, %s7694_s15  ;;  %v725_v40 = vrot.slane %v718_v35, 1  ;;  %v723_v41 = vrot.slane %v717_v36, 1  ;;  %v817_v35 = vmul.f32 %v815_v27, %v7823_v2 }
  0x86   : > { %459 = vrot.lane.b32.xlu2 %v451_v42, %s7694_s15  ;;  %v722_v42 = vrot.slane %v716_v39, 1  ;;  %v825_v39 = vrot.slane %v818_v31, 1 }
  0x87   : > { %v726_v47 = vsel %vm595_vm0, %v723_v41, %v725_v40 }
  0x8d   : > { %477 = vrot.lane.b32.xlu1 %v470_v44, %s7694_s15  ;;  %475 = vrot.lane.b32.xlu0 %v469_v45, %s7694_s15  ;;  %v740_v45 = vstv %s7186_s10  ;;  %s7207_s10 = sld [smem:[#allocation6 + $0xc]] }
  0x8e   : > { %479 = vrot.lane.b32.xlu2 %v471_v46, %s7694_s15  ;;  %v741_v51 = vmul.f32 %v740_v45, %v7820_v1 }
  0x95   : > { %497 = vrot.lane.b32.xlu1 %v490_v48, %s7694_s15  ;;  %495 = vrot.lane.b32.xlu0 %v489_v49, %s7694_s15  ;;  %v724_v48 = vsel %vm595_vm0, %v722_v42, %v723_v41  ;;  %v743_v49 = vmul.f32 %v740_v45, %v7817_v0 }
  0x96   : > { %499 = vrot.lane.b32.xlu2 %v491_v50, %s7694_s15  ;;  %v742_v50 = vmul.f32 %v740_v45, %v7823_v2 }
  0x98   : > { %v7897_v52 = vpop.permute.xlu2 %297 }
  0x9d   : > { %517 = vrot.lane.b32.xlu1 %v510_v53, %s7695_s5  ;;  %515 = vrot.lane.b32.xlu0 %v509_v54, %s7695_s5  ;;  %v750_v53 = vrot.slane %v743_v49, 1  ;;  %v748_v54 = vrot.slane %v742_v50, 1 }
  0x9e   : > { %519 = vrot.lane.b32.xlu2 %v511_v55, %s7695_s5  ;;  %v747_v55 = vrot.slane %v741_v51, 1 }
  0xa0   : > { %v7905_v57 = vpop.permute.xlu2 %299 }
  0xa5   : > { %537 = vrot.lane.b32.xlu1 %v530_v58, %s7695_s5  ;;  %535 = vrot.lane.b32.xlu0 %v529_v59, %s7695_s5 }
  0xa6   : > { %539 = vrot.lane.b32.xlu2 %v531_v60, %s7695_s5 }
  0xa8   : > { %v7913_v62 = vpop.permute.xlu2 %319 }
  0xad   : > { %557 = vrot.lane.b32.xlu1 %v550_v63, %s7695_s5  ;;  %555 = vrot.lane.b32.xlu0 %v549_v3, %s7695_s5  ;;  %v767_v63 = vmul.f32 %v765_v56, %v7823_v2  ;;  %v751_v3 = vsel %vm595_vm0, %v748_v54, %v750_v53 }
  0xae   : > { %559 = vrot.lane.b32.xlu2 %v551_v4, %s7695_s5  ;;  %v749_v4 = vsel %vm595_vm0, %v747_v55, %v748_v54 }
  0xaf   : > { %v7921_v7 = vpop.permute.xlu1 %279  ;;  %v7923_v8 = vpop.permute.xlu0 %275 }
  0xb0   : > { %v7925_v9 = vpop.permute.xlu2 %339 }
  0xb5   : > { %577 = vrot.lane.b32.xlu1 %v570_v10, %s7695_s5  ;;  %575 = vrot.lane.b32.xlu0 %v569_v11, %s7695_s5  ;;  %v773_v10 = vrot.slane %v767_v63, 1  ;;  %v772_v11 = vrot.slane %v766_v5, 1  ;;  %v865_v63 = vstv %s7191_s24  ;;  %s7212_s24 = sld [smem:[#allocation6 + $0x58]] }
  0xb6   : > { %579 = vrot.lane.b32.xlu2 %v571_v14, %s7695_s5  ;;  %v790_v14 = vstv %s7188_s12  ;;  %s7209_s12 = sld [smem:[#allocation6 + $0xa2]] }
  0xb7   : > { %v7936_v19 = vpop.permute.xlu1 %295  ;;  %v7938_v20 = vpop.permute.xlu0 %277  ;;  %v774_v17 = vsel %vm595_vm0, %v772_v11, %v773_v10  ;;  %v793_v18 = vmul.f32 %v790_v14, %v7817_v0  ;;  %v792_v21 = vmul.f32 %v790_v14, %v7823_v2 }
  0xb8   : > { %v7940_v22 = vpop.permute.xlu2 %359 }
  0xb9   : > { %v798_v25 = vrot.slane %v792_v21, 1 }
  0xbd   : > { %679 = vrot.lane.b32.xlu1 %v676_v23, %s7692_s22  ;;  %677 = vrot.lane.b32.xlu0 %v674_v24, %s7692_s22  ;;  %v791_v23 = vmul.f32 %v790_v14, %v7820_v1  ;;  %v800_v24 = vrot.slane %v793_v18, 1 }
  0xbe   : > { %681 = vrot.lane.b32.xlu2 %v675_v16, %s7692_s22  ;;  %v776_v16 = vsel %vm595_vm0, %v773_v10, %v775_v6  ;;  %v867_v10 = vmul.f32 %v865_v63, %v7823_v2 }
  0xbf   : > { %v7950_v32 = vpop.permute.xlu1 %317  ;;  %v7952_v33 = vpop.permute.xlu0 %315  ;;  %v797_v26 = vrot.slane %v791_v23, 1  ;;  %v801_v36 = vsel %vm595_vm0, %v798_v25, %v800_v24 }
  0xc0   : > { %v7954_v34 = vpop.permute.xlu2 %379  ;;  %v873_v18 = vrot.slane %v867_v10, 1 }
  0xc5   : > { %704 = vrot.lane.b32.xlu1 %v701_v37, %s7692_s22  ;;  %702 = vrot.lane.b32.xlu0 %v699_v38, %s7692_s22  ;;  %v799_v37 = vsel %vm595_vm0, %v797_v26, %v798_v25  ;;  %v816_v38 = vmul.f32 %v815_v27, %v7820_v1  ;;  %v890_v25 = vstv %s7192_s25  ;;  %s7213_s25 = sld [smem:[#allocation6 + $0xa3]] }
  0xc6   : > { %706 = vrot.lane.b32.xlu2 %v700_v28, %s7692_s22 }
  0xc7   : > { %v7964_v43 = vpop.permute.xlu1 %337  ;;  %v7966_v44 = vpop.permute.xlu0 %335  ;;  %v822_v41 = vrot.slane %v816_v38, 1 }
  0xc8   : > { %v7968_v46 = vpop.permute.xlu2 %399 }
  0xcd   : > { %729 = vrot.lane.b32.xlu1 %v726_v47, %s7692_s22  ;;  %727 = vrot.lane.b32.xlu0 %v724_v48, %s7692_s22  ;;  %v840_v47 = vstv %s7190_s21  ;;  %s7211_s21 = sld [smem:[#allocation6 + $0xd]] }
  0xce   : > { %731 = vrot.lane.b32.xlu2 %v725_v40, %s7692_s22  ;;  %v823_v40 = vrot.slane %v817_v35, 1  ;;  %v843_v51 = vmul.f32 %v840_v47, %v7817_v0  ;;  %v841_v54 = vmul.f32 %v840_v47, %v7820_v1  ;;  %v893_v35 = vmul.f32 %v890_v25, %v7817_v0 }
  0xcf   : > { %v7978_v58 = vpop.permute.xlu1 %357  ;;  %v7980_v59 = vpop.permute.xlu0 %355 }
  0xd0   : > { %v7982_v60 = vpop.permute.xlu2 %419  ;;  %v826_v49 = vsel %vm595_vm0, %v823_v40, %v825_v39  ;;  %v824_v50 = vsel %vm595_vm0, %v822_v41, %v823_v40  ;;  %v850_v55 = vrot.slane %v843_v51, 1  ;;  %v847_v61 = vrot.slane %v841_v54, 1 }
  0xd1   : > { %v900_v38 = vrot.slane %v893_v35, 1  ;;  %v915_v41 = vstv %s7193_s26  ;;  %s7214_s26 = sld [smem:[#allocation6 + $0xee]] }
  0xd2   : > { %v918_v51 = vmul.f32 %v915_v41, %v7817_v0 }
  0xd5   : > { %754 = vrot.lane.b32.xlu1 %v751_v3, %s7692_s22  ;;  %752 = vrot.lane.b32.xlu0 %v749_v4, %s7692_s22 }
  0xd6   : > { %756 = vrot.lane.b32.xlu2 %v750_v53, %s7692_s22  ;;  %v842_v53 = vmul.f32 %v840_v47, %v7823_v2 }
  0xd7   : > { %v7992_v12 = vpop.permute.xlu1 %377  ;;  %v7994_v13 = vpop.permute.xlu0 %375 }
  0xd8   : > { %v7996_v15 = vpop.permute.xlu2 %439  ;;  %v848_v56 = vrot.slane %v842_v53, 1  ;;  %v917_v53 = vmul.f32 %v915_v41, %v7823_v2 }
  0xda   : > { %v851_v11 = vsel %vm595_vm0, %v848_v56, %v850_v55  ;;  %v849_v14 = vsel %vm595_vm0, %v847_v61, %v848_v56  ;;  %v916_v56 = vmul.f32 %v915_v41, %v7820_v1  ;;  %v925_v61 = vrot.slane %v918_v51, 1 }
  0xdd   : > { %779 = vrot.lane.b32.xlu1 %v776_v16, %s7693_s19  ;;  %777 = vrot.lane.b32.xlu0 %v774_v17, %s7693_s19  ;;  %v866_v16 = vmul.f32 %v865_v63, %v7820_v1 }
  0xde   : > { %781 = vrot.lane.b32.xlu2 %v775_v6, %s7693_s19  ;;  %v868_v6 = vmul.f32 %v865_v63, %v7817_v0  ;;  %v923_v63 = vrot.slane %v917_v53, 1 }
  0xdf   : > { %v8006_v28 = vpop.permute.xlu1 %397  ;;  %v8008_v29 = vpop.permute.xlu0 %395  ;;  %v872_v21 = vrot.slane %v866_v16, 1 }
  0xe0   : > { %v8010_v30 = vpop.permute.xlu2 %459  ;;  %v875_v17 = vrot.slane %v868_v6, 1  ;;  %v922_v6 = vrot.slane %v916_v56, 1 }
  0xe1   : > { %v874_v31 = vsel %vm595_vm0, %v872_v21, %v873_v18 }
  0xe2   : > { %v876_v27 = vsel %vm595_vm0, %v873_v18, %v875_v17  ;;  %v924_v18 = vsel %vm595_vm0, %v922_v6, %v923_v63 }
  0xe5   : > { %804 = vrot.lane.b32.xlu1 %v801_v36, %s7693_s19  ;;  %802 = vrot.lane.b32.xlu0 %v799_v37, %s7693_s19  ;;  %v892_v36 = vmul.f32 %v890_v25, %v7823_v2  ;;  %v891_v37 = vmul.f32 %v890_v25, %v7820_v1 }
  0xe6   : > { %806 = vrot.lane.b32.xlu2 %v800_v24, %s7693_s19 }
  0xe7   : > { %v8020_v42 = vpop.permute.xlu1 %417  ;;  %v8022_v45 = vpop.permute.xlu0 %415  ;;  %v897_v40 = vrot.slane %v891_v37, 1  ;;  %v965_v37 = vstv %s7195_s28  ;;  %s7216_s28 = sld [smem:[#allocation6 + $0x59]] }
  0xe8   : > { %v8024_v48 = vpop.permute.xlu2 %479  ;;  %v968_v41 = vmul.f32 %v965_v37, %v7817_v0  ;;  %v967_v51 = vmul.f32 %v965_v37, %v7823_v2 }
  0xea   : > { %v975_v56 = vrot.slane %v968_v41, 1 }
  0xed   : > { %829 = vrot.lane.b32.xlu1 %v826_v49, %s7693_s19  ;;  %827 = vrot.lane.b32.xlu0 %v824_v50, %s7693_s19 }
  0xee   : > { %831 = vrot.lane.b32.xlu2 %v825_v39, %s7693_s19  ;;  %v898_v39 = vrot.slane %v892_v36, 1 }
  0xef   : > { %v8034_v3 = vpop.permute.xlu1 %437  ;;  %v8036_v4 = vpop.permute.xlu0 %435 }
  0xf0   : > { %12840 = vst [vmem:[#allocation11_spill] sm:$0xff] %v8034_v3  ;;  %v8038_v5 = vpop.permute.xlu2 %499  ;;  %v901_v54 = vsel %vm595_vm0, %v898_v39, %v900_v38 }
  0xf1   : > { %12841 = vst [vmem:[#allocation12_spill] sm:$0xff] %v8036_v4 }
  0xf2   : > { %12842 = vst [vmem:[#allocation13_spill] sm:$0xff] %v8038_v5 }
  0xf5   : > { %854 = vrot.lane.b32.xlu1 %v851_v11, %s7693_s19  ;;  %852 = vrot.lane.b32.xlu0 %v849_v14, %s7693_s19  ;;  %v940_v14 = vstv %s7194_s27  ;;  %s7215_s27 = sld [smem:[#allocation6 + $0xe]] }
  0xf6   : > { %856 = vrot.lane.b32.xlu2 %v850_v55, %s7693_s19  ;;  %v899_v55 = vsel %vm595_vm0, %v897_v40, %v898_v39  ;;  %v943_v21 = vmul.f32 %v940_v14, %v7817_v0  ;;  %v942_v25 = vmul.f32 %v940_v14, %v7823_v2 }
  0xf7   : > { %v8048_v23 = vpop.permute.xlu1 %457  ;;  %v8050_v24 = vpop.permute.xlu0 %455 }
  0xf8   : > { %12843 = vst [vmem:[#allocation14_spill] sm:$0xff] %v8048_v23  ;;  %v8052_v26 = vpop.permute.xlu2 %519  ;;  %v948_v35 = vrot.slane %v942_v25, 1 }
  0xf9   : > { %12844 = vst [vmem:[#allocation15_spill] sm:$0xff] %v8050_v24 }
  0xfa   : > { %12845 = vst [vmem:[#allocation16_spill] sm:$0xff] %v8052_v26 }
  0xfd   : > { %879 = vrot.lane.b32.xlu1 %v876_v27, %s7694_s15  ;;  %877 = vrot.lane.b32.xlu0 %v874_v31, %s7694_s15  ;;  %v941_v27 = vmul.f32 %v940_v14, %v7820_v1  ;;  %v950_v31 = vrot.slane %v943_v21, 1 }
  0xfe   : > { %881 = vrot.lane.b32.xlu2 %v875_v17, %s7694_s15  ;;  %v926_v17 = vsel %vm595_vm0, %v923_v63, %v925_v61 }
  0xff   : > { %v8062_v47 = vpop.permute.xlu1 %477  ;;  %v8064_v49 = vpop.permute.xlu0 %475  ;;  %v947_v36 = vrot.slane %v941_v27, 1  ;;  %v951_v53 = vsel %vm595_vm0, %v948_v35, %v950_v31 }
 0x100   : > { %12846 = vst [vmem:[#allocation17_spill] sm:$0xff] %v8062_v47  ;;  %v8066_v50 = vpop.permute.xlu2 %539 }
 0x101   : > { %12847 = vst [vmem:[#allocation18_spill] sm:$0xff] %v8064_v49 }
 0x102   : > { %12848 = vst [vmem:[#allocation19_spill] sm:$0xff] %v8066_v50 }
 0x105   : > { %904 = vrot.lane.b32.xlu1 %v901_v54, %s7694_s15  ;;  %902 = vrot.lane.b32.xlu0 %v899_v55, %s7694_s15  ;;  %v949_v54 = vsel %vm595_vm0, %v947_v36, %v948_v35  ;;  %v966_v55 = vmul.f32 %v965_v37, %v7820_v1 }
 0x106   : > { %906 = vrot.lane.b32.xlu2 %v900_v38, %s7694_s15 }
 0x107   : > { %v8076_v10 = vpop.permute.xlu1 %497  ;;  %v8078_v11 = vpop.permute.xlu0 %495  ;;  %v972_v63 = vrot.slane %v966_v55, 1 }
 0x108   : > { %12849 = vst [vmem:[#allocation20_spill] sm:$0xff] %v8076_v10  ;;  %v8080_v16 = vpop.permute.xlu2 %559 }
 0x109   : > { %12850 = vst [vmem:[#allocation21_spill] sm:$0xff] %v8078_v11 }
 0x10a   : > { %12851 = vst [vmem:[#allocation22_spill] sm:$0xff] %v8080_v16 }
 0x10d   : > { %929 = vrot.lane.b32.xlu1 %v926_v17, %s7694_s15  ;;  %927 = vrot.lane.b32.xlu0 %v924_v18, %s7694_s15  ;;  %v990_v17 = vstv %s7196_s29  ;;  %s7217_s29 = sld [smem:[#allocation6 + $0xa4]] }
 0x10e   : > { %931 = vrot.lane.b32.xlu2 %v925_v61, %s7694_s15  ;;  %v973_v61 = vrot.slane %v967_v51, 1  ;;  %v993_v27 = vmul.f32 %v990_v17, %v7817_v0  ;;  %v992_v35 = vmul.f32 %v990_v17, %v7823_v2  ;;  %v991_v36 = vmul.f32 %v990_v17, %v7820_v1 }
 0x10f   : > { %v8090_v38 = vpop.permute.xlu1 %517  ;;  %v8092_v39 = vpop.permute.xlu0 %515  ;;  %v1015_v51 = vstv %s7197_s4  ;;  %s7218_s4 = sld [smem:[#allocation6 + $0xef]] }
 0x110   : > { %12852 = vst [vmem:[#allocation23_spill] sm:$0xff] %v8090_v38  ;;  %v8094_v40 = vpop.permute.xlu2 %579  ;;  %v976_v21 = vsel %vm595_vm0, %v973_v61, %v975_v56  ;;  %v974_v25 = vsel %vm595_vm0, %v972_v63, %v973_v61  ;;  %v998_v37 = vrot.slane %v992_v35, 1  ;;  %v997_v41 = vrot.slane %v991_v36, 1 }
 0x111   : > { %12853 = vst [vmem:[#allocation24_spill] sm:$0xff] %v8092_v39  ;;  %v1018_v61 = vmul.f32 %v1015_v51, %v7817_v0  ;;  %v1017_v63 = vmul.f32 %v1015_v51, %v7823_v2 }
 0x112   : > { %12854 = vst [vmem:[#allocation25_spill] sm:$0xff] %v8094_v40 }
 0x115   : > { %954 = vrot.lane.b32.xlu1 %v951_v53, %s7694_s15  ;;  %952 = vrot.lane.b32.xlu0 %v949_v54, %s7694_s15 }
 0x116   : > { %956 = vrot.lane.b32.xlu2 %v950_v31, %s7694_s15  ;;  %v1000_v31 = vrot.slane %v993_v27, 1  ;;  %v1023_v27 = vrot.slane %v1017_v63, 1 }
 0x117   : > { %v8104_v6 = vpop.permute.xlu1 %537  ;;  %v8106_v14 = vpop.permute.xlu0 %535 }
 0x118   : > { %12855 = vst [vmem:[#allocation26_spill] sm:$0xff] %v8104_v6  ;;  %v8108_v18 = vpop.permute.xlu2 %681  ;;  %v1001_v17 = vsel %vm595_vm0, %v998_v37, %v1000_v31 }
 0x119   : > { %12856 = vst [vmem:[#allocation27_spill] sm:$0xff] %v8106_v14  ;;  %v10029_v14 = vld [vmem:[%s7802_s9] sm:$0xff] }
 0x11a   : > { %12857 = vst [vmem:[#allocation28_spill] sm:$0xff] %v8108_v18  ;;  %v1040_v18 = vstv %s7198_s6  ;;  %s7223_s6 = sld [smem:[#allocation6 + $0x10]] }
 0x11b   : > { %v1041_v63 = vmul.f32 %v1040_v18, %v7820_v1 }
 0x11d   : > { %979 = vrot.lane.b32.xlu1 %v976_v21, %s7695_s5  ;;  %977 = vrot.lane.b32.xlu0 %v974_v25, %s7695_s5  ;;  %v999_v21 = vsel %vm595_vm0, %v997_v41, %v998_v37  ;;  %v1025_v25 = vrot.slane %v1018_v61, 1  ;;  %v1042_v61 = vmul.f32 %v1040_v18, %v7823_v2 }
 0x11e   : > { %981 = vrot.lane.b32.xlu2 %v975_v56, %s7695_s5  ;;  %v1016_v56 = vmul.f32 %v1015_v51, %v7820_v1  ;;  %v1043_v51 = vmul.f32 %v1040_v18, %v7817_v0 }
 0x11f   : > { %v8118_v53 = vpop.permute.xlu1 %557  ;;  %v8120_v54 = vpop.permute.xlu0 %555  ;;  %v1026_v37 = vsel %vm595_vm0, %v1023_v27, %v1025_v25 }
 0x120   : > { %12858 = vst [vmem:[#allocation29_spill] sm:$0xff] %v8118_v53  ;;  %v8122_v55 = vpop.permute.xlu2 %706  ;;  %v1022_v35 = vrot.slane %v1016_v56, 1  ;;  %v1142_v56 = vstv %s7203_s7  ;;  %s7224_s7 = sld [smem:[#allocation6 + $0x5b]] }
 0x121   : > { %12859 = vst [vmem:[#allocation30_spill] sm:$0xff] %v8120_v54  ;;  %v1144_v18 = vmul.f32 %v1142_v56, %v7823_v2 }
 0x122   : > { %12860 = vst [vmem:[#allocation31_spill] sm:$0xff] %v8122_v55  ;;  %v1024_v41 = vsel %vm595_vm0, %v1022_v35, %v1023_v27  ;;  %v1145_v35 = vmul.f32 %v1142_v56, %v7817_v0 }
 0x125   : > { %1004 = vrot.lane.b32.xlu1 %v1001_v17, %s7695_s5  ;;  %1002 = vrot.lane.b32.xlu0 %v999_v21, %s7695_s5  ;;  %v1048_v17 = vrot.slane %v1042_v61, 1  ;;  %v1047_v21 = vrot.slane %v1041_v63, 1  ;;  %v1150_v61 = vrot.slane %v1144_v18, 2 }
 0x126   : > { %1006 = vrot.lane.b32.xlu2 %v1000_v31, %s7695_s5  ;;  %v1050_v31 = vrot.slane %v1043_v51, 1  ;;  %v1152_v51 = vrot.slane %v1145_v35, 2 }
 0x127   : > { %v8132_v36 = vpop.permute.xlu1 %577  ;;  %v8134_v55 = vpop.permute.xlu0 %575 }
 0x128   : > { %12861 = vst [vmem:[#allocation32_spill] sm:$0xff] %v8132_v36  ;;  %v8136_v54 = vpop.permute.xlu2 %731 }
 0x129   : > { %12862 = vst [vmem:[#allocation33_spill] sm:$0xff] %v8134_v55 }
 0x12a   : > { %12863 = vst [vmem:[#allocation34_spill] sm:$0xff] %v8136_v54 }
 0x12d   : > { %1029 = vrot.lane.b32.xlu1 %v1026_v37, %s7695_s5  ;;  %1027 = vrot.lane.b32.xlu0 %v1024_v41, %s7695_s5  ;;  %v1051_v37 = vsel %vm595_vm0, %v1048_v17, %v1050_v31  ;;  %v1049_v41 = vsel %vm595_vm0, %v1047_v21, %v1048_v17  ;;  %v1153_v17 = vsel %vm1072_vm1, %v1150_v61, %v1152_v51 }
 0x12e   : > { %1031 = vrot.lane.b32.xlu2 %v1025_v25, %s7695_s5  ;;  %v1143_v25 = vmul.f32 %v1142_v56, %v7820_v1 }
 0x12f   : > { %v8146_v54 = vpop.permute.xlu1 %679  ;;  %v8148_v55 = vpop.permute.xlu0 %677 }
 0x130   : > { %12864 = vst [vmem:[#allocation35_spill] sm:$0xff] %v8146_v54  ;;  %v8150_v27 = vpop.permute.xlu2 %756  ;;  %v1149_v63 = vrot.slane %v1143_v25, 2  ;;  %v1167_v54 = vstv %s7204_s8  ;;  %v1192_v25 = vstv %s7205_s23  ;;  %s7225_s8 = sld [smem:[#allocation6 + $0xa6]] }
 0x131   : > { %12865 = vst [vmem:[#allocation36_spill] sm:$0xff] %v8148_v55  ;;  %v1170_v56 = vmul.f32 %v1167_v54, %v7817_v0  ;;  %v1169_v35 = vmul.f32 %v1167_v54, %v7823_v2  ;;  %s7226_s23 = sld [smem:[#allocation6 + $0xf1]] }
 0x132   : > { %12866 = vst [vmem:[#allocation37_spill] sm:$0xff] %v8150_v27  ;;  %v1151_v21 = vsel %vm1072_vm1, %v1149_v63, %v1150_v61  ;;  %v1195_v63 = vmul.f32 %v1192_v25, %v7817_v0 }
 0x133   : > { %v1177_v18 = vrot.slane %v1170_v56, 2 }
 0x134   : > { %v1202_v56 = vrot.slane %v1195_v63, 2 }
 0x135   : > { %1054 = vrot.lane.b32.xlu1 %v1051_v37, %s7695_s5  ;;  %1052 = vrot.lane.b32.xlu0 %v1049_v41, %s7695_s5  ;;  %v1175_v37 = vrot.slane %v1169_v35, 2 }
 0x136   : > { %1056 = vrot.lane.b32.xlu2 %v1050_v31, %s7695_s5  ;;  %v1168_v31 = vmul.f32 %v1167_v54, %v7820_v1  ;;  %v1194_v54 = vmul.f32 %v1192_v25, %v7823_v2 }
 0x137   : > { %v8160_v55 = vpop.permute.xlu1 %704  ;;  %v8162_v27 = vpop.permute.xlu0 %702 }
 0x138   : > { %12867 = vst [vmem:[#allocation38_spill] sm:$0xff] %v8160_v55  ;;  %v8164_v36 = vpop.permute.xlu2 %781  ;;  %v1174_v41 = vrot.slane %v1168_v31, 2  ;;  %v1200_v35 = vrot.slane %v1194_v54, 2 }
 0x139   : > { %12868 = vst [vmem:[#allocation39_spill] sm:$0xff] %v8162_v27 }
 0x13a   : > { %12869 = vst [vmem:[#allocation40_spill] sm:$0xff] %v8164_v36 }
 0x13d   : > { %1156 = vrot.lane.b32.xlu1 %v1153_v17, %s7692_s22  ;;  %1154 = vrot.lane.b32.xlu0 %v1151_v21, %s7692_s22  ;;  %v1178_v17 = vsel %vm1072_vm1, %v1175_v37, %v1177_v18  ;;  %v1176_v21 = vsel %vm1072_vm1, %v1174_v41, %v1175_v37  ;;  %v1203_v37 = vsel %vm1072_vm1, %v1200_v35, %v1202_v56 }
 0x13e   : > { %1158 = vrot.lane.b32.xlu2 %v1152_v51, %s7692_s22  ;;  %v1193_v51 = vmul.f32 %v1192_v25, %v7820_v1 }
 0x13f   : > { %v8174_v27 = vpop.permute.xlu1 %729  ;;  %v8176_v36 = vpop.permute.xlu0 %727 }
 0x140   : > { %12870 = vst [vmem:[#allocation41_spill] sm:$0xff] %v8174_v27  ;;  %v8178_v61 = vpop.permute.xlu2 %806  ;;  %v1199_v31 = vrot.slane %v1193_v51, 2  ;;  %v1217_v27 = vstv %s7206_s30  ;;  %v1242_v51 = vstv %s7207_s10  ;;  %s7227_s30 = sld [smem:[#allocation6 + $0x11]] }
 0x141   : > { %12871 = vst [vmem:[#allocation42_spill] sm:$0xff] %v8176_v36  ;;  %v1220_v25 = vmul.f32 %v1217_v27, %v7817_v0  ;;  %v1219_v63 = vmul.f32 %v1217_v27, %v7823_v2  ;;  %v1218_v54 = vmul.f32 %v1217_v27, %v7820_v1  ;;  %v1244_v27 = vmul.f32 %v1242_v51, %v7823_v2  ;;  %s7228_s10 = sld [smem:[#allocation6 + $0x5c]] }
 0x142   : > { %12872 = vst [vmem:[#allocation43_spill] sm:$0xff] %v8178_v61  ;;  %v1201_v41 = vsel %vm1072_vm1, %v1199_v31, %v1200_v35  ;;  %v1245_v31 = vmul.f32 %v1242_v51, %v7817_v0 }
 0x145   : > { %1181 = vrot.lane.b32.xlu1 %v1178_v17, %s7692_s22  ;;  %1179 = vrot.lane.b32.xlu0 %v1176_v21, %s7692_s22  ;;  %v1225_v17 = vrot.slane %v1219_v63, 2  ;;  %v1224_v21 = vrot.slane %v1218_v54, 2  ;;  %v1250_v63 = vrot.slane %v1244_v27, 2 }
 0x146   : > { %1183 = vrot.lane.b32.xlu2 %v1177_v18, %s7692_s22  ;;  %v1227_v18 = vrot.slane %v1220_v25, 2  ;;  %v1252_v25 = vrot.slane %v1245_v31, 2 }
 0x147   : > { %v8188_v61 = vpop.permute.xlu1 %754  ;;  %v8190_v36 = vpop.permute.xlu0 %752 }
 0x148   : > { %12873 = vst [vmem:[#allocation44_spill] sm:$0xff] %v8188_v61  ;;  %v8192_v55 = vpop.permute.xlu2 %831 }
 0x149   : > { %12874 = vst [vmem:[#allocation45_spill] sm:$0xff] %v8190_v36 }
 0x14a   : > { %12875 = vst [vmem:[#allocation46_spill] sm:$0xff] %v8192_v55 }
 0x14d   : > { %1206 = vrot.lane.b32.xlu1 %v1203_v37, %s7692_s22  ;;  %1204 = vrot.lane.b32.xlu0 %v1201_v41, %s7692_s22  ;;  %v1228_v37 = vsel %vm1072_vm1, %v1225_v17, %v1227_v18  ;;  %v1226_v41 = vsel %vm1072_vm1, %v1224_v21, %v1225_v17  ;;  %v1253_v17 = vsel %vm1072_vm1, %v1250_v63, %v1252_v25 }
 0x14e   : > { %1208 = vrot.lane.b32.xlu2 %v1202_v56, %s7692_s22  ;;  %v1243_v56 = vmul.f32 %v1242_v51, %v7820_v1 }
 0x14f   : > { %v8202_v36 = vpop.permute.xlu1 %779  ;;  %v8204_v55 = vpop.permute.xlu0 %777 }
 0x150   : > { %12876 = vst [vmem:[#allocation47_spill] sm:$0xff] %v8202_v36  ;;  %v8206_v35 = vpop.permute.xlu2 %856  ;;  %v1249_v54 = vrot.slane %v1243_v56, 2  ;;  %v1267_v36 = vstv %s7208_s11  ;;  %v1292_v56 = vstv %s7209_s12  ;;  %s7229_s11 = sld [smem:[#allocation6 + $0xa7]] }
 0x151   : > { %12877 = vst [vmem:[#allocation48_spill] sm:$0xff] %v8204_v55  ;;  %v1270_v51 = vmul.f32 %v1267_v36, %v7817_v0  ;;  %v1269_v31 = vmul.f32 %v1267_v36, %v7823_v2  ;;  %v1268_v27 = vmul.f32 %v1267_v36, %v7820_v1  ;;  %v1294_v36 = vmul.f32 %v1292_v56, %v7823_v2  ;;  %s7230_s12 = sld [smem:[#allocation6 + $0xf2]] }
 0x152   : > { %12878 = vst [vmem:[#allocation49_spill] sm:$0xff] %v8206_v35  ;;  %v1251_v21 = vsel %vm1072_vm1, %v1249_v54, %v1250_v63  ;;  %v1295_v54 = vmul.f32 %v1292_v56, %v7817_v0 }
 0x155   : > { %1231 = vrot.lane.b32.xlu1 %v1228_v37, %s7692_s22  ;;  %1229 = vrot.lane.b32.xlu0 %v1226_v41, %s7692_s22  ;;  %v1275_v37 = vrot.slane %v1269_v31, 2  ;;  %v1274_v41 = vrot.slane %v1268_v27, 2  ;;  %v1300_v31 = vrot.slane %v1294_v36, 2 }
 0x156   : > { %1233 = vrot.lane.b32.xlu2 %v1227_v18, %s7692_s22  ;;  %v1277_v18 = vrot.slane %v1270_v51, 2  ;;  %v1302_v51 = vrot.slane %v1295_v54, 2 }
 0x157   : > { %v8216_v55 = vpop.permute.xlu1 %804  ;;  %v8218_v35 = vpop.permute.xlu0 %802 }
 0x158   : > { %12879 = vst [vmem:[#allocation50_spill] sm:$0xff] %v8216_v55  ;;  %v8220_v61 = vpop.permute.xlu2 %881 }
 0x159   : > { %12880 = vst [vmem:[#allocation51_spill] sm:$0xff] %v8218_v35 }
 0x15a   : > { %12881 = vst [vmem:[#allocation52_spill] sm:$0xff] %v8220_v61 }
 0x15d   : > { %1256 = vrot.lane.b32.xlu1 %v1253_v17, %s7693_s19  ;;  %1254 = vrot.lane.b32.xlu0 %v1251_v21, %s7693_s19  ;;  %v1278_v17 = vsel %vm1072_vm1, %v1275_v37, %v1277_v18  ;;  %v1276_v21 = vsel %vm1072_vm1, %v1274_v41, %v1275_v37  ;;  %v1303_v37 = vsel %vm1072_vm1, %v1300_v31, %v1302_v51 }
 0x15e   : > { %1258 = vrot.lane.b32.xlu2 %v1252_v25, %s7693_s19  ;;  %v1293_v25 = vmul.f32 %v1292_v56, %v7820_v1 }
 0x15f   : > { %v8230_v61 = vpop.permute.xlu1 %829  ;;  %v8232_v35 = vpop.permute.xlu0 %827 }
 0x160   : > { %12882 = vst [vmem:[#allocation53_spill] sm:$0xff] %v8230_v61  ;;  %v8234_v63 = vpop.permute.xlu2 %906  ;;  %v1299_v27 = vrot.slane %v1293_v25, 2  ;;  %v1317_v61 = vstv %s7210_s18  ;;  %v1342_v25 = vstv %s7211_s21  ;;  %s7231_s18 = sld [smem:[#allocation6 + $0x12]] }
 0x161   : > { %12883 = vst [vmem:[#allocation54_spill] sm:$0xff] %v8232_v35  ;;  %v1320_v56 = vmul.f32 %v1317_v61, %v7817_v0  ;;  %v1319_v54 = vmul.f32 %v1317_v61, %v7823_v2  ;;  %v8265_v2 = vld [vmem:[%s7802_s9 + $0x10] sm:$0xff]  ;;  %s7232_s21 = sld [smem:[#allocation6 + $0x5d]] }
 0x162   : > { %12884 = vst [vmem:[#allocation55_spill] sm:$0xff] %v8234_v63  ;;  %v1301_v41 = vsel %vm1072_vm1, %v1299_v27, %v1300_v31 }
 0x163   : > { %v1327_v36 = vrot.slane %v1320_v56, 2 }
 0x165   : > { %1281 = vrot.lane.b32.xlu1 %v1278_v17, %s7693_s19  ;;  %1279 = vrot.lane.b32.xlu0 %v1276_v21, %s7693_s19  ;;  %v1325_v17 = vrot.slane %v1319_v54, 2 }
 0x166   : > { %1283 = vrot.lane.b32.xlu2 %v1277_v18, %s7693_s19  ;;  %v1318_v18 = vmul.f32 %v1317_v61, %v7820_v1  ;;  %v1345_v1 = vmul.f32 %v8265_v2, %v1342_v25  ;;  %v8269_v61 = vld [vmem:[%s7802_s9 + $0x8] sm:$0xff] }
 0x167   : > { %v8244_v63 = vpop.permute.xlu1 %854  ;;  %v8246_v35 = vpop.permute.xlu0 %852  ;;  %v1344_v27 = vmul.f32 %v8269_v61, %v1342_v25 }
 0x168   : > { %12885 = vst [vmem:[#allocation56_spill] sm:$0xff] %v8244_v63  ;;  %v8248_v55 = vpop.permute.xlu2 %931  ;;  %v1324_v21 = vrot.slane %v1318_v18, 2  ;;  %v1352_v54 = vrot.slane %v1345_v1, 2 }
 0x169   : > { %12886 = vst [vmem:[#allocation57_spill] sm:$0xff] %v8246_v35  ;;  %v1350_v18 = vrot.slane %v1344_v27, 2 }
 0x16a   : > { %12887 = vst [vmem:[#allocation58_spill] sm:$0xff] %v8248_v55  ;;  %v1367_v55 = vstv %s7212_s24  ;;  %s7233_s24 = sld [smem:[#allocation6 + $0xa8]] }
 0x16b   : > { %v1369_v1 = vmul.f32 %v8269_v61, %v1367_v55 }
 0x16d   : > { %1306 = vrot.lane.b32.xlu1 %v1303_v37, %s7693_s19  ;;  %1304 = vrot.lane.b32.xlu0 %v1301_v41, %s7693_s19  ;;  %v1326_v37 = vsel %vm1072_vm1, %v1324_v21, %v1325_v17  ;;  %v8275_v41 = vld [vmem:[%s7802_s9] sm:$0xff]  ;;  %v1353_v21 = vsel %vm1072_vm1, %v1350_v18, %v1352_v54 }
 0x16e   : > { %1308 = vrot.lane.b32.xlu2 %v1302_v51, %s7693_s19  ;;  %v1328_v51 = vsel %vm1072_vm1, %v1325_v17, %v1327_v36  ;;  %v1343_v56 = vmul.f32 %v8275_v41, %v1342_v25  ;;  %v1368_v27 = vmul.f32 %v8275_v41, %v1367_v55 }
 0x16f   : > { %v8258_v35 = vpop.permute.xlu1 %879  ;;  %v8260_v31 = vpop.permute.xlu0 %877 }
 0x170   : > { %12888 = vst [vmem:[#allocation59_spill] sm:$0xff] %v8258_v35  ;;  %v8262_v0 = vpop.permute.xlu2 %956 }
 0x171   : > { %12889 = vst [vmem:[#allocation60_spill] sm:$0xff] %v8260_v31 }
 0x172   : > { %12890 = vst [vmem:[#allocation61_spill] sm:$0xff] %v8262_v0  ;;  %v1349_v0 = vrot.slane %v1343_v56, 2  ;;  %v1374_v56 = vrot.slane %v1368_v27, 2 }
 0x174   : > { %v1351_v25 = vsel %vm1072_vm1, %v1349_v0, %v1350_v18 }
 0x175   : > { %1331 = vrot.lane.b32.xlu1 %v1328_v51, %s7693_s19  ;;  %1329 = vrot.lane.b32.xlu0 %v1326_v37, %s7693_s19  ;;  %v1370_v51 = vmul.f32 %v8265_v2, %v1367_v55  ;;  %v1375_v37 = vrot.slane %v1369_v1, 2 }
 0x176   : > { %1333 = vrot.lane.b32.xlu2 %v1327_v36, %s7693_s19 }
 0x177   : > { %v8281_v31 = vpop.permute.xlu1 %904  ;;  %v8283_v35 = vpop.permute.xlu0 %902  ;;  %v1377_v36 = vrot.slane %v1370_v51, 2 }
 0x178   : > { %12891 = vst [vmem:[#allocation62_spill] sm:$0xff] %v8281_v31  ;;  %v8285_v17 = vpop.permute.xlu2 %981 }
 0x179   : > { %12892 = vst [vmem:[#allocation63_spill] sm:$0xff] %v8283_v35  ;;  %v1392_v35 = vstv %s7213_s25  ;;  %s7234_s25 = sld [smem:[#allocation6 + $0xf3]] }
 0x17a   : > { %12893 = vst [vmem:[#allocation64_spill] sm:$0xff] %v8285_v17  ;;  %v1395_v18 = vmul.f32 %v8265_v2, %v1392_v35  ;;  %v1394_v55 = vmul.f32 %v8269_v61, %v1392_v35 }
 0x17c   : > { %v1402_v51 = vrot.slane %v1395_v18, 2  ;;  %v1400_v1 = vrot.slane %v1394_v55, 2 }
 0x17d   : > { %1356 = vrot.lane.b32.xlu1 %v1353_v21, %s7694_s15  ;;  %1354 = vrot.lane.b32.xlu0 %v1351_v25, %s7694_s15  ;;  %v1378_v21 = vsel %vm1072_vm1, %v1375_v37, %v1377_v36  ;;  %v1376_v25 = vsel %vm1072_vm1, %v1374_v56, %v1375_v37 }
 0x17e   : > { %1358 = vrot.lane.b32.xlu2 %v1352_v54, %s7694_s15  ;;  %v1393_v54 = vmul.f32 %v8275_v41, %v1392_v35  ;;  %v1403_v37 = vsel %vm1072_vm1, %v1400_v1, %v1402_v51 }
 0x17f   : > { %v8295_v31 = vpop.permute.xlu1 %929  ;;  %v8297_v17 = vpop.permute.xlu0 %927 }
 0x180   : > { %12894 = vst [vmem:[#allocation65_spill] sm:$0xff] %v8295_v31  ;;  %v8299_v0 = vpop.permute.xlu2 %1006  ;;  %v1399_v27 = vrot.slane %v1393_v54, 2  ;;  %v1442_v54 = vstv %s7215_s27  ;;  %s7236_s27 = sld [smem:[#allocation6 + $0x5e]] }
 0x181   : > { %12895 = vst [vmem:[#allocation66_spill] sm:$0xff] %v8297_v17 }
 0x182   : > { %12896 = vst [vmem:[#allocation67_spill] sm:$0xff] %v8299_v0  ;;  %v1417_v0 = vstv %s7214_s26  ;;  %v1401_v35 = vsel %vm1072_vm1, %v1399_v27, %v1400_v1  ;;  %v1445_v27 = vmul.f32 %v8265_v2, %v1442_v54  ;;  %s7235_s26 = sld [smem:[#allocation6 + $0x13]] }
 0x183   : > { %v1420_v56 = vmul.f32 %v8265_v2, %v1417_v0  ;;  %v1419_v18 = vmul.f32 %v8269_v61, %v1417_v0  ;;  %v1418_v55 = vmul.f32 %v8275_v41, %v1417_v0  ;;  %v1444_v0 = vmul.f32 %v8269_v61, %v1442_v54 }
 0x185   : > { %1381 = vrot.lane.b32.xlu1 %v1378_v21, %s7694_s15  ;;  %1379 = vrot.lane.b32.xlu0 %v1376_v25, %s7694_s15  ;;  %v1425_v21 = vrot.slane %v1419_v18, 2  ;;  %v1424_v25 = vrot.slane %v1418_v55, 2  ;;  %v1450_v18 = vrot.slane %v1444_v0, 2 }
 0x186   : > { %1383 = vrot.lane.b32.xlu2 %v1377_v36, %s7694_s15  ;;  %v1427_v36 = vrot.slane %v1420_v56, 2  ;;  %v1452_v56 = vrot.slane %v1445_v27, 2 }
 0x187   : > { %v8309_v17 = vpop.permute.xlu1 %954  ;;  %v8311_v31 = vpop.permute.xlu0 %952 }
 0x188   : > { %12897 = vst [vmem:[#allocation68_spill] sm:$0xff] %v8309_v17  ;;  %v8313_v63 = vpop.permute.xlu2 %1031 }
 0x189   : > { %12898 = vst [vmem:[#allocation69_spill] sm:$0xff] %v8311_v31 }
 0x18a   : > { %12899 = vst [vmem:[#allocation70_spill] sm:$0xff] %v8313_v63 }
 0x18d   : > { %1406 = vrot.lane.b32.xlu1 %v1403_v37, %s7694_s15  ;;  %1404 = vrot.lane.b32.xlu0 %v1401_v35, %s7694_s15  ;;  %v1428_v37 = vsel %vm1072_vm1, %v1425_v21, %v1427_v36  ;;  %v1426_v35 = vsel %vm1072_vm1, %v1424_v25, %v1425_v21  ;;  %v1453_v21 = vsel %vm1072_vm1, %v1450_v18, %v1452_v56 }
 0x18e   : > { %1408 = vrot.lane.b32.xlu2 %v1402_v51, %s7694_s15  ;;  %v1443_v51 = vmul.f32 %v8275_v41, %v1442_v54 }
 0x18f   : > { %v8323_v31 = vpop.permute.xlu1 %979  ;;  %v8325_v17 = vpop.permute.xlu0 %977 }
 0x190   : > { %12900 = vst [vmem:[#allocation71_spill] sm:$0xff] %v8323_v31  ;;  %v8327_v1 = vpop.permute.xlu2 %1056  ;;  %v1449_v55 = vrot.slane %v1443_v51, 2  ;;  %v1467_v31 = vstv %s7216_s28  ;;  %v1492_v51 = vstv %s7217_s29  ;;  %s7237_s28 = sld [smem:[#allocation6 + $0xa9]] }
 0x191   : > { %12901 = vst [vmem:[#allocation72_spill] sm:$0xff] %v8325_v17  ;;  %v1470_v54 = vmul.f32 %v8265_v2, %v1467_v31  ;;  %v1469_v27 = vmul.f32 %v8269_v61, %v1467_v31  ;;  %v1468_v0 = vmul.f32 %v8275_v41, %v1467_v31  ;;  %v1494_v31 = vmul.f32 %v8269_v61, %v1492_v51  ;;  %s7238_s29 = sld [smem:[#allocation6 + $0xf4]] }
 0x192   : > { %12902 = vst [vmem:[#allocation73_spill] sm:$0xff] %v8327_v1  ;;  %v1451_v25 = vsel %vm1072_vm1, %v1449_v55, %v1450_v18  ;;  %v1495_v55 = vmul.f32 %v8265_v2, %v1492_v51 }
 0x195   : > { %1431 = vrot.lane.b32.xlu1 %v1428_v37, %s7694_s15  ;;  %1429 = vrot.lane.b32.xlu0 %v1426_v35, %s7694_s15  ;;  %v1475_v37 = vrot.slane %v1469_v27, 2  ;;  %v1474_v35 = vrot.slane %v1468_v0, 2  ;;  %v1500_v27 = vrot.slane %v1494_v31, 2 }
 0x196   : > { %1433 = vrot.lane.b32.xlu2 %v1427_v36, %s7694_s15  ;;  %v1477_v36 = vrot.slane %v1470_v54, 2  ;;  %v1502_v54 = vrot.slane %v1495_v55, 2 }
 0x197   : > { %v8337_v17 = vpop.permute.xlu1 %1004  ;;  %v8339_v1 = vpop.permute.xlu0 %1002 }
 0x198   : > { %12903 = vst [vmem:[#allocation74_spill] sm:$0xff] %v8337_v17  ;;  %v8341_v63 = vpop.permute.xlu2 %1158 }
 0x199   : > { %12904 = vst [vmem:[#allocation75_spill] sm:$0xff] %v8339_v1 }
 0x19a   : > { %12905 = vst [vmem:[#allocation76_spill] sm:$0xff] %v8341_v63 }
 0x19d   : > { %1456 = vrot.lane.b32.xlu1 %v1453_v21, %s7695_s5  ;;  %1454 = vrot.lane.b32.xlu0 %v1451_v25, %s7695_s5  ;;  %v1478_v21 = vsel %vm1072_vm1, %v1475_v37, %v1477_v36  ;;  %v1476_v25 = vsel %vm1072_vm1, %v1474_v35, %v1475_v37  ;;  %v1503_v37 = vsel %vm1072_vm1, %v1500_v27, %v1502_v54 }
 0x19e   : > { %1458 = vrot.lane.b32.xlu2 %v1452_v56, %s7695_s5  ;;  %v1493_v56 = vmul.f32 %v8275_v41, %v1492_v51 }
 0x19f   : > { %v8351_v63 = vpop.permute.xlu1 %1029  ;;  %v8353_v1 = vpop.permute.xlu0 %1027 }
 0x1a0   : > { %12906 = vst [vmem:[#allocation77_spill] sm:$0xff] %v8351_v63  ;;  %v8355_v18 = vpop.permute.xlu2 %1183  ;;  %v1499_v0 = vrot.slane %v1493_v56, 2  ;;  %v1517_v63 = vstv %s7218_s4  ;;  %v1619_v56 = vstv %s7223_s6  ;;  %s7243_s4 = sld [smem:[#allocation6 + $0x15]] }
 0x1a1   : > { %12907 = vst [vmem:[#allocation78_spill] sm:$0xff] %v8353_v1  ;;  %v1520_v51 = vmul.f32 %v8265_v2, %v1517_v63  ;;  %v1519_v55 = vmul.f32 %v8269_v61, %v1517_v63  ;;  %v1518_v31 = vmul.f32 %v8275_v41, %v1517_v63  ;;  %v1621_v63 = vmul.f32 %v8269_v61, %v1619_v56  ;;  %s7244_s6 = sld [smem:[#allocation6 + $0x60]] }
 0x1a2   : > { %12908 = vst [vmem:[#allocation79_spill] sm:$0xff] %v8355_v18  ;;  %v1501_v35 = vsel %vm1072_vm1, %v1499_v0, %v1500_v27  ;;  %v1622_v0 = vmul.f32 %v8265_v2, %v1619_v56 }
 0x1a5   : > { %1481 = vrot.lane.b32.xlu1 %v1478_v21, %s7695_s5  ;;  %1479 = vrot.lane.b32.xlu0 %v1476_v25, %s7695_s5  ;;  %v1525_v21 = vrot.slane %v1519_v55, 2  ;;  %v1524_v25 = vrot.slane %v1518_v31, 2  ;;  %v1627_v55 = vrot.slane %v1621_v63, 3 }
 0x1a6   : > { %1483 = vrot.lane.b32.xlu2 %v1477_v36, %s7695_s5  ;;  %v1527_v36 = vrot.slane %v1520_v51, 2  ;;  %v1629_v51 = vrot.slane %v1622_v0, 3 }
 0x1a7   : > { %v8365_v18 = vpop.permute.xlu1 %1054  ;;  %v8367_v1 = vpop.permute.xlu0 %1052 }
 0x1a8   : > { %12909 = vst [vmem:[#allocation80_spill] sm:$0xff] %v8365_v18  ;;  %v8369_v17 = vpop.permute.xlu2 %1208 }
 0x1a9   : > { %12910 = vst [vmem:[#allocation81_spill] sm:$0xff] %v8367_v1 }
 0x1aa   : > { %12911 = vst [vmem:[#allocation82_spill] sm:$0xff] %v8369_v17 }
 0x1ad   : > { %1506 = vrot.lane.b32.xlu1 %v1503_v37, %s7695_s5  ;;  %1504 = vrot.lane.b32.xlu0 %v1501_v35, %s7695_s5  ;;  %v1528_v37 = vsel %vm1072_vm1, %v1525_v21, %v1527_v36  ;;  %v1526_v35 = vsel %vm1072_vm1, %v1524_v25, %v1525_v21  ;;  %v1630_v21 = vsel %vm1549_vm2, %v1627_v55, %v1629_v51 }
 0x1ae   : > { %1508 = vrot.lane.b32.xlu2 %v1502_v54, %s7695_s5  ;;  %v1620_v54 = vmul.f32 %v8275_v41, %v1619_v56 }
 0x1af   : > { %v8379_v17 = vpop.permute.xlu1 %1156  ;;  %v8381_v1 = vpop.permute.xlu0 %1154 }
 0x1b0   : > { %12912 = vst [vmem:[#allocation83_spill] sm:$0xff] %v8379_v17  ;;  %v8383_v27 = vpop.permute.xlu2 %1233  ;;  %v1626_v31 = vrot.slane %v1620_v54, 3  ;;  %v1669_v54 = vstv %s7225_s8  ;;  %s7246_s8 = sld [smem:[#allocation6 + $0xf6]] }
 0x1b1   : > { %12913 = vst [vmem:[#allocation84_spill] sm:$0xff] %v8381_v1 }
 0x1b2   : > { %12914 = vst [vmem:[#allocation85_spill] sm:$0xff] %v8383_v27  ;;  %v1644_v27 = vstv %s7224_s7  ;;  %v1628_v25 = vsel %vm1549_vm2, %v1626_v31, %v1627_v55  ;;  %v1672_v31 = vmul.f32 %v8265_v2, %v1669_v54  ;;  %s7245_s7 = sld [smem:[#allocation6 + $0xab]] }
 0x1b3   : > { %v1647_v56 = vmul.f32 %v8265_v2, %v1644_v27  ;;  %v1646_v0 = vmul.f32 %v8269_v61, %v1644_v27 }
 0x1b5   : > { %1531 = vrot.lane.b32.xlu1 %v1528_v37, %s7695_s5  ;;  %1529 = vrot.lane.b32.xlu0 %v1526_v35, %s7695_s5  ;;  %v1654_v63 = vrot.slane %v1647_v56, 3  ;;  %v1652_v37 = vrot.slane %v1646_v0, 3  ;;  %v1679_v56 = vrot.slane %v1672_v31, 3 }
 0x1b6   : > { %1533 = vrot.lane.b32.xlu2 %v1527_v36, %s7695_s5  ;;  %v1645_v36 = vmul.f32 %v8275_v41, %v1644_v27  ;;  %v1671_v27 = vmul.f32 %v8269_v61, %v1669_v54 }
 0x1b7   : > { %v8393_v1 = vpop.permute.xlu1 %1181  ;;  %v8395_v17 = vpop.permute.xlu0 %1179 }
 0x1b8   : > { %12915 = vst [vmem:[#allocation86_spill] sm:$0xff] %v8393_v1  ;;  %v8397_v18 = vpop.permute.xlu2 %1258  ;;  %v1651_v35 = vrot.slane %v1645_v36, 3  ;;  %v1677_v0 = vrot.slane %v1671_v27, 3 }
 0x1b9   : > { %12916 = vst [vmem:[#allocation87_spill] sm:$0xff] %v8395_v17 }
 0x1ba   : > { %12917 = vst [vmem:[#allocation88_spill] sm:$0xff] %v8397_v18 }
 0x1bd   : > { %1633 = vrot.lane.b32.xlu1 %v1630_v21, %s7692_s22  ;;  %1631 = vrot.lane.b32.xlu0 %v1628_v25, %s7692_s22  ;;  %v1655_v21 = vsel %vm1549_vm2, %v1652_v37, %v1654_v63  ;;  %v1653_v25 = vsel %vm1549_vm2, %v1651_v35, %v1652_v37  ;;  %v1680_v37 = vsel %vm1549_vm2, %v1677_v0, %v1679_v56 }
 0x1be   : > { %1635 = vrot.lane.b32.xlu2 %v1629_v51, %s7692_s22  ;;  %v1670_v51 = vmul.f32 %v8275_v41, %v1669_v54 }
 0x1bf   : > { %v8407_v18 = vpop.permute.xlu1 %1206  ;;  %v8409_v17 = vpop.permute.xlu0 %1204 }
 0x1c0   : > { %12918 = vst [vmem:[#allocation89_spill] sm:$0xff] %v8407_v18  ;;  %v8411_v55 = vpop.permute.xlu2 %1283  ;;  %v1676_v36 = vrot.slane %v1670_v51, 3  ;;  %v1694_v18 = vstv %s7226_s23  ;;  %v1719_v51 = vstv %s7227_s30  ;;  %s7247_s23 = sld [smem:[#allocation6 + $0x16]] }
 0x1c1   : > { %12919 = vst [vmem:[#allocation90_spill] sm:$0xff] %v8409_v17  ;;  %v1697_v54 = vmul.f32 %v8265_v2, %v1694_v18  ;;  %v1696_v31 = vmul.f32 %v8269_v61, %v1694_v18  ;;  %v1695_v27 = vmul.f32 %v8275_v41, %v1694_v18  ;;  %v1721_v18 = vmul.f32 %v8269_v61, %v1719_v51  ;;  %s7248_s30 = sld [smem:[#allocation6 + $0x61]] }
 0x1c2   : > { %12920 = vst [vmem:[#allocation91_spill] sm:$0xff] %v8411_v55  ;;  %v1678_v35 = vsel %vm1549_vm2, %v1676_v36, %v1677_v0  ;;  %v1722_v36 = vmul.f32 %v8265_v2, %v1719_v51 }
 0x1c5   : > { %1658 = vrot.lane.b32.xlu1 %v1655_v21, %s7692_s22  ;;  %1656 = vrot.lane.b32.xlu0 %v1653_v25, %s7692_s22  ;;  %v1702_v21 = vrot.slane %v1696_v31, 3  ;;  %v1701_v25 = vrot.slane %v1695_v27, 3  ;;  %v1727_v31 = vrot.slane %v1721_v18, 3 }
 0x1c6   : > { %1660 = vrot.lane.b32.xlu2 %v1654_v63, %s7692_s22  ;;  %v1704_v63 = vrot.slane %v1697_v54, 3  ;;  %v1729_v54 = vrot.slane %v1722_v36, 3 }
 0x1c7   : > { %v8421_v55 = vpop.permute.xlu1 %1231  ;;  %v8423_v17 = vpop.permute.xlu0 %1229 }
 0x1c8   : > { %12921 = vst [vmem:[#allocation92_spill] sm:$0xff] %v8421_v55  ;;  %v8425_v1 = vpop.permute.xlu2 %1308 }
 0x1c9   : > { %12922 = vst [vmem:[#allocation93_spill] sm:$0xff] %v8423_v17 }
 0x1ca   : > { %12923 = vst [vmem:[#allocation94_spill] sm:$0xff] %v8425_v1 }
 0x1cd   : > { %1683 = vrot.lane.b32.xlu1 %v1680_v37, %s7692_s22  ;;  %1681 = vrot.lane.b32.xlu0 %v1678_v35, %s7692_s22  ;;  %v1705_v37 = vsel %vm1549_vm2, %v1702_v21, %v1704_v63  ;;  %v1703_v35 = vsel %vm1549_vm2, %v1701_v25, %v1702_v21  ;;  %v1730_v21 = vsel %vm1549_vm2, %v1727_v31, %v1729_v54 }
 0x1ce   : > { %1685 = vrot.lane.b32.xlu2 %v1679_v56, %s7692_s22  ;;  %v1720_v56 = vmul.f32 %v8275_v41, %v1719_v51 }
 0x1cf   : > { %v8435_v17 = vpop.permute.xlu1 %1256  ;;  %v8437_v55 = vpop.permute.xlu0 %1254 }
 0x1d0   : > { %12924 = vst [vmem:[#allocation95_spill] sm:$0xff] %v8435_v17  ;;  %v8439_v0 = vpop.permute.xlu2 %1333  ;;  %v1726_v27 = vrot.slane %v1720_v56, 3  ;;  %v1744_v17 = vstv %s7228_s10  ;;  %v1769_v56 = vstv %s7229_s11  ;;  %s7249_s10 = sld [smem:[#allocation6 + $0xac]] }
 0x1d1   : > { %12925 = vst [vmem:[#allocation96_spill] sm:$0xff] %v8437_v55  ;;  %v1747_v51 = vmul.f32 %v8265_v2, %v1744_v17  ;;  %v1746_v36 = vmul.f32 %v8269_v61, %v1744_v17  ;;  %v1745_v18 = vmul.f32 %v8275_v41, %v1744_v17  ;;  %v1771_v17 = vmul.f32 %v8269_v61, %v1769_v56  ;;  %s7250_s11 = sld [smem:[#allocation6 + $0xf7]] }
 0x1d2   : > { %12926 = vst [vmem:[#allocation97_spill] sm:$0xff] %v8439_v0  ;;  %v1728_v25 = vsel %vm1549_vm2, %v1726_v27, %v1727_v31  ;;  %v1772_v27 = vmul.f32 %v8265_v2, %v1769_v56 }
 0x1d5   : > { %1708 = vrot.lane.b32.xlu1 %v1705_v37, %s7692_s22  ;;  %1706 = vrot.lane.b32.xlu0 %v1703_v35, %s7692_s22  ;;  %v1752_v37 = vrot.slane %v1746_v36, 3  ;;  %v1751_v35 = vrot.slane %v1745_v18, 3  ;;  %v1777_v36 = vrot.slane %v1771_v17, 3 }
 0x1d6   : > { %1710 = vrot.lane.b32.xlu2 %v1704_v63, %s7692_s22  ;;  %v1754_v63 = vrot.slane %v1747_v51, 3  ;;  %v1779_v51 = vrot.slane %v1772_v27, 3 }
 0x1d7   : > { %v8449_v0 = vpop.permute.xlu1 %1281  ;;  %v8451_v55 = vpop.permute.xlu0 %1279 }
 0x1d8   : > { %12927 = vst [vmem:[#allocation98_spill] sm:$0xff] %v8449_v0  ;;  %v8453_v1 = vpop.permute.xlu2 %1358 }
 0x1d9   : > { %12928 = vst [vmem:[#allocation99_spill] sm:$0xff] %v8451_v55 }
 0x1da   : > { %12929 = vst [vmem:[#allocation100_spill] sm:$0xff] %v8453_v1 }
 0x1dd   : > { %1733 = vrot.lane.b32.xlu1 %v1730_v21, %s7693_s19  ;;  %1731 = vrot.lane.b32.xlu0 %v1728_v25, %s7693_s19  ;;  %v1755_v21 = vsel %vm1549_vm2, %v1752_v37, %v1754_v63  ;;  %v1753_v25 = vsel %vm1549_vm2, %v1751_v35, %v1752_v37  ;;  %v1780_v37 = vsel %vm1549_vm2, %v1777_v36, %v1779_v51 }
 0x1de   : > { %1735 = vrot.lane.b32.xlu2 %v1729_v54, %s7693_s19  ;;  %v1770_v54 = vmul.f32 %v8275_v41, %v1769_v56 }
 0x1df   : > { %v8463_v55 = vpop.permute.xlu1 %1306  ;;  %v8465_v0 = vpop.permute.xlu0 %1304 }
 0x1e0   : > { %12930 = vst [vmem:[#allocation101_spill] sm:$0xff] %v8463_v55  ;;  %v8467_v31 = vpop.permute.xlu2 %1383  ;;  %v1776_v18 = vrot.slane %v1770_v54, 3  ;;  %v1794_v55 = vstv %s7230_s12  ;;  %v1819_v54 = vstv %s7231_s18  ;;  %s7251_s12 = sld [smem:[#allocation6 + $0x17]] }
 0x1e1   : > { %12931 = vst [vmem:[#allocation102_spill] sm:$0xff] %v8465_v0  ;;  %v1797_v56 = vmul.f32 %v8265_v2, %v1794_v55  ;;  %v1796_v27 = vmul.f32 %v8269_v61, %v1794_v55  ;;  %v1795_v17 = vmul.f32 %v8275_v41, %v1794_v55  ;;  %v1821_v55 = vmul.f32 %v8269_v61, %v1819_v54  ;;  %s7252_s18 = sld [smem:[#allocation6 + $0x62]] }
 0x1e2   : > { %12932 = vst [vmem:[#allocation103_spill] sm:$0xff] %v8467_v31  ;;  %v1778_v35 = vsel %vm1549_vm2, %v1776_v18, %v1777_v36  ;;  %v1822_v18 = vmul.f32 %v8265_v2, %v1819_v54 }
 0x1e5   : > { %1758 = vrot.lane.b32.xlu1 %v1755_v21, %s7693_s19  ;;  %1756 = vrot.lane.b32.xlu0 %v1753_v25, %s7693_s19  ;;  %v1802_v21 = vrot.slane %v1796_v27, 3  ;;  %v1801_v25 = vrot.slane %v1795_v17, 3  ;;  %v1827_v27 = vrot.slane %v1821_v55, 3 }
 0x1e6   : > { %1760 = vrot.lane.b32.xlu2 %v1754_v63, %s7693_s19  ;;  %v1804_v63 = vrot.slane %v1797_v56, 3  ;;  %v1829_v56 = vrot.slane %v1822_v18, 3 }
 0x1e7   : > { %v8477_v0 = vpop.permute.xlu1 %1331  ;;  %v8479_v31 = vpop.permute.xlu0 %1329 }
 0x1e8   : > { %12933 = vst [vmem:[#allocation104_spill] sm:$0xff] %v8477_v0  ;;  %v8481_v1 = vpop.permute.xlu2 %1408 }
 0x1e9   : > { %12934 = vst [vmem:[#allocation105_spill] sm:$0xff] %v8479_v31 }
 0x1ea   : > { %12935 = vst [vmem:[#allocation106_spill] sm:$0xff] %v8481_v1 }
 0x1ed   : > { %1783 = vrot.lane.b32.xlu1 %v1780_v37, %s7693_s19  ;;  %1781 = vrot.lane.b32.xlu0 %v1778_v35, %s7693_s19  ;;  %v1805_v37 = vsel %vm1549_vm2, %v1802_v21, %v1804_v63  ;;  %v1803_v35 = vsel %vm1549_vm2, %v1801_v25, %v1802_v21  ;;  %v1830_v21 = vsel %vm1549_vm2, %v1827_v27, %v1829_v56 }
 0x1ee   : > { %1785 = vrot.lane.b32.xlu2 %v1779_v51, %s7693_s19  ;;  %v1820_v51 = vmul.f32 %v8275_v41, %v1819_v54 }
 0x1ef   : > { %v8491_v31 = vpop.permute.xlu1 %1356  ;;  %v8493_v0 = vpop.permute.xlu0 %1354 }
 0x1f0   : > { %12936 = vst [vmem:[#allocation107_spill] sm:$0xff] %v8491_v31  ;;  %v8495_v36 = vpop.permute.xlu2 %1433  ;;  %v1826_v17 = vrot.slane %v1820_v51, 3  ;;  %v1844_v31 = vstv %s7232_s21  ;;  %v1869_v51 = vstv %s7233_s24  ;;  %s7253_s21 = sld [smem:[#allocation6 + $0xad]] }
 0x1f1   : > { %12937 = vst [vmem:[#allocation108_spill] sm:$0xff] %v8493_v0  ;;  %v1847_v54 = vmul.f32 %v8265_v2, %v1844_v31  ;;  %v1846_v18 = vmul.f32 %v8269_v61, %v1844_v31  ;;  %v1845_v55 = vmul.f32 %v8275_v41, %v1844_v31  ;;  %v1871_v31 = vmul.f32 %v8269_v61, %v1869_v51  ;;  %s7254_s24 = sld [smem:[#allocation6 + $0xf8]] }
 0x1f2   : > { %12938 = vst [vmem:[#allocation109_spill] sm:$0xff] %v8495_v36  ;;  %v1828_v25 = vsel %vm1549_vm2, %v1826_v17, %v1827_v27  ;;  %v1872_v17 = vmul.f32 %v8265_v2, %v1869_v51 }
 0x1f5   : > { %1808 = vrot.lane.b32.xlu1 %v1805_v37, %s7693_s19  ;;  %1806 = vrot.lane.b32.xlu0 %v1803_v35, %s7693_s19  ;;  %v1852_v37 = vrot.slane %v1846_v18, 3  ;;  %v1851_v35 = vrot.slane %v1845_v55, 3  ;;  %v1877_v18 = vrot.slane %v1871_v31, 3 }
 0x1f6   : > { %1810 = vrot.lane.b32.xlu2 %v1804_v63, %s7693_s19  ;;  %v1854_v63 = vrot.slane %v1847_v54, 3  ;;  %v1879_v54 = vrot.slane %v1872_v17, 3 }
 0x1f7   : > { %v8505_v0 = vpop.permute.xlu1 %1381  ;;  %v8507_v36 = vpop.permute.xlu0 %1379 }
 0x1f8   : > { %12939 = vst [vmem:[#allocation110_spill] sm:$0xff] %v8505_v0  ;;  %v8509_v1 = vpop.permute.xlu2 %1458 }
 0x1f9   : > { %12940 = vst [vmem:[#allocation111_spill] sm:$0xff] %v8507_v36 }
 0x1fa   : > { %12941 = vst [vmem:[#allocation112_spill] sm:$0xff] %v8509_v1 }
 0x1fd   : > { %1833 = vrot.lane.b32.xlu1 %v1830_v21, %s7694_s15  ;;  %1831 = vrot.lane.b32.xlu0 %v1828_v25, %s7694_s15  ;;  %v1855_v21 = vsel %vm1549_vm2, %v1852_v37, %v1854_v63  ;;  %v1853_v25 = vsel %vm1549_vm2, %v1851_v35, %v1852_v37  ;;  %v1880_v37 = vsel %vm1549_vm2, %v1877_v18, %v1879_v54 }
 0x1fe   : > { %1835 = vrot.lane.b32.xlu2 %v1829_v56, %s7694_s15  ;;  %v1870_v56 = vmul.f32 %v8275_v41, %v1869_v51 }
 0x1ff   : > { %v8519_v36 = vpop.permute.xlu1 %1406  ;;  %v8521_v0 = vpop.permute.xlu0 %1404 }
 0x200   : > { %12942 = vst [vmem:[#allocation113_spill] sm:$0xff] %v8519_v36  ;;  %v8523_v27 = vpop.permute.xlu2 %1483  ;;  %v1876_v55 = vrot.slane %v1870_v56, 3  ;;  %v1894_v36 = vstv %s7234_s25  ;;  %v1919_v56 = vstv %s7235_s26  ;;  %s7255_s25 = sld [smem:[#allocation6 + $0x18]] }
 0x201   : > { %12943 = vst [vmem:[#allocation114_spill] sm:$0xff] %v8521_v0  ;;  %v1897_v51 = vmul.f32 %v8265_v2, %v1894_v36  ;;  %v1896_v17 = vmul.f32 %v8269_v61, %v1894_v36  ;;  %v1895_v31 = vmul.f32 %v8275_v41, %v1894_v36  ;;  %v1921_v36 = vmul.f32 %v8269_v61, %v1919_v56  ;;  %s7256_s26 = sld [smem:[#allocation6 + $0x63]] }
 0x202   : > { %12944 = vst [vmem:[#allocation115_spill] sm:$0xff] %v8523_v27  ;;  %v1878_v35 = vsel %vm1549_vm2, %v1876_v55, %v1877_v18  ;;  %v1922_v55 = vmul.f32 %v8265_v2, %v1919_v56 }
 0x205   : > { %1858 = vrot.lane.b32.xlu1 %v1855_v21, %s7694_s15  ;;  %1856 = vrot.lane.b32.xlu0 %v1853_v25, %s7694_s15  ;;  %v1902_v21 = vrot.slane %v1896_v17, 3  ;;  %v1901_v25 = vrot.slane %v1895_v31, 3  ;;  %v1927_v17 = vrot.slane %v1921_v36, 3 }
 0x206   : > { %1860 = vrot.lane.b32.xlu2 %v1854_v63, %s7694_s15  ;;  %v1904_v63 = vrot.slane %v1897_v51, 3  ;;  %v1929_v51 = vrot.slane %v1922_v55, 3 }
 0x207   : > { %v8533_v0 = vpop.permute.xlu1 %1431  ;;  %v8535_v27 = vpop.permute.xlu0 %1429 }
 0x208   : > { %12945 = vst [vmem:[#allocation116_spill] sm:$0xff] %v8533_v0  ;;  %v8537_v1 = vpop.permute.xlu2 %1508 }
 0x209   : > { %12946 = vst [vmem:[#allocation117_spill] sm:$0xff] %v8535_v27 }
 0x20a   : > { %12947 = vst [vmem:[#allocation118_spill] sm:$0xff] %v8537_v1 }
 0x20d   : > { %1883 = vrot.lane.b32.xlu1 %v1880_v37, %s7694_s15  ;;  %1881 = vrot.lane.b32.xlu0 %v1878_v35, %s7694_s15  ;;  %v1905_v37 = vsel %vm1549_vm2, %v1902_v21, %v1904_v63  ;;  %v1903_v35 = vsel %vm1549_vm2, %v1901_v25, %v1902_v21  ;;  %v1930_v21 = vsel %vm1549_vm2, %v1927_v17, %v1929_v51 }
 0x20e   : > { %1885 = vrot.lane.b32.xlu2 %v1879_v54, %s7694_s15  ;;  %v1920_v54 = vmul.f32 %v8275_v41, %v1919_v56 }
 0x20f   : > { %v8547_v27 = vpop.permute.xlu1 %1456  ;;  %v8549_v0 = vpop.permute.xlu0 %1454 }
 0x210   : > { %12948 = vst [vmem:[#allocation119_spill] sm:$0xff] %v8547_v27  ;;  %v8551_v18 = vpop.permute.xlu2 %1533  ;;  %v1926_v31 = vrot.slane %v1920_v54, 3  ;;  %v1944_v27 = vstv %s7236_s27  ;;  %v1969_v54 = vstv %s7237_s28  ;;  %s7257_s27 = sld [smem:[#allocation6 + $0xae]] }
 0x211   : > { %12949 = vst [vmem:[#allocation120_spill] sm:$0xff] %v8549_v0  ;;  %v1947_v56 = vmul.f32 %v8265_v2, %v1944_v27  ;;  %v1946_v55 = vmul.f32 %v8269_v61, %v1944_v27  ;;  %v1945_v36 = vmul.f32 %v8275_v41, %v1944_v27  ;;  %v1971_v27 = vmul.f32 %v8269_v61, %v1969_v54  ;;  %s7258_s28 = sld [smem:[#allocation6 + $0xf9]] }
 0x212   : > { %12950 = vst [vmem:[#allocation121_spill] sm:$0xff] %v8551_v18  ;;  %v1928_v25 = vsel %vm1549_vm2, %v1926_v31, %v1927_v17  ;;  %v1972_v31 = vmul.f32 %v8265_v2, %v1969_v54 }
 0x215   : > { %1908 = vrot.lane.b32.xlu1 %v1905_v37, %s7694_s15  ;;  %1906 = vrot.lane.b32.xlu0 %v1903_v35, %s7694_s15  ;;  %v1952_v37 = vrot.slane %v1946_v55, 3  ;;  %v1951_v35 = vrot.slane %v1945_v36, 3  ;;  %v1977_v55 = vrot.slane %v1971_v27, 3 }
 0x216   : > { %1910 = vrot.lane.b32.xlu2 %v1904_v63, %s7694_s15  ;;  %v1954_v63 = vrot.slane %v1947_v56, 3  ;;  %v1979_v56 = vrot.slane %v1972_v31, 3 }
 0x217   : > { %v8561_v18 = vpop.permute.xlu1 %1481  ;;  %v8563_v0 = vpop.permute.xlu0 %1479 }
 0x218   : > { %12951 = vst [vmem:[#allocation122_spill] sm:$0xff] %v8561_v18  ;;  %v8565_v1 = vpop.permute.xlu2 %1635 }
 0x219   : > { %12952 = vst [vmem:[#allocation123_spill] sm:$0xff] %v8563_v0 }
 0x21a   : > { %12953 = vst [vmem:[#allocation124_spill] sm:$0xff] %v8565_v1 }
 0x21d   : > { %1933 = vrot.lane.b32.xlu1 %v1930_v21, %s7695_s5  ;;  %1931 = vrot.lane.b32.xlu0 %v1928_v25, %s7695_s5  ;;  %v1955_v21 = vsel %vm1549_vm2, %v1952_v37, %v1954_v63  ;;  %v1953_v25 = vsel %vm1549_vm2, %v1951_v35, %v1952_v37  ;;  %v1980_v37 = vsel %vm1549_vm2, %v1977_v55, %v1979_v56 }
 0x21e   : > { %1935 = vrot.lane.b32.xlu2 %v1929_v51, %s7695_s5  ;;  %v1970_v51 = vmul.f32 %v8275_v41, %v1969_v54 }
 0x21f   : > { %v8575_v1 = vpop.permute.xlu1 %1506  ;;  %v8577_v0 = vpop.permute.xlu0 %1504 }
 0x220   : > { %12954 = vst [vmem:[#allocation125_spill] sm:$0xff] %v8575_v1  ;;  %v8579_v17 = vpop.permute.xlu2 %1660  ;;  %v1976_v36 = vrot.slane %v1970_v51, 3  ;;  %v1994_v1 = vstv %s7238_s29  ;;  %v2096_v51 = vstv %s7243_s4  ;;  %s7266_s29 = sld [smem:[#allocation6 + $0x1a]] }
 0x221   : > { %12955 = vst [vmem:[#allocation126_spill] sm:$0xff] %v8577_v0  ;;  %v1997_v54 = vmul.f32 %v8265_v2, %v1994_v1  ;;  %v1996_v31 = vmul.f32 %v8269_v61, %v1994_v1  ;;  %v1995_v27 = vmul.f32 %v8275_v41, %v1994_v1  ;;  %v2098_v1 = vmul.f32 %v8269_v61, %v2096_v51  ;;  %s7267_s4 = sld [smem:[#allocation6 + $0x65]] }
 0x222   : > { %12956 = vst [vmem:[#allocation127_spill] sm:$0xff] %v8579_v17  ;;  %v1978_v35 = vsel %vm1549_vm2, %v1976_v36, %v1977_v55  ;;  %v2099_v36 = vmul.f32 %v8265_v2, %v2096_v51 }
 0x225   : > { %1958 = vrot.lane.b32.xlu1 %v1955_v21, %s7695_s5  ;;  %1956 = vrot.lane.b32.xlu0 %v1953_v25, %s7695_s5  ;;  %v2002_v21 = vrot.slane %v1996_v31, 3  ;;  %v2001_v25 = vrot.slane %v1995_v27, 3  ;;  %v2104_v31 = vrot.slane %v2098_v1, 4 }
 0x226   : > { %1960 = vrot.lane.b32.xlu2 %v1954_v63, %s7695_s5  ;;  %v2004_v63 = vrot.slane %v1997_v54, 3  ;;  %v2106_v54 = vrot.slane %v2099_v36, 4 }
 0x227   : > { %v8589_v17 = vpop.permute.xlu1 %1531  ;;  %v8591_v0 = vpop.permute.xlu0 %1529 }
 0x228   : > { %12957 = vst [vmem:[#allocation128_spill] sm:$0xff] %v8589_v17  ;;  %v8593_v18 = vpop.permute.xlu2 %1685 }
 0x229   : > { %12958 = vst [vmem:[#allocation129_spill] sm:$0xff] %v8591_v0 }
 0x22a   : > { %12959 = vst [vmem:[#allocation130_spill] sm:$0xff] %v8593_v18 }
 0x22d   : > { %1983 = vrot.lane.b32.xlu1 %v1980_v37, %s7695_s5  ;;  %1981 = vrot.lane.b32.xlu0 %v1978_v35, %s7695_s5  ;;  %v2005_v37 = vsel %vm1549_vm2, %v2002_v21, %v2004_v63  ;;  %v2003_v35 = vsel %vm1549_vm2, %v2001_v25, %v2002_v21  ;;  %v2107_v21 = vsel %vm2026_vm3, %v2104_v31, %v2106_v54 }
 0x22e   : > { %1985 = vrot.lane.b32.xlu2 %v1979_v56, %s7695_s5  ;;  %v2097_v56 = vmul.f32 %v8275_v41, %v2096_v51 }
 0x22f   : > { %v8603_v18 = vpop.permute.xlu1 %1633  ;;  %v8605_v0 = vpop.permute.xlu0 %1631 }
 0x230   : > { %12960 = vst [vmem:[#allocation131_spill] sm:$0xff] %v8603_v18  ;;  %v8607_v55 = vpop.permute.xlu2 %1710  ;;  %v2103_v27 = vrot.slane %v2097_v56, 4  ;;  %v2121_v18 = vstv %s7244_s6  ;;  %v2146_v56 = vstv %s7245_s7  ;;  %s7268_s6 = sld [smem:[#allocation6 + $0xb0]] }
 0x231   : > { %12961 = vst [vmem:[#allocation132_spill] sm:$0xff] %v8605_v0  ;;  %v2124_v51 = vmul.f32 %v8265_v2, %v2121_v18  ;;  %v2123_v36 = vmul.f32 %v8269_v61, %v2121_v18  ;;  %s7269_s7 = sld [smem:[#allocation6 + $0xfb]] }
 0x232   : > { %12962 = vst [vmem:[#allocation133_spill] sm:$0xff] %v8607_v55  ;;  %v2105_v25 = vsel %vm2026_vm3, %v2103_v27, %v2104_v31  ;;  %v2149_v27 = vmul.f32 %v8265_v2, %v2146_v56 }
 0x233   : > { %v2131_v1 = vrot.slane %v2124_v51, 4 }
 0x234   : > { %v2156_v51 = vrot.slane %v2149_v27, 4 }
 0x235   : > { %2008 = vrot.lane.b32.xlu1 %v2005_v37, %s7695_s5  ;;  %2006 = vrot.lane.b32.xlu0 %v2003_v35, %s7695_s5  ;;  %v2129_v37 = vrot.slane %v2123_v36, 4 }
 0x236   : > { %2010 = vrot.lane.b32.xlu2 %v2004_v63, %s7695_s5  ;;  %v2122_v63 = vmul.f32 %v8275_v41, %v2121_v18  ;;  %v2148_v18 = vmul.f32 %v8269_v61, %v2146_v56 }
 0x237   : > { %v8617_v0 = vpop.permute.xlu1 %1658  ;;  %v8619_v55 = vpop.permute.xlu0 %1656 }
 0x238   : > { %12963 = vst [vmem:[#allocation134_spill] sm:$0xff] %v8617_v0  ;;  %v8621_v17 = vpop.permute.xlu2 %1735  ;;  %v2128_v35 = vrot.slane %v2122_v63, 4  ;;  %v2154_v36 = vrot.slane %v2148_v18, 4 }
 0x239   : > { %12964 = vst [vmem:[#allocation135_spill] sm:$0xff] %v8619_v55 }
 0x23a   : > { %12965 = vst [vmem:[#allocation136_spill] sm:$0xff] %v8621_v17 }
 0x23d   : > { %2110 = vrot.lane.b32.xlu1 %v2107_v21, %s7692_s22  ;;  %2108 = vrot.lane.b32.xlu0 %v2105_v25, %s7692_s22  ;;  %v2132_v21 = vsel %vm2026_vm3, %v2129_v37, %v2131_v1  ;;  %v2130_v25 = vsel %vm2026_vm3, %v2128_v35, %v2129_v37  ;;  %v2157_v37 = vsel %vm2026_vm3, %v2154_v36, %v2156_v51 }
 0x23e   : > { %2112 = vrot.lane.b32.xlu2 %v2106_v54, %s7692_s22  ;;  %v2147_v54 = vmul.f32 %v8275_v41, %v2146_v56 }
 0x23f   : > { %v8631_v17 = vpop.permute.xlu1 %1683  ;;  %v8633_v55 = vpop.permute.xlu0 %1681 }
 0x240   : > { %12966 = vst [vmem:[#allocation137_spill] sm:$0xff] %v8631_v17  ;;  %v8635_v31 = vpop.permute.xlu2 %1760  ;;  %v2153_v63 = vrot.slane %v2147_v54, 4  ;;  %v2196_v54 = vstv %s7247_s23  ;;  %s7271_s23 = sld [smem:[#allocation6 + $0x66]] }
 0x241   : > { %12967 = vst [vmem:[#allocation138_spill] sm:$0xff] %v8633_v55 }
 0x242   : > { %12968 = vst [vmem:[#allocation139_spill] sm:$0xff] %v8635_v31  ;;  %v2171_v31 = vstv %s7246_s8  ;;  %v2155_v35 = vsel %vm2026_vm3, %v2153_v63, %v2154_v36  ;;  %v2199_v63 = vmul.f32 %v8265_v2, %v2196_v54  ;;  %s7270_s8 = sld [smem:[#allocation6 + $0x1b]] }
 0x243   : > { %v2174_v56 = vmul.f32 %v8265_v2, %v2171_v31  ;;  %v2173_v27 = vmul.f32 %v8269_v61, %v2171_v31  ;;  %v2172_v18 = vmul.f32 %v8275_v41, %v2171_v31  ;;  %v2198_v31 = vmul.f32 %v8269_v61, %v2196_v54 }
 0x245   : > { %2135 = vrot.lane.b32.xlu1 %v2132_v21, %s7692_s22  ;;  %2133 = vrot.lane.b32.xlu0 %v2130_v25, %s7692_s22  ;;  %v2179_v21 = vrot.slane %v2173_v27, 4  ;;  %v2178_v25 = vrot.slane %v2172_v18, 4  ;;  %v2204_v27 = vrot.slane %v2198_v31, 4 }
 0x246   : > { %2137 = vrot.lane.b32.xlu2 %v2131_v1, %s7692_s22  ;;  %v2181_v1 = vrot.slane %v2174_v56, 4  ;;  %v2206_v56 = vrot.slane %v2199_v63, 4 }
 0x247   : > { %v8645_v55 = vpop.permute.xlu1 %1708  ;;  %v8647_v17 = vpop.permute.xlu0 %1706 }
 0x248   : > { %12969 = vst [vmem:[#allocation140_spill] sm:$0xff] %v8645_v55  ;;  %v8649_v0 = vpop.permute.xlu2 %1785 }
 0x249   : > { %12970 = vst [vmem:[#allocation141_spill] sm:$0xff] %v8647_v17 }
 0x24a   : > { %12971 = vst [vmem:[#allocation142_spill] sm:$0xff] %v8649_v0 }
 0x24d   : > { %2160 = vrot.lane.b32.xlu1 %v2157_v37, %s7692_s22  ;;  %2158 = vrot.lane.b32.xlu0 %v2155_v35, %s7692_s22  ;;  %v2182_v37 = vsel %vm2026_vm3, %v2179_v21, %v2181_v1  ;;  %v2180_v35 = vsel %vm2026_vm3, %v2178_v25, %v2179_v21  ;;  %v2207_v21 = vsel %vm2026_vm3, %v2204_v27, %v2206_v56 }
 0x24e   : > { %2162 = vrot.lane.b32.xlu2 %v2156_v51, %s7692_s22  ;;  %v2197_v51 = vmul.f32 %v8275_v41, %v2196_v54 }
 0x24f   : > { %v8659_v0 = vpop.permute.xlu1 %1733  ;;  %v8661_v17 = vpop.permute.xlu0 %1731 }
 0x250   : > { %12972 = vst [vmem:[#allocation143_spill] sm:$0xff] %v8659_v0  ;;  %v8663_v36 = vpop.permute.xlu2 %1810  ;;  %v2203_v18 = vrot.slane %v2197_v51, 4  ;;  %v2221_v0 = vstv %s7248_s30  ;;  %v2246_v51 = vstv %s7249_s10  ;;  %s7272_s30 = sld [smem:[#allocation6 + $0xb1]] }
 0x251   : > { %12973 = vst [vmem:[#allocation144_spill] sm:$0xff] %v8661_v17  ;;  %v2224_v54 = vmul.f32 %v8265_v2, %v2221_v0  ;;  %v2223_v63 = vmul.f32 %v8269_v61, %v2221_v0  ;;  %v2222_v31 = vmul.f32 %v8275_v41, %v2221_v0  ;;  %v2248_v0 = vmul.f32 %v8269_v61, %v2246_v51  ;;  %s7273_s10 = sld [smem:[#allocation6 + $0xfc]] }
 0x252   : > { %12974 = vst [vmem:[#allocation145_spill] sm:$0xff] %v8663_v36  ;;  %v2205_v25 = vsel %vm2026_vm3, %v2203_v18, %v2204_v27  ;;  %v2249_v18 = vmul.f32 %v8265_v2, %v2246_v51 }
 0x255   : > { %2185 = vrot.lane.b32.xlu1 %v2182_v37, %s7692_s22  ;;  %2183 = vrot.lane.b32.xlu0 %v2180_v35, %s7692_s22  ;;  %v2229_v37 = vrot.slane %v2223_v63, 4  ;;  %v2228_v35 = vrot.slane %v2222_v31, 4  ;;  %v2254_v63 = vrot.slane %v2248_v0, 4 }
 0x256   : > { %2187 = vrot.lane.b32.xlu2 %v2181_v1, %s7692_s22  ;;  %v2231_v1 = vrot.slane %v2224_v54, 4  ;;  %v2256_v54 = vrot.slane %v2249_v18, 4 }
 0x257   : > { %v8673_v36 = vpop.permute.xlu1 %1758  ;;  %v8675_v17 = vpop.permute.xlu0 %1756 }
 0x258   : > { %12975 = vst [vmem:[#allocation146_spill] sm:$0xff] %v8673_v36  ;;  %v8677_v55 = vpop.permute.xlu2 %1835 }
 0x259   : > { %12976 = vst [vmem:[#allocation147_spill] sm:$0xff] %v8675_v17 }
 0x25a   : > { %12977 = vst [vmem:[#allocation148_spill] sm:$0xff] %v8677_v55 }
 0x25d   : > { %2210 = vrot.lane.b32.xlu1 %v2207_v21, %s7693_s19  ;;  %2208 = vrot.lane.b32.xlu0 %v2205_v25, %s7693_s19  ;;  %v2232_v21 = vsel %vm2026_vm3, %v2229_v37, %v2231_v1  ;;  %v2230_v25 = vsel %vm2026_vm3, %v2228_v35, %v2229_v37  ;;  %v2257_v37 = vsel %vm2026_vm3, %v2254_v63, %v2256_v54 }
 0x25e   : > { %2212 = vrot.lane.b32.xlu2 %v2206_v56, %s7693_s19  ;;  %v2247_v56 = vmul.f32 %v8275_v41, %v2246_v51 }
 0x25f   : > { %v8687_v55 = vpop.permute.xlu1 %1783  ;;  %v8689_v17 = vpop.permute.xlu0 %1781 }
 0x260   : > { %12978 = vst [vmem:[#allocation149_spill] sm:$0xff] %v8687_v55  ;;  %v8691_v27 = vpop.permute.xlu2 %1860  ;;  %v2253_v31 = vrot.slane %v2247_v56, 4  ;;  %v2271_v55 = vstv %s7250_s11  ;;  %v2296_v56 = vstv %s7251_s12  ;;  %s7274_s11 = sld [smem:[#allocation6 + $0x1c]] }
 0x261   : > { %12979 = vst [vmem:[#allocation150_spill] sm:$0xff] %v8689_v17  ;;  %v2274_v51 = vmul.f32 %v8265_v2, %v2271_v55  ;;  %v2273_v18 = vmul.f32 %v8269_v61, %v2271_v55  ;;  %v8722_v61 = vld [vmem:[%s7802_s9 + $0x10] sm:$0xff]  ;;  %s7275_s12 = sld [smem:[#allocation6 + $0x67]] }
 0x262   : > { %12980 = vst [vmem:[#allocation151_spill] sm:$0xff] %v8691_v27  ;;  %v2255_v35 = vsel %vm2026_vm3, %v2253_v31, %v2254_v63 }
 0x263   : > { %v2281_v0 = vrot.slane %v2274_v51, 4 }
 0x265   : > { %2235 = vrot.lane.b32.xlu1 %v2232_v21, %s7693_s19  ;;  %2233 = vrot.lane.b32.xlu0 %v2230_v25, %s7693_s19  ;;  %v2279_v21 = vrot.slane %v2273_v18, 4 }
 0x266   : > { %2237 = vrot.lane.b32.xlu2 %v2231_v1, %s7693_s19  ;;  %v2272_v1 = vmul.f32 %v8275_v41, %v2271_v55  ;;  %v2299_v41 = vmul.f32 %v8722_v61, %v2296_v56  ;;  %v8726_v55 = vld [vmem:[%s7802_s9 + $0x8] sm:$0xff] }
 0x267   : > { %v8701_v27 = vpop.permute.xlu1 %1808  ;;  %v8703_v17 = vpop.permute.xlu0 %1806  ;;  %v2298_v31 = vmul.f32 %v8726_v55, %v2296_v56 }
 0x268   : > { %12981 = vst [vmem:[#allocation152_spill] sm:$0xff] %v8701_v27  ;;  %v8705_v36 = vpop.permute.xlu2 %1885  ;;  %v2278_v25 = vrot.slane %v2272_v1, 4  ;;  %v2306_v18 = vrot.slane %v2299_v41, 4 }
 0x269   : > { %12982 = vst [vmem:[#allocation153_spill] sm:$0xff] %v8703_v17  ;;  %v2304_v1 = vrot.slane %v2298_v31, 4 }
 0x26a   : > { %12983 = vst [vmem:[#allocation154_spill] sm:$0xff] %v8705_v36  ;;  %v2321_v36 = vstv %s7252_s18  ;;  %s7276_s18 = sld [smem:[#allocation6 + $0xb2]] }
 0x26b   : > { %v2323_v41 = vmul.f32 %v8726_v55, %v2321_v36 }
 0x26d   : > { %2260 = vrot.lane.b32.xlu1 %v2257_v37, %s7693_s19  ;;  %2258 = vrot.lane.b32.xlu0 %v2255_v35, %s7693_s19  ;;  %v2280_v37 = vsel %vm2026_vm3, %v2278_v25, %v2279_v21  ;;  %v8732_v35 = vld [vmem:[%s7802_s9] sm:$0xff]  ;;  %v2307_v25 = vsel %vm2026_vm3, %v2304_v1, %v2306_v18 }
 0x26e   : > { %2262 = vrot.lane.b32.xlu2 %v2256_v54, %s7693_s19  ;;  %v2282_v54 = vsel %vm2026_vm3, %v2279_v21, %v2281_v0  ;;  %v2297_v51 = vmul.f32 %v8732_v35, %v2296_v56  ;;  %v2322_v31 = vmul.f32 %v8732_v35, %v2321_v36 }
 0x26f   : > { %v8715_v17 = vpop.permute.xlu1 %1833  ;;  %v8717_v63 = vpop.permute.xlu0 %1831 }
 0x270   : > { %12984 = vst [vmem:[#allocation155_spill] sm:$0xff] %v8715_v17  ;;  %v8719_v2 = vpop.permute.xlu2 %1910 }
 0x271   : > { %12985 = vst [vmem:[#allocation156_spill] sm:$0xff] %v8717_v63 }
 0x272   : > { %12986 = vst [vmem:[#allocation157_spill] sm:$0xff] %v8719_v2  ;;  %v2303_v2 = vrot.slane %v2297_v51, 4  ;;  %v2328_v51 = vrot.slane %v2322_v31, 4 }
 0x274   : > { %v2305_v56 = vsel %vm2026_vm3, %v2303_v2, %v2304_v1 }
 0x275   : > { %2285 = vrot.lane.b32.xlu1 %v2282_v54, %s7693_s19  ;;  %2283 = vrot.lane.b32.xlu0 %v2280_v37, %s7693_s19  ;;  %v2324_v54 = vmul.f32 %v8722_v61, %v2321_v36  ;;  %v2329_v37 = vrot.slane %v2323_v41, 4 }
 0x276   : > { %2287 = vrot.lane.b32.xlu2 %v2281_v0, %s7693_s19 }
 0x277   : > { %v8738_v63 = vpop.permute.xlu1 %1858  ;;  %v8740_v17 = vpop.permute.xlu0 %1856  ;;  %v2331_v0 = vrot.slane %v2324_v54, 4 }
 0x278   : > { %12987 = vst [vmem:[#allocation158_spill] sm:$0xff] %v8738_v63  ;;  %v8742_v21 = vpop.permute.xlu2 %1935 }
 0x279   : > { %12988 = vst [vmem:[#allocation159_spill] sm:$0xff] %v8740_v17  ;;  %v2346_v17 = vstv %s7253_s21  ;;  %s7277_s21 = sld [smem:[#allocation6 + $0xfd]] }
 0x27a   : > { %12989 = vst [vmem:[#allocation160_spill] sm:$0xff] %v8742_v21  ;;  %v2349_v1 = vmul.f32 %v8722_v61, %v2346_v17  ;;  %v2348_v36 = vmul.f32 %v8726_v55, %v2346_v17 }
 0x27c   : > { %v2356_v54 = vrot.slane %v2349_v1, 4  ;;  %v2354_v41 = vrot.slane %v2348_v36, 4 }
 0x27d   : > { %2310 = vrot.lane.b32.xlu1 %v2307_v25, %s7694_s15  ;;  %2308 = vrot.lane.b32.xlu0 %v2305_v56, %s7694_s15  ;;  %v2332_v25 = vsel %vm2026_vm3, %v2329_v37, %v2331_v0  ;;  %v2330_v56 = vsel %vm2026_vm3, %v2328_v51, %v2329_v37 }
 0x27e   : > { %2312 = vrot.lane.b32.xlu2 %v2306_v18, %s7694_s15  ;;  %v2347_v18 = vmul.f32 %v8732_v35, %v2346_v17  ;;  %v2357_v37 = vsel %vm2026_vm3, %v2354_v41, %v2356_v54 }
 0x27f   : > { %v8752_v63 = vpop.permute.xlu1 %1883  ;;  %v8754_v21 = vpop.permute.xlu0 %1881 }
 0x280   : > { %12990 = vst [vmem:[#allocation161_spill] sm:$0xff] %v8752_v63  ;;  %v8756_v2 = vpop.permute.xlu2 %1960  ;;  %v2353_v31 = vrot.slane %v2347_v18, 4  ;;  %v2396_v18 = vstv %s7255_s25  ;;  %s7279_s25 = sld [smem:[#allocation6 + $0x68]] }
 0x281   : > { %12991 = vst [vmem:[#allocation162_spill] sm:$0xff] %v8754_v21 }
 0x282   : > { %12992 = vst [vmem:[#allocation163_spill] sm:$0xff] %v8756_v2  ;;  %v2371_v2 = vstv %s7254_s24  ;;  %v2355_v17 = vsel %vm2026_vm3, %v2353_v31, %v2354_v41  ;;  %v2399_v31 = vmul.f32 %v8722_v61, %v2396_v18  ;;  %s7278_s24 = sld [smem:[#allocation6 + $0x1d]] }
 0x283   : > { %v2374_v51 = vmul.f32 %v8722_v61, %v2371_v2  ;;  %v2373_v1 = vmul.f32 %v8726_v55, %v2371_v2  ;;  %v2372_v36 = vmul.f32 %v8732_v35, %v2371_v2  ;;  %v2398_v2 = vmul.f32 %v8726_v55, %v2396_v18 }
 0x285   : > { %2335 = vrot.lane.b32.xlu1 %v2332_v25, %s7694_s15  ;;  %2333 = vrot.lane.b32.xlu0 %v2330_v56, %s7694_s15  ;;  %v2379_v25 = vrot.slane %v2373_v1, 4  ;;  %v2378_v56 = vrot.slane %v2372_v36, 4  ;;  %v2404_v1 = vrot.slane %v2398_v2, 4 }
 0x286   : > { %2337 = vrot.lane.b32.xlu2 %v2331_v0, %s7694_s15  ;;  %v2381_v0 = vrot.slane %v2374_v51, 4  ;;  %v2406_v51 = vrot.slane %v2399_v31, 4 }
 0x287   : > { %v8766_v21 = vpop.permute.xlu1 %1908  ;;  %v8768_v63 = vpop.permute.xlu0 %1906 }
 0x288   : > { %12993 = vst [vmem:[#allocation164_spill] sm:$0xff] %v8766_v21  ;;  %v8770_v27 = vpop.permute.xlu2 %1985 }
 0x289   : > { %12994 = vst [vmem:[#allocation165_spill] sm:$0xff] %v8768_v63 }
 0x28a   : > { %12995 = vst [vmem:[#allocation166_spill] sm:$0xff] %v8770_v27 }
 0x28d   : > { %2360 = vrot.lane.b32.xlu1 %v2357_v37, %s7694_s15  ;;  %2358 = vrot.lane.b32.xlu0 %v2355_v17, %s7694_s15  ;;  %v2382_v37 = vsel %vm2026_vm3, %v2379_v25, %v2381_v0  ;;  %v2380_v17 = vsel %vm2026_vm3, %v2378_v56, %v2379_v25  ;;  %v2407_v25 = vsel %vm2026_vm3, %v2404_v1, %v2406_v51 }
 0x28e   : > { %2362 = vrot.lane.b32.xlu2 %v2356_v54, %s7694_s15  ;;  %v2397_v54 = vmul.f32 %v8732_v35, %v2396_v18 }
 0x28f   : > { %v8780_v63 = vpop.permute.xlu1 %1933  ;;  %v8782_v21 = vpop.permute.xlu0 %1931 }
 0x290   : > { %12996 = vst [vmem:[#allocation167_spill] sm:$0xff] %v8780_v63  ;;  %v8784_v41 = vpop.permute.xlu2 %2010  ;;  %v2403_v36 = vrot.slane %v2397_v54, 4  ;;  %v2421_v63 = vstv %s7256_s26  ;;  %v2446_v54 = vstv %s7257_s27  ;;  %s7280_s26 = sld [smem:[#allocation6 + $0xb3]] }
 0x291   : > { %12997 = vst [vmem:[#allocation168_spill] sm:$0xff] %v8782_v21  ;;  %v2424_v18 = vmul.f32 %v8722_v61, %v2421_v63  ;;  %v2423_v31 = vmul.f32 %v8726_v55, %v2421_v63  ;;  %v2422_v2 = vmul.f32 %v8732_v35, %v2421_v63  ;;  %v2448_v63 = vmul.f32 %v8726_v55, %v2446_v54  ;;  %s7281_s27 = sld [smem:[#allocation6 + $0xfe]] }
 0x292   : > { %12998 = vst [vmem:[#allocation169_spill] sm:$0xff] %v8784_v41  ;;  %v2405_v56 = vsel %vm2026_vm3, %v2403_v36, %v2404_v1  ;;  %v2449_v36 = vmul.f32 %v8722_v61, %v2446_v54 }
 0x295   : > { %2385 = vrot.lane.b32.xlu1 %v2382_v37, %s7694_s15  ;;  %2383 = vrot.lane.b32.xlu0 %v2380_v17, %s7694_s15  ;;  %v2429_v37 = vrot.slane %v2423_v31, 4  ;;  %v2428_v17 = vrot.slane %v2422_v2, 4  ;;  %v2454_v31 = vrot.slane %v2448_v63, 4 }
 0x296   : > { %2387 = vrot.lane.b32.xlu2 %v2381_v0, %s7694_s15  ;;  %v2431_v0 = vrot.slane %v2424_v18, 4  ;;  %v2456_v18 = vrot.slane %v2449_v36, 4 }
 0x297   : > { %v8794_v41 = vpop.permute.xlu1 %1958  ;;  %v8796_v21 = vpop.permute.xlu0 %1956 }
 0x298   : > { %12999 = vst [vmem:[#allocation170_spill] sm:$0xff] %v8794_v41  ;;  %v8798_v27 = vpop.permute.xlu2 %2112 }
 0x299   : > { %13000 = vst [vmem:[#allocation171_spill] sm:$0xff] %v8796_v21 }
 0x29a   : > { %13001 = vst [vmem:[#allocation172_spill] sm:$0xff] %v8798_v27 }
 0x29d   : > { %2410 = vrot.lane.b32.xlu1 %v2407_v25, %s7695_s5  ;;  %2408 = vrot.lane.b32.xlu0 %v2405_v56, %s7695_s5  ;;  %v2432_v25 = vsel %vm2026_vm3, %v2429_v37, %v2431_v0  ;;  %v2430_v56 = vsel %vm2026_vm3, %v2428_v17, %v2429_v37  ;;  %v2457_v37 = vsel %vm2026_vm3, %v2454_v31, %v2456_v18 }
 0x29e   : > { %2412 = vrot.lane.b32.xlu2 %v2406_v51, %s7695_s5  ;;  %v2447_v51 = vmul.f32 %v8732_v35, %v2446_v54 }
 0x29f   : > { %v8808_v27 = vpop.permute.xlu1 %1983  ;;  %v8810_v21 = vpop.permute.xlu0 %1981 }
 0x2a0   : > { %13002 = vst [vmem:[#allocation173_spill] sm:$0xff] %v8808_v27  ;;  %v8812_v1 = vpop.permute.xlu2 %2137  ;;  %v2453_v2 = vrot.slane %v2447_v51, 4  ;;  %v2471_v27 = vstv %s7258_s28  ;;  %s7286_s28 = sld [smem:[#allocation6 + $0x1f]] }
 0x2a1   : > { %13003 = vst [vmem:[#allocation174_spill] sm:$0xff] %v8810_v21  ;;  %v2474_v54 = vmul.f32 %v8722_v61, %v2471_v27  ;;  %v2472_v36 = vmul.f32 %v8732_v35, %v2471_v27 }
 0x2a2   : > { %13004 = vst [vmem:[#allocation175_spill] sm:$0xff] %v8812_v1  ;;  %v2455_v17 = vsel %vm2026_vm3, %v2453_v2, %v2454_v31  ;;  %v8848_v31 = vld [vmem:[%s7802_s9 + $0x20] sm:$0xff]  ;;  %v8851_v2 = vld [vmem:[%s7802_s9 + $0x18] sm:$0xff] }
 0x2a5   : > { %2435 = vrot.lane.b32.xlu1 %v2432_v25, %s7695_s5  ;;  %2433 = vrot.lane.b32.xlu0 %v2430_v56, %s7695_s5  ;;  %v2473_v25 = vmul.f32 %v8726_v55, %v2471_v27  ;;  %v2478_v56 = vrot.slane %v2472_v36, 4 }
 0x2a6   : > { %2437 = vrot.lane.b32.xlu2 %v2431_v0, %s7695_s5  ;;  %v2481_v0 = vrot.slane %v2474_v54, 4  ;;  %v8858_v54 = vld [vmem:[%s7802_s9 + $0x28] sm:$0xff] }
 0x2a7   : > { %v8822_v1 = vpop.permute.xlu1 %2008  ;;  %v8824_v21 = vpop.permute.xlu0 %2006  ;;  %v2479_v63 = vrot.slane %v2473_v25, 4 }
 0x2a8   : > { %13005 = vst [vmem:[#allocation176_spill] sm:$0xff] %v8822_v1  ;;  %v8826_v41 = vpop.permute.xlu2 %2162 }
 0x2a9   : > { %13006 = vst [vmem:[#allocation177_spill] sm:$0xff] %v8824_v21  ;;  %v2482_v27 = vsel %vm2026_vm3, %v2479_v63, %v2481_v0  ;;  %v2480_v35 = vsel %vm2026_vm3, %v2478_v56, %v2479_v63  ;;  %v2552_v56 = vstv %s7267_s4  ;;  %s7288_s4 = sld [smem:[#allocation6 + $0xb5]] }
 0x2aa   : > { %13007 = vst [vmem:[#allocation178_spill] sm:$0xff] %v8826_v41 }
 0x2ad   : > { %2460 = vrot.lane.b32.xlu1 %v2457_v37, %s7695_s5  ;;  %2458 = vrot.lane.b32.xlu0 %v2455_v17, %s7695_s5 }
 0x2ae   : > { %2462 = vrot.lane.b32.xlu2 %v2456_v18, %s7695_s5  ;;  %v2532_v18 = vstv %s7266_s29  ;;  %s7287_s29 = sld [smem:[#allocation6 + $0x6a]] }
 0x2af   : > { %v8836_v51 = vpop.permute.xlu1 %2110  ;;  %v8838_v61 = vpop.permute.xlu0 %2108  ;;  %v2534_v36 = vmul.f32 %v8848_v31, %v2532_v18  ;;  %v2533_v63 = vmul.f32 %v8851_v2, %v2532_v18 }
 0x2b0   : > { %13008 = vst [vmem:[#allocation179_spill] sm:$0xff] %v8836_v51  ;;  %v8840_v55 = vpop.permute.xlu2 %2187 }
 0x2b1   : > { %13009 = vst [vmem:[#allocation180_spill] sm:$0xff] %v8838_v61 }
 0x2b2   : > { %13010 = vst [vmem:[#allocation181_spill] sm:$0xff] %v8840_v55 }
 0x2b4   : > { %v2953_v41 = vstv %s7287_s29  ;;  %s7308_s29 = sld [smem:[#allocation6 + $0xba]] }
 0x2b5   : > { %2485 = vrot.lane.b32.xlu1 %v2482_v27, %s7695_s5  ;;  %2483 = vrot.lane.b32.xlu0 %v2480_v35, %s7695_s5 }
 0x2b6   : > { %2487 = vrot.lane.b32.xlu2 %v2481_v0, %s7695_s5  ;;  %v2535_v0 = vmul.f32 %v8858_v54, %v2532_v18  ;;  %v2555_v18 = vmul.f32 %v8858_v54, %v2552_v56 }
 0x2b7   : > { %v8853_v37 = vpop.permute.xlu1 %2135  ;;  %v8855_v17 = vpop.permute.xlu0 %2133 }
 0x2b8   : > { %13011 = vst [vmem:[#allocation182_spill] sm:$0xff] %v8853_v37  ;;  %v8860_v25 = vpop.permute.xlu2 %2212  ;;  %v2554_v37 = vmul.f32 %v8848_v31, %v2552_v56 }
 0x2b9   : > { %13012 = vst [vmem:[#allocation183_spill] sm:$0xff] %v8855_v17 }
 0x2ba   : > { %13013 = vst [vmem:[#allocation184_spill] sm:$0xff] %v8860_v25  ;;  %v2553_v25 = vmul.f32 %v8851_v2, %v2552_v56 }
 0x2bd   : > { %2541 = vrot.lane.b32.xlu1 %v2534_v36, %s7692_s22  ;;  %2539 = vrot.lane.b32.xlu0 %v2533_v63, %s7692_s22  ;;  %v2572_v36 = vstv %s7268_s6  ;;  %s7289_s6 = sld [smem:[#allocation6 + $0x100]] }
 0x2be   : > { %2543 = vrot.lane.b32.xlu2 %v2535_v0, %s7692_s22  ;;  %v2575_v56 = vmul.f32 %v8858_v54, %v2572_v36 }
 0x2bf   : > { %v8868_v27 = vpop.permute.xlu1 %2160  ;;  %v8870_v35 = vpop.permute.xlu0 %2158 }
 0x2c0   : > { %13014 = vst [vmem:[#allocation185_spill] sm:$0xff] %v8868_v27  ;;  %v8872_v17 = vpop.permute.xlu2 %2237  ;;  %v2574_v27 = vmul.f32 %v8848_v31, %v2572_v36 }
 0x2c1   : > { %13015 = vst [vmem:[#allocation186_spill] sm:$0xff] %v8870_v35 }
 0x2c2   : > { %13016 = vst [vmem:[#allocation187_spill] sm:$0xff] %v8872_v17  ;;  %v2573_v17 = vmul.f32 %v8851_v2, %v2572_v36 }
 0x2c5   : > { %2561 = vrot.lane.b32.xlu1 %v2554_v37, %s7692_s22  ;;  %2559 = vrot.lane.b32.xlu0 %v2553_v25, %s7692_s22  ;;  %v2592_v37 = vstv %s7269_s7  ;;  %s7290_s7 = sld [smem:[#allocation6 + $0x20]] }
 0x2c6   : > { %2563 = vrot.lane.b32.xlu2 %v2555_v18, %s7692_s22  ;;  %v2595_v36 = vmul.f32 %v8858_v54, %v2592_v37 }
 0x2c7   : > { %v8880_v63 = vpop.permute.xlu1 %2185  ;;  %v8882_v0 = vpop.permute.xlu0 %2183 }
 0x2c8   : > { %13017 = vst [vmem:[#allocation188_spill] sm:$0xff] %v8880_v63  ;;  %v8884_v35 = vpop.permute.xlu2 %2262  ;;  %v2594_v63 = vmul.f32 %v8848_v31, %v2592_v37 }
 0x2c9   : > { %13018 = vst [vmem:[#allocation189_spill] sm:$0xff] %v8882_v0 }
 0x2ca   : > { %13019 = vst [vmem:[#allocation190_spill] sm:$0xff] %v8884_v35  ;;  %v2593_v35 = vmul.f32 %v8851_v2, %v2592_v37 }
 0x2cd   : > { %2581 = vrot.lane.b32.xlu1 %v2574_v27, %s7692_s22  ;;  %2579 = vrot.lane.b32.xlu0 %v2573_v17, %s7692_s22  ;;  %v2612_v17 = vstv %s7270_s8  ;;  %s7291_s8 = sld [smem:[#allocation6 + $0x6b]] }
 0x2ce   : > { %2583 = vrot.lane.b32.xlu2 %v2575_v56, %s7692_s22  ;;  %v2615_v37 = vmul.f32 %v8858_v54, %v2612_v17 }
 0x2cf   : > { %v8892_v25 = vpop.permute.xlu1 %2210  ;;  %v8894_v18 = vpop.permute.xlu0 %2208 }
 0x2d0   : > { %13020 = vst [vmem:[#allocation191_spill] sm:$0xff] %v8892_v25  ;;  %v8896_v0 = vpop.permute.xlu2 %2287  ;;  %v2613_v25 = vmul.f32 %v8851_v2, %v2612_v17 }
 0x2d1   : > { %13021 = vst [vmem:[#allocation192_spill] sm:$0xff] %v8894_v18 }
 0x2d2   : > { %13022 = vst [vmem:[#allocation193_spill] sm:$0xff] %v8896_v0  ;;  %v2614_v0 = vmul.f32 %v8848_v31, %v2612_v17 }
 0x2d5   : > { %2601 = vrot.lane.b32.xlu1 %v2594_v63, %s7692_s22  ;;  %2599 = vrot.lane.b32.xlu0 %v2593_v35, %s7692_s22  ;;  %v2632_v35 = vstv %s7271_s23  ;;  %s7292_s23 = sld [smem:[#allocation6 + $0xb6]] }
 0x2d6   : > { %2603 = vrot.lane.b32.xlu2 %v2595_v36, %s7692_s22  ;;  %v2635_v17 = vmul.f32 %v8858_v54, %v2632_v35 }
 0x2d7   : > { %v8904_v27 = vpop.permute.xlu1 %2235  ;;  %v8906_v56 = vpop.permute.xlu0 %2233 }
 0x2d8   : > { %13023 = vst [vmem:[#allocation194_spill] sm:$0xff] %v8904_v27  ;;  %v8908_v18 = vpop.permute.xlu2 %2312  ;;  %v2633_v27 = vmul.f32 %v8851_v2, %v2632_v35 }
 0x2d9   : > { %13024 = vst [vmem:[#allocation195_spill] sm:$0xff] %v8906_v56 }
 0x2da   : > { %13025 = vst [vmem:[#allocation196_spill] sm:$0xff] %v8908_v18  ;;  %v2634_v18 = vmul.f32 %v8848_v31, %v2632_v35 }
 0x2dd   : > { %2621 = vrot.lane.b32.xlu1 %v2614_v0, %s7693_s19  ;;  %2619 = vrot.lane.b32.xlu0 %v2613_v25, %s7693_s19  ;;  %v2652_v0 = vstv %s7272_s30  ;;  %s7293_s30 = sld [smem:[#allocation6 + $0x101]] }
 0x2de   : > { %2623 = vrot.lane.b32.xlu2 %v2615_v37, %s7693_s19  ;;  %v2655_v35 = vmul.f32 %v8858_v54, %v2652_v0 }
 0x2df   : > { %v8916_v63 = vpop.permute.xlu1 %2260  ;;  %v8918_v36 = vpop.permute.xlu0 %2258 }
 0x2e0   : > { %13026 = vst [vmem:[#allocation197_spill] sm:$0xff] %v8916_v63  ;;  %v8920_v56 = vpop.permute.xlu2 %2337  ;;  %v2653_v63 = vmul.f32 %v8851_v2, %v2652_v0 }
 0x2e1   : > { %13027 = vst [vmem:[#allocation198_spill] sm:$0xff] %v8918_v36 }
 0x2e2   : > { %13028 = vst [vmem:[#allocation199_spill] sm:$0xff] %v8920_v56  ;;  %v2654_v56 = vmul.f32 %v8848_v31, %v2652_v0 }
 0x2e5   : > { %2641 = vrot.lane.b32.xlu1 %v2634_v18, %s7693_s19  ;;  %2639 = vrot.lane.b32.xlu0 %v2633_v27, %s7693_s19  ;;  %v2672_v18 = vstv %s7273_s10  ;;  %s7294_s10 = sld [smem:[#allocation6 + $0x21]] }
 0x2e6   : > { %2643 = vrot.lane.b32.xlu2 %v2635_v17, %s7693_s19  ;;  %v2675_v0 = vmul.f32 %v8858_v54, %v2672_v18 }
 0x2e7   : > { %v8928_v25 = vpop.permute.xlu1 %2285  ;;  %v8930_v37 = vpop.permute.xlu0 %2283 }
 0x2e8   : > { %13029 = vst [vmem:[#allocation200_spill] sm:$0xff] %v8928_v25  ;;  %v8932_v36 = vpop.permute.xlu2 %2362  ;;  %v2673_v25 = vmul.f32 %v8851_v2, %v2672_v18 }
 0x2e9   : > { %13030 = vst [vmem:[#allocation201_spill] sm:$0xff] %v8930_v37 }
 0x2ea   : > { %13031 = vst [vmem:[#allocation202_spill] sm:$0xff] %v8932_v36  ;;  %v2674_v36 = vmul.f32 %v8848_v31, %v2672_v18 }
 0x2ed   : > { %2661 = vrot.lane.b32.xlu1 %v2654_v56, %s7693_s19  ;;  %2659 = vrot.lane.b32.xlu0 %v2653_v63, %s7693_s19  ;;  %v2692_v56 = vstv %s7274_s11  ;;  %s7295_s11 = sld [smem:[#allocation6 + $0x6c]] }
 0x2ee   : > { %2663 = vrot.lane.b32.xlu2 %v2655_v35, %s7693_s19  ;;  %v2695_v18 = vmul.f32 %v8858_v54, %v2692_v56 }
 0x2ef   : > { %v8940_v27 = vpop.permute.xlu1 %2310  ;;  %v8942_v17 = vpop.permute.xlu0 %2308 }
 0x2f0   : > { %13032 = vst [vmem:[#allocation203_spill] sm:$0xff] %v8940_v27  ;;  %v8944_v37 = vpop.permute.xlu2 %2387  ;;  %v2693_v27 = vmul.f32 %v8851_v2, %v2692_v56 }
 0x2f1   : > { %13033 = vst [vmem:[#allocation204_spill] sm:$0xff] %v8942_v17 }
 0x2f2   : > { %13034 = vst [vmem:[#allocation205_spill] sm:$0xff] %v8944_v37  ;;  %v2694_v37 = vmul.f32 %v8848_v31, %v2692_v56 }
 0x2f5   : > { %2681 = vrot.lane.b32.xlu1 %v2674_v36, %s7693_s19  ;;  %2679 = vrot.lane.b32.xlu0 %v2673_v25, %s7693_s19  ;;  %v2712_v36 = vstv %s7275_s12  ;;  %s7296_s12 = sld [smem:[#allocation6 + $0xb7]] }
 0x2f6   : > { %2683 = vrot.lane.b32.xlu2 %v2675_v0, %s7693_s19  ;;  %v2715_v56 = vmul.f32 %v8858_v54, %v2712_v36 }
 0x2f7   : > { %v8952_v63 = vpop.permute.xlu1 %2335  ;;  %v8954_v35 = vpop.permute.xlu0 %2333 }
 0x2f8   : > { %13035 = vst [vmem:[#allocation206_spill] sm:$0xff] %v8952_v63  ;;  %v8956_v17 = vpop.permute.xlu2 %2412  ;;  %v2714_v63 = vmul.f32 %v8848_v31, %v2712_v36 }
 0x2f9   : > { %13036 = vst [vmem:[#allocation207_spill] sm:$0xff] %v8954_v35 }
 0x2fa   : > { %13037 = vst [vmem:[#allocation208_spill] sm:$0xff] %v8956_v17  ;;  %v2713_v17 = vmul.f32 %v8851_v2, %v2712_v36 }
 0x2fd   : > { %2701 = vrot.lane.b32.xlu1 %v2694_v37, %s7694_s15  ;;  %2699 = vrot.lane.b32.xlu0 %v2693_v27, %s7694_s15  ;;  %v2732_v37 = vstv %s7276_s18  ;;  %s7297_s18 = sld [smem:[#allocation6 + $0x102]] }
 0x2fe   : > { %2703 = vrot.lane.b32.xlu2 %v2695_v18, %s7694_s15  ;;  %v2735_v36 = vmul.f32 %v8858_v54, %v2732_v37 }
 0x2ff   : > { %v8964_v25 = vpop.permute.xlu1 %2360  ;;  %v8966_v0 = vpop.permute.xlu0 %2358 }
 0x300   : > { %13038 = vst [vmem:[#allocation209_spill] sm:$0xff] %v8964_v25  ;;  %v8968_v35 = vpop.permute.xlu2 %2437  ;;  %v2734_v25 = vmul.f32 %v8848_v31, %v2732_v37 }
 0x301   : > { %13039 = vst [vmem:[#allocation210_spill] sm:$0xff] %v8966_v0 }
 0x302   : > { %13040 = vst [vmem:[#allocation211_spill] sm:$0xff] %v8968_v35  ;;  %v2733_v35 = vmul.f32 %v8851_v2, %v2732_v37 }
 0x305   : > { %2721 = vrot.lane.b32.xlu1 %v2714_v63, %s7694_s15  ;;  %2719 = vrot.lane.b32.xlu0 %v2713_v17, %s7694_s15  ;;  %v2752_v17 = vstv %s7277_s21  ;;  %s7298_s21 = sld [smem:[#allocation6 + $0x22]] }
 0x306   : > { %2723 = vrot.lane.b32.xlu2 %v2715_v56, %s7694_s15  ;;  %v2755_v37 = vmul.f32 %v8858_v54, %v2752_v17 }
 0x307   : > { %v8976_v27 = vpop.permute.xlu1 %2385  ;;  %v8978_v18 = vpop.permute.xlu0 %2383 }
 0x308   : > { %13041 = vst [vmem:[#allocation212_spill] sm:$0xff] %v8976_v27  ;;  %v8980_v0 = vpop.permute.xlu2 %2462  ;;  %v2754_v27 = vmul.f32 %v8848_v31, %v2752_v17 }
 0x309   : > { %13042 = vst [vmem:[#allocation213_spill] sm:$0xff] %v8978_v18 }
 0x30a   : > { %13043 = vst [vmem:[#allocation214_spill] sm:$0xff] %v8980_v0  ;;  %v2753_v0 = vmul.f32 %v8851_v2, %v2752_v17 }
 0x30d   : > { %2741 = vrot.lane.b32.xlu1 %v2734_v25, %s7694_s15  ;;  %2739 = vrot.lane.b32.xlu0 %v2733_v35, %s7694_s15  ;;  %v2772_v35 = vstv %s7278_s24  ;;  %s7299_s24 = sld [smem:[#allocation6 + $0x6d]] }
 0x30e   : > { %2743 = vrot.lane.b32.xlu2 %v2735_v36, %s7694_s15  ;;  %v2775_v17 = vmul.f32 %v8858_v54, %v2772_v35 }
 0x30f   : > { %v8988_v63 = vpop.permute.xlu1 %2410  ;;  %v8990_v56 = vpop.permute.xlu0 %2408 }
 0x310   : > { %13044 = vst [vmem:[#allocation215_spill] sm:$0xff] %v8988_v63  ;;  %v8992_v18 = vpop.permute.xlu2 %2487  ;;  %v2773_v63 = vmul.f32 %v8851_v2, %v2772_v35 }
 0x311   : > { %13045 = vst [vmem:[#allocation216_spill] sm:$0xff] %v8990_v56 }
 0x312   : > { %13046 = vst [vmem:[#allocation217_spill] sm:$0xff] %v8992_v18  ;;  %v2774_v18 = vmul.f32 %v8848_v31, %v2772_v35 }
 0x315   : > { %2761 = vrot.lane.b32.xlu1 %v2754_v27, %s7694_s15  ;;  %2759 = vrot.lane.b32.xlu0 %v2753_v0, %s7694_s15  ;;  %v2792_v0 = vstv %s7279_s25  ;;  %s7300_s25 = sld [smem:[#allocation6 + $0xb8]] }
 0x316   : > { %2763 = vrot.lane.b32.xlu2 %v2755_v37, %s7694_s15  ;;  %v2795_v35 = vmul.f32 %v8858_v54, %v2792_v0 }
 0x317   : > { %v9000_v25 = vpop.permute.xlu1 %2435  ;;  %v9002_v36 = vpop.permute.xlu0 %2433 }
 0x318   : > { %13047 = vst [vmem:[#allocation218_spill] sm:$0xff] %v9000_v25  ;;  %v9004_v56 = vpop.permute.xlu2 %2543  ;;  %v2793_v25 = vmul.f32 %v8851_v2, %v2792_v0 }
 0x319   : > { %13048 = vst [vmem:[#allocation219_spill] sm:$0xff] %v9002_v36 }
 0x31a   : > { %13049 = vst [vmem:[#allocation220_spill] sm:$0xff] %v9004_v56  ;;  %v2794_v56 = vmul.f32 %v8848_v31, %v2792_v0 }
 0x31d   : > { %2781 = vrot.lane.b32.xlu1 %v2774_v18, %s7695_s5  ;;  %2779 = vrot.lane.b32.xlu0 %v2773_v63, %s7695_s5  ;;  %v2812_v18 = vstv %s7280_s26  ;;  %s7301_s26 = sld [smem:[#allocation6 + $0x103]] }
 0x31e   : > { %2783 = vrot.lane.b32.xlu2 %v2775_v17, %s7695_s5  ;;  %v2815_v0 = vmul.f32 %v8858_v54, %v2812_v18 }
 0x31f   : > { %v9012_v27 = vpop.permute.xlu1 %2460  ;;  %v9014_v37 = vpop.permute.xlu0 %2458 }
 0x320   : > { %13050 = vst [vmem:[#allocation221_spill] sm:$0xff] %v9012_v27  ;;  %v9016_v36 = vpop.permute.xlu2 %2563  ;;  %v2813_v27 = vmul.f32 %v8851_v2, %v2812_v18 }
 0x321   : > { %13051 = vst [vmem:[#allocation222_spill] sm:$0xff] %v9014_v37  ;;  %v2814_v37 = vmul.f32 %v8848_v31, %v2812_v18 }
 0x322   : > { %13052 = vst [vmem:[#allocation223_spill] sm:$0xff] %v9016_v36 }
 0x325   : > { %2801 = vrot.lane.b32.xlu1 %v2794_v56, %s7695_s5  ;;  %2799 = vrot.lane.b32.xlu0 %v2793_v25, %s7695_s5  ;;  %v2832_v56 = vstv %s7281_s27  ;;  %v2928_v25 = vstv %s7286_s28  ;;  %s7306_s27 = sld [smem:[#allocation6 + $0x24]] }
 0x326   : > { %2803 = vrot.lane.b32.xlu2 %v2795_v35, %s7695_s5  ;;  %v2833_v55 = vmul.f32 %v8851_v2, %v2832_v56  ;;  %v2931_v18 = vmul.f32 %v8858_v54, %v2928_v25  ;;  %s7307_s28 = sld [smem:[#allocation6 + $0x6f]] }
 0x327   : > { %v9024_v63 = vpop.permute.xlu1 %2485  ;;  %v9026_v17 = vpop.permute.xlu0 %2483 }
 0x328   : > { %13053 = vst [vmem:[#allocation224_spill] sm:$0xff] %v9024_v63  ;;  %v9028_v36 = vpop.permute.xlu2 %2583 }
 0x329   : > { %13054 = vst [vmem:[#allocation225_spill] sm:$0xff] %v9026_v17  ;;  %v2834_v17 = vmul.f32 %v8848_v31, %v2832_v56 }
 0x32a   : > { %13055 = vst [vmem:[#allocation226_spill] sm:$0xff] %v9028_v36 }
 0x32d   : > { %2821 = vrot.lane.b32.xlu1 %v2814_v37, %s7695_s5  ;;  %2819 = vrot.lane.b32.xlu0 %v2813_v27, %s7695_s5  ;;  %v2930_v37 = vmul.f32 %v8848_v31, %v2928_v25  ;;  %v2835_v27 = vmul.f32 %v8858_v54, %v2832_v56 }
 0x32e   : > { %2823 = vrot.lane.b32.xlu2 %v2815_v0, %s7695_s5  ;;  %v2929_v0 = vmul.f32 %v8851_v2, %v2928_v25 }
 0x32f   : > { %v9036_v35 = vpop.permute.xlu1 %2541  ;;  %v9038_v63 = vpop.permute.xlu0 %2539 }
 0x330   : > { %13056 = vst [vmem:[#allocation227_spill] sm:$0xff] %v9036_v35  ;;  %v9040_v36 = vpop.permute.xlu2 %2603  ;;  %v2936_v35 = vrot.slane %v2930_v37, 1 }
 0x331   : > { %13057 = vst [vmem:[#allocation228_spill] sm:$0xff] %v9038_v63  ;;  %v2938_v63 = vrot.slane %v2931_v18, 1  ;;  %v2954_v18 = vmul.f32 %v8851_v2, %v2953_v41 }
 0x332   : > { %13058 = vst [vmem:[#allocation229_spill] sm:$0xff] %v9040_v36  ;;  %v2935_v36 = vrot.slane %v2929_v0, 1 }
 0x333   : > { %v2939_v56 = vsel %vm595_vm0, %v2936_v35, %v2938_v63  ;;  %v2960_v0 = vrot.slane %v2954_v18, 1 }
 0x334   : > { %v2937_v25 = vsel %vm595_vm0, %v2935_v36, %v2936_v35 }
 0x335   : > { %2841 = vrot.lane.b32.xlu1 %v2834_v17, %s7695_s5  ;;  %2839 = vrot.lane.b32.xlu0 %v2833_v55, %s7695_s5  ;;  %v2956_v17 = vmul.f32 %v8858_v54, %v2953_v41  ;;  %v2955_v55 = vmul.f32 %v8848_v31, %v2953_v41 }
 0x336   : > { %2843 = vrot.lane.b32.xlu2 %v2835_v27, %s7695_s5 }
 0x337   : > { %v9051_v61 = vpop.permute.xlu1 %2561  ;;  %v9053_v51 = vpop.permute.xlu0 %2559  ;;  %v2963_v37 = vrot.slane %v2956_v17, 1  ;;  %v2961_v27 = vrot.slane %v2955_v55, 1 }
 0x338   : > { %13059 = vst [vmem:[#allocation230_spill] sm:$0xff] %v9051_v61  ;;  %v9055_v21 = vpop.permute.xlu2 %2623 }
 0x339   : > { %13060 = vst [vmem:[#allocation231_spill] sm:$0xff] %v9053_v51  ;;  %v2978_v51 = vstv %s7288_s4  ;;  %s7309_s4 = sld [smem:[#allocation6 + $0x105]] }
 0x33a   : > { %13061 = vst [vmem:[#allocation232_spill] sm:$0xff] %v9055_v21  ;;  %v2981_v35 = vmul.f32 %v8858_v54, %v2978_v51  ;;  %v2980_v41 = vmul.f32 %v8848_v31, %v2978_v51 }
 0x33c   : > { %v2988_v17 = vrot.slane %v2981_v35, 1  ;;  %v2986_v55 = vrot.slane %v2980_v41, 1 }
 0x33d   : > { %2942 = vrot.lane.b32.xlu1 %v2939_v56, %s7692_s22  ;;  %2940 = vrot.lane.b32.xlu0 %v2937_v25, %s7692_s22  ;;  %v2964_v56 = vsel %vm595_vm0, %v2961_v27, %v2963_v37  ;;  %v2962_v25 = vsel %vm595_vm0, %v2960_v0, %v2961_v27 }
 0x33e   : > { %2944 = vrot.lane.b32.xlu2 %v2938_v63, %s7692_s22  ;;  %v2979_v63 = vmul.f32 %v8851_v2, %v2978_v51  ;;  %v2989_v27 = vsel %vm595_vm0, %v2986_v55, %v2988_v17 }
 0x33f   : > { %v9065_v61 = vpop.permute.xlu1 %2581  ;;  %v9067_v21 = vpop.permute.xlu0 %2579 }
 0x340   : > { %13062 = vst [vmem:[#allocation233_spill] sm:$0xff] %v9065_v61  ;;  %v9069_v36 = vpop.permute.xlu2 %2643  ;;  %v2985_v18 = vrot.slane %v2979_v63, 1  ;;  %v3028_v63 = vstv %s7290_s7  ;;  %s7311_s7 = sld [smem:[#allocation6 + $0x70]] }
 0x341   : > { %13063 = vst [vmem:[#allocation234_spill] sm:$0xff] %v9067_v21 }
 0x342   : > { %13064 = vst [vmem:[#allocation235_spill] sm:$0xff] %v9069_v36  ;;  %v3003_v36 = vstv %s7289_s6  ;;  %v2987_v51 = vsel %vm595_vm0, %v2985_v18, %v2986_v55  ;;  %v3031_v18 = vmul.f32 %v8858_v54, %v3028_v63  ;;  %s7310_s6 = sld [smem:[#allocation6 + $0x25]] }
 0x343   : > { %v3006_v0 = vmul.f32 %v8858_v54, %v3003_v36  ;;  %v3005_v35 = vmul.f32 %v8848_v31, %v3003_v36  ;;  %v3004_v41 = vmul.f32 %v8851_v2, %v3003_v36  ;;  %v3030_v36 = vmul.f32 %v8848_v31, %v3028_v63 }
 0x345   : > { %2967 = vrot.lane.b32.xlu1 %v2964_v56, %s7692_s22  ;;  %2965 = vrot.lane.b32.xlu0 %v2962_v25, %s7692_s22  ;;  %v3011_v56 = vrot.slane %v3005_v35, 1  ;;  %v3010_v25 = vrot.slane %v3004_v41, 1  ;;  %v3036_v35 = vrot.slane %v3030_v36, 1 }
 0x346   : > { %2969 = vrot.lane.b32.xlu2 %v2963_v37, %s7692_s22  ;;  %v3013_v37 = vrot.slane %v3006_v0, 1  ;;  %v3038_v0 = vrot.slane %v3031_v18, 1 }
 0x347   : > { %v9079_v21 = vpop.permute.xlu1 %2601  ;;  %v9081_v61 = vpop.permute.xlu0 %2599 }
 0x348   : > { %13065 = vst [vmem:[#allocation236_spill] sm:$0xff] %v9079_v21  ;;  %v9083_v1 = vpop.permute.xlu2 %2663 }
 0x349   : > { %13066 = vst [vmem:[#allocation237_spill] sm:$0xff] %v9081_v61 }
 0x34a   : > { %13067 = vst [vmem:[#allocation238_spill] sm:$0xff] %v9083_v1 }
 0x34d   : > { %2992 = vrot.lane.b32.xlu1 %v2989_v27, %s7692_s22  ;;  %2990 = vrot.lane.b32.xlu0 %v2987_v51, %s7692_s22  ;;  %v3014_v27 = vsel %vm595_vm0, %v3011_v56, %v3013_v37  ;;  %v3012_v51 = vsel %vm595_vm0, %v3010_v25, %v3011_v56  ;;  %v3039_v56 = vsel %vm595_vm0, %v3036_v35, %v3038_v0 }
 0x34e   : > { %2994 = vrot.lane.b32.xlu2 %v2988_v17, %s7692_s22  ;;  %v3029_v17 = vmul.f32 %v8851_v2, %v3028_v63 }
 0x34f   : > { %v9093_v1 = vpop.permute.xlu1 %2621  ;;  %v9095_v61 = vpop.permute.xlu0 %2619 }
 0x350   : > { %13068 = vst [vmem:[#allocation239_spill] sm:$0xff] %v9093_v1  ;;  %v9097_v55 = vpop.permute.xlu2 %2683  ;;  %v3035_v41 = vrot.slane %v3029_v17, 1  ;;  %v3053_v1 = vstv %s7291_s8  ;;  %v3078_v17 = vstv %s7292_s23  ;;  %s7312_s8 = sld [smem:[#allocation6 + $0xbb]] }
 0x351   : > { %13069 = vst [vmem:[#allocation240_spill] sm:$0xff] %v9095_v61  ;;  %v3056_v63 = vmul.f32 %v8858_v54, %v3053_v1  ;;  %v3055_v18 = vmul.f32 %v8848_v31, %v3053_v1  ;;  %v3054_v36 = vmul.f32 %v8851_v2, %v3053_v1  ;;  %v3080_v1 = vmul.f32 %v8848_v31, %v3078_v17  ;;  %s7313_s23 = sld [smem:[#allocation6 + $0x106]] }
 0x352   : > { %13070 = vst [vmem:[#allocation241_spill] sm:$0xff] %v9097_v55  ;;  %v3037_v25 = vsel %vm595_vm0, %v3035_v41, %v3036_v35  ;;  %v3081_v41 = vmul.f32 %v8858_v54, %v3078_v17 }
 0x355   : > { %3017 = vrot.lane.b32.xlu1 %v3014_v27, %s7692_s22  ;;  %3015 = vrot.lane.b32.xlu0 %v3012_v51, %s7692_s22  ;;  %v3061_v27 = vrot.slane %v3055_v18, 1  ;;  %v3060_v51 = vrot.slane %v3054_v36, 1  ;;  %v3086_v18 = vrot.slane %v3080_v1, 1 }
 0x356   : > { %3019 = vrot.lane.b32.xlu2 %v3013_v37, %s7692_s22  ;;  %v3063_v37 = vrot.slane %v3056_v63, 1  ;;  %v3088_v63 = vrot.slane %v3081_v41, 1 }
 0x357   : > { %v9107_v55 = vpop.permute.xlu1 %2641  ;;  %v9109_v61 = vpop.permute.xlu0 %2639 }
 0x358   : > { %13071 = vst [vmem:[#allocation242_spill] sm:$0xff] %v9107_v55  ;;  %v9111_v21 = vpop.permute.xlu2 %2703 }
 0x359   : > { %13072 = vst [vmem:[#allocation243_spill] sm:$0xff] %v9109_v61 }
 0x35a   : > { %13073 = vst [vmem:[#allocation244_spill] sm:$0xff] %v9111_v21 }
 0x35d   : > { %3042 = vrot.lane.b32.xlu1 %v3039_v56, %s7693_s19  ;;  %3040 = vrot.lane.b32.xlu0 %v3037_v25, %s7693_s19  ;;  %v3064_v56 = vsel %vm595_vm0, %v3061_v27, %v3063_v37  ;;  %v3062_v25 = vsel %vm595_vm0, %v3060_v51, %v3061_v27  ;;  %v3089_v27 = vsel %vm595_vm0, %v3086_v18, %v3088_v63 }
 0x35e   : > { %3044 = vrot.lane.b32.xlu2 %v3038_v0, %s7693_s19  ;;  %v3079_v0 = vmul.f32 %v8851_v2, %v3078_v17 }
 0x35f   : > { %v9121_v61 = vpop.permute.xlu1 %2661  ;;  %v9123_v21 = vpop.permute.xlu0 %2659 }
 0x360   : > { %13074 = vst [vmem:[#allocation245_spill] sm:$0xff] %v9121_v61  ;;  %v9125_v35 = vpop.permute.xlu2 %2723  ;;  %v3085_v36 = vrot.slane %v3079_v0, 1  ;;  %v3103_v61 = vstv %s7293_s30  ;;  %v3128_v0 = vstv %s7294_s10  ;;  %s7314_s30 = sld [smem:[#allocation6 + $0x26]] }
 0x361   : > { %13075 = vst [vmem:[#allocation246_spill] sm:$0xff] %v9123_v21  ;;  %v3106_v17 = vmul.f32 %v8858_v54, %v3103_v61  ;;  %v3105_v41 = vmul.f32 %v8848_v31, %v3103_v61  ;;  %v3104_v1 = vmul.f32 %v8851_v2, %v3103_v61  ;;  %v3130_v61 = vmul.f32 %v8848_v31, %v3128_v0  ;;  %s7315_s10 = sld [smem:[#allocation6 + $0x71]] }
 0x362   : > { %13076 = vst [vmem:[#allocation247_spill] sm:$0xff] %v9125_v35  ;;  %v3087_v51 = vsel %vm595_vm0, %v3085_v36, %v3086_v18  ;;  %v3131_v36 = vmul.f32 %v8858_v54, %v3128_v0 }
 0x365   : > { %3067 = vrot.lane.b32.xlu1 %v3064_v56, %s7693_s19  ;;  %3065 = vrot.lane.b32.xlu0 %v3062_v25, %s7693_s19  ;;  %v3111_v56 = vrot.slane %v3105_v41, 1  ;;  %v3110_v25 = vrot.slane %v3104_v1, 1  ;;  %v3136_v41 = vrot.slane %v3130_v61, 1 }
 0x366   : > { %3069 = vrot.lane.b32.xlu2 %v3063_v37, %s7693_s19  ;;  %v3113_v37 = vrot.slane %v3106_v17, 1  ;;  %v3138_v17 = vrot.slane %v3131_v36, 1 }
 0x367   : > { %v9135_v35 = vpop.permute.xlu1 %2681  ;;  %v9137_v21 = vpop.permute.xlu0 %2679 }
 0x368   : > { %13077 = vst [vmem:[#allocation248_spill] sm:$0xff] %v9135_v35  ;;  %v9139_v55 = vpop.permute.xlu2 %2743 }
 0x369   : > { %13078 = vst [vmem:[#allocation249_spill] sm:$0xff] %v9137_v21 }
 0x36a   : > { %13079 = vst [vmem:[#allocation250_spill] sm:$0xff] %v9139_v55 }
 0x36d   : > { %3092 = vrot.lane.b32.xlu1 %v3089_v27, %s7693_s19  ;;  %3090 = vrot.lane.b32.xlu0 %v3087_v51, %s7693_s19  ;;  %v3114_v27 = vsel %vm595_vm0, %v3111_v56, %v3113_v37  ;;  %v3112_v51 = vsel %vm595_vm0, %v3110_v25, %v3111_v56  ;;  %v3139_v56 = vsel %vm595_vm0, %v3136_v41, %v3138_v17 }
 0x36e   : > { %3094 = vrot.lane.b32.xlu2 %v3088_v63, %s7693_s19  ;;  %v3129_v63 = vmul.f32 %v8851_v2, %v3128_v0 }
 0x36f   : > { %v9149_v21 = vpop.permute.xlu1 %2701  ;;  %v9151_v55 = vpop.permute.xlu0 %2699 }
 0x370   : > { %13080 = vst [vmem:[#allocation251_spill] sm:$0xff] %v9149_v21  ;;  %v9153_v18 = vpop.permute.xlu2 %2763  ;;  %v3135_v1 = vrot.slane %v3129_v63, 1  ;;  %v3153_v21 = vstv %s7295_s11  ;;  %v3178_v63 = vstv %s7296_s12  ;;  %s7316_s11 = sld [smem:[#allocation6 + $0xbc]] }
 0x371   : > { %13081 = vst [vmem:[#allocation252_spill] sm:$0xff] %v9151_v55  ;;  %v3156_v0 = vmul.f32 %v8858_v54, %v3153_v21  ;;  %v3155_v36 = vmul.f32 %v8848_v31, %v3153_v21  ;;  %v3154_v61 = vmul.f32 %v8851_v2, %v3153_v21  ;;  %v3180_v21 = vmul.f32 %v8848_v31, %v3178_v63  ;;  %s7317_s12 = sld [smem:[#allocation6 + $0x107]] }
 0x372   : > { %13082 = vst [vmem:[#allocation253_spill] sm:$0xff] %v9153_v18  ;;  %v3137_v25 = vsel %vm595_vm0, %v3135_v1, %v3136_v41  ;;  %v3181_v1 = vmul.f32 %v8858_v54, %v3178_v63 }
 0x375   : > { %3117 = vrot.lane.b32.xlu1 %v3114_v27, %s7693_s19  ;;  %3115 = vrot.lane.b32.xlu0 %v3112_v51, %s7693_s19  ;;  %v3161_v27 = vrot.slane %v3155_v36, 1  ;;  %v3160_v51 = vrot.slane %v3154_v61, 1  ;;  %v3186_v36 = vrot.slane %v3180_v21, 1 }
 0x376   : > { %3119 = vrot.lane.b32.xlu2 %v3113_v37, %s7693_s19  ;;  %v3163_v37 = vrot.slane %v3156_v0, 1  ;;  %v3188_v0 = vrot.slane %v3181_v1, 1 }
 0x377   : > { %v9163_v18 = vpop.permute.xlu1 %2721  ;;  %v9165_v55 = vpop.permute.xlu0 %2719 }
 0x378   : > { %13083 = vst [vmem:[#allocation254_spill] sm:$0xff] %v9163_v18  ;;  %v9167_v35 = vpop.permute.xlu2 %2783 }
 0x379   : > { %13084 = vst [vmem:[#allocation255_spill] sm:$0xff] %v9165_v55 }
 0x37a   : > { %13085 = vst [vmem:[#allocation256_spill] sm:$0xff] %v9167_v35 }
 0x37d   : > { %3142 = vrot.lane.b32.xlu1 %v3139_v56, %s7694_s15  ;;  %3140 = vrot.lane.b32.xlu0 %v3137_v25, %s7694_s15  ;;  %v3164_v56 = vsel %vm595_vm0, %v3161_v27, %v3163_v37  ;;  %v3162_v25 = vsel %vm595_vm0, %v3160_v51, %v3161_v27  ;;  %v3189_v27 = vsel %vm595_vm0, %v3186_v36, %v3188_v0 }
 0x37e   : > { %3144 = vrot.lane.b32.xlu2 %v3138_v17, %s7694_s15  ;;  %v3179_v17 = vmul.f32 %v8851_v2, %v3178_v63 }
 0x37f   : > { %v9177_v55 = vpop.permute.xlu1 %2741  ;;  %v9179_v18 = vpop.permute.xlu0 %2739 }
 0x380   : > { %13086 = vst [vmem:[#allocation257_spill] sm:$0xff] %v9177_v55  ;;  %v9181_v41 = vpop.permute.xlu2 %2803  ;;  %v3185_v61 = vrot.slane %v3179_v17, 1  ;;  %v3228_v17 = vstv %s7298_s21  ;;  %s7319_s21 = sld [smem:[#allocation6 + $0x72]] }
 0x381   : > { %13087 = vst [vmem:[#allocation258_spill] sm:$0xff] %v9179_v18 }
 0x382   : > { %13088 = vst [vmem:[#allocation259_spill] sm:$0xff] %v9181_v41  ;;  %v3203_v41 = vstv %s7297_s18  ;;  %v3187_v51 = vsel %vm595_vm0, %v3185_v61, %v3186_v36  ;;  %v3231_v61 = vmul.f32 %v8858_v54, %v3228_v17  ;;  %s7318_s18 = sld [smem:[#allocation6 + $0x27]] }
 0x383   : > { %v3206_v63 = vmul.f32 %v8858_v54, %v3203_v41  ;;  %v3205_v1 = vmul.f32 %v8848_v31, %v3203_v41  ;;  %v3204_v21 = vmul.f32 %v8851_v2, %v3203_v41  ;;  %v3230_v41 = vmul.f32 %v8848_v31, %v3228_v17 }
 0x385   : > { %3167 = vrot.lane.b32.xlu1 %v3164_v56, %s7694_s15  ;;  %3165 = vrot.lane.b32.xlu0 %v3162_v25, %s7694_s15  ;;  %v3211_v56 = vrot.slane %v3205_v1, 1  ;;  %v3210_v25 = vrot.slane %v3204_v21, 1  ;;  %v3236_v1 = vrot.slane %v3230_v41, 1 }
 0x386   : > { %3169 = vrot.lane.b32.xlu2 %v3163_v37, %s7694_s15  ;;  %v3213_v37 = vrot.slane %v3206_v63, 1  ;;  %v3238_v63 = vrot.slane %v3231_v61, 1 }
 0x387   : > { %v9191_v18 = vpop.permute.xlu1 %2761  ;;  %v9193_v55 = vpop.permute.xlu0 %2759 }
 0x388   : > { %13089 = vst [vmem:[#allocation260_spill] sm:$0xff] %v9191_v18  ;;  %v9195_v35 = vpop.permute.xlu2 %2823 }
 0x389   : > { %13090 = vst [vmem:[#allocation261_spill] sm:$0xff] %v9193_v55 }
 0x38a   : > { %13091 = vst [vmem:[#allocation262_spill] sm:$0xff] %v9195_v35 }
 0x38d   : > { %3192 = vrot.lane.b32.xlu1 %v3189_v27, %s7694_s15  ;;  %3190 = vrot.lane.b32.xlu0 %v3187_v51, %s7694_s15  ;;  %v3214_v27 = vsel %vm595_vm0, %v3211_v56, %v3213_v37  ;;  %v3212_v51 = vsel %vm595_vm0, %v3210_v25, %v3211_v56  ;;  %v3239_v56 = vsel %vm595_vm0, %v3236_v1, %v3238_v63 }
 0x38e   : > { %3194 = vrot.lane.b32.xlu2 %v3188_v0, %s7694_s15  ;;  %v3229_v0 = vmul.f32 %v8851_v2, %v3228_v17 }
 0x38f   : > { %v9205_v55 = vpop.permute.xlu1 %2781  ;;  %v9207_v35 = vpop.permute.xlu0 %2779 }
 0x390   : > { %13092 = vst [vmem:[#allocation263_spill] sm:$0xff] %v9205_v55  ;;  %v9209_v36 = vpop.permute.xlu2 %2843  ;;  %v3235_v21 = vrot.slane %v3229_v0, 1  ;;  %v3253_v55 = vstv %s7299_s24  ;;  %v3278_v0 = vstv %s7300_s25  ;;  %s7320_s24 = sld [smem:[#allocation6 + $0xbd]] }
 0x391   : > { %13093 = vst [vmem:[#allocation264_spill] sm:$0xff] %v9207_v35  ;;  %v3256_v17 = vmul.f32 %v8858_v54, %v3253_v55  ;;  %v3255_v61 = vmul.f32 %v8848_v31, %v3253_v55  ;;  %v3254_v41 = vmul.f32 %v8851_v2, %v3253_v55  ;;  %v3280_v55 = vmul.f32 %v8848_v31, %v3278_v0  ;;  %s7321_s25 = sld [smem:[#allocation6 + $0x108]] }
 0x392   : > { %13094 = vst [vmem:[#allocation265_spill] sm:$0xff] %v9209_v36  ;;  %v3237_v25 = vsel %vm595_vm0, %v3235_v21, %v3236_v1  ;;  %v3281_v21 = vmul.f32 %v8858_v54, %v3278_v0 }
 0x395   : > { %3217 = vrot.lane.b32.xlu1 %v3214_v27, %s7694_s15  ;;  %3215 = vrot.lane.b32.xlu0 %v3212_v51, %s7694_s15  ;;  %v3261_v27 = vrot.slane %v3255_v61, 1  ;;  %v3260_v51 = vrot.slane %v3254_v41, 1  ;;  %v3286_v61 = vrot.slane %v3280_v55, 1 }
 0x396   : > { %3219 = vrot.lane.b32.xlu2 %v3213_v37, %s7694_s15  ;;  %v3263_v37 = vrot.slane %v3256_v17, 1  ;;  %v3288_v17 = vrot.slane %v3281_v21, 1 }
 0x397   : > { %v9219_v35 = vpop.permute.xlu1 %2801  ;;  %v9221_v36 = vpop.permute.xlu0 %2799 }
 0x398   : > { %13095 = vst [vmem:[#allocation266_spill] sm:$0xff] %v9219_v35  ;;  %v9223_v18 = vpop.permute.xlu2 %2944 }
 0x399   : > { %13096 = vst [vmem:[#allocation267_spill] sm:$0xff] %v9221_v36 }
 0x39a   : > { %13097 = vst [vmem:[#allocation268_spill] sm:$0xff] %v9223_v18 }
 0x39d   : > { %3242 = vrot.lane.b32.xlu1 %v3239_v56, %s7695_s5  ;;  %3240 = vrot.lane.b32.xlu0 %v3237_v25, %s7695_s5  ;;  %v3264_v56 = vsel %vm595_vm0, %v3261_v27, %v3263_v37  ;;  %v3262_v25 = vsel %vm595_vm0, %v3260_v51, %v3261_v27  ;;  %v3289_v27 = vsel %vm595_vm0, %v3286_v61, %v3288_v17 }
 0x39e   : > { %3244 = vrot.lane.b32.xlu2 %v3238_v63, %s7695_s5  ;;  %v3279_v63 = vmul.f32 %v8851_v2, %v3278_v0 }
 0x39f   : > { %v9233_v18 = vpop.permute.xlu1 %2821  ;;  %v9235_v36 = vpop.permute.xlu0 %2819 }
 0x3a0   : > { %13098 = vst [vmem:[#allocation269_spill] sm:$0xff] %v9233_v18  ;;  %v9237_v1 = vpop.permute.xlu2 %2969  ;;  %v3285_v41 = vrot.slane %v3279_v63, 1  ;;  %v3303_v18 = vstv %s7301_s26  ;;  %v3404_v63 = vstv %s7306_s27  ;;  %s7326_s26 = sld [smem:[#allocation6 + $0x29]] }
 0x3a1   : > { %13099 = vst [vmem:[#allocation270_spill] sm:$0xff] %v9235_v36  ;;  %v3306_v0 = vmul.f32 %v8858_v54, %v3303_v18  ;;  %v3305_v21 = vmul.f32 %v8848_v31, %v3303_v18  ;;  %v3304_v55 = vmul.f32 %v8851_v2, %v3303_v18  ;;  %v3406_v18 = vmul.f32 %v8848_v31, %v3404_v63  ;;  %s7327_s27 = sld [smem:[#allocation6 + $0x74]] }
 0x3a2   : > { %13100 = vst [vmem:[#allocation271_spill] sm:$0xff] %v9237_v1  ;;  %v3287_v51 = vsel %vm595_vm0, %v3285_v41, %v3286_v61  ;;  %v3407_v41 = vmul.f32 %v8858_v54, %v3404_v63 }
 0x3a5   : > { %3267 = vrot.lane.b32.xlu1 %v3264_v56, %s7695_s5  ;;  %3265 = vrot.lane.b32.xlu0 %v3262_v25, %s7695_s5  ;;  %v3311_v56 = vrot.slane %v3305_v21, 1  ;;  %v3310_v25 = vrot.slane %v3304_v55, 1  ;;  %v3412_v21 = vrot.slane %v3406_v18, 2 }
 0x3a6   : > { %3269 = vrot.lane.b32.xlu2 %v3263_v37, %s7695_s5  ;;  %v3313_v37 = vrot.slane %v3306_v0, 1  ;;  %v3414_v0 = vrot.slane %v3407_v41, 2 }
 0x3a7   : > { %v9247_v1 = vpop.permute.xlu1 %2841  ;;  %v9249_v36 = vpop.permute.xlu0 %2839 }
 0x3a8   : > { %13101 = vst [vmem:[#allocation272_spill] sm:$0xff] %v9247_v1  ;;  %v9251_v35 = vpop.permute.xlu2 %2994 }
 0x3a9   : > { %13102 = vst [vmem:[#allocation273_spill] sm:$0xff] %v9249_v36 }
 0x3aa   : > { %13103 = vst [vmem:[#allocation274_spill] sm:$0xff] %v9251_v35 }
 0x3ad   : > { %3292 = vrot.lane.b32.xlu1 %v3289_v27, %s7695_s5  ;;  %3290 = vrot.lane.b32.xlu0 %v3287_v51, %s7695_s5  ;;  %v3314_v27 = vsel %vm595_vm0, %v3311_v56, %v3313_v37  ;;  %v3312_v51 = vsel %vm595_vm0, %v3310_v25, %v3311_v56  ;;  %v3415_v56 = vsel %vm1072_vm1, %v3412_v21, %v3414_v0 }
 0x3ae   : > { %3294 = vrot.lane.b32.xlu2 %v3288_v17, %s7695_s5  ;;  %v3405_v17 = vmul.f32 %v8851_v2, %v3404_v63 }
 0x3af   : > { %v9261_v35 = vpop.permute.xlu1 %2942  ;;  %v9263_v36 = vpop.permute.xlu0 %2940 }
 0x3b0   : > { %13104 = vst [vmem:[#allocation275_spill] sm:$0xff] %v9261_v35  ;;  %v9265_v61 = vpop.permute.xlu2 %3019  ;;  %v3411_v55 = vrot.slane %v3405_v17, 2  ;;  %v3429_v35 = vstv %s7307_s28  ;;  %v3454_v17 = vstv %s7308_s29  ;;  %s7328_s28 = sld [smem:[#allocation6 + $0xbf]] }
 0x3b1   : > { %13105 = vst [vmem:[#allocation276_spill] sm:$0xff] %v9263_v36  ;;  %v3432_v63 = vmul.f32 %v8858_v54, %v3429_v35  ;;  %v3431_v41 = vmul.f32 %v8848_v31, %v3429_v35  ;;  %v3430_v18 = vmul.f32 %v8851_v2, %v3429_v35  ;;  %v3456_v35 = vmul.f32 %v8848_v31, %v3454_v17  ;;  %s7329_s29 = sld [smem:[#allocation6 + $0x10a]] }
 0x3b2   : > { %13106 = vst [vmem:[#allocation277_spill] sm:$0xff] %v9265_v61  ;;  %v3413_v25 = vsel %vm1072_vm1, %v3411_v55, %v3412_v21  ;;  %v3457_v55 = vmul.f32 %v8858_v54, %v3454_v17 }
 0x3b5   : > { %3317 = vrot.lane.b32.xlu1 %v3314_v27, %s7695_s5  ;;  %3315 = vrot.lane.b32.xlu0 %v3312_v51, %s7695_s5  ;;  %v3437_v27 = vrot.slane %v3431_v41, 2  ;;  %v3436_v51 = vrot.slane %v3430_v18, 2  ;;  %v3462_v41 = vrot.slane %v3456_v35, 2 }
 0x3b6   : > { %3319 = vrot.lane.b32.xlu2 %v3313_v37, %s7695_s5  ;;  %v3439_v37 = vrot.slane %v3432_v63, 2  ;;  %v3464_v63 = vrot.slane %v3457_v55, 2 }
 0x3b7   : > { %v9275_v36 = vpop.permute.xlu1 %2967  ;;  %v9277_v61 = vpop.permute.xlu0 %2965 }
 0x3b8   : > { %13107 = vst [vmem:[#allocation278_spill] sm:$0xff] %v9275_v36  ;;  %v9279_v1 = vpop.permute.xlu2 %3044 }
 0x3b9   : > { %13108 = vst [vmem:[#allocation279_spill] sm:$0xff] %v9277_v61 }
 0x3ba   : > { %13109 = vst [vmem:[#allocation280_spill] sm:$0xff] %v9279_v1 }
 0x3bd   : > { %3418 = vrot.lane.b32.xlu1 %v3415_v56, %s7692_s22  ;;  %3416 = vrot.lane.b32.xlu0 %v3413_v25, %s7692_s22  ;;  %v3440_v56 = vsel %vm1072_vm1, %v3437_v27, %v3439_v37  ;;  %v3438_v25 = vsel %vm1072_vm1, %v3436_v51, %v3437_v27  ;;  %v3465_v27 = vsel %vm1072_vm1, %v3462_v41, %v3464_v63 }
 0x3be   : > { %3420 = vrot.lane.b32.xlu2 %v3414_v0, %s7692_s22  ;;  %v3455_v0 = vmul.f32 %v8851_v2, %v3454_v17 }
 0x3bf   : > { %v9289_v1 = vpop.permute.xlu1 %2992  ;;  %v9291_v61 = vpop.permute.xlu0 %2990 }
 0x3c0   : > { %13110 = vst [vmem:[#allocation281_spill] sm:$0xff] %v9289_v1  ;;  %v9293_v21 = vpop.permute.xlu2 %3069  ;;  %v3461_v18 = vrot.slane %v3455_v0, 2  ;;  %v3479_v1 = vstv %s7309_s4  ;;  %v3504_v0 = vstv %s7310_s6  ;;  %s7330_s4 = sld [smem:[#allocation6 + $0x2a]] }
 0x3c1   : > { %13111 = vst [vmem:[#allocation282_spill] sm:$0xff] %v9291_v61  ;;  %v3482_v17 = vmul.f32 %v8858_v54, %v3479_v1  ;;  %v3481_v55 = vmul.f32 %v8848_v31, %v3479_v1  ;;  %v3480_v35 = vmul.f32 %v8851_v2, %v3479_v1  ;;  %v3506_v1 = vmul.f32 %v8848_v31, %v3504_v0  ;;  %s7331_s6 = sld [smem:[#allocation6 + $0x75]] }
 0x3c2   : > { %13112 = vst [vmem:[#allocation283_spill] sm:$0xff] %v9293_v21  ;;  %v3463_v51 = vsel %vm1072_vm1, %v3461_v18, %v3462_v41  ;;  %v3507_v18 = vmul.f32 %v8858_v54, %v3504_v0 }
 0x3c5   : > { %3443 = vrot.lane.b32.xlu1 %v3440_v56, %s7692_s22  ;;  %3441 = vrot.lane.b32.xlu0 %v3438_v25, %s7692_s22  ;;  %v3487_v56 = vrot.slane %v3481_v55, 2  ;;  %v3486_v25 = vrot.slane %v3480_v35, 2  ;;  %v3512_v55 = vrot.slane %v3506_v1, 2  ;;  %v9345_v1 = vld [vmem:[%s7802_s9 + $0x18] sm:$0xff] }
 0x3c6   : > { %3445 = vrot.lane.b32.xlu2 %v3439_v37, %s7692_s22  ;;  %v3489_v37 = vrot.slane %v3482_v17, 2  ;;  %v3514_v17 = vrot.slane %v3507_v18, 2  ;;  %v9341_v18 = vld [vmem:[%s7802_s9 + $0x20] sm:$0xff] }
 0x3c7   : > { %v9303_v61 = vpop.permute.xlu1 %3017  ;;  %v9305_v21 = vpop.permute.xlu0 %3015 }
 0x3c8   : > { %13113 = vst [vmem:[#allocation284_spill] sm:$0xff] %v9303_v61  ;;  %v9307_v36 = vpop.permute.xlu2 %3094 }
 0x3c9   : > { %13114 = vst [vmem:[#allocation285_spill] sm:$0xff] %v9305_v21 }
 0x3ca   : > { %13115 = vst [vmem:[#allocation286_spill] sm:$0xff] %v9307_v36 }
 0x3cd   : > { %3468 = vrot.lane.b32.xlu1 %v3465_v27, %s7692_s22  ;;  %3466 = vrot.lane.b32.xlu0 %v3463_v51, %s7692_s22  ;;  %v3490_v27 = vsel %vm1072_vm1, %v3487_v56, %v3489_v37  ;;  %v3488_v51 = vsel %vm1072_vm1, %v3486_v25, %v3487_v56 }
 0x3ce   : > { %3470 = vrot.lane.b32.xlu2 %v3464_v63, %s7692_s22  ;;  %v3505_v63 = vmul.f32 %v8851_v2, %v3504_v0  ;;  %v3515_v2 = vsel %vm1072_vm1, %v3512_v55, %v3514_v17 }
 0x3cf   : > { %v9317_v36 = vpop.permute.xlu1 %3042  ;;  %v9319_v21 = vpop.permute.xlu0 %3040 }
 0x3d0   : > { %13116 = vst [vmem:[#allocation287_spill] sm:$0xff] %v9317_v36  ;;  %v9321_v41 = vpop.permute.xlu2 %3119  ;;  %v3511_v35 = vrot.slane %v3505_v63, 2  ;;  %v3579_v36 = vstv %s7313_s23  ;;  %s7334_s23 = sld [smem:[#allocation6 + $0x2b]] }
 0x3d1   : > { %13117 = vst [vmem:[#allocation288_spill] sm:$0xff] %v9319_v21 }
 0x3d2   : > { %13118 = vst [vmem:[#allocation289_spill] sm:$0xff] %v9321_v41  ;;  %v3529_v41 = vstv %s7311_s7  ;;  %v3513_v25 = vsel %vm1072_vm1, %v3511_v35, %v3512_v55  ;;  %v3554_v35 = vstv %s7312_s8  ;;  %s7332_s7 = sld [smem:[#allocation6 + $0xc0]] }
 0x3d3   : > { %v3532_v0 = vmul.f32 %v8858_v54, %v3529_v41  ;;  %s7333_s8 = sld [smem:[#allocation6 + $0x10b]] }
 0x3d5   : > { %3493 = vrot.lane.b32.xlu1 %v3490_v27, %s7692_s22  ;;  %3491 = vrot.lane.b32.xlu0 %v3488_v51, %s7692_s22  ;;  %v3530_v27 = vmul.f32 %v9345_v1, %v3529_v41  ;;  %v3539_v51 = vrot.slane %v3532_v0, 2  ;;  %v3555_v0 = vmul.f32 %v9345_v1, %v3554_v35 }
 0x3d6   : > { %3495 = vrot.lane.b32.xlu2 %v3489_v37, %s7692_s22  ;;  %v3531_v37 = vmul.f32 %v9341_v18, %v3529_v41 }
 0x3d7   : > { %v9331_v21 = vpop.permute.xlu1 %3067  ;;  %v9333_v31 = vpop.permute.xlu0 %3065  ;;  %v3536_v55 = vrot.slane %v3530_v27, 2 }
 0x3d8   : > { %13119 = vst [vmem:[#allocation290_spill] sm:$0xff] %v9331_v21  ;;  %v9335_v56 = vpop.permute.xlu2 %3144  ;;  %v3537_v63 = vrot.slane %v3531_v37, 2  ;;  %v9358_v21 = vld [vmem:[%s7802_s9 + $0x28] sm:$0xff] }
 0x3d9   : > { %13120 = vst [vmem:[#allocation291_spill] sm:$0xff] %v9333_v31  ;;  %v3557_v41 = vmul.f32 %v9358_v21, %v3554_v35 }
 0x3da   : > { %13121 = vst [vmem:[#allocation292_spill] sm:$0xff] %v9335_v56 }
 0x3db   : > { %v3564_v37 = vrot.slane %v3557_v41, 2  ;;  %v3581_v41 = vmul.f32 %v9341_v18, %v3579_v36 }
 0x3dd   : > { %3518 = vrot.lane.b32.xlu1 %v3515_v2, %s7693_s19  ;;  %3516 = vrot.lane.b32.xlu0 %v3513_v25, %s7693_s19  ;;  %v3556_v2 = vmul.f32 %v9341_v18, %v3554_v35  ;;  %v3540_v25 = vsel %vm1072_vm1, %v3537_v63, %v3539_v51  ;;  %v3582_v35 = vmul.f32 %v9358_v21, %v3579_v36 }
 0x3de   : > { %3520 = vrot.lane.b32.xlu2 %v3514_v17, %s7693_s19  ;;  %v3538_v17 = vsel %vm1072_vm1, %v3536_v55, %v3537_v63 }
 0x3df   : > { %v9351_v54 = vpop.permute.xlu1 %3092  ;;  %v9353_v31 = vpop.permute.xlu0 %3090  ;;  %v3562_v27 = vrot.slane %v3556_v2, 2  ;;  %v3580_v2 = vmul.f32 %v9345_v1, %v3579_v36 }
 0x3e0   : > { %13122 = vst [vmem:[#allocation293_spill] sm:$0xff] %v9351_v54  ;;  %v9355_v56 = vpop.permute.xlu2 %3169 }
 0x3e1   : > { %13123 = vst [vmem:[#allocation294_spill] sm:$0xff] %v9353_v31  ;;  %v3565_v63 = vsel %vm1072_vm1, %v3562_v27, %v3564_v37 }
 0x3e2   : > { %13124 = vst [vmem:[#allocation295_spill] sm:$0xff] %v9355_v56  ;;  %v3561_v56 = vrot.slane %v3555_v0, 2  ;;  %v3604_v0 = vstv %s7314_s30  ;;  %s7335_s30 = sld [smem:[#allocation6 + $0x76]] }
 0x3e3   : > { %v3606_v36 = vmul.f32 %v9341_v18, %v3604_v0 }
 0x3e4   : > { %v3563_v55 = vsel %vm1072_vm1, %v3561_v56, %v3562_v27  ;;  %v3607_v27 = vmul.f32 %v9358_v21, %v3604_v0 }
 0x3e5   : > { %3543 = vrot.lane.b32.xlu1 %v3540_v25, %s7693_s19  ;;  %3541 = vrot.lane.b32.xlu0 %v3538_v17, %s7693_s19  ;;  %v3587_v25 = vrot.slane %v3581_v41, 2  ;;  %v3586_v17 = vrot.slane %v3580_v2, 2  ;;  %v3612_v41 = vrot.slane %v3606_v36, 2 }
 0x3e6   : > { %3545 = vrot.lane.b32.xlu2 %v3539_v51, %s7693_s19  ;;  %v3589_v51 = vrot.slane %v3582_v35, 2  ;;  %v3614_v35 = vrot.slane %v3607_v27, 2 }
 0x3e7   : > { %v9368_v31 = vpop.permute.xlu1 %3117  ;;  %v9370_v54 = vpop.permute.xlu0 %3115 }
 0x3e8   : > { %13125 = vst [vmem:[#allocation296_spill] sm:$0xff] %v9368_v31  ;;  %v9372_v61 = vpop.permute.xlu2 %3194 }
 0x3e9   : > { %13126 = vst [vmem:[#allocation297_spill] sm:$0xff] %v9370_v54 }
 0x3ea   : > { %13127 = vst [vmem:[#allocation298_spill] sm:$0xff] %v9372_v61 }
 0x3ed   : > { %3568 = vrot.lane.b32.xlu1 %v3565_v63, %s7693_s19  ;;  %3566 = vrot.lane.b32.xlu0 %v3563_v55, %s7693_s19  ;;  %v3590_v63 = vsel %vm1072_vm1, %v3587_v25, %v3589_v51  ;;  %v3588_v55 = vsel %vm1072_vm1, %v3586_v17, %v3587_v25  ;;  %v3615_v25 = vsel %vm1072_vm1, %v3612_v41, %v3614_v35 }
 0x3ee   : > { %3570 = vrot.lane.b32.xlu2 %v3564_v37, %s7693_s19  ;;  %v3605_v37 = vmul.f32 %v9345_v1, %v3604_v0 }
 0x3ef   : > { %v9382_v61 = vpop.permute.xlu1 %3142  ;;  %v9384_v54 = vpop.permute.xlu0 %3140 }
 0x3f0   : > { %13128 = vst [vmem:[#allocation299_spill] sm:$0xff] %v9382_v61  ;;  %v9386_v56 = vpop.permute.xlu2 %3219  ;;  %v3611_v2 = vrot.slane %v3605_v37, 2  ;;  %v3629_v61 = vstv %s7315_s10  ;;  %v3654_v37 = vstv %s7316_s11  ;;  %s7336_s10 = sld [smem:[#allocation6 + $0xc1]] }
 0x3f1   : > { %13129 = vst [vmem:[#allocation300_spill] sm:$0xff] %v9384_v54  ;;  %v3632_v0 = vmul.f32 %v9358_v21, %v3629_v61  ;;  %v3631_v27 = vmul.f32 %v9341_v18, %v3629_v61  ;;  %v3630_v36 = vmul.f32 %v9345_v1, %v3629_v61  ;;  %v3656_v61 = vmul.f32 %v9341_v18, %v3654_v37  ;;  %s7337_s11 = sld [smem:[#allocation6 + $0x10c]] }
 0x3f2   : > { %13130 = vst [vmem:[#allocation301_spill] sm:$0xff] %v9386_v56  ;;  %v3613_v17 = vsel %vm1072_vm1, %v3611_v2, %v3612_v41  ;;  %v3657_v2 = vmul.f32 %v9358_v21, %v3654_v37 }
 0x3f5   : > { %3593 = vrot.lane.b32.xlu1 %v3590_v63, %s7693_s19  ;;  %3591 = vrot.lane.b32.xlu0 %v3588_v55, %s7693_s19  ;;  %v3637_v63 = vrot.slane %v3631_v27, 2  ;;  %v3636_v55 = vrot.slane %v3630_v36, 2  ;;  %v3662_v27 = vrot.slane %v3656_v61, 2 }
 0x3f6   : > { %3595 = vrot.lane.b32.xlu2 %v3589_v51, %s7693_s19  ;;  %v3639_v51 = vrot.slane %v3632_v0, 2  ;;  %v3664_v0 = vrot.slane %v3657_v2, 2 }
 0x3f7   : > { %v9396_v54 = vpop.permute.xlu1 %3167  ;;  %v9398_v56 = vpop.permute.xlu0 %3165 }
 0x3f8   : > { %13131 = vst [vmem:[#allocation302_spill] sm:$0xff] %v9396_v54  ;;  %v9400_v31 = vpop.permute.xlu2 %3244 }
 0x3f9   : > { %13132 = vst [vmem:[#allocation303_spill] sm:$0xff] %v9398_v56 }
 0x3fa   : > { %13133 = vst [vmem:[#allocation304_spill] sm:$0xff] %v9400_v31 }
 0x3fd   : > { %3618 = vrot.lane.b32.xlu1 %v3615_v25, %s7694_s15  ;;  %3616 = vrot.lane.b32.xlu0 %v3613_v17, %s7694_s15  ;;  %v3640_v25 = vsel %vm1072_vm1, %v3637_v63, %v3639_v51  ;;  %v3638_v17 = vsel %vm1072_vm1, %v3636_v55, %v3637_v63  ;;  %v3665_v63 = vsel %vm1072_vm1, %v3662_v27, %v3664_v0 }
 0x3fe   : > { %3620 = vrot.lane.b32.xlu2 %v3614_v35, %s7694_s15  ;;  %v3655_v35 = vmul.f32 %v9345_v1, %v3654_v37 }
 0x3ff   : > { %v9410_v56 = vpop.permute.xlu1 %3192  ;;  %v9412_v54 = vpop.permute.xlu0 %3190 }
 0x400   : > { %13134 = vst [vmem:[#allocation305_spill] sm:$0xff] %v9410_v56  ;;  %v9414_v41 = vpop.permute.xlu2 %3269  ;;  %v3661_v36 = vrot.slane %v3655_v35, 2  ;;  %v3704_v35 = vstv %s7318_s18  ;;  %s7339_s18 = sld [smem:[#allocation6 + $0x77]] }
 0x401   : > { %13135 = vst [vmem:[#allocation306_spill] sm:$0xff] %v9412_v54 }
 0x402   : > { %13136 = vst [vmem:[#allocation307_spill] sm:$0xff] %v9414_v41  ;;  %v3679_v41 = vstv %s7317_s12  ;;  %v3663_v55 = vsel %vm1072_vm1, %v3661_v36, %v3662_v27  ;;  %v3707_v36 = vmul.f32 %v9358_v21, %v3704_v35  ;;  %s7338_s12 = sld [smem:[#allocation6 + $0x2c]] }
 0x403   : > { %v3682_v37 = vmul.f32 %v9358_v21, %v3679_v41  ;;  %v3681_v2 = vmul.f32 %v9341_v18, %v3679_v41  ;;  %v3680_v61 = vmul.f32 %v9345_v1, %v3679_v41  ;;  %v3706_v41 = vmul.f32 %v9341_v18, %v3704_v35 }
 0x405   : > { %3643 = vrot.lane.b32.xlu1 %v3640_v25, %s7694_s15  ;;  %3641 = vrot.lane.b32.xlu0 %v3638_v17, %s7694_s15  ;;  %v3687_v25 = vrot.slane %v3681_v2, 2  ;;  %v3686_v17 = vrot.slane %v3680_v61, 2  ;;  %v3712_v2 = vrot.slane %v3706_v41, 2 }
 0x406   : > { %3645 = vrot.lane.b32.xlu2 %v3639_v51, %s7694_s15  ;;  %v3689_v51 = vrot.slane %v3682_v37, 2  ;;  %v3714_v37 = vrot.slane %v3707_v36, 2 }
 0x407   : > { %v9424_v54 = vpop.permute.xlu1 %3217  ;;  %v9426_v56 = vpop.permute.xlu0 %3215 }
 0x408   : > { %13137 = vst [vmem:[#allocation308_spill] sm:$0xff] %v9424_v54  ;;  %v9428_v31 = vpop.permute.xlu2 %3294 }
 0x409   : > { %13138 = vst [vmem:[#allocation309_spill] sm:$0xff] %v9426_v56 }
 0x40a   : > { %13139 = vst [vmem:[#allocation310_spill] sm:$0xff] %v9428_v31 }
 0x40d   : > { %3668 = vrot.lane.b32.xlu1 %v3665_v63, %s7694_s15  ;;  %3666 = vrot.lane.b32.xlu0 %v3663_v55, %s7694_s15  ;;  %v3690_v63 = vsel %vm1072_vm1, %v3687_v25, %v3689_v51  ;;  %v3688_v55 = vsel %vm1072_vm1, %v3686_v17, %v3687_v25  ;;  %v3715_v25 = vsel %vm1072_vm1, %v3712_v2, %v3714_v37 }
 0x40e   : > { %3670 = vrot.lane.b32.xlu2 %v3664_v0, %s7694_s15  ;;  %v3705_v0 = vmul.f32 %v9345_v1, %v3704_v35 }
 0x40f   : > { %v9438_v56 = vpop.permute.xlu1 %3242  ;;  %v9440_v54 = vpop.permute.xlu0 %3240 }
 0x410   : > { %13140 = vst [vmem:[#allocation311_spill] sm:$0xff] %v9438_v56  ;;  %v9442_v27 = vpop.permute.xlu2 %3319  ;;  %v3711_v61 = vrot.slane %v3705_v0, 2  ;;  %v3729_v56 = vstv %s7319_s21  ;;  %v3754_v0 = vstv %s7320_s24  ;;  %s7340_s21 = sld [smem:[#allocation6 + $0xc2]] }
 0x411   : > { %13141 = vst [vmem:[#allocation312_spill] sm:$0xff] %v9440_v54  ;;  %v3732_v35 = vmul.f32 %v9358_v21, %v3729_v56  ;;  %v3731_v36 = vmul.f32 %v9341_v18, %v3729_v56  ;;  %v3730_v41 = vmul.f32 %v9345_v1, %v3729_v56  ;;  %v3756_v56 = vmul.f32 %v9341_v18, %v3754_v0  ;;  %s7341_s24 = sld [smem:[#allocation6 + $0x10d]] }
 0x412   : > { %13142 = vst [vmem:[#allocation313_spill] sm:$0xff] %v9442_v27  ;;  %v3713_v17 = vsel %vm1072_vm1, %v3711_v61, %v3712_v2  ;;  %v3757_v61 = vmul.f32 %v9358_v21, %v3754_v0 }
 0x415   : > { %3693 = vrot.lane.b32.xlu1 %v3690_v63, %s7694_s15  ;;  %3691 = vrot.lane.b32.xlu0 %v3688_v55, %s7694_s15  ;;  %v3737_v63 = vrot.slane %v3731_v36, 2  ;;  %v3736_v55 = vrot.slane %v3730_v41, 2  ;;  %v3762_v36 = vrot.slane %v3756_v56, 2 }
 0x416   : > { %3695 = vrot.lane.b32.xlu2 %v3689_v51, %s7694_s15  ;;  %v3739_v51 = vrot.slane %v3732_v35, 2  ;;  %v3764_v35 = vrot.slane %v3757_v61, 2 }
 0x417   : > { %v9452_v54 = vpop.permute.xlu1 %3267  ;;  %v9454_v27 = vpop.permute.xlu0 %3265 }
 0x418   : > { %13143 = vst [vmem:[#allocation314_spill] sm:$0xff] %v9452_v54  ;;  %v9456_v31 = vpop.permute.xlu2 %3420 }
 0x419   : > { %13144 = vst [vmem:[#allocation315_spill] sm:$0xff] %v9454_v27 }
 0x41a   : > { %13145 = vst [vmem:[#allocation316_spill] sm:$0xff] %v9456_v31 }
 0x41d   : > { %3718 = vrot.lane.b32.xlu1 %v3715_v25, %s7695_s5  ;;  %3716 = vrot.lane.b32.xlu0 %v3713_v17, %s7695_s5  ;;  %v3740_v25 = vsel %vm1072_vm1, %v3737_v63, %v3739_v51  ;;  %v3738_v17 = vsel %vm1072_vm1, %v3736_v55, %v3737_v63  ;;  %v3765_v63 = vsel %vm1072_vm1, %v3762_v36, %v3764_v35 }
 0x41e   : > { %3720 = vrot.lane.b32.xlu2 %v3714_v37, %s7695_s5  ;;  %v3755_v37 = vmul.f32 %v9345_v1, %v3754_v0 }
 0x41f   : > { %v9466_v31 = vpop.permute.xlu1 %3292  ;;  %v9468_v27 = vpop.permute.xlu0 %3290 }
 0x420   : > { %13146 = vst [vmem:[#allocation317_spill] sm:$0xff] %v9466_v31  ;;  %v9470_v2 = vpop.permute.xlu2 %3445  ;;  %v3761_v41 = vrot.slane %v3755_v37, 2  ;;  %v3779_v31 = vstv %s7321_s25  ;;  %v3880_v37 = vstv %s7326_s26  ;;  %s7346_s25 = sld [smem:[#allocation6 + $0x2e]] }
 0x421   : > { %13147 = vst [vmem:[#allocation318_spill] sm:$0xff] %v9468_v27  ;;  %v3782_v0 = vmul.f32 %v9358_v21, %v3779_v31  ;;  %v3781_v61 = vmul.f32 %v9341_v18, %v3779_v31  ;;  %v3780_v56 = vmul.f32 %v9345_v1, %v3779_v31  ;;  %v3882_v31 = vmul.f32 %v9341_v18, %v3880_v37  ;;  %s7347_s26 = sld [smem:[#allocation6 + $0x79]] }
 0x422   : > { %13148 = vst [vmem:[#allocation319_spill] sm:$0xff] %v9470_v2  ;;  %v3763_v55 = vsel %vm1072_vm1, %v3761_v41, %v3762_v36  ;;  %v3883_v41 = vmul.f32 %v9358_v21, %v3880_v37 }
 0x425   : > { %3743 = vrot.lane.b32.xlu1 %v3740_v25, %s7695_s5  ;;  %3741 = vrot.lane.b32.xlu0 %v3738_v17, %s7695_s5  ;;  %v3787_v25 = vrot.slane %v3781_v61, 2  ;;  %v3786_v17 = vrot.slane %v3780_v56, 2  ;;  %v3888_v61 = vrot.slane %v3882_v31, 3 }
 0x426   : > { %3745 = vrot.lane.b32.xlu2 %v3739_v51, %s7695_s5  ;;  %v3789_v51 = vrot.slane %v3782_v0, 2  ;;  %v3890_v0 = vrot.slane %v3883_v41, 3 }
 0x427   : > { %v9480_v2 = vpop.permute.xlu1 %3317  ;;  %v9482_v27 = vpop.permute.xlu0 %3315 }
 0x428   : > { %13149 = vst [vmem:[#allocation320_spill] sm:$0xff] %v9480_v2  ;;  %v9484_v54 = vpop.permute.xlu2 %3470 }
 0x429   : > { %13150 = vst [vmem:[#allocation321_spill] sm:$0xff] %v9482_v27 }
 0x42a   : > { %13151 = vst [vmem:[#allocation322_spill] sm:$0xff] %v9484_v54 }
 0x42d   : > { %3768 = vrot.lane.b32.xlu1 %v3765_v63, %s7695_s5  ;;  %3766 = vrot.lane.b32.xlu0 %v3763_v55, %s7695_s5  ;;  %v3790_v63 = vsel %vm1072_vm1, %v3787_v25, %v3789_v51  ;;  %v3788_v55 = vsel %vm1072_vm1, %v3786_v17, %v3787_v25  ;;  %v3891_v25 = vsel %vm1549_vm2, %v3888_v61, %v3890_v0 }
 0x42e   : > { %3770 = vrot.lane.b32.xlu2 %v3764_v35, %s7695_s5  ;;  %v3881_v35 = vmul.f32 %v9345_v1, %v3880_v37 }
 0x42f   : > { %v9494_v54 = vpop.permute.xlu1 %3418  ;;  %v9496_v27 = vpop.permute.xlu0 %3416 }
 0x430   : > { %13152 = vst [vmem:[#allocation323_spill] sm:$0xff] %v9494_v54  ;;  %v9498_v36 = vpop.permute.xlu2 %3495  ;;  %v3887_v56 = vrot.slane %v3881_v35, 3  ;;  %v3905_v54 = vstv %s7327_s27  ;;  %v3930_v35 = vstv %s7328_s28  ;;  %s7348_s27 = sld [smem:[#allocation6 + $0xc4]] }
 0x431   : > { %13153 = vst [vmem:[#allocation324_spill] sm:$0xff] %v9496_v27  ;;  %v3908_v37 = vmul.f32 %v9358_v21, %v3905_v54  ;;  %v3907_v41 = vmul.f32 %v9341_v18, %v3905_v54  ;;  %v3906_v31 = vmul.f32 %v9345_v1, %v3905_v54  ;;  %v3932_v54 = vmul.f32 %v9341_v18, %v3930_v35  ;;  %s7349_s28 = sld [smem:[#allocation6 + $0x10f]] }
 0x432   : > { %13154 = vst [vmem:[#allocation325_spill] sm:$0xff] %v9498_v36  ;;  %v3889_v17 = vsel %vm1549_vm2, %v3887_v56, %v3888_v61  ;;  %v3933_v56 = vmul.f32 %v9358_v21, %v3930_v35 }
 0x435   : > { %3793 = vrot.lane.b32.xlu1 %v3790_v63, %s7695_s5  ;;  %3791 = vrot.lane.b32.xlu0 %v3788_v55, %s7695_s5  ;;  %v3913_v63 = vrot.slane %v3907_v41, 3  ;;  %v3912_v55 = vrot.slane %v3906_v31, 3  ;;  %v3938_v41 = vrot.slane %v3932_v54, 3 }
 0x436   : > { %3795 = vrot.lane.b32.xlu2 %v3789_v51, %s7695_s5  ;;  %v3915_v51 = vrot.slane %v3908_v37, 3  ;;  %v3940_v37 = vrot.slane %v3933_v56, 3 }
 0x437   : > { %v9508_v36 = vpop.permute.xlu1 %3443  ;;  %v9510_v27 = vpop.permute.xlu0 %3441 }
 0x438   : > { %13155 = vst [vmem:[#allocation326_spill] sm:$0xff] %v9508_v36  ;;  %v9512_v2 = vpop.permute.xlu2 %3520 }
 0x439   : > { %13156 = vst [vmem:[#allocation327_spill] sm:$0xff] %v9510_v27 }
 0x43a   : > { %13157 = vst [vmem:[#allocation328_spill] sm:$0xff] %v9512_v2 }
 0x43d   : > { %3894 = vrot.lane.b32.xlu1 %v3891_v25, %s7692_s22  ;;  %3892 = vrot.lane.b32.xlu0 %v3889_v17, %s7692_s22  ;;  %v3916_v25 = vsel %vm1549_vm2, %v3913_v63, %v3915_v51  ;;  %v3914_v17 = vsel %vm1549_vm2, %v3912_v55, %v3913_v63  ;;  %v3941_v63 = vsel %vm1549_vm2, %v3938_v41, %v3940_v37 }
 0x43e   : > { %3896 = vrot.lane.b32.xlu2 %v3890_v0, %s7692_s22  ;;  %v3931_v0 = vmul.f32 %v9345_v1, %v3930_v35 }
 0x43f   : > { %v9522_v27 = vpop.permute.xlu1 %3468  ;;  %v9524_v36 = vpop.permute.xlu0 %3466 }
 0x440   : > { %13158 = vst [vmem:[#allocation329_spill] sm:$0xff] %v9522_v27  ;;  %v9526_v61 = vpop.permute.xlu2 %3545  ;;  %v3937_v31 = vrot.slane %v3931_v0, 3  ;;  %v3980_v0 = vstv %s7330_s4  ;;  %s7351_s4 = sld [smem:[#allocation6 + $0x7a]] }
 0x441   : > { %13159 = vst [vmem:[#allocation330_spill] sm:$0xff] %v9524_v36 }
 0x442   : > { %13160 = vst [vmem:[#allocation331_spill] sm:$0xff] %v9526_v61  ;;  %v3955_v61 = vstv %s7329_s29  ;;  %v3939_v55 = vsel %vm1549_vm2, %v3937_v31, %v3938_v41  ;;  %v3983_v31 = vmul.f32 %v9358_v21, %v3980_v0  ;;  %s7350_s29 = sld [smem:[#allocation6 + $0x2f]] }
 0x443   : > { %v3958_v35 = vmul.f32 %v9358_v21, %v3955_v61  ;;  %v3957_v56 = vmul.f32 %v9341_v18, %v3955_v61  ;;  %v3956_v54 = vmul.f32 %v9345_v1, %v3955_v61  ;;  %v3982_v61 = vmul.f32 %v9341_v18, %v3980_v0 }
 0x445   : > { %3919 = vrot.lane.b32.xlu1 %v3916_v25, %s7692_s22  ;;  %3917 = vrot.lane.b32.xlu0 %v3914_v17, %s7692_s22  ;;  %v3963_v25 = vrot.slane %v3957_v56, 3  ;;  %v3962_v17 = vrot.slane %v3956_v54, 3  ;;  %v3988_v56 = vrot.slane %v3982_v61, 3 }
 0x446   : > { %3921 = vrot.lane.b32.xlu2 %v3915_v51, %s7692_s22  ;;  %v3965_v51 = vrot.slane %v3958_v35, 3  ;;  %v3990_v35 = vrot.slane %v3983_v31, 3 }
 0x447   : > { %v9536_v36 = vpop.permute.xlu1 %3493  ;;  %v9538_v27 = vpop.permute.xlu0 %3491 }
 0x448   : > { %13161 = vst [vmem:[#allocation332_spill] sm:$0xff] %v9536_v36  ;;  %v9540_v2 = vpop.permute.xlu2 %3570 }
 0x449   : > { %13162 = vst [vmem:[#allocation333_spill] sm:$0xff] %v9538_v27 }
 0x44a   : > { %13163 = vst [vmem:[#allocation334_spill] sm:$0xff] %v9540_v2 }
 0x44d   : > { %3944 = vrot.lane.b32.xlu1 %v3941_v63, %s7692_s22  ;;  %3942 = vrot.lane.b32.xlu0 %v3939_v55, %s7692_s22  ;;  %v3966_v63 = vsel %vm1549_vm2, %v3963_v25, %v3965_v51  ;;  %v3964_v55 = vsel %vm1549_vm2, %v3962_v17, %v3963_v25  ;;  %v3991_v25 = vsel %vm1549_vm2, %v3988_v56, %v3990_v35 }
 0x44e   : > { %3946 = vrot.lane.b32.xlu2 %v3940_v37, %s7692_s22  ;;  %v3981_v37 = vmul.f32 %v9345_v1, %v3980_v0 }
 0x44f   : > { %v9550_v27 = vpop.permute.xlu1 %3518  ;;  %v9552_v2 = vpop.permute.xlu0 %3516 }
 0x450   : > { %13164 = vst [vmem:[#allocation335_spill] sm:$0xff] %v9550_v27  ;;  %v9554_v41 = vpop.permute.xlu2 %3595  ;;  %v3987_v54 = vrot.slane %v3981_v37, 3  ;;  %v4030_v37 = vstv %s7332_s7  ;;  %s7353_s7 = sld [smem:[#allocation6 + $0x110]] }
 0x451   : > { %13165 = vst [vmem:[#allocation336_spill] sm:$0xff] %v9552_v2 }
 0x452   : > { %13166 = vst [vmem:[#allocation337_spill] sm:$0xff] %v9554_v41  ;;  %v4005_v41 = vstv %s7331_s6  ;;  %v3989_v17 = vsel %vm1549_vm2, %v3987_v54, %v3988_v56  ;;  %v4033_v54 = vmul.f32 %v9358_v21, %v4030_v37  ;;  %s7352_s6 = sld [smem:[#allocation6 + $0xc5]] }
 0x453   : > { %v4008_v0 = vmul.f32 %v9358_v21, %v4005_v41  ;;  %v4007_v31 = vmul.f32 %v9341_v18, %v4005_v41  ;;  %v4006_v61 = vmul.f32 %v9345_v1, %v4005_v41  ;;  %v4032_v41 = vmul.f32 %v9341_v18, %v4030_v37 }
 0x455   : > { %3969 = vrot.lane.b32.xlu1 %v3966_v63, %s7692_s22  ;;  %3967 = vrot.lane.b32.xlu0 %v3964_v55, %s7692_s22  ;;  %v4013_v63 = vrot.slane %v4007_v31, 3  ;;  %v4012_v55 = vrot.slane %v4006_v61, 3  ;;  %v4038_v31 = vrot.slane %v4032_v41, 3 }
 0x456   : > { %3971 = vrot.lane.b32.xlu2 %v3965_v51, %s7692_s22  ;;  %v4015_v51 = vrot.slane %v4008_v0, 3  ;;  %v4040_v0 = vrot.slane %v4033_v54, 3 }
 0x457   : > { %v9564_v2 = vpop.permute.xlu1 %3543  ;;  %v9566_v27 = vpop.permute.xlu0 %3541 }
 0x458   : > { %13167 = vst [vmem:[#allocation338_spill] sm:$0xff] %v9564_v2  ;;  %v9568_v36 = vpop.permute.xlu2 %3620 }
 0x459   : > { %13168 = vst [vmem:[#allocation339_spill] sm:$0xff] %v9566_v27 }
 0x45a   : > { %13169 = vst [vmem:[#allocation340_spill] sm:$0xff] %v9568_v36 }
 0x45d   : > { %3994 = vrot.lane.b32.xlu1 %v3991_v25, %s7693_s19  ;;  %3992 = vrot.lane.b32.xlu0 %v3989_v17, %s7693_s19  ;;  %v4016_v25 = vsel %vm1549_vm2, %v4013_v63, %v4015_v51  ;;  %v4014_v17 = vsel %vm1549_vm2, %v4012_v55, %v4013_v63  ;;  %v4041_v63 = vsel %vm1549_vm2, %v4038_v31, %v4040_v0 }
 0x45e   : > { %3996 = vrot.lane.b32.xlu2 %v3990_v35, %s7693_s19  ;;  %v4031_v35 = vmul.f32 %v9345_v1, %v4030_v37 }
 0x45f   : > { %v9578_v27 = vpop.permute.xlu1 %3568  ;;  %v9580_v2 = vpop.permute.xlu0 %3566 }
 0x460   : > { %13170 = vst [vmem:[#allocation341_spill] sm:$0xff] %v9578_v27  ;;  %v9582_v56 = vpop.permute.xlu2 %3645  ;;  %v4037_v61 = vrot.slane %v4031_v35, 3  ;;  %v4055_v27 = vstv %s7333_s8  ;;  %v4080_v35 = vstv %s7334_s23  ;;  %s7354_s8 = sld [smem:[#allocation6 + $0x30]] }
 0x461   : > { %13171 = vst [vmem:[#allocation342_spill] sm:$0xff] %v9580_v2  ;;  %v4058_v37 = vmul.f32 %v9358_v21, %v4055_v27  ;;  %v4057_v54 = vmul.f32 %v9341_v18, %v4055_v27  ;;  %v4056_v41 = vmul.f32 %v9345_v1, %v4055_v27  ;;  %v4082_v27 = vmul.f32 %v9341_v18, %v4080_v35  ;;  %s7355_s23 = sld [smem:[#allocation6 + $0x7b]] }
 0x462   : > { %13172 = vst [vmem:[#allocation343_spill] sm:$0xff] %v9582_v56  ;;  %v4039_v55 = vsel %vm1549_vm2, %v4037_v61, %v4038_v31  ;;  %v4083_v61 = vmul.f32 %v9358_v21, %v4080_v35 }
 0x465   : > { %4019 = vrot.lane.b32.xlu1 %v4016_v25, %s7693_s19  ;;  %4017 = vrot.lane.b32.xlu0 %v4014_v17, %s7693_s19  ;;  %v4063_v25 = vrot.slane %v4057_v54, 3  ;;  %v4062_v17 = vrot.slane %v4056_v41, 3  ;;  %v4088_v54 = vrot.slane %v4082_v27, 3 }
 0x466   : > { %4021 = vrot.lane.b32.xlu2 %v4015_v51, %s7693_s19  ;;  %v4065_v51 = vrot.slane %v4058_v37, 3  ;;  %v4090_v37 = vrot.slane %v4083_v61, 3 }
 0x467   : > { %v9592_v56 = vpop.permute.xlu1 %3593  ;;  %v9594_v2 = vpop.permute.xlu0 %3591 }
 0x468   : > { %13173 = vst [vmem:[#allocation344_spill] sm:$0xff] %v9592_v56  ;;  %v9596_v36 = vpop.permute.xlu2 %3670 }
 0x469   : > { %13174 = vst [vmem:[#allocation345_spill] sm:$0xff] %v9594_v2 }
 0x46a   : > { %13175 = vst [vmem:[#allocation346_spill] sm:$0xff] %v9596_v36 }
 0x46d   : > { %4044 = vrot.lane.b32.xlu1 %v4041_v63, %s7693_s19  ;;  %4042 = vrot.lane.b32.xlu0 %v4039_v55, %s7693_s19  ;;  %v4066_v63 = vsel %vm1549_vm2, %v4063_v25, %v4065_v51  ;;  %v4064_v55 = vsel %vm1549_vm2, %v4062_v17, %v4063_v25  ;;  %v4091_v25 = vsel %vm1549_vm2, %v4088_v54, %v4090_v37 }
 0x46e   : > { %4046 = vrot.lane.b32.xlu2 %v4040_v0, %s7693_s19  ;;  %v4081_v0 = vmul.f32 %v9345_v1, %v4080_v35 }
 0x46f   : > { %v9606_v36 = vpop.permute.xlu1 %3618  ;;  %v9608_v2 = vpop.permute.xlu0 %3616 }
 0x470   : > { %13176 = vst [vmem:[#allocation347_spill] sm:$0xff] %v9606_v36  ;;  %v9610_v31 = vpop.permute.xlu2 %3695  ;;  %v4087_v41 = vrot.slane %v4081_v0, 3  ;;  %v4105_v36 = vstv %s7335_s30  ;;  %v4130_v0 = vstv %s7336_s10  ;;  %s7356_s30 = sld [smem:[#allocation6 + $0xc6]] }
 0x471   : > { %13177 = vst [vmem:[#allocation348_spill] sm:$0xff] %v9608_v2  ;;  %v4108_v35 = vmul.f32 %v9358_v21, %v4105_v36  ;;  %v4107_v61 = vmul.f32 %v9341_v18, %v4105_v36  ;;  %v4106_v27 = vmul.f32 %v9345_v1, %v4105_v36  ;;  %v4132_v36 = vmul.f32 %v9341_v18, %v4130_v0  ;;  %s7357_s10 = sld [smem:[#allocation6 + $0x111]] }
 0x472   : > { %13178 = vst [vmem:[#allocation349_spill] sm:$0xff] %v9610_v31  ;;  %v4089_v17 = vsel %vm1549_vm2, %v4087_v41, %v4088_v54  ;;  %v4133_v41 = vmul.f32 %v9358_v21, %v4130_v0 }
 0x475   : > { %4069 = vrot.lane.b32.xlu1 %v4066_v63, %s7693_s19  ;;  %4067 = vrot.lane.b32.xlu0 %v4064_v55, %s7693_s19  ;;  %v4113_v63 = vrot.slane %v4107_v61, 3  ;;  %v4112_v55 = vrot.slane %v4106_v27, 3  ;;  %v4138_v61 = vrot.slane %v4132_v36, 3 }
 0x476   : > { %4071 = vrot.lane.b32.xlu2 %v4065_v51, %s7693_s19  ;;  %v4115_v51 = vrot.slane %v4108_v35, 3  ;;  %v4140_v35 = vrot.slane %v4133_v41, 3 }
 0x477   : > { %v9620_v2 = vpop.permute.xlu1 %3643  ;;  %v9622_v31 = vpop.permute.xlu0 %3641 }
 0x478   : > { %13179 = vst [vmem:[#allocation350_spill] sm:$0xff] %v9620_v2  ;;  %v9624_v56 = vpop.permute.xlu2 %3720 }
 0x479   : > { %13180 = vst [vmem:[#allocation351_spill] sm:$0xff] %v9622_v31 }
 0x47a   : > { %13181 = vst [vmem:[#allocation352_spill] sm:$0xff] %v9624_v56 }
 0x47d   : > { %4094 = vrot.lane.b32.xlu1 %v4091_v25, %s7694_s15  ;;  %4092 = vrot.lane.b32.xlu0 %v4089_v17, %s7694_s15  ;;  %v4116_v25 = vsel %vm1549_vm2, %v4113_v63, %v4115_v51  ;;  %v4114_v17 = vsel %vm1549_vm2, %v4112_v55, %v4113_v63  ;;  %v4141_v63 = vsel %vm1549_vm2, %v4138_v61, %v4140_v35 }
 0x47e   : > { %4096 = vrot.lane.b32.xlu2 %v4090_v37, %s7694_s15  ;;  %v4131_v37 = vmul.f32 %v9345_v1, %v4130_v0 }
 0x47f   : > { %v9634_v31 = vpop.permute.xlu1 %3668  ;;  %v9636_v2 = vpop.permute.xlu0 %3666 }
 0x480   : > { %13182 = vst [vmem:[#allocation353_spill] sm:$0xff] %v9634_v31  ;;  %v9638_v54 = vpop.permute.xlu2 %3745  ;;  %v4137_v27 = vrot.slane %v4131_v37, 3  ;;  %v4180_v37 = vstv %s7338_s12  ;;  %s7359_s12 = sld [smem:[#allocation6 + $0x7c]] }
 0x481   : > { %13183 = vst [vmem:[#allocation354_spill] sm:$0xff] %v9636_v2 }
 0x482   : > { %13184 = vst [vmem:[#allocation355_spill] sm:$0xff] %v9638_v54  ;;  %v4155_v54 = vstv %s7337_s11  ;;  %v4139_v55 = vsel %vm1549_vm2, %v4137_v27, %v4138_v61  ;;  %v4183_v27 = vmul.f32 %v9358_v21, %v4180_v37  ;;  %s7358_s11 = sld [smem:[#allocation6 + $0x31]] }
 0x483   : > { %v4158_v0 = vmul.f32 %v9358_v21, %v4155_v54  ;;  %v4157_v41 = vmul.f32 %v9341_v18, %v4155_v54  ;;  %v4156_v36 = vmul.f32 %v9345_v1, %v4155_v54  ;;  %v4182_v54 = vmul.f32 %v9341_v18, %v4180_v37 }
 0x485   : > { %4119 = vrot.lane.b32.xlu1 %v4116_v25, %s7694_s15  ;;  %4117 = vrot.lane.b32.xlu0 %v4114_v17, %s7694_s15  ;;  %v4163_v25 = vrot.slane %v4157_v41, 3  ;;  %v4162_v17 = vrot.slane %v4156_v36, 3  ;;  %v4188_v41 = vrot.slane %v4182_v54, 3 }
 0x486   : > { %4121 = vrot.lane.b32.xlu2 %v4115_v51, %s7694_s15  ;;  %v4165_v51 = vrot.slane %v4158_v0, 3  ;;  %v4190_v0 = vrot.slane %v4183_v27, 3 }
 0x487   : > { %v9648_v2 = vpop.permute.xlu1 %3693  ;;  %v9650_v31 = vpop.permute.xlu0 %3691 }
 0x488   : > { %13185 = vst [vmem:[#allocation356_spill] sm:$0xff] %v9648_v2  ;;  %v9652_v56 = vpop.permute.xlu2 %3770 }
 0x489   : > { %13186 = vst [vmem:[#allocation357_spill] sm:$0xff] %v9650_v31 }
 0x48a   : > { %13187 = vst [vmem:[#allocation358_spill] sm:$0xff] %v9652_v56 }
 0x48d   : > { %4144 = vrot.lane.b32.xlu1 %v4141_v63, %s7694_s15  ;;  %4142 = vrot.lane.b32.xlu0 %v4139_v55, %s7694_s15  ;;  %v4166_v63 = vsel %vm1549_vm2, %v4163_v25, %v4165_v51  ;;  %v4164_v55 = vsel %vm1549_vm2, %v4162_v17, %v4163_v25  ;;  %v4191_v25 = vsel %vm1549_vm2, %v4188_v41, %v4190_v0 }
 0x48e   : > { %4146 = vrot.lane.b32.xlu2 %v4140_v35, %s7694_s15  ;;  %v4181_v35 = vmul.f32 %v9345_v1, %v4180_v37 }
 0x48f   : > { %v9662_v31 = vpop.permute.xlu1 %3718  ;;  %v9664_v2 = vpop.permute.xlu0 %3716 }
 0x490   : > { %13188 = vst [vmem:[#allocation359_spill] sm:$0xff] %v9662_v31  ;;  %v9666_v61 = vpop.permute.xlu2 %3795  ;;  %v4187_v36 = vrot.slane %v4181_v35, 3  ;;  %v4205_v31 = vstv %s7339_s18  ;;  %v4230_v35 = vstv %s7340_s21  ;;  %s7360_s18 = sld [smem:[#allocation6 + $0xc7]] }
 0x491   : > { %13189 = vst [vmem:[#allocation360_spill] sm:$0xff] %v9664_v2  ;;  %v4208_v37 = vmul.f32 %v9358_v21, %v4205_v31  ;;  %v4207_v27 = vmul.f32 %v9341_v18, %v4205_v31  ;;  %v4206_v54 = vmul.f32 %v9345_v1, %v4205_v31  ;;  %v4232_v31 = vmul.f32 %v9341_v18, %v4230_v35  ;;  %s7361_s21 = sld [smem:[#allocation6 + $0x112]] }
 0x492   : > { %13190 = vst [vmem:[#allocation361_spill] sm:$0xff] %v9666_v61  ;;  %v4189_v17 = vsel %vm1549_vm2, %v4187_v36, %v4188_v41  ;;  %v4233_v36 = vmul.f32 %v9358_v21, %v4230_v35 }
 0x495   : > { %4169 = vrot.lane.b32.xlu1 %v4166_v63, %s7694_s15  ;;  %4167 = vrot.lane.b32.xlu0 %v4164_v55, %s7694_s15  ;;  %v4213_v63 = vrot.slane %v4207_v27, 3  ;;  %v4212_v55 = vrot.slane %v4206_v54, 3  ;;  %v4238_v27 = vrot.slane %v4232_v31, 3 }
 0x496   : > { %4171 = vrot.lane.b32.xlu2 %v4165_v51, %s7694_s15  ;;  %v4215_v51 = vrot.slane %v4208_v37, 3  ;;  %v4240_v37 = vrot.slane %v4233_v36, 3 }
 0x497   : > { %v9676_v61 = vpop.permute.xlu1 %3743  ;;  %v9678_v2 = vpop.permute.xlu0 %3741 }
 0x498   : > { %13191 = vst [vmem:[#allocation362_spill] sm:$0xff] %v9676_v61  ;;  %v9680_v56 = vpop.permute.xlu2 %3896 }
 0x499   : > { %13192 = vst [vmem:[#allocation363_spill] sm:$0xff] %v9678_v2 }
 0x49a   : > { %13193 = vst [vmem:[#allocation364_spill] sm:$0xff] %v9680_v56 }
 0x49d   : > { %4194 = vrot.lane.b32.xlu1 %v4191_v25, %s7695_s5  ;;  %4192 = vrot.lane.b32.xlu0 %v4189_v17, %s7695_s5  ;;  %v4216_v25 = vsel %vm1549_vm2, %v4213_v63, %v4215_v51  ;;  %v4214_v17 = vsel %vm1549_vm2, %v4212_v55, %v4213_v63  ;;  %v4241_v63 = vsel %vm1549_vm2, %v4238_v27, %v4240_v37 }
 0x49e   : > { %4196 = vrot.lane.b32.xlu2 %v4190_v0, %s7695_s5  ;;  %v4231_v0 = vmul.f32 %v9345_v1, %v4230_v35 }
 0x49f   : > { %v9690_v56 = vpop.permute.xlu1 %3768  ;;  %v9692_v2 = vpop.permute.xlu0 %3766 }
 0x4a0   : > { %13194 = vst [vmem:[#allocation365_spill] sm:$0xff] %v9690_v56  ;;  %v9694_v41 = vpop.permute.xlu2 %3921  ;;  %v4237_v54 = vrot.slane %v4231_v0, 3  ;;  %v4255_v56 = vstv %s7341_s24  ;;  %v4356_v0 = vstv %s7346_s25  ;;  %s7369_s24 = sld [smem:[#allocation6 + $0x33]] }
 0x4a1   : > { %13195 = vst [vmem:[#allocation366_spill] sm:$0xff] %v9692_v2  ;;  %v4258_v35 = vmul.f32 %v9358_v21, %v4255_v56  ;;  %v4257_v36 = vmul.f32 %v9341_v18, %v4255_v56  ;;  %v4256_v31 = vmul.f32 %v9345_v1, %v4255_v56  ;;  %v4358_v56 = vmul.f32 %v9341_v18, %v4356_v0  ;;  %s7370_s25 = sld [smem:[#allocation6 + $0x7e]] }
 0x4a2   : > { %13196 = vst [vmem:[#allocation367_spill] sm:$0xff] %v9694_v41  ;;  %v4239_v55 = vsel %vm1549_vm2, %v4237_v54, %v4238_v27  ;;  %v4359_v54 = vmul.f32 %v9358_v21, %v4356_v0 }
 0x4a5   : > { %4219 = vrot.lane.b32.xlu1 %v4216_v25, %s7695_s5  ;;  %4217 = vrot.lane.b32.xlu0 %v4214_v17, %s7695_s5  ;;  %v4263_v25 = vrot.slane %v4257_v36, 3  ;;  %v4262_v17 = vrot.slane %v4256_v31, 3  ;;  %v4364_v36 = vrot.slane %v4358_v56, 4 }
 0x4a6   : > { %4221 = vrot.lane.b32.xlu2 %v4215_v51, %s7695_s5  ;;  %v4265_v51 = vrot.slane %v4258_v35, 3  ;;  %v4366_v35 = vrot.slane %v4359_v54, 4 }
 0x4a7   : > { %v9704_v41 = vpop.permute.xlu1 %3793  ;;  %v9706_v2 = vpop.permute.xlu0 %3791 }
 0x4a8   : > { %13197 = vst [vmem:[#allocation368_spill] sm:$0xff] %v9704_v41  ;;  %v9708_v61 = vpop.permute.xlu2 %3946 }
 0x4a9   : > { %13198 = vst [vmem:[#allocation369_spill] sm:$0xff] %v9706_v2 }
 0x4aa   : > { %13199 = vst [vmem:[#allocation370_spill] sm:$0xff] %v9708_v61 }
 0x4ad   : > { %4244 = vrot.lane.b32.xlu1 %v4241_v63, %s7695_s5  ;;  %4242 = vrot.lane.b32.xlu0 %v4239_v55, %s7695_s5  ;;  %v4266_v63 = vsel %vm1549_vm2, %v4263_v25, %v4265_v51  ;;  %v4264_v55 = vsel %vm1549_vm2, %v4262_v17, %v4263_v25  ;;  %v4367_v25 = vsel %vm2026_vm3, %v4364_v36, %v4366_v35 }
 0x4ae   : > { %4246 = vrot.lane.b32.xlu2 %v4240_v37, %s7695_s5  ;;  %v4357_v37 = vmul.f32 %v9345_v1, %v4356_v0 }
 0x4af   : > { %v9718_v61 = vpop.permute.xlu1 %3894  ;;  %v9720_v2 = vpop.permute.xlu0 %3892 }
 0x4b0   : > { %13200 = vst [vmem:[#allocation371_spill] sm:$0xff] %v9718_v61  ;;  %v9722_v27 = vpop.permute.xlu2 %3971  ;;  %v4363_v31 = vrot.slane %v4357_v37, 4  ;;  %v4406_v37 = vstv %s7348_s27  ;;  %s7160_s27 = sld [smem:[#allocation6 + $0x4b]] }
 0x4b1   : > { %13201 = vst [vmem:[#allocation372_spill] sm:$0xff] %v9720_v2 }
 0x4b2   : > { %13202 = vst [vmem:[#allocation373_spill] sm:$0xff] %v9722_v27  ;;  %v4381_v27 = vstv %s7347_s26  ;;  %v4365_v17 = vsel %vm2026_vm3, %v4363_v31, %v4364_v36  ;;  %v4409_v31 = vmul.f32 %v9358_v21, %v4406_v37  ;;  %s7371_s26 = sld [smem:[#allocation6 + $0xc9]] }
 0x4b3   : > { %v4384_v0 = vmul.f32 %v9358_v21, %v4381_v27  ;;  %v4383_v54 = vmul.f32 %v9341_v18, %v4381_v27  ;;  %v4382_v56 = vmul.f32 %v9345_v1, %v4381_v27  ;;  %v4408_v27 = vmul.f32 %v9341_v18, %v4406_v37 }
 0x4b5   : > { %4269 = vrot.lane.b32.xlu1 %v4266_v63, %s7695_s5  ;;  %4267 = vrot.lane.b32.xlu0 %v4264_v55, %s7695_s5  ;;  %v4389_v63 = vrot.slane %v4383_v54, 4  ;;  %v4388_v55 = vrot.slane %v4382_v56, 4  ;;  %v4414_v54 = vrot.slane %v4408_v27, 4 }
 0x4b6   : > { %4271 = vrot.lane.b32.xlu2 %v4265_v51, %s7695_s5  ;;  %v4391_v51 = vrot.slane %v4384_v0, 4  ;;  %v4416_v0 = vrot.slane %v4409_v31, 4 }
 0x4b7   : > { %v9732_v2 = vpop.permute.xlu1 %3919  ;;  %v9734_v61 = vpop.permute.xlu0 %3917 }
 0x4b8   : > { %13203 = vst [vmem:[#allocation374_spill] sm:$0xff] %v9732_v2  ;;  %v9736_v41 = vpop.permute.xlu2 %3996 }
 0x4b9   : > { %13204 = vst [vmem:[#allocation375_spill] sm:$0xff] %v9734_v61 }
 0x4ba   : > { %13205 = vst [vmem:[#allocation376_spill] sm:$0xff] %v9736_v41 }
 0x4bd   : > { %4370 = vrot.lane.b32.xlu1 %v4367_v25, %s7692_s22  ;;  %4368 = vrot.lane.b32.xlu0 %v4365_v17, %s7692_s22  ;;  %v4392_v25 = vsel %vm2026_vm3, %v4389_v63, %v4391_v51  ;;  %v4390_v17 = vsel %vm2026_vm3, %v4388_v55, %v4389_v63  ;;  %v4417_v63 = vsel %vm2026_vm3, %v4414_v54, %v4416_v0 }
 0x4be   : > { %4372 = vrot.lane.b32.xlu2 %v4366_v35, %s7692_s22  ;;  %v4407_v35 = vmul.f32 %v9345_v1, %v4406_v37 }
 0x4bf   : > { %v9746_v61 = vpop.permute.xlu1 %3944  ;;  %v9748_v2 = vpop.permute.xlu0 %3942 }
 0x4c0   : > { %13206 = vst [vmem:[#allocation377_spill] sm:$0xff] %v9746_v61  ;;  %v9750_v36 = vpop.permute.xlu2 %4021  ;;  %v4413_v56 = vrot.slane %v4407_v35, 4  ;;  %v4456_v35 = vstv %s7350_s29  ;;  %s7157_s29 = sld [smem:[#allocation7 + $0x1]] }
 0x4c1   : > { %13207 = vst [vmem:[#allocation378_spill] sm:$0xff] %v9748_v2 }
 0x4c2   : > { %13208 = vst [vmem:[#allocation379_spill] sm:$0xff] %v9750_v36  ;;  %v4431_v36 = vstv %s7349_s28  ;;  %v4415_v55 = vsel %vm2026_vm3, %v4413_v56, %v4414_v54  ;;  %v4459_v56 = vmul.f32 %v9358_v21, %v4456_v35  ;;  %s7372_s28 = sld [smem:[#allocation6 + $0x114]] }
 0x4c3   : > { %v4434_v37 = vmul.f32 %v9358_v21, %v4431_v36  ;;  %v4433_v31 = vmul.f32 %v9341_v18, %v4431_v36  ;;  %v4432_v27 = vmul.f32 %v9345_v1, %v4431_v36  ;;  %v4458_v36 = vmul.f32 %v9341_v18, %v4456_v35 }
 0x4c5   : > { %4395 = vrot.lane.b32.xlu1 %v4392_v25, %s7692_s22  ;;  %4393 = vrot.lane.b32.xlu0 %v4390_v17, %s7692_s22  ;;  %v4439_v25 = vrot.slane %v4433_v31, 4  ;;  %v4438_v17 = vrot.slane %v4432_v27, 4  ;;  %v4464_v31 = vrot.slane %v4458_v36, 4  ;;  %v9802_v36 = vld [vmem:[%s7802_s9 + $0x18] sm:$0xff] }
 0x4c6   : > { %4397 = vrot.lane.b32.xlu2 %v4391_v51, %s7692_s22  ;;  %v4441_v51 = vrot.slane %v4434_v37, 4  ;;  %v4466_v37 = vrot.slane %v4459_v56, 4  ;;  %v9798_v56 = vld [vmem:[%s7802_s9 + $0x20] sm:$0xff] }
 0x4c7   : > { %v9760_v2 = vpop.permute.xlu1 %3969  ;;  %v9762_v61 = vpop.permute.xlu0 %3967 }
 0x4c8   : > { %13209 = vst [vmem:[#allocation380_spill] sm:$0xff] %v9760_v2  ;;  %v9764_v41 = vpop.permute.xlu2 %4046 }
 0x4c9   : > { %13210 = vst [vmem:[#allocation381_spill] sm:$0xff] %v9762_v61 }
 0x4ca   : > { %13211 = vst [vmem:[#allocation382_spill] sm:$0xff] %v9764_v41 }
 0x4cd   : > { %4420 = vrot.lane.b32.xlu1 %v4417_v63, %s7692_s22  ;;  %4418 = vrot.lane.b32.xlu0 %v4415_v55, %s7692_s22  ;;  %v4442_v63 = vsel %vm2026_vm3, %v4439_v25, %v4441_v51  ;;  %v4440_v55 = vsel %vm2026_vm3, %v4438_v17, %v4439_v25 }
 0x4ce   : > { %4422 = vrot.lane.b32.xlu2 %v4416_v0, %s7692_s22  ;;  %v4457_v0 = vmul.f32 %v9345_v1, %v4456_v35  ;;  %v4467_v1 = vsel %vm2026_vm3, %v4464_v31, %v4466_v37 }
 0x4cf   : > { %v9774_v41 = vpop.permute.xlu1 %3994  ;;  %v9776_v61 = vpop.permute.xlu0 %3992 }
 0x4d0   : > { %13212 = vst [vmem:[#allocation383_spill] sm:$0xff] %v9774_v41  ;;  %v9778_v54 = vpop.permute.xlu2 %4071  ;;  %v4463_v27 = vrot.slane %v4457_v0, 4  ;;  %v4481_v41 = vstv %s7351_s4  ;;  %s7161_s4 = sld [smem:[#allocation6 + $0x96]] }
 0x4d1   : > { %13213 = vst [vmem:[#allocation384_spill] sm:$0xff] %v9776_v61  ;;  %v4484_v35 = vmul.f32 %v9358_v21, %v4481_v41 }
 0x4d2   : > { %13214 = vst [vmem:[#allocation385_spill] sm:$0xff] %v9778_v54  ;;  %v4465_v17 = vsel %vm2026_vm3, %v4463_v27, %v4464_v31  ;;  %v4506_v27 = vstv %s7352_s6  ;;  %v4531_v54 = vstv %s7353_s7  ;;  %s235_s6 = sld [smem:[#allocation6]] }
 0x4d3   : > { %s7162_s7 = sld [smem:[#allocation6 + $0xe1]] }
 0x4d5   : > { %4445 = vrot.lane.b32.xlu1 %v4442_v63, %s7692_s22  ;;  %4443 = vrot.lane.b32.xlu0 %v4440_v55, %s7692_s22  ;;  %v4482_v63 = vmul.f32 %v9802_v36, %v4481_v41  ;;  %v4491_v55 = vrot.slane %v4484_v35, 4  ;;  %v4507_v35 = vmul.f32 %v9802_v36, %v4506_v27 }
 0x4d6   : > { %4447 = vrot.lane.b32.xlu2 %v4441_v51, %s7692_s22  ;;  %v4483_v51 = vmul.f32 %v9798_v56, %v4481_v41 }
 0x4d7   : > { %v9788_v61 = vpop.permute.xlu1 %4019  ;;  %v9790_v18 = vpop.permute.xlu0 %4017  ;;  %v4488_v31 = vrot.slane %v4482_v63, 4 }
 0x4d8   : > { %13215 = vst [vmem:[#allocation386_spill] sm:$0xff] %v9788_v61  ;;  %v9792_v25 = vpop.permute.xlu2 %4096  ;;  %v4489_v0 = vrot.slane %v4483_v51, 4  ;;  %v9815_v61 = vld [vmem:[%s7802_s9 + $0x28] sm:$0xff] }
 0x4d9   : > { %13216 = vst [vmem:[#allocation387_spill] sm:$0xff] %v9790_v18  ;;  %v4509_v41 = vmul.f32 %v9815_v61, %v4506_v27 }
 0x4da   : > { %13217 = vst [vmem:[#allocation388_spill] sm:$0xff] %v9792_v25 }
 0x4db   : > { %v4516_v51 = vrot.slane %v4509_v41, 4  ;;  %v4533_v41 = vmul.f32 %v9798_v56, %v4531_v54 }
 0x4dd   : > { %4470 = vrot.lane.b32.xlu1 %v4467_v1, %s7693_s19  ;;  %4468 = vrot.lane.b32.xlu0 %v4465_v17, %s7693_s19  ;;  %v4508_v1 = vmul.f32 %v9798_v56, %v4506_v27  ;;  %v4492_v17 = vsel %vm2026_vm3, %v4489_v0, %v4491_v55  ;;  %v4534_v27 = vmul.f32 %v9815_v61, %v4531_v54 }
 0x4de   : > { %4472 = vrot.lane.b32.xlu2 %v4466_v37, %s7693_s19  ;;  %v4490_v37 = vsel %vm2026_vm3, %v4488_v31, %v4489_v0 }
 0x4df   : > { %v9808_v21 = vpop.permute.xlu1 %4044  ;;  %v9810_v18 = vpop.permute.xlu0 %4042  ;;  %v4514_v63 = vrot.slane %v4508_v1, 4  ;;  %v4532_v1 = vmul.f32 %v9802_v36, %v4531_v54 }
 0x4e0   : > { %13218 = vst [vmem:[#allocation389_spill] sm:$0xff] %v9808_v21  ;;  %v9812_v25 = vpop.permute.xlu2 %4121 }
 0x4e1   : > { %13219 = vst [vmem:[#allocation390_spill] sm:$0xff] %v9810_v18  ;;  %v4517_v0 = vsel %vm2026_vm3, %v4514_v63, %v4516_v51 }
 0x4e2   : > { %13220 = vst [vmem:[#allocation391_spill] sm:$0xff] %v9812_v25  ;;  %v4513_v25 = vrot.slane %v4507_v35, 4  ;;  %v4556_v35 = vstv %s7354_s8  ;;  %s7158_s8 = sld [smem:[#allocation7 + $0x2]] }
 0x4e3   : > { %v4558_v54 = vmul.f32 %v9798_v56, %v4556_v35 }
 0x4e4   : > { %v4515_v31 = vsel %vm2026_vm3, %v4513_v25, %v4514_v63  ;;  %v4559_v63 = vmul.f32 %v9815_v61, %v4556_v35 }
 0x4e5   : > { %4495 = vrot.lane.b32.xlu1 %v4492_v17, %s7693_s19  ;;  %4493 = vrot.lane.b32.xlu0 %v4490_v37, %s7693_s19  ;;  %v4539_v17 = vrot.slane %v4533_v41, 4  ;;  %v4538_v37 = vrot.slane %v4532_v1, 4  ;;  %v4564_v41 = vrot.slane %v4558_v54, 4 }
 0x4e6   : > { %4497 = vrot.lane.b32.xlu2 %v4491_v55, %s7693_s19  ;;  %v4541_v55 = vrot.slane %v4534_v27, 4  ;;  %v4566_v27 = vrot.slane %v4559_v63, 4 }
 0x4e7   : > { %v9825_v18 = vpop.permute.xlu1 %4069  ;;  %v9827_v21 = vpop.permute.xlu0 %4067 }
 0x4e8   : > { %13221 = vst [vmem:[#allocation392_spill] sm:$0xff] %v9825_v18  ;;  %v9829_v2 = vpop.permute.xlu2 %4146 }
 0x4e9   : > { %13222 = vst [vmem:[#allocation393_spill] sm:$0xff] %v9827_v21 }
 0x4ea   : > { %13223 = vst [vmem:[#allocation394_spill] sm:$0xff] %v9829_v2 }
 0x4ed   : > { %4520 = vrot.lane.b32.xlu1 %v4517_v0, %s7693_s19  ;;  %4518 = vrot.lane.b32.xlu0 %v4515_v31, %s7693_s19  ;;  %v4542_v0 = vsel %vm2026_vm3, %v4539_v17, %v4541_v55  ;;  %v4540_v31 = vsel %vm2026_vm3, %v4538_v37, %v4539_v17  ;;  %v4567_v17 = vsel %vm2026_vm3, %v4564_v41, %v4566_v27 }
 0x4ee   : > { %4522 = vrot.lane.b32.xlu2 %v4516_v51, %s7693_s19  ;;  %v4557_v51 = vmul.f32 %v9802_v36, %v4556_v35 }
 0x4ef   : > { %v9839_v2 = vpop.permute.xlu1 %4094  ;;  %v9841_v21 = vpop.permute.xlu0 %4092 }
 0x4f0   : > { %13224 = vst [vmem:[#allocation395_spill] sm:$0xff] %v9839_v2  ;;  %v9843_v25 = vpop.permute.xlu2 %4171  ;;  %v4563_v1 = vrot.slane %v4557_v51, 4  ;;  %v4606_v51 = vstv %s7356_s30  ;;  %s7373_s30 = sld [smem:[#allocation6 + $0x34]] }
 0x4f1   : > { %13225 = vst [vmem:[#allocation396_spill] sm:$0xff] %v9841_v21 }
 0x4f2   : > { %13226 = vst [vmem:[#allocation397_spill] sm:$0xff] %v9843_v25  ;;  %v4581_v25 = vstv %s7355_s23  ;;  %v4565_v37 = vsel %vm2026_vm3, %v4563_v1, %v4564_v41  ;;  %v4609_v1 = vmul.f32 %v9815_v61, %v4606_v51  ;;  %s10004_s23 = sld [smem:[#allocation7]] }
 0x4f3   : > { %v4584_v35 = vmul.f32 %v9815_v61, %v4581_v25  ;;  %v4583_v63 = vmul.f32 %v9798_v56, %v4581_v25  ;;  %v4582_v54 = vmul.f32 %v9802_v36, %v4581_v25  ;;  %v4608_v25 = vmul.f32 %v9798_v56, %v4606_v51 }
 0x4f5   : > { %4545 = vrot.lane.b32.xlu1 %v4542_v0, %s7693_s19  ;;  %4543 = vrot.lane.b32.xlu0 %v4540_v31, %s7693_s19  ;;  %v4589_v0 = vrot.slane %v4583_v63, 4  ;;  %v4588_v31 = vrot.slane %v4582_v54, 4  ;;  %v4614_v63 = vrot.slane %v4608_v25, 4 }
 0x4f6   : > { %4547 = vrot.lane.b32.xlu2 %v4541_v55, %s7693_s19  ;;  %v4591_v55 = vrot.slane %v4584_v35, 4  ;;  %v4616_v35 = vrot.slane %v4609_v1, 4 }
 0x4f7   : > { %v9853_v21 = vpop.permute.xlu1 %4119  ;;  %v9855_v2 = vpop.permute.xlu0 %4117 }
 0x4f8   : > { %13227 = vst [vmem:[#allocation398_spill] sm:$0xff] %v9853_v21  ;;  %v9857_v18 = vpop.permute.xlu2 %4196 }
 0x4f9   : > { %13228 = vst [vmem:[#allocation399_spill] sm:$0xff] %v9855_v2 }
 0x4fa   : > { %13229 = vst [vmem:[#allocation400_spill] sm:$0xff] %v9857_v18 }
 0x4fd   : > { %4570 = vrot.lane.b32.xlu1 %v4567_v17, %s7694_s15  ;;  %4568 = vrot.lane.b32.xlu0 %v4565_v37, %s7694_s15  ;;  %v4592_v17 = vsel %vm2026_vm3, %v4589_v0, %v4591_v55  ;;  %v4590_v37 = vsel %vm2026_vm3, %v4588_v31, %v4589_v0  ;;  %v4617_v0 = vsel %vm2026_vm3, %v4614_v63, %v4616_v35 }
 0x4fe   : > { %4572 = vrot.lane.b32.xlu2 %v4566_v27, %s7694_s15  ;;  %v4607_v27 = vmul.f32 %v9802_v36, %v4606_v51 }
 0x4ff   : > { %v9867_v2 = vpop.permute.xlu1 %4144  ;;  %v9869_v21 = vpop.permute.xlu0 %4142 }
 0x500   : > { %13230 = vst [vmem:[#allocation401_spill] sm:$0xff] %v9867_v2  ;;  %v9871_v41 = vpop.permute.xlu2 %4221  ;;  %v4613_v54 = vrot.slane %v4607_v27, 4  ;;  %v4656_v27 = vstv %s7358_s11  ;;  %s10032_s11 = sld [smem:[#allocation6 + $0x5]] }
 0x501   : > { %13231 = vst [vmem:[#allocation402_spill] sm:$0xff] %v9869_v21 }
 0x502   : > { %13232 = vst [vmem:[#allocation403_spill] sm:$0xff] %v9871_v41  ;;  %v4631_v41 = vstv %s7357_s10  ;;  %v4615_v31 = vsel %vm2026_vm3, %v4613_v54, %v4614_v63  ;;  %v4659_v54 = vmul.f32 %v9815_v61, %v4656_v27  ;;  %s7159_s10 = sld [smem:[#allocation7 + $0x3]] }
 0x503   : > { %v4634_v51 = vmul.f32 %v9815_v61, %v4631_v41  ;;  %v4633_v1 = vmul.f32 %v9798_v56, %v4631_v41  ;;  %v4632_v25 = vmul.f32 %v9802_v36, %v4631_v41  ;;  %v4658_v41 = vmul.f32 %v9798_v56, %v4656_v27 }
 0x505   : > { %4595 = vrot.lane.b32.xlu1 %v4592_v17, %s7694_s15  ;;  %4593 = vrot.lane.b32.xlu0 %v4590_v37, %s7694_s15  ;;  %v4639_v17 = vrot.slane %v4633_v1, 4  ;;  %v4638_v37 = vrot.slane %v4632_v25, 4  ;;  %v4664_v1 = vrot.slane %v4658_v41, 4 }
 0x506   : > { %4597 = vrot.lane.b32.xlu2 %v4591_v55, %s7694_s15  ;;  %v4641_v55 = vrot.slane %v4634_v51, 4  ;;  %v4666_v51 = vrot.slane %v4659_v54, 4 }
 0x507   : > { %v9881_v21 = vpop.permute.xlu1 %4169  ;;  %v9883_v2 = vpop.permute.xlu0 %4167 }
 0x508   : > { %13233 = vst [vmem:[#allocation404_spill] sm:$0xff] %v9881_v21  ;;  %v9885_v18 = vpop.permute.xlu2 %4246  ;;  %v230_v11 = vstv %s7159_s10  ;;  %s10322_s10 = sld [smem:[#allocation6 + $0x36]] }
 0x509   : > { %13234 = vst [vmem:[#allocation405_spill] sm:$0xff] %v9883_v2 }
 0x50a   : > { %13235 = vst [vmem:[#allocation406_spill] sm:$0xff] %v9885_v18 }
 0x50d   : > { %4620 = vrot.lane.b32.xlu1 %v4617_v0, %s7694_s15  ;;  %4618 = vrot.lane.b32.xlu0 %v4615_v31, %s7694_s15  ;;  %v4642_v0 = vsel %vm2026_vm3, %v4639_v17, %v4641_v55  ;;  %v4640_v31 = vsel %vm2026_vm3, %v4638_v37, %v4639_v17  ;;  %v4667_v17 = vsel %vm2026_vm3, %v4664_v1, %v4666_v51 }
 0x50e   : > { %4622 = vrot.lane.b32.xlu2 %v4616_v35, %s7694_s15  ;;  %v4657_v35 = vmul.f32 %v9802_v36, %v4656_v27 }
 0x50f   : > { %v9895_v2 = vpop.permute.xlu1 %4194  ;;  %v9897_v21 = vpop.permute.xlu0 %4192 }
 0x510   : > { %13236 = vst [vmem:[#allocation407_spill] sm:$0xff] %v9895_v2  ;;  %v9899_v63 = vpop.permute.xlu2 %4271  ;;  %v4663_v25 = vrot.slane %v4657_v35, 4  ;;  %v4681_v2 = vstv %s7359_s12  ;;  %v4706_v35 = vstv %s7360_s18  ;;  %s10040_s12 = sld [smem:[#allocation6 + $0x7f]] }
 0x511   : > { %13237 = vst [vmem:[#allocation408_spill] sm:$0xff] %v9897_v21  ;;  %v4684_v27 = vmul.f32 %v9815_v61, %v4681_v2  ;;  %v4683_v54 = vmul.f32 %v9798_v56, %v4681_v2  ;;  %v4682_v41 = vmul.f32 %v9802_v36, %v4681_v2  ;;  %v4708_v2 = vmul.f32 %v9798_v56, %v4706_v35  ;;  %s10051_s18 = sld [smem:[#allocation6 + $0x50]] }
 0x512   : > { %13238 = vst [vmem:[#allocation409_spill] sm:$0xff] %v9899_v63  ;;  %v4665_v37 = vsel %vm2026_vm3, %v4663_v25, %v4664_v1  ;;  %v4709_v25 = vmul.f32 %v9815_v61, %v4706_v35 }
 0x515   : > { %4645 = vrot.lane.b32.xlu1 %v4642_v0, %s7694_s15  ;;  %4643 = vrot.lane.b32.xlu0 %v4640_v31, %s7694_s15  ;;  %v4689_v0 = vrot.slane %v4683_v54, 4  ;;  %v4688_v31 = vrot.slane %v4682_v41, 4  ;;  %v4714_v54 = vrot.slane %v4708_v2, 4 }
 0x516   : > { %4647 = vrot.lane.b32.xlu2 %v4641_v55, %s7694_s15  ;;  %v4691_v55 = vrot.slane %v4684_v27, 4  ;;  %v4716_v27 = vrot.slane %v4709_v25, 4 }
 0x517   : > { %v9909_v21 = vpop.permute.xlu1 %4219  ;;  %v9911_v63 = vpop.permute.xlu0 %4217 }
 0x518   : > { %13239 = vst [vmem:[#allocation410_spill] sm:$0xff] %v9909_v21  ;;  %v9913_v18 = vpop.permute.xlu2 %4372 }
 0x519   : > { %13240 = vst [vmem:[#allocation411_spill] sm:$0xff] %v9911_v63 }
 0x51a   : > { %13241 = vst [vmem:[#allocation412_spill] sm:$0xff] %v9913_v18 }
 0x51d   : > { %4670 = vrot.lane.b32.xlu1 %v4667_v17, %s7695_s5  ;;  %4668 = vrot.lane.b32.xlu0 %v4665_v37, %s7695_s5  ;;  %v4692_v17 = vsel %vm2026_vm3, %v4689_v0, %v4691_v55  ;;  %v4690_v37 = vsel %vm2026_vm3, %v4688_v31, %v4689_v0  ;;  %v4717_v0 = vsel %vm2026_vm3, %v4714_v54, %v4716_v27 }
 0x51e   : > { %4672 = vrot.lane.b32.xlu2 %v4666_v51, %s7695_s5  ;;  %v4707_v51 = vmul.f32 %v9802_v36, %v4706_v35 }
 0x51f   : > { %v9923_v18 = vpop.permute.xlu1 %4244  ;;  %v9925_v63 = vpop.permute.xlu0 %4242 }
 0x520   : > { %13242 = vst [vmem:[#allocation413_spill] sm:$0xff] %v9923_v18  ;;  %v9927_v1 = vpop.permute.xlu2 %4397  ;;  %v4713_v41 = vrot.slane %v4707_v51, 4  ;;  %v4731_v18 = vstv %s7361_s21  ;;  %s10055_s21 = sld [smem:[#allocation6 + $0x9b]] }
 0x521   : > { %13243 = vst [vmem:[#allocation414_spill] sm:$0xff] %v9925_v63  ;;  %v4734_v35 = vmul.f32 %v9815_v61, %v4731_v18  ;;  %v4732_v25 = vmul.f32 %v9802_v36, %v4731_v18 }
 0x522   : > { %13244 = vst [vmem:[#allocation415_spill] sm:$0xff] %v9927_v1  ;;  %v4715_v31 = vsel %vm2026_vm3, %v4713_v41, %v4714_v54  ;;  %v9963_v54 = vld [vmem:[%s7802_s9 + $0x38] sm:$0xff]  ;;  %v9966_v41 = vld [vmem:[%s7802_s9 + $0x30] sm:$0xff] }
 0x525   : > { %4695 = vrot.lane.b32.xlu1 %v4692_v17, %s7695_s5  ;;  %4693 = vrot.lane.b32.xlu0 %v4690_v37, %s7695_s5  ;;  %v4733_v17 = vmul.f32 %v9798_v56, %v4731_v18  ;;  %v4738_v37 = vrot.slane %v4732_v25, 4 }
 0x526   : > { %4697 = vrot.lane.b32.xlu2 %v4691_v55, %s7695_s5  ;;  %v4741_v55 = vrot.slane %v4734_v35, 4  ;;  %v9973_v35 = vld [vmem:[%s7802_s9 + $0x40] sm:$0xff] }
 0x527   : > { %v9937_v1 = vpop.permute.xlu1 %4269  ;;  %v9939_v63 = vpop.permute.xlu0 %4267  ;;  %v4739_v2 = vrot.slane %v4733_v17, 4 }
 0x528   : > { %13245 = vst [vmem:[#allocation416_spill] sm:$0xff] %v9937_v1  ;;  %v9941_v21 = vpop.permute.xlu2 %4422  ;;  %v227_v1 = vstv %s7158_s8  ;;  %s10239_s8 = sld [smem:[#allocation6 + $0xcb]] }
 0x529   : > { %13246 = vst [vmem:[#allocation417_spill] sm:$0xff] %v9939_v63  ;;  %v4742_v18 = vsel %vm2026_vm3, %v4739_v2, %v4741_v55  ;;  %v4740_v36 = vsel %vm2026_vm3, %v4738_v37, %v4739_v2  ;;  %v4812_v37 = vstv %s7370_s25  ;;  %s10074_s25 = sld [smem:[#allocation6 + $0xca]] }
 0x52a   : > { %13247 = vst [vmem:[#allocation418_spill] sm:$0xff] %v9941_v21  ;;  %v10023_v21 = vld [vmem:[%s7802_s9 + $0x10] sm:$0xff] }
 0x52d   : > { %4720 = vrot.lane.b32.xlu1 %v4717_v0, %s7695_s5  ;;  %4718 = vrot.lane.b32.xlu0 %v4715_v31, %s7695_s5 }
 0x52e   : > { %4722 = vrot.lane.b32.xlu2 %v4716_v27, %s7695_s5  ;;  %v4792_v27 = vstv %s7369_s24  ;;  %s10065_s24 = sld [smem:[#allocation6 + $0xe6]] }
 0x52f   : > { %v9951_v51 = vpop.permute.xlu1 %4370  ;;  %v9953_v61 = vpop.permute.xlu0 %4368  ;;  %v4794_v25 = vmul.f32 %v9963_v54, %v4792_v27  ;;  %v4793_v2 = vmul.f32 %v9966_v41, %v4792_v27 }
 0x530   : > { %13248 = vst [vmem:[#allocation419_spill] sm:$0xff] %v9951_v51  ;;  %v9955_v56 = vpop.permute.xlu2 %4447 }
 0x531   : > { %13249 = vst [vmem:[#allocation420_spill] sm:$0xff] %v9953_v61  ;;  %v236_v61 = vstv %s235_s6  ;;  %s10199_s6 = sld [smem:[#allocation6 + $0x80]] }
 0x532   : > { %13250 = vst [vmem:[#allocation421_spill] sm:$0xff] %v9955_v56  ;;  %v224_v56 = vstv %s7157_s29  ;;  %v239_v53 = vmul.f32 %v10023_v21, %v236_v61  ;;  %v237_v6 = vmul.f32 %v10029_v14, %v236_v61  ;;  %s10189_s29 = sld [smem:[#allocation6 + $0x55]] }
 0x535   : > { %4745 = vrot.lane.b32.xlu1 %v4742_v18, %s7695_s5  ;;  %4743 = vrot.lane.b32.xlu0 %v4740_v36, %s7695_s5 }
 0x536   : > { %4747 = vrot.lane.b32.xlu2 %v4741_v55, %s7695_s5  ;;  %v4795_v55 = vmul.f32 %v9973_v35, %v4792_v27  ;;  %v4815_v27 = vmul.f32 %v9973_v35, %v4812_v37 }
 0x537   : > { %v9968_v0 = vpop.permute.xlu1 %4395  ;;  %v9970_v31 = vpop.permute.xlu0 %4393 }
 0x538   : > { %13251 = vst [vmem:[#allocation422_spill] sm:$0xff] %v9968_v0  ;;  %v9975_v17 = vpop.permute.xlu2 %4472  ;;  %v4813_v0 = vmul.f32 %v9966_v41, %v4812_v37 }
 0x539   : > { %13252 = vst [vmem:[#allocation423_spill] sm:$0xff] %v9970_v31 }
 0x53a   : > { %13253 = vst [vmem:[#allocation424_spill] sm:$0xff] %v9975_v17  ;;  %v4814_v17 = vmul.f32 %v9963_v54, %v4812_v37 }
 0x53d   : > { %4801 = vrot.lane.b32.xlu1 %v4794_v25, %s7692_s22  ;;  %4799 = vrot.lane.b32.xlu0 %v4793_v2, %s7692_s22  ;;  %v4832_v25 = vstv %s7371_s26  ;;  %s10120_s26 = sld [smem:[#allocation6 + $0x115]] }
 0x53e   : > { %4803 = vrot.lane.b32.xlu2 %v4795_v55, %s7692_s22  ;;  %v4833_v37 = vmul.f32 %v9966_v41, %v4832_v25 }
 0x53f   : > { %v9983_v18 = vpop.permute.xlu1 %4420  ;;  %v9985_v36 = vpop.permute.xlu0 %4418 }
 0x540   : > { %13254 = vst [vmem:[#allocation425_spill] sm:$0xff] %v9983_v18  ;;  %v9987_v31 = vpop.permute.xlu2 %4497  ;;  %v4834_v18 = vmul.f32 %v9963_v54, %v4832_v25 }
 0x541   : > { %13255 = vst [vmem:[#allocation426_spill] sm:$0xff] %v9985_v36 }
 0x542   : > { %13256 = vst [vmem:[#allocation427_spill] sm:$0xff] %v9987_v31  ;;  %v252_v31 = vstv %s7161_s4  ;;  %s10192_s4 = sld [smem:[#allocation6 + $0xa0]] }
 0x543   : > { %v253_v10 = vmul.f32 %v10029_v14, %v252_v31 }
 0x545   : > { %4821 = vrot.lane.b32.xlu1 %v4814_v17, %s7692_s22  ;;  %4819 = vrot.lane.b32.xlu0 %v4813_v0, %s7692_s22  ;;  %v4835_v0 = vmul.f32 %v9973_v35, %v4832_v25  ;;  %v244_v17 = vstv %s7160_s27  ;;  %s10158_s27 = sld [smem:[#allocation6 + $0x35]] }
 0x546   : > { %4823 = vrot.lane.b32.xlu2 %v4815_v27, %s7692_s22  ;;  %v4852_v27 = vstv %s7372_s28  ;;  %v245_v40 = vmul.f32 %v10029_v14, %v244_v17  ;;  %s10174_s28 = sld [smem:[#allocation6 + $0xa]] }
 0x547   : > { %v9995_v2 = vpop.permute.xlu1 %4445  ;;  %v9997_v55 = vpop.permute.xlu0 %4443  ;;  %v4855_v51 = vmul.f32 %v9973_v35, %v4852_v27 }
 0x548   : > { %13257 = vst [vmem:[#allocation428_spill] sm:$0xff] %v9995_v2  ;;  %v9999_v36 = vpop.permute.xlu2 %4522 }
 0x549   : > { %13258 = vst [vmem:[#allocation429_spill] sm:$0xff] %v9997_v55 }
 0x54a   : > { %13259 = vst [vmem:[#allocation430_spill] sm:$0xff] %v9999_v36  ;;  %v10016_v36 = vld [vmem:[%s7802_s9 + $0x8] sm:$0xff] }
 0x54b   : > { %v238_v38 = vmul.f32 %v10016_v36, %v236_v61  ;;  %v254_v16 = vmul.f32 %v10016_v36, %v252_v31 }
 0x54d   : > { %4841 = vrot.lane.b32.xlu1 %v4834_v18, %s7692_s22  ;;  %4839 = vrot.lane.b32.xlu0 %v4833_v37, %s7692_s22  ;;  %v246_v18 = vmul.f32 %v10016_v36, %v244_v17  ;;  %v4854_v37 = vmul.f32 %v9963_v54, %v4852_v27  ;;  %v257_v4 = vadd.f32 %v254_v16, %v227_v1  ;;  %v608_v16 = vstv %s10051_s18  ;;  %s10353_s18 = sld [smem:[#allocation6 + $0xf0]] }
 0x54e   : > { %4843 = vrot.lane.b32.xlu2 %v4835_v0, %s7692_s22  ;;  %v4853_v0 = vmul.f32 %v9966_v41, %v4852_v27  ;;  %v221_v27 = vstv %s10004_s23  ;;  %s10281_s23 = sld [smem:[#allocation6 + $0x116]] }
 0x54f   : > { %v10009_v55 = vpop.permute.xlu1 %4470  ;;  %v10011_v2 = vpop.permute.xlu0 %4468  ;;  %v249_v63 = vadd.f32 %v246_v18, %v224_v56  ;;  %v4872_v18 = vstv %s7373_s30  ;;  %v242_v24 = vadd.f32 %v239_v53, %v221_v27  ;;  %v240_v61 = vadd.f32 %v237_v6, %v221_v27  ;;  %s10313_s30 = sld [smem:[#allocation6 + $0xf]] }
 0x550   : > { %13260 = vst [vmem:[#allocation431_spill] sm:$0xff] %v10009_v55  ;;  %v10013_v25 = vpop.permute.xlu2 %4547  ;;  %v260_v55 = vstv %s7162_s7  ;;  %s10216_s7 = sld [smem:[#allocation6 + $0xeb]] }
 0x551   : > { %13261 = vst [vmem:[#allocation432_spill] sm:$0xff] %v10011_v2  ;;  %v255_v2 = vmul.f32 %v10023_v21, %v252_v31  ;;  %v263_v39 = vmul.f32 %v10023_v21, %v260_v55  ;;  %v4874_v31 = vmul.f32 %v9963_v54, %v4872_v18  ;;  %v305_v3 = vadd.f32 %v7897_v52, %v249_v63 }
 0x552   : > { %13262 = vst [vmem:[#allocation433_spill] sm:$0xff] %v10013_v25  ;;  %v247_v25 = vmul.f32 %v10023_v21, %v244_v17  ;;  %v262_v17 = vmul.f32 %v10016_v36, %v260_v55  ;;  %v286_v26 = vadd.f32 %v7921_v7, %v242_v24  ;;  %v325_v24 = vadd.f32 %v7950_v32, %v257_v4 }
 0x553   : > { %v258_v47 = vadd.f32 %v255_v2, %v227_v1  ;;  %v266_v23 = vadd.f32 %v263_v39, %v230_v11  ;;  %v4875_v2 = vmul.f32 %v9973_v35, %v4872_v18  ;;  %v284_v39 = vadd.f32 %v7923_v8, %v240_v61 }
 0x554   : > { %v250_v49 = vadd.f32 %v247_v25, %v224_v56  ;;  %v241_v25 = vadd.f32 %v238_v38, %v221_v27  ;;  %v265_v6 = vadd.f32 %v262_v17, %v230_v11  ;;  %v366_v7 = vadd.f32 %v7940_v22, %v286_v26 }
 0x555   : > { %4861 = vrot.lane.b32.xlu1 %v4854_v37, %s7692_s22  ;;  %4859 = vrot.lane.b32.xlu0 %v4853_v0, %s7692_s22  ;;  %v326_v5 = vadd.f32 %v7913_v62, %v258_v47  ;;  %v4892_v62 = vstv %s10040_s12  ;;  %v10102_v63 = vmul.f32 %v10023_v21, %v608_v16  ;;  %s10342_s12 = sld [smem:[#allocation6 + $0xa5]] }
 0x556   : > { %4863 = vrot.lane.b32.xlu2 %v4855_v51, %s7692_s22  ;;  %v261_v51 = vmul.f32 %v10029_v14, %v260_v55  ;;  %v256_v55 = vadd.f32 %v253_v10, %v227_v1  ;;  %v306_v53 = vadd.f32 %v7905_v57, %v250_v49  ;;  %v346_v10 = vadd.f32 %v7925_v9, %v266_v23 }
 0x557   : > { %v10045_v37 = vpop.permute.xlu1 %4495  ;;  %v10047_v0 = vpop.permute.xlu0 %4493  ;;  %v588_v57 = vstv %s10032_s11  ;;  %v285_v8 = vadd.f32 %v7938_v20, %v241_v25  ;;  %v345_v23 = vadd.f32 %v7964_v43, %v265_v6  ;;  %v627_v20 = vstv %s10055_s21  ;;  %s10328_s11 = sld [smem:[#allocation6 + $0x5a]] }
 0x558   : > { %13263 = vst [vmem:[#allocation434_spill] sm:$0xff] %v10045_v37  ;;  %v10053_v50 = vpop.permute.xlu2 %4572  ;;  %v4873_v37 = vmul.f32 %v9966_v41, %v4872_v18  ;;  %v324_v47 = vadd.f32 %v7952_v33, %v256_v55  ;;  %v591_v22 = vmul.f32 %v10023_v21, %v588_v57  ;;  %v4894_v32 = vmul.f32 %v9963_v54, %v4892_v62  ;;  %s10362_s21 = sld [smem:[#allocation6 + $0x81]] }
 0x559   : > { %13264 = vst [vmem:[#allocation435_spill] sm:$0xff] %v10047_v0  ;;  %v248_v0 = vadd.f32 %v245_v40, %v224_v56  ;;  %v4893_v33 = vmul.f32 %v9966_v41, %v4892_v62  ;;  %v406_v4 = vadd.f32 %v7968_v46, %v326_v5  ;;  %v365_v26 = vadd.f32 %v7978_v58, %v285_v8  ;;  %v13269_v8 = vld [vmem:[#allocation12_spill] sm:$0xff] }
 0x55a   : > { %13265 = vst [vmem:[#allocation436_spill] sm:$0xff] %v10053_v50  ;;  %v264_v50 = vadd.f32 %v261_v51, %v230_v11  ;;  %v4895_v43 = vmul.f32 %v9973_v35, %v4892_v62  ;;  %v446_v1 = vadd.f32 %v7996_v15, %v366_v7  ;;  %v405_v46 = vadd.f32 %v8006_v28, %v325_v24  ;;  %v13268_v62 = vld [vmem:[#allocation11_spill] sm:$0xff] }
 0x55b   : > { %v304_v52 = vadd.f32 %v7936_v19, %v248_v0  ;;  %v386_v19 = vadd.f32 %v7954_v34, %v306_v53  ;;  %v364_v34 = vadd.f32 %v7980_v59, %v284_v39  ;;  %v10107_v58 = vmul.f32 %v10023_v21, %v627_v20  ;;  %v13266_v53 = vld [vmem:[#allocation16_spill] sm:$0xff] }
 0x55c   : > { %v344_v11 = vadd.f32 %v7966_v44, %v264_v50  ;;  %v426_v44 = vadd.f32 %v7982_v60, %v346_v10  ;;  %v385_v50 = vadd.f32 %v7992_v12, %v305_v3  ;;  %v590_v59 = vmul.f32 %v10016_v36, %v588_v57 }
 0x55d   : > { %4881 = vrot.lane.b32.xlu1 %v4874_v31, %s7693_s19  ;;  %4879 = vrot.lane.b32.xlu0 %v4873_v37, %s7693_s19  ;;  %v384_v40 = vadd.f32 %v7994_v13, %v304_v52  ;;  %v466_v5 = vadd.f32 %v8010_v30, %v386_v19  ;;  %v404_v60 = vadd.f32 %v8008_v29, %v324_v47  ;;  %v599_v12 = vrot.slane %v591_v22, 1  ;;  %v13267_v52 = vld [vmem:[#allocation13_spill] sm:$0xff]  ;;  %v13270_v22 = vld [vmem:[#allocation14_spill] sm:$0xff] }
 0x55e   : > { %4883 = vrot.lane.b32.xlu2 %v4875_v2, %s7693_s19  ;;  %v589_v13 = vmul.f32 %v10029_v14, %v588_v57  ;;  %v646_v3 = vstv %s10065_s24  ;;  %v610_v15 = vmul.f32 %v10016_v36, %v608_v16  ;;  %v609_v28 = vmul.f32 %v10029_v14, %v608_v16  ;;  %s10408_s24 = sld [smem:[#allocation6 + $0xcc]] }
 0x55f   : > { %v10080_v49 = vpop.permute.xlu1 %4520  ;;  %v10082_v9 = vpop.permute.xlu0 %4518  ;;  %v4912_v56 = vstv %s10074_s25  ;;  %v425_v30 = vadd.f32 %v8020_v42, %v345_v23  ;;  %v424_v29 = vadd.f32 %v8022_v45, %v344_v11  ;;  %v618_v27 = vrot.slane %v10102_v63, 1  ;;  %s10448_s25 = sld [smem:[#allocation6 + $0x117]] }
 0x560   : > { %v10088_v38 = vpop.permute.xlu2 %4597  ;;  %v629_v18 = vmul.f32 %v10016_v36, %v627_v20  ;;  %v486_v17 = vadd.f32 %v8024_v48, %v406_v4  ;;  %v637_v51 = vrot.slane %v10107_v58, 1  ;;  %v597_v61 = vrot.slane %v590_v59, 1  ;;  %v13274_v59 = vld [vmem:[#allocation18_spill] sm:$0xff] }
 0x561   : > { %v628_v31 = vmul.f32 %v10029_v14, %v627_v20  ;;  %v10136_v42 = vmul.f32 %v10023_v21, %v646_v3  ;;  %v596_v45 = vrot.slane %v589_v13, 1  ;;  %v4914_v25 = vmul.f32 %v9963_v54, %v4912_v56 }
 0x562   : > { %v4913_v55 = vmul.f32 %v9966_v41, %v4912_v56  ;;  %v526_v6 = vadd.f32 %v13266_v53, %v446_v1  ;;  %v616_v39 = vrot.slane %v610_v15, 1  ;;  %v615_v10 = vrot.slane %v609_v28, 1  ;;  %v13273_v1 = vld [vmem:[#allocation17_spill] sm:$0xff]  ;;  %v13275_v28 = vld [vmem:[#allocation20_spill] sm:$0xff] }
 0x563   : > { %v4915_v48 = vmul.f32 %v9973_v35, %v4912_v56  ;;  %v506_v57 = vadd.f32 %v13267_v52, %v426_v44  ;;  %v445_v7 = vadd.f32 %v13268_v62, %v365_v26  ;;  %v444_v24 = vadd.f32 %v13269_v8, %v364_v34  ;;  %v13278_v53 = vld [vmem:[#allocation21_spill] sm:$0xff]  ;;  %v13281_v8 = vld [vmem:[#allocation26_spill] sm:$0xff] }
 0x564   : > { %v635_v47 = vrot.slane %v629_v18, 1  ;;  %v600_v19 = vsel %vm595_vm0, %v597_v61, %v599_v12  ;;  %v634_v23 = vrot.slane %v628_v31, 1  ;;  %v648_v11 = vmul.f32 %v10016_v36, %v646_v3 }
 0x565   : > { %4901 = vrot.lane.b32.xlu1 %v4894_v32, %s7693_s19  ;;  %4899 = vrot.lane.b32.xlu0 %v4893_v33, %s7693_s19  ;;  %v647_v16 = vmul.f32 %v10029_v14, %v646_v3  ;;  %v465_v20 = vadd.f32 %v13270_v22, %v385_v50  ;;  %v13271_v32 = vld [vmem:[#allocation15_spill] sm:$0xff]  ;;  %v656_v4 = vrot.slane %v10136_v42, 1  ;;  %v606_v26 = vadd.f32 %v599_v12, %v526_v6 }
 0x566   : > { %4903 = vrot.lane.b32.xlu2 %v4895_v43, %s7693_s19  ;;  %v464_v33 = vadd.f32 %v13271_v32, %v384_v40  ;;  %v598_v43 = vsel %vm595_vm0, %v596_v45, %v597_v61  ;;  %v619_v34 = vsel %vm595_vm0, %v616_v39, %v618_v27  ;;  %v617_v44 = vsel %vm595_vm0, %v615_v10, %v616_v39  ;;  %v13272_v50 = vld [vmem:[#allocation19_spill] sm:$0xff]  ;;  %v13276_v45 = vld [vmem:[#allocation22_spill] sm:$0xff]  ;;  %v13279_v39 = vld [vmem:[#allocation25_spill] sm:$0xff] }
 0x567   : > { %v10126_v37 = vpop.permute.xlu1 %4545  ;;  %v10128_v0 = vpop.permute.xlu0 %4543  ;;  %v4932_v63 = vstv %s10120_s26  ;;  %v546_v40 = vadd.f32 %v13272_v50, %v466_v5  ;;  %v485_v58 = vadd.f32 %v13273_v1, %v405_v46  ;;  %v484_v13 = vadd.f32 %v13274_v59, %v404_v60  ;;  %v13280_v10 = vld [vmem:[#allocation24_spill] sm:$0xff]  ;;  %v13286_v1 = vld [vmem:[#allocation33_spill] sm:$0xff]  ;;  %s10457_s26 = sld [smem:[#allocation6 + $0x38]] }
 0x568   : > { %v10133_v2 = vpop.permute.xlu2 %4622  ;;  %v638_v3 = vsel %vm595_vm0, %v635_v47, %v637_v51  ;;  %v505_v56 = vadd.f32 %v13275_v28, %v425_v30  ;;  %v636_v18 = vsel %vm595_vm0, %v634_v23, %v635_v47  ;;  %v654_v61 = vrot.slane %v648_v11, 1  ;;  %v13285_v50 = vld [vmem:[#allocation32_spill] sm:$0xff] }
 0x569   : > { %v653_v31 = vrot.slane %v647_v16, 1  ;;  %v566_v5 = vadd.f32 %v13276_v45, %v486_v17  ;;  %v4934_v60 = vmul.f32 %v9963_v54, %v4932_v63  ;;  %v504_v6 = vadd.f32 %v13278_v53, %v424_v29  ;;  %v13282_v17 = vld [vmem:[#allocation27_spill] sm:$0xff]  ;;  %v13284_v16 = vld [vmem:[#allocation30_spill] sm:$0xff] }
 0x56a   : > { %v586_v30 = vadd.f32 %v13279_v39, %v506_v57  ;;  %v4935_v52 = vmul.f32 %v9973_v35, %v4932_v63  ;;  %v625_v62 = vadd.f32 %v618_v27, %v546_v40  ;;  %v545_v47 = vadd.f32 %v13281_v8, %v465_v20  ;;  %v13287_v40 = vld [vmem:[#allocation28_spill] sm:$0xff] }
 0x56b   : > { %v544_v23 = vadd.f32 %v13282_v17, %v464_v33  ;;  %v564_v22 = vadd.f32 %v13284_v16, %v484_v13  ;;  %v657_v32 = vsel %vm595_vm0, %v654_v61, %v656_v4  ;;  %v585_v29 = vadd.f32 %v13285_v50, %v505_v56  ;;  %v13288_v13 = vld [vmem:[#allocation31_spill] sm:$0xff] }
 0x56c   : > { %v584_v57 = vadd.f32 %v13286_v1, %v504_v6  ;;  %v655_v27 = vsel %vm595_vm0, %v653_v31, %v654_v61  ;;  %v663_v20 = vadd.f32 %v656_v4, %v586_v30  ;;  %v4952_v59 = vstv %s10158_s27  ;;  %v13289_v4 = vld [vmem:[#allocation34_spill] sm:$0xff]  ;;  %v13292_v6 = vld [vmem:[#allocation36_spill] sm:$0xff]  ;;  %s10466_s27 = sld [smem:[#allocation6 + $0x14]] }
 0x56d   : > { %4921 = vrot.lane.b32.xlu1 %v4914_v25, %s7693_s19  ;;  %4919 = vrot.lane.b32.xlu0 %v4913_v55, %s7693_s19  ;;  %v13277_v25 = vld [vmem:[#allocation23_spill] sm:$0xff]  ;;  %v4933_v55 = vmul.f32 %v9966_v41, %v4932_v63  ;;  %v713_v28 = vadd.f32 %v13288_v13, %v625_v62  ;;  %v642_v45 = vadd.f32 %v636_v18, %v564_v22  ;;  %v13293_v30 = vld [vmem:[#allocation38_spill] sm:$0xff]  ;;  %v13299_v22 = vld [vmem:[#allocation44_spill] sm:$0xff] }
 0x56e   : > { %4923 = vrot.lane.b32.xlu2 %v4915_v48, %s7693_s19  ;;  %v525_v46 = vadd.f32 %v13277_v25, %v445_v7  ;;  %v524_v48 = vadd.f32 %v13280_v10, %v444_v24  ;;  %v13283_v7 = vld [vmem:[#allocation29_spill] sm:$0xff]  ;;  %v644_v24 = vadd.f32 %v637_v51, %v566_v5  ;;  %v624_v51 = vadd.f32 %v619_v34, %v545_v47  ;;  %v13295_v62 = vld [vmem:[#allocation39_spill] sm:$0xff]  ;;  %v13300_v1 = vld [vmem:[#allocation46_spill] sm:$0xff] }
 0x56f   : > { %v10164_v15 = vpop.permute.xlu1 %4570  ;;  %v10166_v12 = vpop.permute.xlu0 %4568  ;;  %v565_v11 = vadd.f32 %v13283_v7, %v485_v58  ;;  %v688_v58 = vadd.f32 %v13287_v40, %v606_v26  ;;  %v662_v5 = vadd.f32 %v657_v32, %v585_v29  ;;  %v661_v26 = vadd.f32 %v655_v27, %v584_v57  ;;  %v13296_v47 = vld [vmem:[#allocation41_spill] sm:$0xff]  ;;  %v13302_v27 = vld [vmem:[#allocation47_spill] sm:$0xff]  ;;  %v13305_v13 = vld [vmem:[#allocation50_spill] sm:$0xff] }
 0x570   : > { %v10170_v42 = vpop.permute.xlu2 %4647  ;;  %v605_v63 = vadd.f32 %v600_v19, %v525_v46  ;;  %v604_v33 = vadd.f32 %v598_v43, %v524_v48  ;;  %v623_v19 = vadd.f32 %v617_v44, %v544_v23  ;;  %v738_v43 = vadd.f32 %v13289_v4, %v644_v24  ;;  %v13290_v46 = vld [vmem:[#allocation35_spill] sm:$0xff]  ;;  %v13294_v48 = vld [vmem:[#allocation40_spill] sm:$0xff]  ;;  %v13297_v23 = vld [vmem:[#allocation42_spill] sm:$0xff] }
 0x571   : > { %v643_v56 = vadd.f32 %v638_v3, %v565_v11  ;;  %v4954_v34 = vmul.f32 %v9963_v54, %v4952_v59  ;;  %v4953_v44 = vmul.f32 %v9966_v41, %v4952_v59  ;;  %v13291_v3 = vld [vmem:[#allocation37_spill] sm:$0xff]  ;;  %v712_v18 = vadd.f32 %v13293_v30, %v624_v51  ;;  %v13298_v11 = vld [vmem:[#allocation43_spill] sm:$0xff] }
 0x572   : > { %v763_v53 = vadd.f32 %v13291_v3, %v663_v20  ;;  %v686_v39 = vadd.f32 %v13292_v6, %v604_v33  ;;  %v4955_v10 = vmul.f32 %v9973_v35, %v4952_v59  ;;  %v711_v8 = vadd.f32 %v13295_v62, %v623_v19  ;;  %v13301_v24 = vld [vmem:[#allocation45_spill] sm:$0xff]  ;;  %v13311_v3 = vld [vmem:[#allocation54_spill] sm:$0xff] }
 0x573   : > { %v737_v17 = vadd.f32 %v13296_v47, %v643_v56  ;;  %v736_v7 = vadd.f32 %v13297_v23, %v642_v45  ;;  %v813_v16 = vadd.f32 %v13298_v11, %v713_v28  ;;  %v762_v32 = vadd.f32 %v13299_v22, %v662_v5  ;;  %v13303_v33 = vld [vmem:[#allocation49_spill] sm:$0xff]  ;;  %v13306_v56 = vld [vmem:[#allocation51_spill] sm:$0xff] }
 0x574   : > { %v1085_v29 = vstv %s10189_s29  ;;  %v838_v57 = vadd.f32 %v13300_v1, %v738_v43  ;;  %v863_v40 = vadd.f32 %v13303_v33, %v763_v53  ;;  %v1104_v51 = vstv %s10192_s4  ;;  %v13314_v1 = vld [vmem:[#allocation58_spill] sm:$0xff]  ;;  %s10490_s29 = sld [smem:[#allocation6 + $0x83]] }
 0x575   : > { %4941 = vrot.lane.b32.xlu1 %v4934_v60, %s7693_s19  ;;  %4939 = vrot.lane.b32.xlu0 %v4933_v55, %s7693_s19  ;;  %v687_v60 = vadd.f32 %v13290_v46, %v605_v63  ;;  %v1065_v55 = vstv %s10174_s28  ;;  %v761_v63 = vadd.f32 %v13301_v24, %v661_v26  ;;  %v4972_v19 = vstv %s10199_s6  ;;  %v13309_v46 = vld [vmem:[#allocation52_spill] sm:$0xff]  ;;  %v13315_v24 = vld [vmem:[#allocation57_spill] sm:$0xff]  ;;  %s10483_s28 = sld [smem:[#allocation6 + $0x5f]] }
 0x576   : > { %4943 = vrot.lane.b32.xlu2 %v4935_v52, %s7693_s19  ;;  %v788_v52 = vadd.f32 %v13294_v48, %v688_v58  ;;  %v10226_v50 = vmul.f32 %v10023_v21, %v1065_v55  ;;  %v13304_v58 = vld [vmem:[#allocation48_spill] sm:$0xff]  ;;  %v812_v28 = vadd.f32 %v13305_v13, %v712_v18  ;;  %v811_v45 = vadd.f32 %v13306_v56, %v711_v8  ;;  %v13316_v13 = vld [vmem:[#allocation59_spill] sm:$0xff]  ;;  %s10493_s4 = sld [smem:[#allocation6 + $0xaa]] }
 0x577   : > { %v10202_v61 = vpop.permute.xlu1 %4595  ;;  %v10204_v31 = vpop.permute.xlu0 %4593  ;;  %v787_v20 = vadd.f32 %v13302_v27, %v687_v60  ;;  %v786_v59 = vadd.f32 %v13304_v58, %v686_v39  ;;  %v1088_v4 = vmul.f32 %v10023_v21, %v1085_v29  ;;  %v1067_v43 = vmul.f32 %v10016_v36, %v1065_v55  ;;  %s10528_s6 = sld [smem:[#allocation6 + $0xf5]] }
 0x578   : > { %v10207_v25 = vpop.permute.xlu2 %4672  ;;  %v888_v60 = vadd.f32 %v13309_v46, %v788_v52  ;;  %v836_v53 = vadd.f32 %v13311_v3, %v736_v7  ;;  %v1076_v6 = vrot.slane %v10226_v50, 2  ;;  %v10256_v30 = vmul.f32 %v10023_v21, %v1104_v51  ;;  %v13313_v7 = vld [vmem:[#allocation56_spill] sm:$0xff] }
 0x579   : > { %v1066_v18 = vmul.f32 %v10029_v14, %v1065_v55  ;;  %v4973_v48 = vmul.f32 %v9966_v41, %v4972_v19  ;;  %v1123_v62 = vstv %s10216_s7  ;;  %v1087_v52 = vmul.f32 %v10016_v36, %v1085_v29  ;;  %v13319_v46 = vld [vmem:[#allocation64_spill] sm:$0xff]  ;;  %s10548_s7 = sld [smem:[#allocation6 + $0xce]] }
 0x57a   : > { %v1086_v8 = vmul.f32 %v10029_v14, %v1085_v29  ;;  %v4975_v47 = vmul.f32 %v9973_v35, %v4972_v19  ;;  %v862_v11 = vadd.f32 %v13313_v7, %v762_v32  ;;  %v1095_v22 = vrot.slane %v1088_v4, 2  ;;  %v13317_v32 = vld [vmem:[#allocation60_spill] sm:$0xff]  ;;  %v13327_v29 = vld [vmem:[#allocation66_spill] sm:$0xff] }
 0x57b   : > { %v1074_v50 = vrot.slane %v1067_v43, 2  ;;  %v938_v55 = vadd.f32 %v13314_v1, %v838_v57  ;;  %v861_v27 = vadd.f32 %v13315_v24, %v761_v63  ;;  %v1106_v33 = vmul.f32 %v10016_v36, %v1104_v51  ;;  %v13324_v1 = vld [vmem:[#allocation62_spill] sm:$0xff] }
 0x57c   : > { %v1105_v58 = vmul.f32 %v10029_v14, %v1104_v51  ;;  %v887_v56 = vadd.f32 %v13316_v13, %v787_v20  ;;  %v886_v57 = vadd.f32 %v13317_v32, %v786_v59  ;;  %v1093_v4 = vrot.slane %v1087_v52, 2  ;;  %v13318_v20 = vld [vmem:[#allocation61_spill] sm:$0xff]  ;;  %v13322_v59 = vld [vmem:[#allocation67_spill] sm:$0xff] }
 0x57d   : > { %4961 = vrot.lane.b32.xlu1 %v4954_v34, %s7694_s15  ;;  %4959 = vrot.lane.b32.xlu0 %v4953_v44, %s7694_s15  ;;  %v13310_v34 = vld [vmem:[#allocation53_spill] sm:$0xff]  ;;  %v1092_v63 = vrot.slane %v1086_v8, 2  ;;  %v4992_v43 = vstv %s10239_s8  ;;  %v963_v51 = vadd.f32 %v13318_v20, %v863_v40  ;;  %v1077_v3 = vsel %vm1072_vm1, %v1074_v50, %v1076_v6  ;;  %v13325_v32 = vld [vmem:[#allocation63_spill] sm:$0xff]  ;;  %s10591_s8 = sld [smem:[#allocation6 + $0x119]] }
 0x57e   : > { %4963 = vrot.lane.b32.xlu2 %v4955_v10, %s7694_s15  ;;  %v837_v44 = vadd.f32 %v13310_v34, %v737_v17  ;;  %v4974_v10 = vmul.f32 %v9963_v54, %v4972_v19  ;;  %v13312_v17 = vld [vmem:[#allocation55_spill] sm:$0xff]  ;;  %v10274_v19 = vmul.f32 %v10023_v21, %v1123_v62  ;;  %v988_v34 = vadd.f32 %v13319_v46, %v888_v60 }
 0x57f   : > { %v10245_v5 = vpop.permute.xlu1 %4620  ;;  %v10247_v26 = vpop.permute.xlu0 %4618  ;;  %v913_v23 = vadd.f32 %v13312_v17, %v813_v16  ;;  %v1073_v16 = vrot.slane %v1066_v18, 2  ;;  %v1125_v18 = vmul.f32 %v10016_v36, %v1123_v62  ;;  %v1112_v8 = vrot.slane %v1106_v33, 2 }
 0x580   : > { %13307 = vst [vmem:[#allocation16_spill] sm:$0xff] %v10245_v5  ;;  %v10253_v39 = vpop.permute.xlu2 %4697  ;;  %v1111_v17 = vrot.slane %v1105_v58, 2  ;;  %v912_v40 = vadd.f32 %v13324_v1, %v812_v28  ;;  %v4994_v24 = vmul.f32 %v9963_v54, %v4992_v43  ;;  %v4993_v13 = vmul.f32 %v9966_v41, %v4992_v43 }
 0x581   : > { %13308 = vst [vmem:[#allocation13_spill] sm:$0xff] %v10247_v26  ;;  %v1013_v52 = vadd.f32 %v13322_v59, %v913_v23  ;;  %v1075_v60 = vsel %vm1072_vm1, %v1073_v16, %v1074_v50  ;;  %v911_v20 = vadd.f32 %v13325_v32, %v811_v45  ;;  %v1096_v46 = vsel %vm1072_vm1, %v1093_v4, %v1095_v22  ;;  %v13519_v26 = vld [vmem:[#allocation216_spill] sm:$0xff] }
 0x582   : > { %v1094_v23 = vsel %vm1072_vm1, %v1092_v63, %v1093_v4  ;;  %v4995_v33 = vmul.f32 %v9973_v35, %v4992_v43  ;;  %v1083_v58 = vadd.f32 %v1076_v6, %v988_v34  ;;  %v1131_v28 = vrot.slane %v1125_v18, 2  ;;  %v13330_v4 = vld [vmem:[#allocation68_spill] sm:$0xff]  ;;  %v13331_v43 = vld [vmem:[#allocation71_spill] sm:$0xff] }
 0x583   : > { %v1102_v50 = vadd.f32 %v1095_v22, %v1013_v52  ;;  %v13328_v16 = vrot.slane %v10256_v30, 2  ;;  %v1113_v45 = vsel %vm1072_vm1, %v1111_v17, %v1112_v8  ;;  %v962_v63 = vadd.f32 %v13330_v4, %v862_v11  ;;  %v13334_v18 = vld [vmem:[#allocation72_spill] sm:$0xff]  ;;  %v13335_v11 = vld [vmem:[#allocation74_spill] sm:$0xff]  ;;  %v13337_v17 = vld [vmem:[#allocation77_spill] sm:$0xff] }
 0x584   : > { %v1133_v6 = vrot.slane %v10274_v19, 2  ;;  %v986_v52 = vadd.f32 %v13334_v18, %v886_v57  ;;  %v1012_v19 = vadd.f32 %v13335_v11, %v912_v40  ;;  %v13340_v57 = vld [vmem:[#allocation78_spill] sm:$0xff]  ;;  %v13345_v11 = vld [vmem:[#allocation76_spill] sm:$0xff] }
 0x585   : > { %4981 = vrot.lane.b32.xlu1 %v4974_v10, %s7694_s15  ;;  %4979 = vrot.lane.b32.xlu0 %v4973_v48, %s7694_s15  ;;  %v1115_v1 = vsel %vm1072_vm1, %v1112_v8, %v13328_v16  ;;  %v13342_v16 = vld [vmem:[#allocation81_spill] sm:$0xff] }
 0x586   : > { %4983 = vrot.lane.b32.xlu2 %v4975_v47, %s7694_s15  ;;  %v1124_v47 = vmul.f32 %v10029_v14, %v1123_v62  ;;  %v13326_v62 = vld [vmem:[#allocation65_spill] sm:$0xff] }
 0x587   : > { %v10287_v10 = vpop.permute.xlu1 %4645  ;;  %v10289_v48 = vpop.permute.xlu0 %4643  ;;  %v937_v59 = vadd.f32 %v13326_v62, %v837_v44  ;;  %v987_v44 = vadd.f32 %v13331_v43, %v887_v56  ;;  %v13336_v56 = vld [vmem:[#allocation75_spill] sm:$0xff] }
 0x588   : > { %13320 = vst [vmem:[#allocation11_spill] sm:$0xff] %v10287_v10  ;;  %v10293_v7 = vpop.permute.xlu2 %4722  ;;  %v1130_v32 = vrot.slane %v1124_v47, 2  ;;  %v1011_v8 = vadd.f32 %v13336_v56, %v911_v20  ;;  %v13344_v20 = vrot.slane %v10256_v30, 2  ;;  %v13346_v56 = vld [vmem:[#allocation79_spill] sm:$0xff] }
 0x589   : > { %13321 = vst [vmem:[#allocation12_spill] sm:$0xff] %v10289_v48  ;;  %v936_v48 = vadd.f32 %v13327_v29, %v836_v53  ;;  %v13332_v53 = vld [vmem:[#allocation69_spill] sm:$0xff]  ;;  %v1037_v47 = vadd.f32 %v13337_v17, %v937_v59  ;;  %v1082_v43 = vadd.f32 %v1077_v3, %v987_v44  ;;  %v1190_v17 = vadd.f32 %v13346_v56, %v1102_v50  ;;  %v13352_v50 = vld [vmem:[#allocation87_spill] sm:$0xff] }
 0x58a   : > { %13323 = vst [vmem:[#allocation14_spill] sm:$0xff] %v10293_v7  ;;  %v13329_v7 = vld [vmem:[#allocation70_spill] sm:$0xff]  ;;  %v961_v22 = vadd.f32 %v13332_v53, %v861_v27  ;;  %v13333_v29 = vld [vmem:[#allocation73_spill] sm:$0xff]  ;;  %v1132_v62 = vsel %vm1072_vm1, %v1130_v32, %v1131_v28  ;;  %v1101_v32 = vadd.f32 %v1096_v46, %v1012_v19  ;;  %v13353_v19 = vld [vmem:[#allocation88_spill] sm:$0xff] }
 0x58b   : > { %v1038_v10 = vadd.f32 %v13329_v7, %v938_v55  ;;  %v1063_v34 = vadd.f32 %v13333_v29, %v963_v51  ;;  %v5012_v55 = vstv %s10281_s23  ;;  %v1134_v7 = vsel %vm1072_vm1, %v1131_v28, %v1133_v6  ;;  %v13351_v46 = vld [vmem:[#allocation86_spill] sm:$0xff]  ;;  %s10638_s23 = sld [smem:[#allocation6 + $0x39]] }
 0x58c   : > { %v1061_v40 = vadd.f32 %v13342_v16, %v961_v22  ;;  %v5014_v53 = vmul.f32 %v9963_v54, %v5012_v55  ;;  %v5013_v29 = vmul.f32 %v9966_v41, %v5012_v55  ;;  %v5015_v28 = vmul.f32 %v9973_v35, %v5012_v55  ;;  %v13348_v16 = vld [vmem:[#allocation85_spill] sm:$0xff] }
 0x58d   : > { %5001 = vrot.lane.b32.xlu1 %v4994_v24, %s7694_s15  ;;  %4999 = vrot.lane.b32.xlu0 %v4993_v13, %s7694_s15  ;;  %v1036_v24 = vadd.f32 %v13340_v57, %v936_v48  ;;  %v13341_v13 = vld [vmem:[#allocation80_spill] sm:$0xff]  ;;  %v1121_v59 = vadd.f32 %v13344_v20, %v1038_v10  ;;  %v1140_v18 = vadd.f32 %v1133_v6, %v1063_v34  ;;  %v13347_v10 = vld [vmem:[#allocation82_spill] sm:$0xff]  ;;  %v5032_v55 = vstv %s10322_s10  ;;  %s10677_s10 = sld [smem:[#allocation6 + $0x84]] }
 0x58e   : > { %5003 = vrot.lane.b32.xlu2 %v4995_v33, %s7694_s15  ;;  %v1062_v33 = vadd.f32 %v13341_v13, %v962_v63  ;;  %v1081_v48 = vadd.f32 %v1075_v60, %v986_v52  ;;  %v1165_v63 = vadd.f32 %v13345_v11, %v1083_v58  ;;  %v1100_v22 = vadd.f32 %v1094_v23, %v1011_v8  ;;  %v13349_v60 = vld [vmem:[#allocation83_spill] sm:$0xff]  ;;  %v13350_v58 = vld [vmem:[#allocation84_spill] sm:$0xff]  ;;  %v13361_v11 = vld [vmem:[#allocation93_spill] sm:$0xff] }
 0x58f   : > { %v10330_v27 = vpop.permute.xlu1 %4670  ;;  %v10332_v51 = vpop.permute.xlu0 %4668  ;;  %v1120_v30 = vadd.f32 %v1115_v1, %v1037_v47  ;;  %v1119_v3 = vadd.f32 %v1113_v45, %v1036_v24  ;;  %v1215_v44 = vadd.f32 %v13347_v10, %v1121_v59  ;;  %v1138_v13 = vadd.f32 %v1132_v62, %v1061_v40  ;;  %v13354_v47 = vld [vmem:[#allocation89_spill] sm:$0xff]  ;;  %v13355_v24 = vld [vmem:[#allocation90_spill] sm:$0xff]  ;;  %v13358_v59 = vld [vmem:[#allocation91_spill] sm:$0xff] }
 0x590   : > { %13338 = vst [vmem:[#allocation15_spill] sm:$0xff] %v10330_v27  ;;  %v10338_v4 = vpop.permute.xlu2 %4747  ;;  %v1139_v57 = vadd.f32 %v1134_v7, %v1062_v33  ;;  %v1240_v6 = vadd.f32 %v13348_v16, %v1140_v18  ;;  %v1164_v34 = vadd.f32 %v13349_v60, %v1082_v43  ;;  %v1163_v52 = vadd.f32 %v13350_v58, %v1081_v48  ;;  %v13360_v18 = vld [vmem:[#allocation92_spill] sm:$0xff] }
 0x591   : > { %13339 = vst [vmem:[#allocation19_spill] sm:$0xff] %v10332_v51  ;;  %v1189_v23 = vadd.f32 %v13351_v46, %v1101_v32  ;;  %v1188_v1 = vadd.f32 %v13352_v50, %v1100_v22  ;;  %v1542_v45 = vstv %s10313_s30  ;;  %v1265_v8 = vadd.f32 %v13353_v19, %v1165_v63  ;;  %v13364_v16 = vld [vmem:[#allocation96_spill] sm:$0xff]  ;;  %v13367_v50 = vld [vmem:[#allocation98_spill] sm:$0xff]  ;;  %s10669_s30 = sld [smem:[#allocation6 + $0x19]] }
 0x592   : > { %13343 = vst [vmem:[#allocation17_spill] sm:$0xff] %v10338_v4  ;;  %v1214_v7 = vadd.f32 %v13354_v47, %v1120_v30  ;;  %v1213_v33 = vadd.f32 %v13355_v24, %v1119_v3  ;;  %v1562_v62 = vstv %s10328_s11  ;;  %v1290_v43 = vadd.f32 %v13358_v59, %v1190_v17  ;;  %v13363_v3 = vld [vmem:[#allocation95_spill] sm:$0xff]  ;;  %v13366_v58 = vld [vmem:[#allocation100_spill] sm:$0xff]  ;;  %v13369_v59 = vld [vmem:[#allocation101_spill] sm:$0xff]  ;;  %s10688_s11 = sld [smem:[#allocation6 + $0x64]] }
 0x593   : > { %v1239_v48 = vadd.f32 %v13360_v18, %v1139_v57  ;;  %v1545_v63 = vmul.f32 %v10023_v21, %v1542_v45  ;;  %v1581_v22 = vstv %s10342_s12  ;;  %v5034_v56 = vmul.f32 %v9963_v54, %v5032_v55  ;;  %v13365_v57 = vld [vmem:[#allocation97_spill] sm:$0xff]  ;;  %v13368_v47 = vld [vmem:[#allocation99_spill] sm:$0xff]  ;;  %s10693_s12 = sld [smem:[#allocation6 + $0xaf]] }
 0x594   : > { %v5033_v30 = vmul.f32 %v9966_v41, %v5032_v55  ;;  %v1264_v10 = vadd.f32 %v13363_v3, %v1164_v34  ;;  %v1263_v60 = vadd.f32 %v13364_v16, %v1163_v52  ;;  %v10385_v17 = vmul.f32 %v10023_v21, %v1562_v62  ;;  %v13371_v3 = vld [vmem:[#allocation102_spill] sm:$0xff] }
 0x595   : > { %5021 = vrot.lane.b32.xlu1 %v5014_v53, %s7694_s15  ;;  %5019 = vrot.lane.b32.xlu0 %v5013_v29, %s7694_s15  ;;  %v13359_v53 = vld [vmem:[#allocation94_spill] sm:$0xff]  ;;  %v1365_v46 = vadd.f32 %v13366_v58, %v1265_v8  ;;  %v1289_v19 = vadd.f32 %v13367_v50, %v1189_v23  ;;  %v1288_v24 = vadd.f32 %v13368_v47, %v1188_v1  ;;  %v1553_v16 = vrot.slane %v1545_v63, 3  ;;  %v13374_v58 = vld [vmem:[#allocation105_spill] sm:$0xff]  ;;  %v13379_v23 = vld [vmem:[#allocation112_spill] sm:$0xff] }
 0x596   : > { %5023 = vrot.lane.b32.xlu2 %v5015_v28, %s7694_s15  ;;  %v1315_v29 = vadd.f32 %v13359_v53, %v1215_v44  ;;  %v1238_v28 = vadd.f32 %v13361_v11, %v1138_v13  ;;  %v5035_v44 = vmul.f32 %v9973_v35, %v5032_v55  ;;  %v1340_v13 = vadd.f32 %v13365_v57, %v1240_v6  ;;  %v13370_v55 = vld [vmem:[#allocation103_spill] sm:$0xff] }
 0x597   : > { %v10368_v40 = vpop.permute.xlu1 %4695  ;;  %v10370_v20 = vpop.permute.xlu0 %4693  ;;  %v1314_v53 = vadd.f32 %v13369_v59, %v1214_v7  ;;  %v10394_v34 = vmul.f32 %v10023_v21, %v1581_v22  ;;  %v1544_v52 = vmul.f32 %v10016_v36, %v1542_v45  ;;  %v1543_v18 = vmul.f32 %v10029_v14, %v1542_v45  ;;  %v13372_v45 = vld [vmem:[#allocation106_spill] sm:$0xff] }
 0x598   : > { %13356 = vst [vmem:[#allocation18_spill] sm:$0xff] %v10368_v40  ;;  %v10376_v32 = vpop.permute.xlu2 %4803  ;;  %v1390_v11 = vadd.f32 %v13370_v55, %v1290_v43  ;;  %v1313_v6 = vadd.f32 %v13371_v3, %v1213_v33  ;;  %v1564_v8 = vmul.f32 %v10016_v36, %v1562_v62  ;;  %v1600_v1 = vstv %s10353_s18  ;;  %v13373_v33 = vld [vmem:[#allocation104_spill] sm:$0xff]  ;;  %s10702_s18 = sld [smem:[#allocation6 + $0xfa]] }
 0x599   : > { %13357 = vst [vmem:[#allocation20_spill] sm:$0xff] %v10370_v20  ;;  %v1563_v7 = vmul.f32 %v10029_v14, %v1562_v62  ;;  %v5052_v57 = vstv %s10362_s21  ;;  %v1415_v43 = vadd.f32 %v13372_v45, %v1315_v29  ;;  %v1339_v63 = vadd.f32 %v13373_v33, %v1239_v48  ;;  %v13378_v33 = vld [vmem:[#allocation107_spill] sm:$0xff]  ;;  %s10724_s21 = sld [smem:[#allocation6 + $0xcf]] }
 0x59a   : > { %13362 = vst [vmem:[#allocation22_spill] sm:$0xff] %v10376_v32  ;;  %v1338_v50 = vadd.f32 %v13374_v58, %v1238_v28  ;;  %v1591_v59 = vrot.slane %v10394_v34, 3  ;;  %v1551_v62 = vrot.slane %v1544_v52, 3  ;;  %v1550_v55 = vrot.slane %v1543_v18, 3  ;;  %v13380_v52 = vld [vmem:[#allocation109_spill] sm:$0xff] }
 0x59b   : > { %v10423_v29 = vmul.f32 %v10023_v21, %v1600_v1  ;;  %v1570_v48 = vrot.slane %v1564_v8, 3  ;;  %v5054_v28 = vmul.f32 %v9963_v54, %v5052_v57  ;;  %v5053_v45 = vmul.f32 %v9966_v41, %v5052_v57 }
 0x59c   : > { %v1364_v58 = vadd.f32 %v13378_v33, %v1264_v10  ;;  %v1465_v32 = vadd.f32 %v13379_v23, %v1365_v46  ;;  %v5055_v34 = vmul.f32 %v9973_v35, %v5052_v57  ;;  %v1440_v18 = vadd.f32 %v13380_v52, %v1340_v13  ;;  %v13382_v33 = vld [vmem:[#allocation110_spill] sm:$0xff]  ;;  %v13383_v23 = vld [vmem:[#allocation111_spill] sm:$0xff] }
 0x59d   : > { %5041 = vrot.lane.b32.xlu1 %v5034_v56, %s7695_s5  ;;  %5039 = vrot.lane.b32.xlu0 %v5033_v30, %s7695_s5  ;;  %v1583_v56 = vmul.f32 %v10016_v36, %v1581_v22  ;;  %v1602_v20 = vmul.f32 %v10016_v36, %v1600_v1  ;;  %v1554_v8 = vsel %vm1549_vm2, %v1551_v62, %v1553_v16  ;;  %v1610_v57 = vrot.slane %v10423_v29, 3 }
 0x59e   : > { %5043 = vrot.lane.b32.xlu2 %v5035_v44, %s7695_s5  ;;  %v1582_v44 = vmul.f32 %v10029_v14, %v1581_v22  ;;  %v13381_v22 = vld [vmem:[#allocation108_spill] sm:$0xff]  ;;  %v1552_v40 = vsel %vm1549_vm2, %v1550_v55, %v1551_v62  ;;  %v1601_v10 = vmul.f32 %v10029_v14, %v1600_v1  ;;  %v1389_v46 = vadd.f32 %v13382_v33, %v1289_v19 }
 0x59f   : > { %v10414_v47 = vpop.permute.xlu1 %4720  ;;  %v10416_v30 = vpop.permute.xlu0 %4718  ;;  %v13384_v13 = vrot.slane %v10385_v17, 3  ;;  %v1560_v36 = vadd.f32 %v1553_v16, %v1465_v32  ;;  %v5072_v19 = vstv %s10408_s24  ;;  %v13390_v32 = vld [vmem:[#allocation118_spill] sm:$0xff]  ;;  %v13391_v16 = vld [vmem:[#allocation116_spill] sm:$0xff]  ;;  %s10761_s24 = sld [smem:[#allocation6 + $0x11a]] }
 0x5a0   : > { %13375 = vst [vmem:[#allocation23_spill] sm:$0xff] %v10414_v47  ;;  %v10420_v3 = vpop.permute.xlu2 %4823  ;;  %v1363_v47 = vadd.f32 %v13381_v22, %v1263_v60  ;;  %v1588_v51 = vrot.slane %v1582_v44, 3  ;;  %v13387_v44 = vld [vmem:[#allocation114_spill] sm:$0xff]  ;;  %v1608_v22 = vrot.slane %v1602_v20, 3  ;;  %v5074_v20 = vmul.f32 %v9963_v54, %v5072_v19 }
 0x5a1   : > { %13376 = vst [vmem:[#allocation21_spill] sm:$0xff] %v10416_v30  ;;  %v1569_v30 = vrot.slane %v1563_v7, 3  ;;  %v1388_v7 = vadd.f32 %v13383_v23, %v1288_v24  ;;  %v1573_v60 = vsel %vm1549_vm2, %v1570_v48, %v13384_v13  ;;  %v13386_v24 = vld [vmem:[#allocation115_spill] sm:$0xff]  ;;  %v1413_v29 = vadd.f32 %v13387_v44, %v1313_v6  ;;  %v13394_v23 = vld [vmem:[#allocation120_spill] sm:$0xff] }
 0x5a2   : > { %13377 = vst [vmem:[#allocation25_spill] sm:$0xff] %v10420_v3  ;;  %v1589_v3 = vrot.slane %v1583_v56, 3  ;;  %v13385_v56 = vld [vmem:[#allocation113_spill] sm:$0xff]  ;;  %v1490_v1 = vadd.f32 %v13386_v24, %v1390_v11  ;;  %v13393_v11 = vld [vmem:[#allocation119_spill] sm:$0xff]  ;;  %v1463_v13 = vadd.f32 %v13394_v23, %v1363_v47  ;;  %v1611_v54 = vsel %vm1549_vm2, %v1608_v22, %v1610_v57 }
 0x5a3   : > { %v1414_v62 = vadd.f32 %v13385_v56, %v1314_v53  ;;  %v1571_v55 = vsel %vm1549_vm2, %v1569_v30, %v1570_v48  ;;  %v1515_v53 = vadd.f32 %v13390_v32, %v1415_v43  ;;  %v1439_v30 = vadd.f32 %v13391_v16, %v1339_v63  ;;  %v13395_v24 = vld [vmem:[#allocation117_spill] sm:$0xff]  ;;  %v13397_v63 = vld [vmem:[#allocation122_spill] sm:$0xff] }
 0x5a4   : > { %v1592_v52 = vsel %vm1549_vm2, %v1589_v3, %v1591_v59  ;;  %v1590_v48 = vsel %vm1549_vm2, %v1588_v51, %v1589_v3  ;;  %v1464_v6 = vadd.f32 %v13393_v11, %v1364_v58  ;;  %v5073_v56 = vmul.f32 %v9966_v41, %v5072_v19  ;;  %v13396_v43 = vld [vmem:[#allocation121_spill] sm:$0xff]  ;;  %v13399_v58 = vld [vmem:[#allocation123_spill] sm:$0xff] }
 0x5a5   : > { %5061 = vrot.lane.b32.xlu1 %v5054_v28, %s7695_s5  ;;  %5059 = vrot.lane.b32.xlu0 %v5053_v45, %s7695_s5  ;;  %v1438_v44 = vadd.f32 %v13395_v24, %v1338_v50  ;;  %v1540_v32 = vadd.f32 %v13396_v43, %v1440_v18  ;;  %v1489_v16 = vadd.f32 %v13397_v63, %v1389_v46  ;;  %v13398_v3 = vrot.slane %v10385_v17, 3  ;;  %v13400_v47 = vld [vmem:[#allocation125_spill] sm:$0xff] }
 0x5a6   : > { %5063 = vrot.lane.b32.xlu2 %v5055_v34, %s7695_s5  ;;  %v1607_v34 = vrot.slane %v1601_v10, 3  ;;  %v5075_v51 = vmul.f32 %v9973_v35, %v5072_v19  ;;  %v1488_v11 = vadd.f32 %v13399_v58, %v1388_v7  ;;  %v1514_v23 = vadd.f32 %v13400_v47, %v1414_v62  ;;  %v13403_v24 = vld [vmem:[#allocation129_spill] sm:$0xff]  ;;  %v13404_v7 = vld [vmem:[#allocation124_spill] sm:$0xff] }
 0x5a7   : > { %v10453_v28 = vpop.permute.xlu1 %4745  ;;  %v10455_v45 = vpop.permute.xlu0 %4743  ;;  %v1579_v10 = vadd.f32 %v13398_v3, %v1490_v1  ;;  %v1538_v46 = vadd.f32 %v13403_v24, %v1438_v44  ;;  %v1598_v43 = vadd.f32 %v1591_v59, %v1515_v53  ;;  %v1559_v35 = vadd.f32 %v1554_v8, %v1464_v6  ;;  %v13408_v53 = vld [vmem:[#allocation130_spill] sm:$0xff]  ;;  %v10510_v44 = vld [vmem:[%s7802_s9 + $0x30] sm:$0xff] }
 0x5a8   : > { %13388 = vst [vmem:[#allocation24_spill] sm:$0xff] %v10453_v28  ;;  %v10462_v33 = vpop.permute.xlu2 %4843  ;;  %v1609_v18 = vsel %vm1549_vm2, %v1607_v34, %v1608_v22  ;;  %v1558_v19 = vadd.f32 %v1552_v40, %v1463_v13  ;;  %v1617_v17 = vadd.f32 %v1610_v57, %v1540_v32  ;;  %v1642_v62 = vadd.f32 %v13404_v7, %v1560_v36  ;;  %v13405_v40 = vld [vmem:[#allocation127_spill] sm:$0xff]  ;;  %v10514_v63 = vld [vmem:[%s7802_s9 + $0x40] sm:$0xff] }
 0x5a9   : > { %13389 = vst [vmem:[#allocation26_spill] sm:$0xff] %v10455_v45  ;;  %v13402_v45 = vld [vmem:[#allocation128_spill] sm:$0xff]  ;;  %v1578_v1 = vadd.f32 %v1573_v60, %v1489_v16  ;;  %v1577_v59 = vadd.f32 %v1571_v55, %v1488_v11  ;;  %v1667_v8 = vadd.f32 %v13405_v40, %v1579_v10  ;;  %v1597_v22 = vadd.f32 %v1592_v52, %v1514_v23  ;;  %v13410_v55 = vld [vmem:[#allocation131_spill] sm:$0xff]  ;;  %v13411_v10 = vld [vmem:[#allocation133_spill] sm:$0xff] }
 0x5aa   : > { %13392 = vst [vmem:[#allocation27_spill] sm:$0xff] %v10462_v33  ;;  %v13401_v33 = vld [vmem:[#allocation126_spill] sm:$0xff]  ;;  %v1539_v50 = vadd.f32 %v13402_v45, %v1439_v30  ;;  %v5188_v60 = vstv %s10457_s26  ;;  %v1692_v30 = vadd.f32 %v13408_v53, %v1598_v43  ;;  %v1641_v13 = vadd.f32 %v13410_v55, %v1559_v35  ;;  %v13412_v11 = vld [vmem:[#allocation132_spill] sm:$0xff]  ;;  %v13417_v35 = vld [vmem:[#allocation137_spill] sm:$0xff]  ;;  %s10816_s26 = sld [smem:[#allocation6 + $0x1e]] }
 0x5ab   : > { %v1513_v41 = vadd.f32 %v13401_v33, %v1413_v29  ;;  %v5092_v29 = vstv %s10448_s25  ;;  %v1615_v33 = vadd.f32 %v1609_v18, %v1538_v46  ;;  %v5191_v16 = vmul.f32 %v10514_v63, %v5188_v60  ;;  %v13413_v23 = vld [vmem:[#allocation134_spill] sm:$0xff]  ;;  %v13415_v18 = vld [vmem:[#allocation136_spill] sm:$0xff]  ;;  %v13416_v46 = vld [vmem:[#allocation139_spill] sm:$0xff]  ;;  %s10812_s25 = sld [smem:[#allocation6 + $0x3a]] }
 0x5ac   : > { %v1616_v34 = vadd.f32 %v1611_v54, %v1539_v50  ;;  %v5093_v32 = vmul.f32 %v10510_v44, %v5092_v29  ;;  %v5189_v3 = vmul.f32 %v10510_v44, %v5188_v60  ;;  %v1717_v58 = vadd.f32 %v13411_v10, %v1617_v17  ;;  %v13420_v53 = vld [vmem:[#allocation141_spill] sm:$0xff]  ;;  %v13421_v55 = vld [vmem:[#allocation142_spill] sm:$0xff]  ;;  %v13446_v28 = vld [vmem:[#allocation159_spill] sm:$0xff] }
 0x5ad   : > { %5081 = vrot.lane.b32.xlu1 %v5074_v20, %s7695_s5  ;;  %5079 = vrot.lane.b32.xlu0 %v5073_v56, %s7695_s5  ;;  %v1596_v36 = vadd.f32 %v1590_v48, %v1513_v41  ;;  %v2019_v20 = vstv %s10466_s27  ;;  %v10506_v56 = vld [vmem:[%s7802_s9 + $0x38] sm:$0xff]  ;;  %v5095_v48 = vmul.f32 %v10514_v63, %v5092_v29  ;;  %v1640_v47 = vadd.f32 %v13412_v11, %v1558_v19  ;;  %v13414_v41 = vld [vmem:[#allocation135_spill] sm:$0xff]  ;;  %s10822_s27 = sld [smem:[#allocation6 + $0x69]] }
 0x5ae   : > { %5083 = vrot.lane.b32.xlu2 %v5075_v51, %s7695_s5  ;;  %v5094_v52 = vmul.f32 %v10506_v56, %v5092_v29  ;;  %v5190_v51 = vmul.f32 %v10506_v56, %v5188_v60  ;;  %v1666_v54 = vadd.f32 %v13413_v23, %v1578_v1  ;;  %v1665_v50 = vadd.f32 %v13414_v41, %v1577_v59  ;;  %v13418_v29 = vld [vmem:[#allocation138_spill] sm:$0xff]  ;;  %v13419_v60 = vld [vmem:[#allocation140_spill] sm:$0xff]  ;;  %v13422_v11 = vld [vmem:[#allocation143_spill] sm:$0xff] }
 0x5af   : > { %v10495_v45 = vpop.permute.xlu1 %4801  ;;  %v10497_v57 = vpop.permute.xlu0 %4799  ;;  %v1742_v24 = vadd.f32 %v13415_v18, %v1642_v62  ;;  %v1767_v43 = vadd.f32 %v13416_v46, %v1667_v8  ;;  %v1691_v7 = vadd.f32 %v13417_v35, %v1597_v22  ;;  %v1690_v40 = vadd.f32 %v13418_v29, %v1596_v36  ;;  %v13423_v23 = vld [vmem:[#allocation144_spill] sm:$0xff]  ;;  %v13433_v29 = vld [vmem:[#allocation151_spill] sm:$0xff] }
 0x5b0   : > { %13406 = vst [vmem:[#allocation29_spill] sm:$0xff] %v10495_v45  ;;  %v10501_v6 = vpop.permute.xlu2 %4863  ;;  %v1716_v17 = vadd.f32 %v13419_v60, %v1616_v34  ;;  %v1715_v19 = vadd.f32 %v13420_v53, %v1615_v33  ;;  %v10533_v1 = vmul.f32 %v10023_v21, %v2019_v20  ;;  %v2039_v59 = vstv %s10483_s28  ;;  %s10833_s28 = sld [smem:[#allocation6 + $0xb4]] }
 0x5b1   : > { %13407 = vst [vmem:[#allocation30_spill] sm:$0xff] %v10497_v57  ;;  %v5198_v62 = vrot.slane %v5191_v16, 1  ;;  %v5196_v8 = vrot.slane %v5190_v51, 1  ;;  %v5195_v22 = vrot.slane %v5189_v3, 1  ;;  %v5213_v36 = vstv %s10490_s29  ;;  %v13428_v51 = vld [vmem:[#allocation147_spill] sm:$0xff]  ;;  %s10841_s29 = sld [smem:[#allocation6 + $0x85]] }
 0x5b2   : > { %13409 = vst [vmem:[#allocation32_spill] sm:$0xff] %v10501_v6  ;;  %v1792_v10 = vadd.f32 %v13421_v55, %v1692_v30  ;;  %v1741_v34 = vadd.f32 %v13422_v11, %v1641_v13  ;;  %v1740_v33 = vadd.f32 %v13423_v23, %v1640_v47  ;;  %v2058_v41 = vstv %s10493_s4  ;;  %v13430_v47 = vld [vmem:[#allocation148_spill] sm:$0xff]  ;;  %v13431_v11 = vld [vmem:[#allocation149_spill] sm:$0xff]  ;;  %s10860_s4 = sld [smem:[#allocation6 + $0xff]] }
 0x5b3   : > { %v1765_v3 = vadd.f32 %v13428_v51, %v1665_v50  ;;  %v10554_v30 = vmul.f32 %v10023_v21, %v2039_v59  ;;  %v1842_v35 = vadd.f32 %v13430_v47, %v1742_v24  ;;  %v5216_v60 = vmul.f32 %v10514_v63, %v5213_v36  ;;  %v13432_v24 = vld [vmem:[#allocation150_spill] sm:$0xff] }
 0x5b4   : > { %v5215_v53 = vmul.f32 %v10506_v56, %v5213_v36  ;;  %v5197_v50 = vsel %vm595_vm0, %v5195_v22, %v5196_v8  ;;  %v5214_v55 = vmul.f32 %v10510_v44, %v5213_v36  ;;  %v10569_v23 = vadd.f32 %v13431_v11, %v1691_v7 }
 0x5b5   : > { %5101 = vrot.lane.b32.xlu1 %v5094_v52, %s7695_s5  ;;  %5099 = vrot.lane.b32.xlu0 %v5093_v32, %s7695_s5  ;;  %v13426_v52 = vld [vmem:[#allocation145_spill] sm:$0xff]  ;;  %v2020_v47 = vmul.f32 %v10029_v14, %v2019_v20  ;;  %v2077_v22 = vstv %s10528_s6  ;;  %v13435_v14 = vld [vmem:[#allocation154_spill] sm:$0xff]  ;;  %v1865_v4 = vadd.f32 %v13446_v28, %v1765_v3  ;;  %s10900_s6 = sld [smem:[#allocation6 + $0xd0]] }
 0x5b6   : > { %5103 = vrot.lane.b32.xlu2 %v5095_v48, %s7695_s5  ;;  %v1817_v32 = vadd.f32 %v13426_v52, %v1717_v58  ;;  %v13427_v48 = vld [vmem:[#allocation146_spill] sm:$0xff]  ;;  %v10563_v58 = vmul.f32 %v10023_v21, %v2058_v41  ;;  %v10572_v52 = vadd.f32 %v13432_v24, %v1690_v40  ;;  %v13434_v21 = vld [vmem:[#allocation152_spill] sm:$0xff]  ;;  %v5223_v40 = vrot.slane %v5216_v60, 1 }
 0x5b7   : > { %v10544_v18 = vpop.permute.xlu1 %4821  ;;  %v10546_v46 = vpop.permute.xlu0 %4819  ;;  %v1766_v16 = vadd.f32 %v13427_v48, %v1666_v54  ;;  %v5199_v54 = vsel %vm595_vm0, %v5196_v8, %v5198_v62  ;;  %v7564_v48 = vld [vmem:[%s7802_s9 + $0x8] sm:$0xff]  ;;  %v5221_v11 = vrot.slane %v5215_v53, 1  ;;  %v5220_v24 = vrot.slane %v5214_v55, 1  ;;  %v13442_v55 = vld [vmem:[#allocation157_spill] sm:$0xff] }
 0x5b8   : > { %13424 = vst [vmem:[#allocation33_spill] sm:$0xff] %v10544_v18  ;;  %v10556_v13 = vpop.permute.xlu2 %4883  ;;  %v2021_v51 = vmul.f32 %v7564_v48, %v2019_v20  ;;  %v2041_v36 = vmul.f32 %v7564_v48, %v2039_v59  ;;  %v7565_v18 = vld [vmem:[%s7802_s9] sm:$0xff]  ;;  %v1892_v20 = vadd.f32 %v13435_v14, %v1792_v10  ;;  %v2027_v8 = vrot.slane %v2020_v47, 4  ;;  %v13439_v53 = vld [vmem:[#allocation155_spill] sm:$0xff]  ;;  %v13440_v14 = vld [vmem:[#allocation156_spill] sm:$0xff] }
 0x5b9   : > { %13425 = vst [vmem:[#allocation28_spill] sm:$0xff] %v10546_v46  ;;  %v1867_v46 = vadd.f32 %v13433_v29, %v1767_v43  ;;  %v2040_v7 = vmul.f32 %v7565_v18, %v2039_v59  ;;  %v13436_v43 = vld [vmem:[#allocation153_spill] sm:$0xff]  ;;  %v7566_v59 = vld [vmem:[%s7802_s9 + $0x10] sm:$0xff]  ;;  %v5238_v10 = vstv %s10548_s7  ;;  %v2059_v57 = vmul.f32 %v7565_v18, %v2058_v41  ;;  %s10933_s7 = sld [smem:[#allocation6 + $0x11b]] }
 0x5ba   : > { %13429 = vst [vmem:[#allocation31_spill] sm:$0xff] %v10556_v13  ;;  %v10578_v13 = vadd.f32 %v13434_v21, %v1716_v17  ;;  %v10587_v29 = vadd.f32 %v13436_v43, %v1715_v19  ;;  %v10594_v21 = vmul.f32 %v7566_v59, %v2077_v22  ;;  %v1841_v19 = vadd.f32 %v13439_v53, %v1741_v34  ;;  %v13443_v53 = vld [vmem:[#allocation160_spill] sm:$0xff] }
 0x5bb   : > { %v1840_v43 = vadd.f32 %v13440_v14, %v1740_v33  ;;  %v2060_v17 = vmul.f32 %v7564_v48, %v2058_v41  ;;  %v1917_v6 = vadd.f32 %v13442_v55, %v1817_v32  ;;  %v2047_v45 = vrot.slane %v2041_v36, 4  ;;  %v13444_v14 = vld [vmem:[#allocation158_spill] sm:$0xff] }
 0x5bc   : > { %v2046_v59 = vrot.slane %v2040_v7, 4  ;;  %v5222_v47 = vsel %vm595_vm0, %v5220_v24, %v5221_v11  ;;  %v5239_v34 = vmul.f32 %v10510_v44, %v5238_v10  ;;  %v1942_v33 = vadd.f32 %v13443_v53, %v1842_v35  ;;  %v13457_v53 = vld [vmem:[#allocation167_spill] sm:$0xff] }
 0x5bd   : > { %5202 = vrot.lane.b32.xlu1 %v5199_v54, %s7692_s22  ;;  %5200 = vrot.lane.b32.xlu0 %v5197_v50, %s7692_s22  ;;  %v2028_v54 = vrot.slane %v2021_v51, 4  ;;  %v5224_v51 = vsel %vm595_vm0, %v5221_v11, %v5223_v40  ;;  %v1866_v41 = vadd.f32 %v13444_v14, %v1766_v16  ;;  %v2066_v7 = vrot.slane %v2060_v17, 4 }
 0x5be   : > { %5204 = vrot.lane.b32.xlu2 %v5198_v62, %s7692_s22  ;;  %v2065_v55 = vrot.slane %v2059_v57, 4  ;;  %v2079_v11 = vmul.f32 %v7564_v48, %v2077_v22  ;;  %v2078_v24 = vmul.f32 %v7565_v18, %v2077_v22  ;;  %v2087_v27 = vrot.slane %v10594_v21, 4  ;;  %v13449_v22 = vld [vmem:[#allocation163_spill] sm:$0xff]  ;;  %v13450_v21 = vld [vmem:[#allocation161_spill] sm:$0xff] }
 0x5bf   : > { %v10596_v50 = vpop.permute.xlu1 %4841  ;;  %v10598_v60 = vpop.permute.xlu0 %4839  ;;  %v2029_v36 = vsel %vm2026_vm3, %v2027_v8, %v2028_v54  ;;  %v2048_v16 = vsel %vm2026_vm3, %v2046_v59, %v2047_v45  ;;  %v5245_v48 = vrot.slane %v5239_v34, 1  ;;  %v5263_v18 = vstv %s10591_s8  ;;  %s10978_s8 = sld [smem:[#allocation6 + $0x3b]] }
 0x5c0   : > { %13437 = vst [vmem:[#allocation34_spill] sm:$0xff] %v10596_v50  ;;  %v10603_v62 = vpop.permute.xlu2 %4903  ;;  %v5241_v50 = vmul.f32 %v10514_v63, %v5238_v10  ;;  %v1967_v17 = vadd.f32 %v13449_v22, %v1867_v46  ;;  %v2084_v46 = vrot.slane %v2078_v24, 4  ;;  %v5265_v14 = vmul.f32 %v10506_v56, %v5263_v18 }
 0x5c1   : > { %13438 = vst [vmem:[#allocation35_spill] sm:$0xff] %v10598_v60  ;;  %v5240_v60 = vmul.f32 %v10506_v56, %v5238_v10  ;;  %v13447_v10 = vrot.slane %v10554_v30, 4 }
 0x5c2   : > { %13441 = vst [vmem:[#allocation37_spill] sm:$0xff] %v10603_v62  ;;  %v13445_v62 = vrot.slane %v10533_v1, 4  ;;  %v5248_v8 = vrot.slane %v5241_v50, 1  ;;  %v2067_v1 = vsel %vm2026_vm3, %v2065_v55, %v2066_v7  ;;  %v13459_v55 = vrot.slane %v10554_v30, 4  ;;  %v13466_v30 = vld [vmem:[#allocation174_spill] sm:$0xff] }
 0x5c3   : > { %v2050_v35 = vsel %vm2026_vm3, %v2047_v45, %v13447_v10  ;;  %v5246_v57 = vrot.slane %v5240_v60, 1  ;;  %v13451_v45 = vld [vmem:[#allocation162_spill] sm:$0xff]  ;;  %v2085_v60 = vrot.slane %v2079_v11, 4  ;;  %v13458_v10 = vld [vmem:[#allocation168_spill] sm:$0xff] }
 0x5c4   : > { %v2031_v32 = vsel %vm2026_vm3, %v2028_v54, %v13445_v62  ;;  %v13448_v28 = vmov %v13445_v62  ;;  %v1891_v54 = vadd.f32 %v13450_v21, %v10569_v23  ;;  %v1890_v62 = vadd.f32 %v13451_v45, %v10572_v52  ;;  %v13456_v23 = vld [vmem:[#allocation166_spill] sm:$0xff] }
 0x5c5   : > { %5227 = vrot.lane.b32.xlu1 %v5224_v51, %s7692_s22  ;;  %5225 = vrot.lane.b32.xlu0 %v5222_v47, %s7692_s22  ;;  %v2037_v3 = vadd.f32 %v13448_v28, %v1942_v33  ;;  %v1992_v34 = vadd.f32 %v13456_v23, %v1892_v20  ;;  %v1941_v52 = vadd.f32 %v13457_v53, %v1841_v19  ;;  %v13460_v20 = vld [vmem:[#allocation164_spill] sm:$0xff]  ;;  %v13461_v19 = vld [vmem:[#allocation165_spill] sm:$0xff]  ;;  %v13463_v53 = vld [vmem:[#allocation170_spill] sm:$0xff] }
 0x5c6   : > { %5229 = vrot.lane.b32.xlu2 %v5223_v40, %s7692_s22  ;;  %v13454_v40 = vrot.slane %v10563_v58, 4  ;;  %v10649_v33 = vmul.f32 %v10514_v63, %v5263_v18  ;;  %v1940_v28 = vadd.f32 %v13458_v10, %v1840_v43  ;;  %v5249_v22 = vsel %vm595_vm0, %v5246_v57, %v5248_v8  ;;  %v13464_v43 = vld [vmem:[#allocation171_spill] sm:$0xff] }
 0x5c7   : > { %v10634_v59 = vpop.permute.xlu1 %4861  ;;  %v10636_v51 = vpop.permute.xlu0 %4859  ;;  %v5247_v21 = vsel %vm595_vm0, %v5245_v48, %v5246_v57  ;;  %v2056_v11 = vadd.f32 %v13459_v55, %v1967_v17  ;;  %v1916_v24 = vadd.f32 %v13460_v20, %v10578_v13  ;;  %v1915_v45 = vadd.f32 %v13461_v19, %v10587_v29  ;;  %v13465_v48 = vld [vmem:[#allocation173_spill] sm:$0xff] }
 0x5c8   : > { %13452 = vst [vmem:[#allocation36_spill] sm:$0xff] %v10634_v59  ;;  %v2069_v50 = vsel %vm2026_vm3, %v2066_v7, %v13454_v40  ;;  %v10644_v47 = vpop.permute.xlu2 %4923  ;;  %v5264_v7 = vmul.f32 %v10510_v44, %v5263_v18  ;;  %v13462_v40 = vld [vmem:[#allocation169_spill] sm:$0xff]  ;;  %v1965_v10 = vadd.f32 %v13464_v43, %v1865_v4  ;;  %v2086_v57 = vsel %vm2026_vm3, %v2084_v46, %v2085_v60 }
 0x5c9   : > { %13453 = vst [vmem:[#allocation38_spill] sm:$0xff] %v10636_v51  ;;  %v2017_v23 = vadd.f32 %v13462_v40, %v1917_v6  ;;  %v1966_v51 = vadd.f32 %v13463_v53, %v1866_v41  ;;  %v1991_v18 = vadd.f32 %v13465_v48, %v1891_v54  ;;  %v1990_v17 = vadd.f32 %v13466_v30, %v1890_v62  ;;  %v13469_v20 = vld [vmem:[#allocation177_spill] sm:$0xff]  ;;  %v13479_v48 = vld [vmem:[#allocation184_spill] sm:$0xff]  ;;  %v13480_v30 = vld [vmem:[#allocation182_spill] sm:$0xff] }
 0x5ca   : > { %13455 = vst [vmem:[#allocation40_spill] sm:$0xff] %v10644_v47  ;;  %v2088_v47 = vsel %vm2026_vm3, %v2085_v60, %v2087_v27  ;;  %v5273_v6 = vrot.slane %v10649_v33, 1  ;;  %v5271_v13 = vrot.slane %v5265_v14, 1  ;;  %v13467_v4 = vrot.slane %v10563_v58, 4  ;;  %v13468_v60 = vld [vmem:[#allocation176_spill] sm:$0xff]  ;;  %v13478_v43 = vld [vmem:[#allocation181_spill] sm:$0xff] }
 0x5cb   : > { %v2036_v41 = vadd.f32 %v2031_v32, %v1941_v52  ;;  %v2035_v55 = vadd.f32 %v2029_v36, %v1940_v28  ;;  %v5270_v54 = vrot.slane %v5264_v7, 1  ;;  %v2094_v62 = vadd.f32 %v2087_v27, %v2017_v23  ;;  %v13472_v14 = vld [vmem:[#allocation172_spill] sm:$0xff]  ;;  %v13473_v36 = vld [vmem:[#allocation175_spill] sm:$0xff]  ;;  %v13475_v7 = vld [vmem:[#allocation178_spill] sm:$0xff] }
 0x5cc   : > { %v2075_v29 = vadd.f32 %v13467_v4, %v1992_v34  ;;  %v2016_v46 = vadd.f32 %v13468_v60, %v1916_v24  ;;  %v5288_v33 = vstv %s10638_s23  ;;  %v2119_v58 = vadd.f32 %v13472_v14, %v2037_v3  ;;  %v13476_v23 = vld [vmem:[#allocation179_spill] sm:$0xff]  ;;  %v13483_v60 = vld [vmem:[#allocation185_spill] sm:$0xff]  ;;  %s10988_s23 = sld [smem:[#allocation6 + $0x23]] }
 0x5cd   : > { %5252 = vrot.lane.b32.xlu1 %v5249_v22, %s7692_s22  ;;  %5250 = vrot.lane.b32.xlu0 %v5247_v21, %s7692_s22  ;;  %v2015_v22 = vadd.f32 %v13469_v20, %v1915_v45  ;;  %v2055_v34 = vadd.f32 %v2050_v35, %v1966_v51  ;;  %v2054_v32 = vadd.f32 %v2048_v16, %v1965_v10 }
 0x5ce   : > { %5254 = vrot.lane.b32.xlu2 %v5248_v8, %s7692_s22  ;;  %v2144_v52 = vadd.f32 %v13473_v36, %v2056_v11  ;;  %v2074_v27 = vadd.f32 %v2069_v50, %v1991_v18  ;;  %v2073_v28 = vadd.f32 %v2067_v1, %v1990_v17  ;;  %v2169_v24 = vadd.f32 %v13475_v7, %v2075_v29  ;;  %v13477_v1 = vld [vmem:[#allocation180_spill] sm:$0xff]  ;;  %v13482_v29 = vld [vmem:[#allocation187_spill] sm:$0xff] }
 0x5cf   : > { %v10681_v19 = vpop.permute.xlu1 %4881  ;;  %v10683_v21 = vpop.permute.xlu0 %4879  ;;  %v5274_v45 = vsel %vm595_vm0, %v5271_v13, %v5273_v6  ;;  %v5272_v40 = vsel %vm595_vm0, %v5270_v54, %v5271_v13  ;;  %v5291_v35 = vmul.f32 %v10514_v63, %v5288_v33  ;;  %v5290_v16 = vmul.f32 %v10506_v56, %v5288_v33  ;;  %v13481_v13 = vld [vmem:[#allocation183_spill] sm:$0xff] }
 0x5d0   : > { %13470 = vst [vmem:[#allocation39_spill] sm:$0xff] %v10681_v19  ;;  %v10690_v8 = vpop.permute.xlu2 %4943  ;;  %v5289_v3 = vmul.f32 %v10510_v44, %v5288_v33  ;;  %v2093_v51 = vadd.f32 %v2088_v47, %v2016_v46  ;;  %v2092_v11 = vadd.f32 %v2086_v57, %v2015_v22  ;;  %v2118_v50 = vadd.f32 %v13476_v23, %v2036_v41  ;;  %v13484_v57 = vld [vmem:[#allocation186_spill] sm:$0xff]  ;;  %v13518_v19 = vld [vmem:[#allocation213_spill] sm:$0xff] }
 0x5d1   : > { %13471 = vst [vmem:[#allocation41_spill] sm:$0xff] %v10683_v21  ;;  %v2117_v53 = vadd.f32 %v13477_v1, %v2035_v55  ;;  %v2194_v10 = vadd.f32 %v13478_v43, %v2094_v62  ;;  %v2219_v18 = vadd.f32 %v13479_v48, %v2119_v58  ;;  %v2143_v17 = vadd.f32 %v13480_v30, %v2055_v34  ;;  %v13485_v33 = vld [vmem:[#allocation190_spill] sm:$0xff]  ;;  %v13486_v58 = vld [vmem:[#allocation188_spill] sm:$0xff]  ;;  %v13495_v48 = vld [vmem:[#allocation195_spill] sm:$0xff] }
 0x5d2   : > { %13474 = vst [vmem:[#allocation42_spill] sm:$0xff] %v10690_v8  ;;  %v2142_v4 = vadd.f32 %v13481_v13, %v2054_v32  ;;  %v2244_v54 = vadd.f32 %v13482_v29, %v2144_v52  ;;  %v2168_v47 = vadd.f32 %v13483_v60, %v2074_v27  ;;  %v2167_v46 = vadd.f32 %v13484_v57, %v2073_v28  ;;  %v13487_v32 = vld [vmem:[#allocation189_spill] sm:$0xff]  ;;  %v13488_v52 = vld [vmem:[#allocation191_spill] sm:$0xff]  ;;  %v13496_v29 = vld [vmem:[#allocation196_spill] sm:$0xff] }
 0x5d3   : > { %v2500_v41 = vstv %s10669_s30  ;;  %v5298_v55 = vrot.slane %v5291_v35, 1  ;;  %v5296_v62 = vrot.slane %v5290_v16, 1  ;;  %v5295_v20 = vrot.slane %v5289_v3, 1  ;;  %v10729_v16 = vld [vmem:[%s7802_s9 + $0x28] sm:$0xff]  ;;  %v13497_v57 = vld [vmem:[#allocation197_spill] sm:$0xff]  ;;  %v13516_v21 = vld [vmem:[#allocation212_spill] sm:$0xff] }
 0x5d4   : > { %v5313_v22 = vstv %s10677_s10  ;;  %v2269_v14 = vadd.f32 %v13485_v33, %v2169_v24  ;;  %v2193_v34 = vadd.f32 %v13486_v58, %v2093_v51  ;;  %v2192_v36 = vadd.f32 %v13487_v32, %v2092_v11  ;;  %v13494_v11 = vld [vmem:[#allocation194_spill] sm:$0xff]  ;;  %v13498_v32 = vld [vmem:[#allocation199_spill] sm:$0xff]  ;;  %s11002_s30 = sld [smem:[#allocation6 + $0x6e]] }
 0x5d5   : > { %5277 = vrot.lane.b32.xlu1 %v5274_v45, %s7692_s22  ;;  %5275 = vrot.lane.b32.xlu0 %v5272_v40, %s7692_s22  ;;  %v2218_v27 = vadd.f32 %v13488_v52, %v2118_v50  ;;  %v13492_v40 = vld [vmem:[#allocation192_spill] sm:$0xff]  ;;  %v2503_v24 = vmul.f32 %v10729_v16, %v2500_v41  ;;  %v2508_v3 = vstv %s10688_s11  ;;  %v2243_v23 = vadd.f32 %v13494_v11, %v2143_v17  ;;  %s11009_s10 = sld [smem:[#allocation6 + $0x86]] }
 0x5d6   : > { %5279 = vrot.lane.b32.xlu2 %v5273_v6, %s7692_s22  ;;  %v13491_v6 = vld [vmem:[#allocation193_spill] sm:$0xff]  ;;  %v2217_v35 = vadd.f32 %v13492_v40, %v2117_v53  ;;  %v2516_v50 = vstv %s10693_s12  ;;  %v5316_v1 = vmul.f32 %v10514_v63, %v5313_v22  ;;  %v5315_v43 = vmul.f32 %v10506_v56, %v5313_v22  ;;  %v13500_v11 = vld [vmem:[#allocation200_spill] sm:$0xff]  ;;  %s11012_s11 = sld [smem:[#allocation6 + $0xb9]] }
 0x5d7   : > { %v10720_v28 = vpop.permute.xlu1 %4901  ;;  %v10722_v7 = vpop.permute.xlu0 %4899  ;;  %v2294_v45 = vadd.f32 %v13491_v6, %v2194_v10  ;;  %v2242_v30 = vadd.f32 %v13495_v48, %v2142_v4  ;;  %v5299_v10 = vsel %vm595_vm0, %v5296_v62, %v5298_v55  ;;  %v5297_v53 = vsel %vm595_vm0, %v5295_v20, %v5296_v62  ;;  %v13499_v6 = vld [vmem:[#allocation198_spill] sm:$0xff]  ;;  %v13501_v48 = vld [vmem:[#allocation201_spill] sm:$0xff]  ;;  %v13502_v20 = vld [vmem:[#allocation208_spill] sm:$0xff]  ;;  %s11037_s12 = sld [smem:[#allocation6 + $0x104]] }
 0x5d8   : > { %13489 = vst [vmem:[#allocation43_spill] sm:$0xff] %v10720_v28  ;;  %v10733_v51 = vpop.permute.xlu2 %4963  ;;  %v5314_v13 = vmul.f32 %v10510_v44, %v5313_v22  ;;  %v2319_v60 = vadd.f32 %v13496_v29, %v2219_v18  ;;  %v2268_v33 = vadd.f32 %v13497_v57, %v2168_v47  ;;  %v2511_v58 = vmul.f32 %v10729_v16, %v2508_v3  ;;  %v13503_v29 = vld [vmem:[#allocation202_spill] sm:$0xff]  ;;  %v13504_v57 = vld [vmem:[#allocation203_spill] sm:$0xff] }
 0x5d9   : > { %13490 = vst [vmem:[#allocation44_spill] sm:$0xff] %v10722_v7  ;;  %v2524_v17 = vstv %s10702_s18  ;;  %v2344_v52 = vadd.f32 %v13498_v32, %v2244_v54  ;;  %v2267_v40 = vadd.f32 %v13499_v6, %v2167_v46  ;;  %v2293_v7 = vadd.f32 %v13500_v11, %v2193_v34  ;;  %v13506_v32 = vld [vmem:[#allocation204_spill] sm:$0xff]  ;;  %v13509_v11 = vld [vmem:[#allocation206_spill] sm:$0xff]  ;;  %s11064_s18 = sld [smem:[#allocation6 + $0xd1]] }
 0x5da   : > { %13493 = vst [vmem:[#allocation46_spill] sm:$0xff] %v10733_v51  ;;  %v2519_v4 = vmul.f32 %v10729_v16, %v2516_v50  ;;  %v2292_v62 = vadd.f32 %v13501_v48, %v2192_v36  ;;  %v2419_v22 = vadd.f32 %v13502_v20, %v2319_v60  ;;  %v5323_v18 = vrot.slane %v5316_v1, 1  ;;  %v13505_v60 = vld [vmem:[#allocation205_spill] sm:$0xff]  ;;  %v13510_v20 = vld [vmem:[#allocation207_spill] sm:$0xff] }
 0x5db   : > { %v5321_v47 = vrot.slane %v5315_v43, 1  ;;  %v2369_v54 = vadd.f32 %v13503_v29, %v2269_v14  ;;  %v2318_v46 = vadd.f32 %v13504_v57, %v2218_v27  ;;  %v10758_v34 = vmul.f32 %v10729_v16, %v2524_v17  ;;  %v10778_v57 = vld [vmem:[%s7802_s9 + $0x18] sm:$0xff] }
 0x5dc   : > { %v5320_v36 = vrot.slane %v5314_v13, 1  ;;  %v2317_v6 = vadd.f32 %v13506_v32, %v2217_v35  ;;  %v5338_v27 = vstv %s10724_s21  ;;  %v2343_v48 = vadd.f32 %v13509_v11, %v2243_v23  ;;  %v13511_v13 = vld [vmem:[#allocation211_spill] sm:$0xff]  ;;  %v13513_v11 = vld [vmem:[#allocation209_spill] sm:$0xff]  ;;  %s11115_s21 = sld [smem:[#allocation6 + $0x11c]] }
 0x5dd   : > { %5302 = vrot.lane.b32.xlu1 %v5299_v10, %s7693_s19  ;;  %5300 = vrot.lane.b32.xlu0 %v5297_v53, %s7693_s19  ;;  %v2394_v10 = vadd.f32 %v13505_v60, %v2294_v45  ;;  %v10766_v53 = vld [vmem:[%s7802_s9 + $0x20] sm:$0xff]  ;;  %v2444_v29 = vadd.f32 %v13511_v13, %v2344_v52  ;;  %v2501_v45 = vmul.f32 %v10778_v57, %v2500_v41 }
 0x5de   : > { %5304 = vrot.lane.b32.xlu2 %v5298_v55, %s7693_s19  ;;  %v2502_v1 = vmul.f32 %v10766_v53, %v2500_v41  ;;  %v2342_v55 = vadd.f32 %v13510_v20, %v2242_v30  ;;  %v2506_v60 = vadd.f32 %v2503_v24, %v2419_v22  ;;  %v2510_v32 = vmul.f32 %v10766_v53, %v2508_v3  ;;  %v13514_v41 = vld [vmem:[#allocation210_spill] sm:$0xff] }
 0x5df   : > { %v10769_v14 = vpop.permute.xlu1 %4921  ;;  %v10771_v43 = vpop.permute.xlu0 %4919  ;;  %v5322_v51 = vsel %vm595_vm0, %v5320_v36, %v5321_v47  ;;  %v5341_v23 = vmul.f32 %v10514_v63, %v5338_v27  ;;  %v5340_v30 = vmul.f32 %v10506_v56, %v5338_v27  ;;  %v5339_v52 = vmul.f32 %v10510_v44, %v5338_v27  ;;  %v13517_v36 = vld [vmem:[#allocation215_spill] sm:$0xff] }
 0x5e0   : > { %13507 = vst [vmem:[#allocation45_spill] sm:$0xff] %v10769_v14  ;;  %v10781_v35 = vpop.permute.xlu2 %4983  ;;  %v2509_v14 = vmul.f32 %v10778_v57, %v2508_v3  ;;  %v2368_v20 = vadd.f32 %v13513_v11, %v2268_v33  ;;  %v2367_v13 = vadd.f32 %v13514_v41, %v2267_v40  ;;  %v2518_v24 = vmul.f32 %v10766_v53, %v2516_v50  ;;  %v13529_v11 = vld [vmem:[#allocation225_spill] sm:$0xff] }
 0x5e1   : > { %13508 = vst [vmem:[#allocation47_spill] sm:$0xff] %v10771_v43  ;;  %v5324_v43 = vsel %vm595_vm0, %v5321_v47, %v5323_v18  ;;  %v2517_v22 = vmul.f32 %v10778_v57, %v2516_v50  ;;  %v2514_v3 = vadd.f32 %v2511_v58, %v2444_v29  ;;  %v2393_v47 = vadd.f32 %v13516_v21, %v2293_v7  ;;  %v13520_v29 = vld [vmem:[#allocation217_spill] sm:$0xff]  ;;  %v13521_v7 = vld [vmem:[#allocation218_spill] sm:$0xff] }
 0x5e2   : > { %13512 = vst [vmem:[#allocation49_spill] sm:$0xff] %v10781_v35  ;;  %v13515_v35 = vld [vmem:[#allocation214_spill] sm:$0xff]  ;;  %v2418_v8 = vadd.f32 %v13517_v36, %v2318_v46  ;;  %v2392_v59 = vadd.f32 %v13518_v19, %v2292_v62  ;;  %v2417_v27 = vadd.f32 %v13519_v26, %v2317_v6  ;;  %v2526_v33 = vmul.f32 %v10766_v53, %v2524_v17 }
 0x5e3   : > { %v2469_v28 = vadd.f32 %v13515_v35, %v2369_v54  ;;  %v5348_v50 = vrot.slane %v5341_v23, 1  ;;  %v5346_v58 = vrot.slane %v5340_v30, 1  ;;  %v5345_v40 = vrot.slane %v5339_v52, 1  ;;  %v13522_v35 = vld [vmem:[#allocation219_spill] sm:$0xff]  ;;  %v13526_v30 = vld [vmem:[#allocation222_spill] sm:$0xff] }
 0x5e4   : > { %v5363_v54 = vstv %s10761_s24  ;;  %v2494_v21 = vadd.f32 %v13520_v29, %v2394_v10  ;;  %v2443_v46 = vadd.f32 %v13521_v7, %v2343_v48  ;;  %v2442_v19 = vadd.f32 %v13522_v35, %v2342_v55  ;;  %v13528_v48 = vld [vmem:[#allocation224_spill] sm:$0xff]  ;;  %s11160_s24 = sld [smem:[#allocation6 + $0x3d]] }
 0x5e5   : > { %5327 = vrot.lane.b32.xlu1 %v5324_v43, %s7693_s19  ;;  %5325 = vrot.lane.b32.xlu0 %v5322_v51, %s7693_s19  ;;  %v2525_v26 = vmul.f32 %v10778_v57, %v2524_v17  ;;  %v2522_v51 = vadd.f32 %v2519_v4, %v2469_v28  ;;  %v13525_v43 = vld [vmem:[#allocation221_spill] sm:$0xff]  ;;  %v2467_v52 = vadd.f32 %v13526_v30, %v2367_v13  ;;  %v13530_v13 = vld [vmem:[#allocation220_spill] sm:$0xff] }
 0x5e6   : > { %5329 = vrot.lane.b32.xlu2 %v5323_v18, %s7693_s19  ;;  %v2505_v18 = vadd.f32 %v2502_v1, %v2418_v8  ;;  %v2468_v23 = vadd.f32 %v13525_v43, %v2368_v20  ;;  %v2493_v55 = vadd.f32 %v13528_v48, %v2393_v47  ;;  %v2492_v17 = vadd.f32 %v13529_v11, %v2392_v59  ;;  %v13531_v59 = vld [vmem:[#allocation223_spill] sm:$0xff]  ;;  %v13532_v48 = vld [vmem:[#allocation226_spill] sm:$0xff] }
 0x5e7   : > { %v10808_v62 = vpop.permute.xlu1 %4941  ;;  %v10810_v6 = vpop.permute.xlu0 %4939  ;;  %v5366_v41 = vmul.f32 %v10514_v63, %v5363_v54  ;;  %v5365_v36 = vmul.f32 %v10506_v56, %v5363_v54  ;;  %v2504_v28 = vadd.f32 %v2501_v45, %v2417_v27  ;;  %v5349_v8 = vsel %vm595_vm0, %v5346_v58, %v5348_v50 }
 0x5e8   : > { %13523 = vst [vmem:[#allocation48_spill] sm:$0xff] %v10808_v62  ;;  %v10818_v10 = vpop.permute.xlu2 %5003  ;;  %v5347_v4 = vsel %vm595_vm0, %v5345_v40, %v5346_v58  ;;  %v5364_v1 = vmul.f32 %v10510_v44, %v5363_v54  ;;  %v2530_v20 = vadd.f32 %v10758_v34, %v2494_v21  ;;  %v2550_v29 = vadd.f32 %v13530_v13, %v2506_v60  ;;  %v13533_v60 = vld [vmem:[#allocation229_spill] sm:$0xff]  ;;  %v13537_v21 = vld [vmem:[#allocation230_spill] sm:$0xff] }
 0x5e9   : > { %13524 = vst [vmem:[#allocation50_spill] sm:$0xff] %v10810_v6  ;;  %v2513_v47 = vadd.f32 %v2510_v32, %v2443_v46  ;;  %v2512_v7 = vadd.f32 %v2509_v14, %v2442_v19  ;;  %v2570_v35 = vadd.f32 %v13531_v59, %v2514_v3  ;;  %v2521_v43 = vadd.f32 %v2518_v24, %v2468_v23  ;;  %v13534_v32 = vld [vmem:[#allocation227_spill] sm:$0xff]  ;;  %v13535_v24 = vld [vmem:[#allocation228_spill] sm:$0xff] }
 0x5ea   : > { %13527 = vst [vmem:[#allocation51_spill] sm:$0xff] %v10818_v10  ;;  %v2520_v30 = vadd.f32 %v2517_v22, %v2467_v52  ;;  %v2590_v11 = vadd.f32 %v13532_v48, %v2522_v51  ;;  %v2529_v45 = vadd.f32 %v2526_v33, %v2493_v55  ;;  %v2528_v27 = vadd.f32 %v2525_v26, %v2492_v17  ;;  %v13536_v33 = vld [vmem:[#allocation232_spill] sm:$0xff]  ;;  %v13538_v19 = vld [vmem:[#allocation231_spill] sm:$0xff]  ;;  %v13542_v17 = vld [vmem:[#allocation233_spill] sm:$0xff] }
 0x5eb   : > { %v5373_v34 = vrot.slane %v5366_v41, 1  ;;  %v5371_v58 = vrot.slane %v5365_v36, 1  ;;  %v2610_v14 = vadd.f32 %v13533_v60, %v2530_v20  ;;  %v2549_v3 = vadd.f32 %v13534_v32, %v2505_v18  ;;  %v13541_v18 = vld [vmem:[#allocation235_spill] sm:$0xff]  ;;  %v13546_v20 = vld [vmem:[#allocation237_spill] sm:$0xff]  ;;  %v13549_v32 = vld [vmem:[#allocation240_spill] sm:$0xff] }
 0x5ec   : > { %v2548_v22 = vadd.f32 %v13535_v24, %v2504_v28  ;;  %v5370_v40 = vrot.slane %v5364_v1, 1  ;;  %v2630_v54 = vadd.f32 %v13536_v33, %v2550_v29  ;;  %v2569_v46 = vadd.f32 %v13537_v21, %v2513_v47  ;;  %v13548_v60 = vld [vmem:[#allocation239_spill] sm:$0xff]  ;;  %v13550_v33 = vld [vmem:[#allocation241_spill] sm:$0xff]  ;;  %v13564_v6 = vld [vmem:[#allocation252_spill] sm:$0xff] }
 0x5ed   : > { %5352 = vrot.lane.b32.xlu1 %v5349_v8, %s7693_s19  ;;  %5350 = vrot.lane.b32.xlu0 %v5347_v4, %s7693_s19  ;;  %v2568_v26 = vadd.f32 %v13538_v19, %v2512_v7  ;;  %v5388_v52 = vstv %s10812_s25  ;;  %v2650_v55 = vadd.f32 %v13541_v18, %v2570_v35  ;;  %v2589_v41 = vadd.f32 %v13542_v17, %v2521_v43  ;;  %v13545_v4 = vld [vmem:[#allocation236_spill] sm:$0xff]  ;;  %v13551_v19 = vld [vmem:[#allocation242_spill] sm:$0xff]  ;;  %s11172_s25 = sld [smem:[#allocation6 + $0x28]] }
 0x5ee   : > { %5354 = vrot.lane.b32.xlu2 %v5348_v50, %s7693_s19  ;;  %v13543_v50 = vld [vmem:[#allocation234_spill] sm:$0xff]  ;;  %v2852_v28 = vstv %s10816_s26  ;;  %v2609_v1 = vadd.f32 %v13545_v4, %v2529_v45  ;;  %v2608_v13 = vadd.f32 %v13546_v20, %v2528_v27  ;;  %v2871_v29 = vstv %s10822_s27  ;;  %v13552_v17 = vld [vmem:[#allocation244_spill] sm:$0xff]  ;;  %v13554_v20 = vld [vmem:[#allocation245_spill] sm:$0xff]  ;;  %s11189_s26 = sld [smem:[#allocation6 + $0x73]] }
 0x5ef   : > { %v10846_v51 = vpop.permute.xlu1 %4961  ;;  %v10848_v23 = vpop.permute.xlu0 %4959  ;;  %v2588_v36 = vadd.f32 %v13543_v50, %v2520_v30  ;;  %v5374_v47 = vsel %vm595_vm0, %v5371_v58, %v5373_v34  ;;  %v5372_v7 = vsel %vm595_vm0, %v5370_v40, %v5371_v58  ;;  %v5391_v59 = vmul.f32 %v10514_v63, %v5388_v52  ;;  %v13547_v30 = vld [vmem:[#allocation238_spill] sm:$0xff]  ;;  %v13553_v50 = vld [vmem:[#allocation243_spill] sm:$0xff]  ;;  %s11195_s27 = sld [smem:[#allocation6 + $0x88]] }
 0x5f0   : > { %13539 = vst [vmem:[#allocation52_spill] sm:$0xff] %v10846_v51  ;;  %v10855_v8 = vpop.permute.xlu2 %5023  ;;  %v5390_v35 = vmul.f32 %v10506_v56, %v5388_v52  ;;  %v5389_v43 = vmul.f32 %v10510_v44, %v5388_v52  ;;  %v2670_v48 = vadd.f32 %v13547_v30, %v2590_v11  ;;  %v2629_v45 = vadd.f32 %v13548_v60, %v2549_v3  ;;  %v13555_v60 = vld [vmem:[#allocation246_spill] sm:$0xff] }
 0x5f1   : > { %13540 = vst [vmem:[#allocation53_spill] sm:$0xff] %v10848_v23  ;;  %v2628_v27 = vadd.f32 %v13549_v32, %v2548_v22  ;;  %v10871_v24 = vmul.f32 %v10729_v16, %v2852_v28  ;;  %v2690_v21 = vadd.f32 %v13550_v33, %v2610_v14  ;;  %v2649_v58 = vadd.f32 %v13551_v19, %v2569_v46 }
 0x5f2   : > { %13544 = vst [vmem:[#allocation54_spill] sm:$0xff] %v10855_v8  ;;  %v10876_v40 = vmul.f32 %v10729_v16, %v2871_v29  ;;  %v2890_v18 = vstv %s10833_s28  ;;  %v2710_v52 = vadd.f32 %v13552_v17, %v2630_v54  ;;  %v2648_v11 = vadd.f32 %v13553_v50, %v2568_v26  ;;  %s11198_s28 = sld [smem:[#allocation6 + $0xbe]] }
 0x5f3   : > { %v2854_v3 = vmul.f32 %v10766_v53, %v2852_v28  ;;  %v5398_v22 = vrot.slane %v5391_v59, 1  ;;  %v5396_v14 = vrot.slane %v5390_v35, 1  ;;  %v5395_v46 = vrot.slane %v5389_v43, 1  ;;  %v13559_v35 = vld [vmem:[#allocation248_spill] sm:$0xff] }
 0x5f4   : > { %v5413_v4 = vstv %s10841_s29  ;;  %v10887_v30 = vadd.f32 %v13554_v20, %v2589_v41  ;;  %v10890_v54 = vadd.f32 %v13555_v60, %v2588_v36  ;;  %v2862_v26 = vrot.slane %v10871_v24, 1  ;;  %s11220_s29 = sld [smem:[#allocation6 + $0x109]] }
 0x5f5   : > { %5377 = vrot.lane.b32.xlu1 %v5374_v47, %s7693_s19  ;;  %5375 = vrot.lane.b32.xlu0 %v5372_v7, %s7693_s19  ;;  %v10894_v32 = vmul.f32 %v10729_v16, %v2890_v18  ;;  %v2689_v43 = vadd.f32 %v13559_v35, %v2609_v1  ;;  %v2881_v41 = vrot.slane %v10876_v40, 1  ;;  %v2853_v36 = vmul.f32 %v10778_v57, %v2852_v28  ;;  %v13562_v35 = vld [vmem:[#allocation249_spill] sm:$0xff] }
 0x5f6   : > { %5379 = vrot.lane.b32.xlu2 %v5373_v34, %s7693_s19  ;;  %v13558_v34 = vld [vmem:[#allocation247_spill] sm:$0xff]  ;;  %v2909_v24 = vstv %s10860_s4  ;;  %v2860_v19 = vrot.slane %v2854_v3, 1  ;;  %v5416_v17 = vmul.f32 %v10514_v63, %v5413_v4  ;;  %v5415_v50 = vmul.f32 %v10506_v56, %v5413_v4  ;;  %s11244_s4 = sld [smem:[#allocation6 + $0xd3]] }
 0x5f7   : > { %v10896_v47 = vpop.permute.xlu1 %4981  ;;  %v10898_v7 = vpop.permute.xlu0 %4979  ;;  %v2730_v59 = vadd.f32 %v13558_v34, %v2650_v55  ;;  %v2873_v20 = vmul.f32 %v10766_v53, %v2871_v29  ;;  %v5399_v60 = vsel %vm595_vm0, %v5396_v14, %v5398_v22  ;;  %v5397_v55 = vsel %vm595_vm0, %v5395_v46, %v5396_v14  ;;  %v13561_v34 = vld [vmem:[#allocation250_spill] sm:$0xff] }
 0x5f8   : > { %13556 = vst [vmem:[#allocation55_spill] sm:$0xff] %v10896_v47  ;;  %v10906_v33 = vpop.permute.xlu2 %5043  ;;  %v5414_v1 = vmul.f32 %v10510_v44, %v5413_v4  ;;  %v2750_v40 = vadd.f32 %v13561_v34, %v2670_v48  ;;  %v2688_v28 = vadd.f32 %v13562_v35, %v2608_v13  ;;  %v2872_v3 = vmul.f32 %v10778_v57, %v2871_v29  ;;  %v13563_v47 = vld [vmem:[#allocation251_spill] sm:$0xff]  ;;  %v13565_v29 = vld [vmem:[#allocation253_spill] sm:$0xff] }
 0x5f9   : > { %13557 = vst [vmem:[#allocation56_spill] sm:$0xff] %v10898_v7  ;;  %v2709_v23 = vadd.f32 %v13563_v47, %v2629_v45  ;;  %v2859_v51 = vrot.slane %v2853_v36, 1  ;;  %v2892_v8 = vmul.f32 %v10766_v53, %v2890_v18  ;;  %v2708_v14 = vadd.f32 %v13564_v6, %v2628_v27  ;;  %v13566_v6 = vld [vmem:[#allocation256_spill] sm:$0xff] }
 0x5fa   : > { %13560 = vst [vmem:[#allocation58_spill] sm:$0xff] %v10906_v33  ;;  %v10921_v33 = vmul.f32 %v10729_v16, %v2909_v24  ;;  %v2891_v46 = vmul.f32 %v10778_v57, %v2890_v18  ;;  %v5423_v13 = vrot.slane %v5416_v17, 1  ;;  %v5421_v48 = vrot.slane %v5415_v50, 1 }
 0x5fb   : > { %v2770_v4 = vadd.f32 %v13565_v29, %v2690_v21  ;;  %v10930_v45 = vsel %vm595_vm0, %v2860_v19, %v2862_v26  ;;  %v2879_v47 = vrot.slane %v2873_v20, 1  ;;  %v5420_v36 = vrot.slane %v5414_v1, 1  ;;  %v13569_v21 = vld [vmem:[#allocation254_spill] sm:$0xff]  ;;  %v13571_v29 = vld [vmem:[#allocation255_spill] sm:$0xff] }
 0x5fc   : > { %v2790_v27 = vadd.f32 %v13566_v6, %v2710_v52  ;;  %v2878_v18 = vrot.slane %v2872_v3, 1  ;;  %v5438_v50 = vstv %s10900_s6  ;;  %v2861_v35 = vsel %vm595_vm0, %v2859_v51, %v2860_v19  ;;  %v13572_v52 = vld [vmem:[#allocation259_spill] sm:$0xff]  ;;  %s11285_s6 = sld [smem:[#allocation6 + $0x11e]] }
 0x5fd   : > { %5402 = vrot.lane.b32.xlu1 %v5399_v60, %s7694_s15  ;;  %5400 = vrot.lane.b32.xlu0 %v5397_v55, %s7694_s15  ;;  %v2911_v60 = vmul.f32 %v10766_v53, %v2909_v24  ;;  %v2729_v55 = vadd.f32 %v13569_v21, %v2649_v58  ;;  %v2898_v20 = vrot.slane %v2892_v8, 1  ;;  %v2728_v7 = vadd.f32 %v13571_v29, %v2648_v11  ;;  %v13574_v21 = vld [vmem:[#allocation258_spill] sm:$0xff] }
 0x5fe   : > { %5404 = vrot.lane.b32.xlu2 %v5398_v22, %s7694_s15  ;;  %v2910_v22 = vmul.f32 %v10778_v57, %v2909_v24  ;;  %v2810_v3 = vadd.f32 %v13572_v52, %v2730_v59  ;;  %v2897_v6 = vrot.slane %v2891_v46, 1  ;;  %v5424_v10 = vsel %vm595_vm0, %v5421_v48, %v5423_v13  ;;  %v13573_v59 = vld [vmem:[#allocation257_spill] sm:$0xff] }
 0x5ff   : > { %v10937_v34 = vpop.permute.xlu1 %5001  ;;  %v10939_v17 = vpop.permute.xlu0 %4999  ;;  %v5440_v58 = vmul.f32 %v10506_v56, %v5438_v50  ;;  %v5439_v51 = vmul.f32 %v10510_v44, %v5438_v50  ;;  %v2869_v8 = vadd.f32 %v2862_v26, %v2790_v27  ;;  %v2882_v24 = vsel %vm595_vm0, %v2879_v47, %v2881_v41 }
 0x600   : > { %13567 = vst [vmem:[#allocation57_spill] sm:$0xff] %v10937_v34  ;;  %v10945_v1 = vpop.permute.xlu2 %5063  ;;  %v5422_v34 = vsel %vm595_vm0, %v5420_v36, %v5421_v48  ;;  %v2880_v19 = vsel %vm595_vm0, %v2878_v18, %v2879_v47  ;;  %v2917_v11 = vrot.slane %v2911_v60, 1  ;;  %v2749_v46 = vadd.f32 %v13573_v59, %v10887_v30  ;;  %v13577_v59 = vld [vmem:[#allocation262_spill] sm:$0xff] }
 0x601   : > { %13568 = vst [vmem:[#allocation59_spill] sm:$0xff] %v10939_v17  ;;  %v5441_v17 = vmul.f32 %v10514_v63, %v5438_v50  ;;  %v2748_v29 = vadd.f32 %v13574_v21, %v10890_v54  ;;  %v13575_v48 = vrot.slane %v10894_v32, 1  ;;  %v2916_v52 = vrot.slane %v2910_v22, 1  ;;  %v13576_v50 = vld [vmem:[#allocation260_spill] sm:$0xff]  ;;  %v13578_v22 = vld [vmem:[#allocation261_spill] sm:$0xff] }
 0x602   : > { %13570 = vst [vmem:[#allocation60_spill] sm:$0xff] %v10945_v1  ;;  %v2888_v1 = vadd.f32 %v2881_v41, %v2810_v3  ;;  %v2769_v26 = vadd.f32 %v13576_v50, %v2689_v43  ;;  %v2919_v27 = vrot.slane %v10921_v33, 1  ;;  %v2899_v47 = vsel %vm595_vm0, %v2897_v6, %v2898_v20  ;;  %v13579_v3 = vld [vmem:[#allocation263_spill] sm:$0xff]  ;;  %v13584_v6 = vld [vmem:[#allocation266_spill] sm:$0xff]  ;;  %v13587_v50 = vld [vmem:[#allocation269_spill] sm:$0xff] }
 0x603   : > { %v2901_v36 = vsel %vm595_vm0, %v2898_v20, %v13575_v48  ;;  %v5448_v30 = vrot.slane %v5441_v17, 1  ;;  %v5446_v54 = vrot.slane %v5440_v58, 1  ;;  %v5445_v18 = vrot.slane %v5439_v51, 1 }
 0x604   : > { %v5463_v60 = vstv %s10933_s7  ;;  %v2830_v21 = vadd.f32 %v13577_v59, %v2750_v40  ;;  %v2768_v41 = vadd.f32 %v13578_v22, %v2688_v28  ;;  %v2789_v43 = vadd.f32 %v13579_v3, %v2709_v23  ;;  %v13586_v28 = vld [vmem:[#allocation267_spill] sm:$0xff]  ;;  %s11326_s7 = sld [smem:[#allocation6 + $0x3e]] }
 0x605   : > { %5427 = vrot.lane.b32.xlu1 %v5424_v10, %s7694_s15  ;;  %5425 = vrot.lane.b32.xlu0 %v5422_v34, %s7694_s15  ;;  %v2920_v33 = vsel %vm595_vm0, %v2917_v11, %v2919_v27  ;;  %v13582_v10 = vld [vmem:[#allocation265_spill] sm:$0xff]  ;;  %v13583_v34 = vld [vmem:[#allocation264_spill] sm:$0xff]  ;;  %v2809_v58 = vadd.f32 %v13584_v6, %v2729_v55  ;;  %v2918_v40 = vsel %vm595_vm0, %v2916_v52, %v2917_v11  ;;  %v13589_v52 = vrot.slane %v10894_v32, 1 }
 0x606   : > { %5429 = vrot.lane.b32.xlu2 %v5423_v13, %s7694_s15  ;;  %v2850_v13 = vadd.f32 %v13582_v10, %v2770_v4  ;;  %v2788_v17 = vadd.f32 %v13583_v34, %v2708_v14  ;;  %v2808_v23 = vadd.f32 %v13586_v28, %v2728_v7  ;;  %v2829_v59 = vadd.f32 %v13587_v50, %v2749_v46  ;;  %v13590_v46 = vld [vmem:[#allocation272_spill] sm:$0xff]  ;;  %v13591_v6 = vld [vmem:[#allocation273_spill] sm:$0xff] }
 0x607   : > { %v10974_v48 = vpop.permute.xlu1 %5021  ;;  %v10976_v20 = vpop.permute.xlu0 %5019  ;;  %v5466_v22 = vmul.f32 %v10514_v63, %v5463_v60  ;;  %v5465_v3 = vmul.f32 %v10506_v56, %v5463_v60  ;;  %v5449_v14 = vsel %vm595_vm0, %v5446_v54, %v5448_v30  ;;  %v5447_v55 = vsel %vm595_vm0, %v5445_v18, %v5446_v54  ;;  %v13593_v54 = vld [vmem:[#allocation271_spill] sm:$0xff] }
 0x608   : > { %13580 = vst [vmem:[#allocation61_spill] sm:$0xff] %v10974_v48  ;;  %v10984_v51 = vpop.permute.xlu2 %5083  ;;  %v5464_v11 = vmul.f32 %v10510_v44, %v5463_v60  ;;  %v2907_v10 = vadd.f32 %v13589_v52, %v2830_v21  ;;  %v2868_v7 = vadd.f32 %v10930_v45, %v2789_v43  ;;  %v2849_v34 = vadd.f32 %v13590_v46, %v2769_v26  ;;  %v13594_v21 = vld [vmem:[#allocation274_spill] sm:$0xff] }
 0x609   : > { %13581 = vst [vmem:[#allocation64_spill] sm:$0xff] %v10976_v20  ;;  %v13588_v20 = vld [vmem:[#allocation270_spill] sm:$0xff]  ;;  %v2848_v28 = vadd.f32 %v13591_v6, %v2768_v41  ;;  %v2926_v50 = vadd.f32 %v2919_v27, %v2850_v13  ;;  %v2867_v48 = vadd.f32 %v2861_v35, %v2788_v17  ;;  %v2976_v18 = vadd.f32 %v13593_v54, %v2888_v1  ;;  %v13595_v1 = vld [vmem:[#allocation275_spill] sm:$0xff]  ;;  %v13599_v17 = vld [vmem:[#allocation276_spill] sm:$0xff] }
 0x60a   : > { %13585 = vst [vmem:[#allocation67_spill] sm:$0xff] %v10984_v51  ;;  %v2828_v4 = vadd.f32 %v13588_v20, %v2748_v29  ;;  %v13592_v51 = vld [vmem:[#allocation268_spill] sm:$0xff]  ;;  %v2887_v29 = vadd.f32 %v2882_v24, %v2809_v58  ;;  %v2886_v20 = vadd.f32 %v2880_v19, %v2808_v23  ;;  %v5473_v32 = vrot.slane %v5466_v22, 1  ;;  %v13601_v23 = vld [vmem:[#allocation279_spill] sm:$0xff] }
 0x60b   : > { %v2951_v62 = vadd.f32 %v13592_v51, %v2869_v8  ;;  %v5471_v45 = vrot.slane %v5465_v3, 1  ;;  %v2906_v26 = vadd.f32 %v2901_v36, %v2829_v59  ;;  %v3001_v27 = vadd.f32 %v13594_v21, %v2907_v10  ;;  %v13604_v3 = vld [vmem:[#allocation281_spill] sm:$0xff]  ;;  %v13612_v21 = vld [vmem:[#allocation288_spill] sm:$0xff] }
 0x60c   : > { %v2905_v60 = vadd.f32 %v2899_v47, %v2828_v4  ;;  %v5470_v35 = vrot.slane %v5464_v11, 1  ;;  %v2925_v8 = vadd.f32 %v2920_v33, %v2849_v34  ;;  %v2924_v24 = vadd.f32 %v2918_v40, %v2848_v28  ;;  %v13598_v47 = vld [vmem:[#allocation277_spill] sm:$0xff]  ;;  %v13603_v33 = vld [vmem:[#allocation280_spill] sm:$0xff]  ;;  %v13606_v34 = vld [vmem:[#allocation282_spill] sm:$0xff] }
 0x60d   : > { %5452 = vrot.lane.b32.xlu1 %v5449_v14, %s7694_s15  ;;  %5450 = vrot.lane.b32.xlu0 %v5447_v55, %s7694_s15  ;;  %v2950_v19 = vadd.f32 %v13595_v1, %v2868_v7  ;;  %v5488_v36 = vstv %s10978_s8  ;;  %v3026_v13 = vadd.f32 %v13598_v47, %v2926_v50  ;;  %v2949_v58 = vadd.f32 %v13599_v17, %v2867_v48  ;;  %v13605_v7 = vld [vmem:[#allocation283_spill] sm:$0xff]  ;;  %v13607_v28 = vld [vmem:[#allocation284_spill] sm:$0xff]  ;;  %v13608_v50 = vld [vmem:[#allocation285_spill] sm:$0xff]  ;;  %s11353_s8 = sld [smem:[#allocation6 + $0x2d]] }
 0x60e   : > { %5454 = vrot.lane.b32.xlu2 %v5448_v30, %s7694_s15  ;;  %v13600_v30 = vld [vmem:[#allocation278_spill] sm:$0xff]  ;;  %v2974_v59 = vadd.f32 %v13601_v23, %v2886_v20  ;;  %v3051_v40 = vadd.f32 %v13603_v33, %v2951_v62  ;;  %v3000_v4 = vadd.f32 %v13604_v3, %v2906_v26  ;;  %v3328_v14 = vstv %s10988_s23  ;;  %v13615_v17 = vld [vmem:[#allocation291_spill] sm:$0xff]  ;;  %s11361_s23 = sld [smem:[#allocation6 + $0x89]] }
 0x60f   : > { %v11014_v41 = vpop.permute.xlu1 %5041  ;;  %v11016_v43 = vpop.permute.xlu0 %5039  ;;  %v2975_v51 = vadd.f32 %v13600_v30, %v2887_v29  ;;  %v5474_v55 = vsel %vm595_vm0, %v5471_v45, %v5473_v32  ;;  %v5472_v11 = vsel %vm595_vm0, %v5470_v35, %v5471_v45  ;;  %v5491_v52 = vmul.f32 %v10514_v63, %v5488_v36  ;;  %v13609_v20 = vld [vmem:[#allocation286_spill] sm:$0xff]  ;;  %v13610_v45 = vld [vmem:[#allocation287_spill] sm:$0xff]  ;;  %v13611_v63 = vld [vmem:[#allocation289_spill] sm:$0xff] }
 0x610   : > { %13596 = vst [vmem:[#allocation62_spill] sm:$0xff] %v11014_v41  ;;  %v11023_v22 = vpop.permute.xlu2 %5103  ;;  %v5490_v48 = vmul.f32 %v10506_v56, %v5488_v36  ;;  %v5489_v10 = vmul.f32 %v10510_v44, %v5488_v36  ;;  %v3076_v46 = vadd.f32 %v13605_v7, %v2976_v18  ;;  %v2999_v6 = vadd.f32 %v13606_v34, %v2905_v60  ;;  %v13613_v35 = vld [vmem:[#allocation290_spill] sm:$0xff]  ;;  %v13614_v36 = vld [vmem:[#allocation292_spill] sm:$0xff] }
 0x611   : > { %13597 = vst [vmem:[#allocation63_spill] sm:$0xff] %v11016_v43  ;;  %v3025_v62 = vadd.f32 %v13607_v28, %v2925_v8  ;;  %v3024_v29 = vadd.f32 %v13608_v50, %v2924_v24  ;;  %v3101_v54 = vadd.f32 %v13609_v20, %v3001_v27  ;;  %v3050_v26 = vadd.f32 %v13610_v45, %v2950_v19  ;;  %v13619_v3 = vld [vmem:[#allocation294_spill] sm:$0xff]  ;;  %v11092_v45 = vld [vmem:[%s7802_s9 + $0x30] sm:$0xff] }
 0x612   : > { %13602 = vst [vmem:[#allocation65_spill] sm:$0xff] %v11023_v22  ;;  %v11042_v56 = vmul.f32 %v10729_v16, %v3328_v14  ;;  %v3347_v44 = vstv %s11002_s30  ;;  %v3126_v18 = vadd.f32 %v13611_v63, %v3026_v13  ;;  %v3049_v60 = vadd.f32 %v13612_v21, %v2949_v58  ;;  %v11079_v7 = vld [vmem:[%s7802_s9 + $0x40] sm:$0xff]  ;;  %s11365_s30 = sld [smem:[#allocation6 + $0x78]] }
 0x613   : > { %v3075_v8 = vadd.f32 %v13613_v35, %v2975_v51  ;;  %v5498_v27 = vrot.slane %v5491_v52, 1  ;;  %v5496_v24 = vrot.slane %v5490_v48, 1  ;;  %v5495_v1 = vrot.slane %v5489_v10, 1  ;;  %v13621_v52 = vld [vmem:[#allocation295_spill] sm:$0xff]  ;;  %v13623_v63 = vld [vmem:[#allocation297_spill] sm:$0xff]  ;;  %v13632_v43 = vld [vmem:[#allocation302_spill] sm:$0xff] }
 0x614   : > { %v5513_v19 = vstv %s11009_s10  ;;  %v3151_v47 = vadd.f32 %v13614_v36, %v3051_v40  ;;  %v11054_v13 = vadd.f32 %v13615_v17, %v2974_v59  ;;  %v11057_v58 = vmul.f32 %v10729_v16, %v3347_v44  ;;  %v13624_v17 = vld [vmem:[#allocation298_spill] sm:$0xff]  ;;  %v13653_v22 = vld [vmem:[#allocation321_spill] sm:$0xff]  ;;  %s11376_s10 = sld [smem:[#allocation6 + $0xc3]] }
 0x615   : > { %5477 = vrot.lane.b32.xlu1 %v5474_v55, %s7694_s15  ;;  %5475 = vrot.lane.b32.xlu0 %v5472_v11, %s7694_s15  ;;  %v3366_v30 = vstv %s11012_s11  ;;  %v11070_v40 = vadd.f32 %v13619_v3, %v2999_v6  ;;  %v3338_v59 = vrot.slane %v11042_v56, 2  ;;  %v3330_v55 = vmul.f32 %v10766_v53, %v3328_v14  ;;  %s11393_s11 = sld [smem:[#allocation6 + $0x10e]] }
 0x616   : > { %5479 = vrot.lane.b32.xlu2 %v5473_v32, %s7694_s15  ;;  %v13618_v32 = vld [vmem:[#allocation293_spill] sm:$0xff]  ;;  %v3176_v48 = vadd.f32 %v13621_v52, %v3076_v46  ;;  %v3329_v10 = vmul.f32 %v10778_v57, %v3328_v14  ;;  %v5516_v34 = vmul.f32 %v11079_v7, %v5513_v19  ;;  %v11087_v28 = vmul.f32 %v10729_v16, %v3366_v30  ;;  %v13622_v14 = vld [vmem:[#allocation296_spill] sm:$0xff] }
 0x617   : > { %v11060_v51 = vpop.permute.xlu1 %5061  ;;  %v11062_v23 = vpop.permute.xlu0 %5059  ;;  %v11067_v33 = vadd.f32 %v13618_v32, %v3000_v4  ;;  %v11083_v4 = vld [vmem:[%s7802_s9 + $0x38] sm:$0xff]  ;;  %v5499_v50 = vsel %vm595_vm0, %v5496_v24, %v5498_v27  ;;  %v5497_v20 = vsel %vm595_vm0, %v5495_v1, %v5496_v24  ;;  %v5514_v46 = vmul.f32 %v11092_v45, %v5513_v19 }
 0x618   : > { %13616 = vst [vmem:[#allocation66_spill] sm:$0xff] %v11060_v51  ;;  %v11074_v11 = vpop.permute.xlu2 %5204  ;;  %v5515_v6 = vmul.f32 %v11083_v4, %v5513_v19  ;;  %v11096_v56 = vadd.f32 %v13622_v14, %v3025_v62  ;;  %v11099_v21 = vadd.f32 %v13623_v63, %v3024_v29  ;;  %v3357_v35 = vrot.slane %v11057_v58, 2  ;;  %v13625_v19 = vld [vmem:[#allocation299_spill] sm:$0xff]  ;;  %v13627_v63 = vld [vmem:[#allocation300_spill] sm:$0xff] }
 0x619   : > { %13617 = vst [vmem:[#allocation70_spill] sm:$0xff] %v11062_v23  ;;  %v3385_v36 = vstv %s11037_s12  ;;  %v3201_v32 = vadd.f32 %v13624_v17, %v3101_v54  ;;  %v3336_v3 = vrot.slane %v3330_v55, 2  ;;  %v3349_v52 = vmul.f32 %v10766_v53, %v3347_v44  ;;  %v13626_v55 = vld [vmem:[#allocation301_spill] sm:$0xff]  ;;  %v13630_v17 = vld [vmem:[#allocation304_spill] sm:$0xff]  ;;  %s11409_s12 = sld [smem:[#allocation6 + $0xd4]] }
 0x61a   : > { %13620 = vst [vmem:[#allocation68_spill] sm:$0xff] %v11074_v11  ;;  %v3348_v24 = vmul.f32 %v10778_v57, %v3347_v44  ;;  %v3335_v1 = vrot.slane %v3329_v10, 2  ;;  %v3368_v23 = vmul.f32 %v10766_v53, %v3366_v30  ;;  %v5523_v62 = vrot.slane %v5516_v34, 1 }
 0x61b   : > { %v5521_v29 = vrot.slane %v5515_v6, 1  ;;  %v3150_v58 = vadd.f32 %v13625_v19, %v3050_v26  ;;  %v11112_v54 = vmul.f32 %v10729_v16, %v3385_v36  ;;  %v5520_v44 = vrot.slane %v5514_v46, 1 }
 0x61c   : > { %v3226_v10 = vadd.f32 %v13626_v55, %v3126_v18  ;;  %v5538_v26 = vstv %s11064_s18  ;;  %v3251_v19 = vadd.f32 %v13630_v17, %v3151_v47  ;;  %v3339_v14 = vsel %vm1072_vm1, %v3336_v3, %v3338_v59  ;;  %v13633_v17 = vld [vmem:[#allocation307_spill] sm:$0xff]  ;;  %s11447_s18 = sld [smem:[#allocation6 + $0x11f]] }
 0x61d   : > { %5502 = vrot.lane.b32.xlu1 %v5499_v50, %s7695_s5  ;;  %5500 = vrot.lane.b32.xlu0 %v5497_v20, %s7695_s5  ;;  %v3149_v50 = vadd.f32 %v13627_v63, %v3049_v60  ;;  %v3367_v20 = vmul.f32 %v10778_v57, %v3366_v30  ;;  %v3355_v51 = vrot.slane %v3349_v52, 2  ;;  %v3175_v41 = vadd.f32 %v13632_v43, %v3075_v8 }
 0x61e   : > { %5504 = vrot.lane.b32.xlu2 %v5498_v27, %s7695_s5  ;;  %v3354_v27 = vrot.slane %v3348_v24, 2  ;;  %v3337_v18 = vsel %vm1072_vm1, %v3335_v1, %v3336_v3  ;;  %v3374_v60 = vrot.slane %v3368_v23, 2  ;;  %v5524_v30 = vsel %vm595_vm0, %v5521_v29, %v5523_v62  ;;  %v13634_v23 = vld [vmem:[#allocation303_spill] sm:$0xff] }
 0x61f   : > { %v11120_v34 = vpop.permute.xlu1 %5081  ;;  %v11122_v6 = vpop.permute.xlu0 %5079  ;;  %v5522_v55 = vsel %vm595_vm0, %v5520_v44, %v5521_v29  ;;  %v5541_v63 = vmul.f32 %v11079_v7, %v5538_v26  ;;  %v5539_v47 = vmul.f32 %v11092_v45, %v5538_v26  ;;  %v3276_v52 = vadd.f32 %v13633_v17, %v3176_v48  ;;  %v13635_v44 = vld [vmem:[#allocation305_spill] sm:$0xff] }
 0x620   : > { %13628 = vst [vmem:[#allocation71_spill] sm:$0xff] %v11120_v34  ;;  %v11127_v46 = vpop.permute.xlu2 %5229  ;;  %v3373_v24 = vrot.slane %v3367_v20, 2  ;;  %v3387_v34 = vmul.f32 %v10766_v53, %v3385_v36  ;;  %v3386_v43 = vmul.f32 %v10778_v57, %v3385_v36  ;;  %v3345_v8 = vadd.f32 %v3338_v59, %v3251_v19 }
 0x621   : > { %13629 = vst [vmem:[#allocation69_spill] sm:$0xff] %v11122_v6  ;;  %v5540_v6 = vmul.f32 %v11083_v4, %v5538_v26  ;;  %v3174_v3 = vadd.f32 %v13634_v23, %v11054_v13  ;;  %v3358_v1 = vsel %vm1072_vm1, %v3355_v51, %v3357_v35  ;;  %v3356_v29 = vsel %vm1072_vm1, %v3354_v27, %v3355_v51  ;;  %v13636_v26 = vld [vmem:[#allocation306_spill] sm:$0xff] }
 0x622   : > { %13631 = vst [vmem:[#allocation73_spill] sm:$0xff] %v11127_v46  ;;  %v3200_v46 = vadd.f32 %v13635_v44, %v11067_v33  ;;  %v3199_v48 = vadd.f32 %v13636_v26, %v11070_v40  ;;  %v3395_v20 = vrot.slane %v11112_v54, 2  ;;  %v13637_v17 = vrot.slane %v11087_v28, 2 }
 0x623   : > { %v5548_v13 = vrot.slane %v5541_v63, 1  ;;  %v5546_v51 = vrot.slane %v5540_v6, 1  ;;  %v5545_v59 = vrot.slane %v5539_v47, 1  ;;  %v5563_v19 = vstv %s11115_s21  ;;  %v13642_v6 = vld [vmem:[#allocation309_spill] sm:$0xff]  ;;  %v13643_v47 = vld [vmem:[#allocation311_spill] sm:$0xff]  ;;  %s11488_s21 = sld [smem:[#allocation6 + $0x3f]] }
 0x624   : > { %v3377_v36 = vsel %vm1072_vm1, %v3374_v60, %v13637_v17  ;;  %v3364_v33 = vadd.f32 %v3357_v35, %v3276_v52  ;;  %v3375_v27 = vsel %vm1072_vm1, %v3373_v24, %v3374_v60  ;;  %v3393_v40 = vrot.slane %v3387_v34, 2  ;;  %v13645_v34 = vld [vmem:[#allocation313_spill] sm:$0xff]  ;;  %v13646_v24 = vld [vmem:[#allocation312_spill] sm:$0xff] }
 0x625   : > { %5527 = vrot.lane.b32.xlu1 %v5524_v30, %s7695_s5  ;;  %5525 = vrot.lane.b32.xlu0 %v5522_v55, %s7695_s5  ;;  %v3392_v23 = vrot.slane %v3386_v43, 2  ;;  %v13640_v30 = vld [vmem:[#allocation310_spill] sm:$0xff]  ;;  %v13641_v55 = vld [vmem:[#allocation308_spill] sm:$0xff]  ;;  %v3224_v63 = vadd.f32 %v13642_v6, %v11099_v21  ;;  %v3250_v35 = vadd.f32 %v13643_v47, %v3150_v58  ;;  %v3326_v60 = vadd.f32 %v13645_v34, %v3226_v10  ;;  %v13649_v47 = vld [vmem:[#allocation317_spill] sm:$0xff] }
 0x626   : > { %5529 = vrot.lane.b32.xlu2 %v5523_v62, %s7695_s5  ;;  %v3301_v26 = vadd.f32 %v13640_v30, %v3201_v32  ;;  %v3225_v62 = vadd.f32 %v13641_v55, %v11096_v56  ;;  %v3249_v43 = vadd.f32 %v13646_v24, %v3149_v50  ;;  %v5566_v17 = vmul.f32 %v11079_v7, %v5563_v19  ;;  %v13647_v30 = vld [vmem:[#allocation314_spill] sm:$0xff]  ;;  %v13648_v55 = vld [vmem:[#allocation315_spill] sm:$0xff] }
 0x627   : > { %v11156_v54 = vpop.permute.xlu1 %5101  ;;  %v11158_v44 = vpop.permute.xlu0 %5099  ;;  %v5565_v32 = vmul.f32 %v11083_v4, %v5563_v19  ;;  %v5549_v56 = vsel %vm595_vm0, %v5546_v51, %v5548_v13  ;;  %v5547_v21 = vsel %vm595_vm0, %v5545_v59, %v5546_v51  ;;  %v5564_v58 = vmul.f32 %v11092_v45, %v5563_v19 }
 0x628   : > { %13638 = vst [vmem:[#allocation72_spill] sm:$0xff] %v11156_v54  ;;  %v11168_v52 = vpop.permute.xlu2 %5254  ;;  %v3274_v6 = vadd.f32 %v13648_v55, %v3174_v3  ;;  %v3300_v10 = vadd.f32 %v13649_v47, %v3200_v46  ;;  %v3396_v50 = vsel %vm1072_vm1, %v3393_v40, %v3395_v20  ;;  %v3394_v34 = vsel %vm1072_vm1, %v3392_v23, %v3393_v40  ;;  %v13651_v54 = vld [vmem:[#allocation318_spill] sm:$0xff]  ;;  %v13664_v47 = vld [vmem:[#allocation327_spill] sm:$0xff] }
 0x629   : > { %13639 = vst [vmem:[#allocation74_spill] sm:$0xff] %v11158_v44  ;;  %v3275_v44 = vadd.f32 %v13647_v30, %v3175_v41  ;;  %v13650_v24 = vrot.slane %v11087_v28, 2  ;;  %v3299_v11 = vadd.f32 %v13651_v54, %v3199_v48  ;;  %v13652_v41 = vld [vmem:[#allocation320_spill] sm:$0xff]  ;;  %v3324_v5 = vadd.f32 %v13653_v22, %v3224_v63  ;;  %v13663_v55 = vld [vmem:[#allocation326_spill] sm:$0xff] }
 0x62a   : > { %13644 = vst [vmem:[#allocation75_spill] sm:$0xff] %v11168_v52  ;;  %v3325_v30 = vadd.f32 %v13652_v41, %v3225_v62  ;;  %v3344_v51 = vadd.f32 %v3339_v14, %v3250_v35  ;;  %v3343_v59 = vadd.f32 %v3337_v18, %v3249_v43  ;;  %v5573_v46 = vrot.slane %v5566_v17, 1  ;;  %v13654_v28 = vld [vmem:[#allocation316_spill] sm:$0xff]  ;;  %v13655_v14 = vld [vmem:[#allocation319_spill] sm:$0xff] }
 0x62b   : > { %v3383_v52 = vadd.f32 %v13650_v24, %v3301_v26  ;;  %v5571_v3 = vrot.slane %v5565_v32, 1  ;;  %v3402_v19 = vadd.f32 %v3395_v20, %v3326_v60  ;;  %v3427_v40 = vadd.f32 %v13654_v28, %v3345_v8  ;;  %v13658_v8 = vld [vmem:[#allocation322_spill] sm:$0xff]  ;;  %v13659_v60 = vld [vmem:[#allocation323_spill] sm:$0xff]  ;;  %v13666_v24 = vld [vmem:[#allocation329_spill] sm:$0xff] }
 0x62c   : > { %v3363_v23 = vadd.f32 %v3358_v1, %v3275_v44  ;;  %v5570_v48 = vrot.slane %v5564_v58, 1  ;;  %v3362_v22 = vadd.f32 %v3356_v29, %v3274_v6  ;;  %v3452_v18 = vadd.f32 %v13655_v14, %v3364_v33  ;;  %v13660_v29 = vld [vmem:[#allocation324_spill] sm:$0xff]  ;;  %v13669_v28 = vld [vmem:[#allocation334_spill] sm:$0xff] }
 0x62d   : > { %5552 = vrot.lane.b32.xlu1 %v5549_v56, %s7695_s5  ;;  %5550 = vrot.lane.b32.xlu0 %v5547_v21, %s7695_s5  ;;  %v3382_v54 = vadd.f32 %v3377_v36, %v3300_v10  ;;  %v5664_v20 = vstv %s11160_s24  ;;  %v3381_v63 = vadd.f32 %v3375_v27, %v3299_v11  ;;  %v3477_v1 = vadd.f32 %v13658_v8, %v3383_v52  ;;  %v13661_v52 = vld [vmem:[#allocation325_spill] sm:$0xff]  ;;  %v13662_v21 = vld [vmem:[#allocation328_spill] sm:$0xff]  ;;  %s11525_s24 = sld [smem:[#allocation6 + $0x8a]] }
 0x62e   : > { %5554 = vrot.lane.b32.xlu2 %v5548_v13, %s7695_s5  ;;  %v3401_v44 = vadd.f32 %v3396_v50, %v3325_v30  ;;  %v3400_v13 = vadd.f32 %v3394_v34, %v3324_v5  ;;  %v3426_v43 = vadd.f32 %v13659_v60, %v3344_v51  ;;  %v3425_v17 = vadd.f32 %v13660_v29, %v3343_v59  ;;  %v13665_v50 = vld [vmem:[#allocation331_spill] sm:$0xff]  ;;  %v13667_v30 = vld [vmem:[#allocation330_spill] sm:$0xff]  ;;  %v13668_v59 = vld [vmem:[#allocation332_spill] sm:$0xff] }
 0x62f   : > { %v11200_v26 = vpop.permute.xlu1 %5202  ;;  %v11202_v62 = vpop.permute.xlu0 %5200  ;;  %v3804_v33 = vstv %s11172_s25  ;;  %v5574_v36 = vsel %vm595_vm0, %v5571_v3, %v5573_v46  ;;  %v5572_v32 = vsel %vm595_vm0, %v5570_v48, %v5571_v3  ;;  %v5667_v56 = vmul.f32 %v11079_v7, %v5664_v20  ;;  %v13670_v48 = vld [vmem:[#allocation333_spill] sm:$0xff]  ;;  %v13673_v60 = vld [vmem:[#allocation336_spill] sm:$0xff]  ;;  %s11539_s25 = sld [smem:[#allocation6 + $0x32]] }
 0x630   : > { %13656 = vst [vmem:[#allocation77_spill] sm:$0xff] %v11200_v26  ;;  %v11206_v35 = vpop.permute.xlu2 %5279  ;;  %v5666_v11 = vmul.f32 %v11083_v4, %v5664_v20  ;;  %v5665_v27 = vmul.f32 %v11092_v45, %v5664_v20  ;;  %v3502_v5 = vadd.f32 %v13661_v52, %v3402_v19  ;;  %v3527_v58 = vadd.f32 %v13662_v21, %v3427_v40 }
 0x631   : > { %13657 = vst [vmem:[#allocation78_spill] sm:$0xff] %v11202_v62  ;;  %v3451_v6 = vadd.f32 %v13663_v55, %v3363_v23  ;;  %v3450_v10 = vadd.f32 %v13664_v47, %v3362_v22  ;;  %v3552_v34 = vadd.f32 %v13665_v50, %v3452_v18  ;;  %v3476_v41 = vadd.f32 %v13666_v24, %v3382_v54 }
 0x632   : > { %v3475_v51 = vadd.f32 %v13667_v30, %v3381_v63  ;;  %v3501_v3 = vadd.f32 %v13668_v59, %v3401_v44  ;;  %v3577_v19 = vadd.f32 %v13669_v28, %v3477_v1  ;;  %v3500_v40 = vadd.f32 %v13670_v48, %v3400_v13  ;;  %v13671_v63 = vld [vmem:[#allocation337_spill] sm:$0xff]  ;;  %v13672_v44 = vld [vmem:[#allocation335_spill] sm:$0xff]  ;;  %v13681_v28 = vld [vmem:[#allocation342_spill] sm:$0xff] }
 0x633   : > { %v11229_v23 = vmul.f32 %v10729_v16, %v3804_v33  ;;  %v3823_v22 = vstv %s11189_s26  ;;  %v5674_v14 = vrot.slane %v5667_v56, 2  ;;  %v5672_v18 = vrot.slane %v5666_v11, 2  ;;  %v13678_v11 = vld [vmem:[#allocation339_spill] sm:$0xff]  ;;  %v13680_v30 = vld [vmem:[#allocation341_spill] sm:$0xff]  ;;  %s11548_s26 = sld [smem:[#allocation6 + $0x7d]] }
 0x634   : > { %v5671_v54 = vrot.slane %v5665_v27, 2  ;;  %v5689_v20 = vstv %s11195_s27  ;;  %v3602_v8 = vadd.f32 %v13671_v63, %v3502_v5  ;;  %v3526_v1 = vadd.f32 %v13672_v44, %v3426_v43  ;;  %v13682_v44 = vld [vmem:[#allocation343_spill] sm:$0xff]  ;;  %s11552_s27 = sld [smem:[#allocation6 + $0xc8]] }
 0x635   : > { %5577 = vrot.lane.b32.xlu1 %v5574_v36, %s7695_s5  ;;  %5575 = vrot.lane.b32.xlu0 %v5572_v32, %s7695_s5  ;;  %v3525_v13 = vadd.f32 %v13673_v60, %v3425_v17  ;;  %v3842_v29 = vstv %s11198_s28  ;;  %v13676_v36 = vld [vmem:[#allocation340_spill] sm:$0xff]  ;;  %v13677_v32 = vld [vmem:[#allocation338_spill] sm:$0xff]  ;;  %v3550_v27 = vadd.f32 %v13678_v11, %v3450_v10  ;;  %v11250_v5 = vmul.f32 %v10729_v16, %v3823_v22  ;;  %v13684_v11 = vld [vmem:[#allocation345_spill] sm:$0xff]  ;;  %s11557_s28 = sld [smem:[#allocation6 + $0x113]] }
 0x636   : > { %5579 = vrot.lane.b32.xlu2 %v5573_v46, %s7695_s5  ;;  %v3627_v46 = vadd.f32 %v13676_v36, %v3527_v58  ;;  %v3551_v56 = vadd.f32 %v13677_v32, %v3451_v6  ;;  %v3814_v17 = vrot.slane %v11229_v23, 3  ;;  %v3806_v55 = vmul.f32 %v10766_v53, %v3804_v33  ;;  %v13683_v36 = vld [vmem:[#allocation344_spill] sm:$0xff] }
 0x637   : > { %v11240_v52 = vpop.permute.xlu1 %5227  ;;  %v11242_v21 = vpop.permute.xlu0 %5225  ;;  %v5692_v47 = vmul.f32 %v11079_v7, %v5689_v20  ;;  %v5691_v50 = vmul.f32 %v11083_v4, %v5689_v20  ;;  %v11259_v24 = vmul.f32 %v10729_v16, %v3842_v29  ;;  %v5675_v58 = vsel %vm1072_vm1, %v5672_v18, %v5674_v14 }
 0x638   : > { %13674 = vst [vmem:[#allocation80_spill] sm:$0xff] %v11240_v52  ;;  %v11252_v43 = vpop.permute.xlu2 %5304  ;;  %v5673_v6 = vsel %vm1072_vm1, %v5671_v54, %v5672_v18  ;;  %v5690_v10 = vmul.f32 %v11092_v45, %v5689_v20  ;;  %v3576_v59 = vadd.f32 %v13680_v30, %v3476_v41  ;;  %v3575_v48 = vadd.f32 %v13681_v28, %v3475_v51  ;;  %v13685_v51 = vld [vmem:[#allocation346_spill] sm:$0xff] }
 0x639   : > { %13675 = vst [vmem:[#allocation81_spill] sm:$0xff] %v11242_v21  ;;  %v3861_v23 = vstv %s11220_s29  ;;  %v3805_v63 = vmul.f32 %v10778_v57, %v3804_v33  ;;  %v3652_v60 = vadd.f32 %v13682_v44, %v3552_v34  ;;  %v11270_v32 = vadd.f32 %v13683_v36, %v3501_v3  ;;  %v13690_v44 = vld [vmem:[#allocation348_spill] sm:$0xff]  ;;  %s11571_s29 = sld [smem:[#allocation6 + $0xd5]] }
 0x63a   : > { %13679 = vst [vmem:[#allocation76_spill] sm:$0xff] %v11252_v43  ;;  %v11273_v21 = vadd.f32 %v13684_v11, %v3500_v40  ;;  %v3833_v52 = vrot.slane %v11250_v5, 3  ;;  %v3812_v18 = vrot.slane %v3806_v55, 3  ;;  %v3825_v54 = vmul.f32 %v10766_v53, %v3823_v22  ;;  %v13686_v5 = vld [vmem:[#allocation347_spill] sm:$0xff]  ;;  %v13692_v11 = vld [vmem:[#allocation352_spill] sm:$0xff] }
 0x63b   : > { %v5699_v41 = vrot.slane %v5692_v47, 2  ;;  %v5697_v33 = vrot.slane %v5691_v50, 2  ;;  %v3677_v34 = vadd.f32 %v13685_v51, %v3577_v19  ;;  %v11282_v20 = vmul.f32 %v10729_v16, %v3861_v23  ;;  %v13689_v50 = vld [vmem:[#allocation349_spill] sm:$0xff] }
 0x63c   : > { %v5696_v40 = vrot.slane %v5690_v10, 2  ;;  %v3626_v55 = vadd.f32 %v13686_v5, %v3526_v1  ;;  %v3811_v30 = vrot.slane %v3805_v63, 3  ;;  %v5714_v19 = vstv %s11244_s4  ;;  %s11603_s4 = sld [smem:[#allocation6 + $0x120]] }
 0x63d   : > { %5678 = vrot.lane.b32.xlu1 %v5675_v58, %s7692_s22  ;;  %5676 = vrot.lane.b32.xlu0 %v5673_v6, %s7692_s22  ;;  %v3824_v58 = vmul.f32 %v10778_v57, %v3823_v22  ;;  %v3702_v28 = vadd.f32 %v13689_v50, %v3602_v8  ;;  %v3625_v16 = vadd.f32 %v13690_v44, %v3525_v13  ;;  %v3831_v22 = vrot.slane %v3825_v54, 3  ;;  %v13693_v50 = vld [vmem:[#allocation350_spill] sm:$0xff] }
 0x63e   : > { %5680 = vrot.lane.b32.xlu2 %v5674_v14, %s7692_s22  ;;  %v3844_v36 = vmul.f32 %v10766_v53, %v3842_v29  ;;  %v3843_v14 = vmul.f32 %v10778_v57, %v3842_v29  ;;  %v3727_v1 = vadd.f32 %v13692_v11, %v3627_v46  ;;  %v3815_v63 = vsel %vm1549_vm2, %v3812_v18, %v3814_v17  ;;  %v13694_v11 = vld [vmem:[#allocation351_spill] sm:$0xff] }
 0x63f   : > { %v11289_v6 = vpop.permute.xlu1 %5252  ;;  %v11291_v47 = vpop.permute.xlu0 %5250  ;;  %v5700_v51 = vsel %vm1072_vm1, %v5697_v33, %v5699_v41  ;;  %v5698_v5 = vsel %vm1072_vm1, %v5696_v40, %v5697_v33  ;;  %v5717_v3 = vmul.f32 %v11079_v7, %v5714_v19  ;;  %v5716_v8 = vmul.f32 %v11083_v4, %v5714_v19 }
 0x640   : > { %13687 = vst [vmem:[#allocation79_spill] sm:$0xff] %v11289_v6  ;;  %v11298_v10 = vpop.permute.xlu2 %5329  ;;  %v5715_v13 = vmul.f32 %v11092_v45, %v5714_v19  ;;  %v3651_v44 = vadd.f32 %v13693_v50, %v3551_v56  ;;  %v3813_v29 = vsel %vm1549_vm2, %v3811_v30, %v3812_v18  ;;  %v3863_v46 = vmul.f32 %v10766_v53, %v3861_v23  ;;  %v13695_v6 = vld [vmem:[#allocation355_spill] sm:$0xff] }
 0x641   : > { %13688 = vst [vmem:[#allocation82_spill] sm:$0xff] %v11291_v47  ;;  %v3830_v47 = vrot.slane %v3824_v58, 3  ;;  %v3650_v54 = vadd.f32 %v13694_v11, %v3550_v27  ;;  %v3752_v62 = vadd.f32 %v13695_v6, %v3652_v60  ;;  %v3850_v26 = vrot.slane %v3844_v36, 3  ;;  %v13696_v60 = vld [vmem:[#allocation353_spill] sm:$0xff]  ;;  %v13697_v58 = vld [vmem:[#allocation354_spill] sm:$0xff] }
 0x642   : > { %13691 = vst [vmem:[#allocation85_spill] sm:$0xff] %v11298_v10  ;;  %v3849_v33 = vrot.slane %v3843_v14, 3  ;;  %v3821_v40 = vadd.f32 %v3814_v17, %v3727_v1  ;;  %v3871_v10 = vrot.slane %v11282_v20, 3  ;;  %v3834_v43 = vsel %vm1549_vm2, %v3831_v22, %v3833_v52  ;;  %v13706_v11 = vld [vmem:[#allocation357_spill] sm:$0xff] }
 0x643   : > { %v3862_v19 = vmul.f32 %v10778_v57, %v3861_v23  ;;  %v5724_v53 = vrot.slane %v5717_v3, 2  ;;  %v5722_v56 = vrot.slane %v5716_v8, 2  ;;  %v5721_v27 = vrot.slane %v5715_v13, 2  ;;  %v13700_v23 = vld [vmem:[#allocation358_spill] sm:$0xff]  ;;  %v13704_v13 = vld [vmem:[#allocation360_spill] sm:$0xff] }
 0x644   : > { %v5739_v18 = vstv %s11285_s6  ;;  %v3676_v30 = vadd.f32 %v13696_v60, %v3576_v59  ;;  %v3675_v17 = vadd.f32 %v13697_v58, %v3575_v48  ;;  %v3832_v20 = vsel %vm1549_vm2, %v3830_v47, %v3831_v22  ;;  %v13703_v48 = vld [vmem:[#allocation359_spill] sm:$0xff]  ;;  %v13708_v58 = vld [vmem:[#allocation362_spill] sm:$0xff]  ;;  %s11657_s6 = sld [smem:[#allocation6 + $0x40]] }
 0x645   : > { %5703 = vrot.lane.b32.xlu1 %v5700_v51, %s7692_s22  ;;  %5701 = vrot.lane.b32.xlu0 %v5698_v5, %s7692_s22  ;;  %v3869_v6 = vrot.slane %v3863_v46, 3  ;;  %v3777_v14 = vadd.f32 %v13700_v23, %v3677_v34  ;;  %v13701_v3 = vrot.slane %v11259_v24, 3  ;;  %v3851_v59 = vsel %vm1549_vm2, %v3849_v33, %v3850_v26  ;;  %v13705_v46 = vld [vmem:[#allocation356_spill] sm:$0xff] }
 0x646   : > { %5705 = vrot.lane.b32.xlu2 %v5699_v41, %s7692_s22  ;;  %v3840_v41 = vadd.f32 %v3833_v52, %v3752_v62  ;;  %v3726_v47 = vadd.f32 %v13703_v48, %v3626_v55  ;;  %v3868_v22 = vrot.slane %v3862_v19, 3  ;;  %v5742_v5 = vmul.f32 %v11079_v7, %v5739_v18  ;;  %v13707_v55 = vld [vmem:[#allocation361_spill] sm:$0xff] }
 0x647   : > { %v11322_v36 = vpop.permute.xlu1 %5277  ;;  %v11324_v57 = vpop.permute.xlu0 %5275  ;;  %v3853_v1 = vsel %vm1549_vm2, %v3850_v26, %v13701_v3  ;;  %v5741_v8 = vmul.f32 %v11083_v4, %v5739_v18  ;;  %v3725_v50 = vadd.f32 %v13704_v13, %v3625_v16  ;;  %v5725_v34 = vsel %vm1072_vm1, %v5722_v56, %v5724_v53  ;;  %v13709_v3 = vld [vmem:[#allocation363_spill] sm:$0xff]  ;;  %v13710_v48 = vld [vmem:[#allocation365_spill] sm:$0xff] }
 0x648   : > { %13698 = vst [vmem:[#allocation83_spill] sm:$0xff] %v11322_v36  ;;  %v11333_v51 = vpop.permute.xlu2 %5354  ;;  %v5723_v62 = vsel %vm1072_vm1, %v5721_v27, %v5722_v56  ;;  %v5740_v52 = vmul.f32 %v11092_v45, %v5739_v18  ;;  %v3701_v26 = vadd.f32 %v13705_v46, %v11270_v32  ;;  %v3700_v33 = vadd.f32 %v13706_v11, %v11273_v21  ;;  %v13712_v18 = vld [vmem:[#allocation366_spill] sm:$0xff]  ;;  %v13713_v46 = vld [vmem:[#allocation368_spill] sm:$0xff]  ;;  %v13715_v11 = vld [vmem:[#allocation369_spill] sm:$0xff] }
 0x649   : > { %13699 = vst [vmem:[#allocation84_spill] sm:$0xff] %v11324_v57  ;;  %v3802_v19 = vadd.f32 %v13707_v55, %v3702_v28  ;;  %v3872_v60 = vsel %vm1549_vm2, %v3869_v6, %v3871_v10  ;;  %v3751_v23 = vadd.f32 %v13708_v58, %v3651_v44  ;;  %v3750_v16 = vadd.f32 %v13709_v3, %v3650_v54  ;;  %v13721_v58 = vld [vmem:[#allocation371_spill] sm:$0xff]  ;;  %v13722_v3 = vld [vmem:[#allocation372_spill] sm:$0xff] }
 0x64a   : > { %13702 = vst [vmem:[#allocation86_spill] sm:$0xff] %v11333_v51  ;;  %v3776_v13 = vadd.f32 %v13710_v48, %v3676_v30  ;;  %v13711_v56 = vrot.slane %v11259_v24, 3  ;;  %v3775_v32 = vadd.f32 %v13712_v18, %v3675_v17  ;;  %v3801_v51 = vadd.f32 %v13713_v46, %v3701_v26  ;;  %v13724_v48 = vld [vmem:[#allocation374_spill] sm:$0xff]  ;;  %v13756_v57 = vld [vmem:[#allocation399_spill] sm:$0xff] }
 0x64b   : > { %v5749_v21 = vrot.slane %v5742_v5, 2  ;;  %v5747_v28 = vrot.slane %v5741_v8, 2  ;;  %v3820_v44 = vadd.f32 %v3815_v63, %v3726_v47  ;;  %v3819_v54 = vadd.f32 %v3813_v29, %v3725_v50  ;;  %v13718_v29 = vld [vmem:[#allocation367_spill] sm:$0xff]  ;;  %v13719_v50 = vld [vmem:[#allocation370_spill] sm:$0xff] }
 0x64c   : > { %v3859_v27 = vadd.f32 %v13711_v56, %v3777_v14  ;;  %v3870_v30 = vsel %vm1549_vm2, %v3868_v22, %v3869_v6  ;;  %v5746_v24 = vrot.slane %v5740_v52, 2  ;;  %v13714_v14 = vld [vmem:[#allocation364_spill] sm:$0xff]  ;;  %v3800_v26 = vadd.f32 %v13715_v11, %v3700_v33  ;;  %v13725_v56 = vld [vmem:[#allocation375_spill] sm:$0xff] }
 0x64d   : > { %5728 = vrot.lane.b32.xlu1 %v5725_v34, %s7692_s22  ;;  %5726 = vrot.lane.b32.xlu0 %v5723_v62, %s7692_s22  ;;  %v3903_v17 = vadd.f32 %v13714_v14, %v3821_v40  ;;  %v3878_v55 = vadd.f32 %v3871_v10, %v3802_v19  ;;  %v5764_v63 = vstv %s11326_s7  ;;  %v3928_v47 = vadd.f32 %v13718_v29, %v3840_v41  ;;  %v13728_v14 = vld [vmem:[#allocation378_spill] sm:$0xff]  ;;  %s11663_s7 = sld [smem:[#allocation6 + $0x37]] }
 0x64e   : > { %5730 = vrot.lane.b32.xlu2 %v5724_v53, %s7692_s22  ;;  %v3839_v6 = vadd.f32 %v3834_v43, %v3751_v23  ;;  %v3838_v22 = vadd.f32 %v3832_v20, %v3750_v16  ;;  %v3858_v53 = vadd.f32 %v3853_v1, %v3776_v13  ;;  %v3953_v62 = vadd.f32 %v13719_v50, %v3859_v27  ;;  %v13720_v20 = vld [vmem:[#allocation373_spill] sm:$0xff] }
 0x64f   : > { %v11367_v34 = vpop.permute.xlu1 %5302  ;;  %v11369_v5 = vpop.permute.xlu0 %5300  ;;  %v3857_v40 = vadd.f32 %v3851_v59, %v3775_v32  ;;  %v3877_v52 = vadd.f32 %v3872_v60, %v3801_v51  ;;  %v5750_v10 = vsel %vm1072_vm1, %v5747_v28, %v5749_v21  ;;  %v5748_v33 = vsel %vm1072_vm1, %v5746_v24, %v5747_v28  ;;  %v13723_v51 = vld [vmem:[#allocation376_spill] sm:$0xff]  ;;  %v13726_v32 = vld [vmem:[#allocation379_spill] sm:$0xff]  ;;  %v13727_v28 = vld [vmem:[#allocation377_spill] sm:$0xff] }
 0x650   : > { %13716 = vst [vmem:[#allocation87_spill] sm:$0xff] %v11367_v34  ;;  %v11373_v8 = vpop.permute.xlu2 %5379  ;;  %v5767_v19 = vmul.f32 %v11079_v7, %v5764_v63  ;;  %v5766_v41 = vmul.f32 %v11083_v4, %v5764_v63  ;;  %v5765_v43 = vmul.f32 %v11092_v45, %v5764_v63  ;;  %v3978_v1 = vadd.f32 %v13720_v20, %v3878_v55  ;;  %v13730_v63 = vld [vmem:[#allocation381_spill] sm:$0xff] }
 0x651   : > { %13717 = vst [vmem:[#allocation88_spill] sm:$0xff] %v11369_v5  ;;  %v3902_v23 = vadd.f32 %v13721_v58, %v3820_v44  ;;  %v3901_v16 = vadd.f32 %v13722_v3, %v3819_v54  ;;  %v3876_v59 = vadd.f32 %v3870_v30, %v3800_v26  ;;  %v4003_v60 = vadd.f32 %v13723_v51, %v3903_v17  ;;  %v13729_v26 = vld [vmem:[#allocation380_spill] sm:$0xff]  ;;  %v13738_v58 = vld [vmem:[#allocation386_spill] sm:$0xff]  ;;  %v13743_v5 = vld [vmem:[#allocation391_spill] sm:$0xff] }
 0x652   : > { %v3927_v13 = vadd.f32 %v13724_v48, %v3839_v6  ;;  %v3926_v27 = vadd.f32 %v13725_v56, %v3838_v22  ;;  %v4280_v18 = vstv %s11353_s8  ;;  %v4028_v46 = vadd.f32 %v13726_v32, %v3928_v47  ;;  %v7573_v47 = vld [vmem:[%s7802_s9 + $0x28] sm:$0xff]  ;;  %s11678_s8 = sld [smem:[#allocation6 + $0x82]] }
 0x653   : > { %v3952_v24 = vadd.f32 %v13727_v28, %v3858_v53  ;;  %v3951_v11 = vadd.f32 %v13728_v14, %v3857_v40  ;;  %v5774_v44 = vrot.slane %v5767_v19, 2  ;;  %v5772_v54 = vrot.slane %v5766_v41, 2  ;;  %v13735_v19 = vld [vmem:[#allocation383_spill] sm:$0xff] }
 0x654   : > { %v5771_v30 = vrot.slane %v5765_v43, 2  ;;  %v5789_v17 = vstv %s11361_s23  ;;  %v3977_v55 = vadd.f32 %v13729_v26, %v3877_v52  ;;  %v3976_v29 = vadd.f32 %v13730_v63, %v3876_v59  ;;  %v13736_v52 = vld [vmem:[#allocation384_spill] sm:$0xff]  ;;  %v13740_v28 = vld [vmem:[#allocation387_spill] sm:$0xff]  ;;  %v7574_v26 = vld [vmem:[%s7802_s9 + $0x20] sm:$0xff]  ;;  %s11681_s23 = sld [smem:[#allocation6 + $0x118]] }
 0x655   : > { %5753 = vrot.lane.b32.xlu1 %v5750_v10, %s7692_s22  ;;  %5751 = vrot.lane.b32.xlu0 %v5748_v33, %s7692_s22  ;;  %v11402_v6 = vmul.f32 %v7573_v47, %v4280_v18  ;;  %v4299_v22 = vstv %s11365_s30  ;;  %v13734_v10 = vld [vmem:[#allocation385_spill] sm:$0xff]  ;;  %v4002_v41 = vadd.f32 %v13735_v19, %v3902_v23  ;;  %v4001_v43 = vadd.f32 %v13736_v52, %v3901_v16  ;;  %v13739_v16 = vld [vmem:[#allocation388_spill] sm:$0xff]  ;;  %v13742_v19 = vld [vmem:[#allocation390_spill] sm:$0xff]  ;;  %s11687_s30 = sld [smem:[#allocation6 + $0x8b]] }
 0x656   : > { %5755 = vrot.lane.b32.xlu2 %v5749_v21, %s7692_s22  ;;  %v13733_v21 = vld [vmem:[#allocation382_spill] sm:$0xff]  ;;  %v4078_v33 = vadd.f32 %v13734_v10, %v3978_v1  ;;  %v4027_v3 = vadd.f32 %v13738_v58, %v3927_v13  ;;  %v4318_v59 = vstv %s11376_s10  ;;  %v5792_v51 = vmul.f32 %v11079_v7, %v5789_v17  ;;  %s11699_s10 = sld [smem:[#allocation6 + $0xcd]] }
 0x657   : > { %v11405_v53 = vpop.permute.xlu1 %5327  ;;  %v11407_v50 = vpop.permute.xlu0 %5325  ;;  %v4053_v40 = vadd.f32 %v13733_v21, %v3953_v62  ;;  %v5791_v48 = vmul.f32 %v11083_v4, %v5789_v17  ;;  %v11421_v56 = vmul.f32 %v7573_v47, %v4299_v22  ;;  %v5775_v62 = vsel %vm1072_vm1, %v5772_v54, %v5774_v44  ;;  %v13741_v21 = vld [vmem:[#allocation389_spill] sm:$0xff] }
 0x658   : > { %13731 = vst [vmem:[#allocation89_spill] sm:$0xff] %v11405_v53  ;;  %v11415_v20 = vpop.permute.xlu2 %5404  ;;  %v5773_v1 = vsel %vm1072_vm1, %v5771_v30, %v5772_v54  ;;  %v5790_v23 = vmul.f32 %v11092_v45, %v5789_v17  ;;  %v4103_v32 = vadd.f32 %v13739_v16, %v4003_v60  ;;  %v4026_v14 = vadd.f32 %v13740_v28, %v3926_v27  ;;  %v13744_v17 = vld [vmem:[#allocation392_spill] sm:$0xff] }
 0x659   : > { %13732 = vst [vmem:[#allocation90_spill] sm:$0xff] %v11407_v50  ;;  %v4282_v63 = vmul.f32 %v7574_v26, %v4280_v18  ;;  %v4052_v10 = vadd.f32 %v13741_v21, %v3952_v24  ;;  %v4051_v52 = vadd.f32 %v13742_v19, %v3951_v11  ;;  %v11432_v58 = vmul.f32 %v7573_v47, %v4318_v59  ;;  %v7575_v50 = vld [vmem:[%s7802_s9 + $0x18] sm:$0xff]  ;;  %v13751_v11 = vld [vmem:[#allocation395_spill] sm:$0xff] }
 0x65a   : > { %13737 = vst [vmem:[#allocation91_spill] sm:$0xff] %v11415_v20  ;;  %v4281_v53 = vmul.f32 %v7575_v50, %v4280_v18  ;;  %v4128_v54 = vadd.f32 %v13743_v5, %v4028_v46  ;;  %v4337_v30 = vstv %s11393_s11  ;;  %v5799_v60 = vrot.slane %v5792_v51, 2  ;;  %v13745_v24 = vld [vmem:[#allocation393_spill] sm:$0xff]  ;;  %v13746_v5 = vld [vmem:[#allocation394_spill] sm:$0xff]  ;;  %s11741_s11 = sld [smem:[#allocation6 + $0xd6]] }
 0x65b   : > { %v5797_v27 = vrot.slane %v5791_v48, 2  ;;  %v11440_v16 = vadd.f32 %v13744_v17, %v3977_v55  ;;  %v11443_v28 = vadd.f32 %v13745_v24, %v3976_v29  ;;  %v5796_v18 = vrot.slane %v5790_v23, 2 }
 0x65c   : > { %v4153_v46 = vadd.f32 %v13746_v5, %v4053_v40  ;;  %v4301_v21 = vmul.f32 %v7574_v26, %v4299_v22  ;;  %v5814_v55 = vstv %s11409_s12  ;;  %v11456_v29 = vmul.f32 %v7573_v47, %v4337_v30  ;;  %v13752_v40 = vld [vmem:[#allocation396_spill] sm:$0xff]  ;;  %s11776_s12 = sld [smem:[#allocation6 + $0x11d]] }
 0x65d   : > { %5778 = vrot.lane.b32.xlu1 %v5775_v62, %s7693_s19  ;;  %5776 = vrot.lane.b32.xlu0 %v5773_v1, %s7693_s19  ;;  %v4288_v62 = vrot.slane %v4282_v63, 4  ;;  %v4287_v19 = vrot.slane %v4281_v53, 4  ;;  %v4300_v17 = vmul.f32 %v7575_v50, %v4299_v22  ;;  %v4102_v13 = vadd.f32 %v13751_v11, %v4002_v41  ;;  %v13754_v11 = vld [vmem:[#allocation400_spill] sm:$0xff] }
 0x65e   : > { %5780 = vrot.lane.b32.xlu2 %v5774_v44, %s7693_s19  ;;  %v13750_v44 = vld [vmem:[#allocation397_spill] sm:$0xff]  ;;  %v4101_v63 = vadd.f32 %v13752_v40, %v4001_v43  ;;  %v5800_v5 = vsel %vm1072_vm1, %v5797_v27, %v5799_v60  ;;  %v5816_v48 = vmul.f32 %v11083_v4, %v5814_v55  ;;  %v5815_v47 = vmul.f32 %v11092_v45, %v5814_v55 }
 0x65f   : > { %v11450_v1 = vpop.permute.xlu1 %5352  ;;  %v11452_v51 = vpop.permute.xlu0 %5350  ;;  %v4178_v23 = vadd.f32 %v13750_v44, %v4078_v33  ;;  %v13753_v22 = vrot.slane %v11402_v6, 4  ;;  %v4307_v34 = vrot.slane %v4301_v21, 4  ;;  %v4320_v33 = vmul.f32 %v7574_v26, %v4318_v59  ;;  %v13755_v44 = vld [vmem:[#allocation398_spill] sm:$0xff] }
 0x660   : > { %13747 = vst [vmem:[#allocation94_spill] sm:$0xff] %v11450_v1  ;;  %v11458_v24 = vpop.permute.xlu2 %5429  ;;  %v5798_v1 = vsel %vm1072_vm1, %v5796_v18, %v5797_v27  ;;  %v4319_v41 = vmul.f32 %v7575_v50, %v4318_v59  ;;  %v4203_v43 = vadd.f32 %v13754_v11, %v4103_v32  ;;  %v4127_v40 = vadd.f32 %v13755_v44, %v4027_v3  ;;  %v13757_v3 = vld [vmem:[#allocation403_spill] sm:$0xff] }
 0x661   : > { %13748 = vst [vmem:[#allocation92_spill] sm:$0xff] %v11452_v51  ;;  %v5817_v51 = vmul.f32 %v11079_v7, %v5814_v55  ;;  %v4291_v53 = vsel %vm2026_vm3, %v4288_v62, %v13753_v22  ;;  %v4289_v27 = vsel %vm2026_vm3, %v4287_v19, %v4288_v62  ;;  %v4306_v18 = vrot.slane %v4300_v17, 4 }
 0x662   : > { %13749 = vst [vmem:[#allocation93_spill] sm:$0xff] %v11458_v24  ;;  %v4126_v36 = vadd.f32 %v13756_v57, %v4026_v14  ;;  %v4347_v24 = vrot.slane %v11456_v29, 4  ;;  %v4339_v55 = vmul.f32 %v7574_v26, %v4337_v30  ;;  %v4338_v20 = vmul.f32 %v7575_v50, %v4337_v30  ;;  %v13759_v30 = vld [vmem:[#allocation401_spill] sm:$0xff] }
 0x663   : > { %v5824_v59 = vrot.slane %v5817_v51, 2  ;;  %v5822_v21 = vrot.slane %v5816_v48, 2  ;;  %v5821_v32 = vrot.slane %v5815_v47, 2  ;;  %v5839_v22 = vstv %s11447_s18  ;;  %s11787_s18 = sld [smem:[#allocation6 + $0x121]] }
 0x664   : > { %v4228_v11 = vadd.f32 %v13757_v3, %v4128_v54  ;;  %v13758_v62 = vrot.slane %v11421_v56, 4  ;;  %v4326_v14 = vrot.slane %v4320_v33, 4  ;;  %v4325_v29 = vrot.slane %v4319_v41, 4 }
 0x665   : > { %5803 = vrot.lane.b32.xlu1 %v5800_v5, %s7693_s19  ;;  %5801 = vrot.lane.b32.xlu0 %v5798_v1, %s7693_s19  ;;  %v13760_v1 = vld [vmem:[#allocation402_spill] sm:$0xff]  ;;  %v13761_v48 = vrot.slane %v11402_v6, 4  ;;  %v4308_v54 = vsel %vm2026_vm3, %v4306_v18, %v4307_v34  ;;  %v4345_v33 = vrot.slane %v4339_v55, 4  ;;  %v5842_v41 = vmul.f32 %v11079_v7, %v5839_v22  ;;  %v13764_v6 = vld [vmem:[#allocation407_spill] sm:$0xff] }
 0x666   : > { %5805 = vrot.lane.b32.xlu2 %v5799_v60, %s7693_s19  ;;  %v4310_v57 = vsel %vm2026_vm3, %v4307_v34, %v13758_v62  ;;  %v4152_v60 = vadd.f32 %v13759_v30, %v4052_v10  ;;  %v4151_v51 = vadd.f32 %v13760_v1, %v4051_v52  ;;  %v13763_v5 = vld [vmem:[#allocation406_spill] sm:$0xff]  ;;  %v5841_v44 = vmul.f32 %v11083_v4, %v5839_v22  ;;  %v13767_v1 = vld [vmem:[#allocation404_spill] sm:$0xff] }
 0x667   : > { %v11484_v26 = vpop.permute.xlu1 %5377  ;;  %v11486_v50 = vpop.permute.xlu0 %5375  ;;  %v4297_v19 = vadd.f32 %v13761_v48, %v4203_v43  ;;  %v4253_v47 = vadd.f32 %v13763_v5, %v4153_v46  ;;  %v4344_v3 = vrot.slane %v4338_v20, 4  ;;  %v5825_v62 = vsel %vm1072_vm1, %v5822_v21, %v5824_v59  ;;  %v13768_v48 = vld [vmem:[#allocation405_spill] sm:$0xff] }
 0x668   : > { %v11495_v17 = vpop.permute.xlu2 %5454  ;;  %v5823_v10 = vsel %vm1072_vm1, %v5821_v32, %v5822_v21  ;;  %v5840_v52 = vmul.f32 %v11092_v45, %v5839_v22  ;;  %v4202_v43 = vadd.f32 %v13764_v6, %v4102_v13  ;;  %v13765_v34 = vrot.slane %v11421_v56, 4  ;;  %v13769_v21 = vld [vmem:[#allocation409_spill] sm:$0xff]  ;;  %v13770_v22 = vld [vmem:[#allocation408_spill] sm:$0xff]  ;;  %v13771_v13 = vld [vmem:[#allocation410_spill] sm:$0xff] }
 0x669   : > { %13762 = vst [vmem:[#allocation95_spill] sm:$0xff] %v11495_v17  ;;  %v13766_v30 = vrot.slane %v11432_v58, 4  ;;  %v4327_v55 = vsel %vm2026_vm3, %v4325_v29, %v4326_v14  ;;  %v4177_v20 = vadd.f32 %v13767_v1, %v11440_v16  ;;  %v4176_v5 = vadd.f32 %v13768_v48, %v11443_v28  ;;  %v13772_v56 = vld [vmem:[#allocation411_spill] sm:$0xff]  ;;  %v13777_v48 = vld [vmem:[#allocation417_spill] sm:$0xff] }
 0x66a   : > { %v4316_v18 = vadd.f32 %v13765_v34, %v4228_v11  ;;  %v4278_v32 = vadd.f32 %v13769_v21, %v4178_v23  ;;  %v4201_v17 = vadd.f32 %v13770_v22, %v4101_v63  ;;  %v4227_v6 = vadd.f32 %v13771_v13, %v4127_v40 }
 0x66b   : > { %v4329_v46 = vsel %vm2026_vm3, %v4326_v14, %v13766_v30  ;;  %v4226_v11 = vadd.f32 %v13772_v56, %v4126_v36  ;;  %v5849_v14 = vrot.slane %v5842_v41, 2  ;;  %v5847_v29 = vrot.slane %v5841_v44, 2  ;;  %v13774_v36 = vld [vmem:[#allocation413_spill] sm:$0xff] }
 0x66c   : > { %v13773_v16 = vmov %v13766_v30  ;;  %v4348_v28 = vsel %vm2026_vm3, %v4345_v33, %v4347_v24  ;;  %v4346_v23 = vsel %vm2026_vm3, %v4344_v3, %v4345_v33  ;;  %v5846_v63 = vrot.slane %v5840_v52, 2  ;;  %v13775_v30 = vld [vmem:[#allocation414_spill] sm:$0xff]  ;;  %v13778_v52 = vld [vmem:[#allocation412_spill] sm:$0xff] }
 0x66d   : > { %5828 = vrot.lane.b32.xlu1 %v5825_v62, %s7693_s19  ;;  %5826 = vrot.lane.b32.xlu0 %v5823_v10, %s7693_s19  ;;  %v4335_v34 = vadd.f32 %v13773_v16, %v4253_v47  ;;  %v4252_v40 = vadd.f32 %v13774_v36, %v4152_v60  ;;  %v4251_v62 = vadd.f32 %v13775_v30, %v4151_v51  ;;  %v5864_v58 = vstv %s11488_s21  ;;  %v13776_v47 = vld [vmem:[#allocation416_spill] sm:$0xff]  ;;  %v13784_v30 = vld [vmem:[#allocation422_spill] sm:$0xff]  ;;  %s11815_s21 = sld [smem:[#allocation6 + $0x3c]] }
 0x66e   : > { %5830 = vrot.lane.b32.xlu2 %v5824_v59, %s7693_s19  ;;  %v4296_v1 = vadd.f32 %v4291_v53, %v4202_v43  ;;  %v4277_v44 = vadd.f32 %v13776_v47, %v4177_v20  ;;  %v4276_v21 = vadd.f32 %v13777_v48, %v4176_v5  ;;  %v4354_v33 = vadd.f32 %v4347_v24, %v4278_v32  ;;  %v13779_v24 = vld [vmem:[#allocation415_spill] sm:$0xff] }
 0x66f   : > { %v11529_v10 = vpop.permute.xlu1 %5402  ;;  %v11531_v41 = vpop.permute.xlu0 %5400  ;;  %v4295_v3 = vadd.f32 %v4289_v27, %v4201_v17  ;;  %v4379_v22 = vadd.f32 %v13778_v52, %v4297_v19  ;;  %v4315_v13 = vadd.f32 %v4310_v57, %v4227_v6  ;;  %v4314_v60 = vadd.f32 %v4308_v54, %v4226_v11  ;;  %v13780_v17 = vld [vmem:[#allocation418_spill] sm:$0xff]  ;;  %v13781_v57 = vld [vmem:[#allocation419_spill] sm:$0xff]  ;;  %v13782_v6 = vld [vmem:[#allocation420_spill] sm:$0xff] }
 0x670   : > { %v11536_v59 = vpop.permute.xlu2 %5479  ;;  %v5850_v53 = vsel %vm1072_vm1, %v5847_v29, %v5849_v14  ;;  %v5848_v51 = vsel %vm1072_vm1, %v5846_v63, %v5847_v29  ;;  %v5867_v43 = vmul.f32 %v11079_v7, %v5864_v58  ;;  %v5866_v20 = vmul.f32 %v11083_v4, %v5864_v58  ;;  %v13783_v63 = vld [vmem:[#allocation421_spill] sm:$0xff] }
 0x671   : > { %v5865_v5 = vmul.f32 %v11092_v45, %v5864_v58  ;;  %v4404_v27 = vadd.f32 %v13779_v24, %v4316_v18  ;;  %v4429_v32 = vadd.f32 %v13780_v17, %v4335_v34  ;;  %v4334_v56 = vadd.f32 %v4329_v46, %v4252_v40  ;;  %v13785_v18 = vld [vmem:[#allocation423_spill] sm:$0xff]  ;;  %v13796_v24 = vld [vmem:[#allocation432_spill] sm:$0xff] }
 0x672   : > { %v4333_v19 = vadd.f32 %v4327_v55, %v4251_v62  ;;  %v4378_v54 = vadd.f32 %v13781_v57, %v4296_v1  ;;  %v4377_v11 = vadd.f32 %v13782_v6, %v4295_v3  ;;  %v4353_v29 = vadd.f32 %v4348_v28, %v4277_v44  ;;  %v13787_v62 = vld [vmem:[#allocation427_spill] sm:$0xff]  ;;  %v13788_v44 = vld [vmem:[#allocation425_spill] sm:$0xff] }
 0x673   : > { %v4352_v16 = vadd.f32 %v4346_v23, %v4276_v21  ;;  %v4454_v36 = vadd.f32 %v13783_v63, %v4354_v33  ;;  %v4403_v58 = vadd.f32 %v13784_v30, %v4315_v13  ;;  %v4402_v47 = vadd.f32 %v13785_v18, %v4314_v60  ;;  %v13786_v23 = vld [vmem:[#allocation424_spill] sm:$0xff]  ;;  %v13789_v21 = vld [vmem:[#allocation426_spill] sm:$0xff]  ;;  %v13797_v57 = vld [vmem:[#allocation433_spill] sm:$0xff] }
 0x674   : > { %v5874_v46 = vrot.slane %v5867_v43, 2  ;;  %v5872_v55 = vrot.slane %v5866_v20, 2  ;;  %v5871_v34 = vrot.slane %v5865_v5, 2  ;;  %v5889_v28 = vstv %s11525_s24  ;;  %v13793_v60 = vld [vmem:[#allocation428_spill] sm:$0xff]  ;;  %v13799_v30 = vld [vmem:[#allocation434_spill] sm:$0xff]  ;;  %s11865_s24 = sld [smem:[#allocation6 + $0x42]] }
 0x675   : > { %5853 = vrot.lane.b32.xlu1 %v5850_v53, %s7693_s19  ;;  %5851 = vrot.lane.b32.xlu0 %v5848_v51, %s7693_s19  ;;  %v4479_v40 = vadd.f32 %v13786_v23, %v4379_v22  ;;  %v4504_v1 = vadd.f32 %v13787_v62, %v4404_v27  ;;  %v4428_v48 = vadd.f32 %v13788_v44, %v4334_v56  ;;  %v13794_v51 = vld [vmem:[#allocation429_spill] sm:$0xff]  ;;  %v13795_v22 = vld [vmem:[#allocation431_spill] sm:$0xff]  ;;  %v4760_v17 = vstv %s11539_s25  ;;  %s11881_s25 = sld [smem:[#allocation6 + $0x87]] }
 0x676   : > { %5855 = vrot.lane.b32.xlu2 %v5849_v14, %s7693_s19  ;;  %v4427_v33 = vadd.f32 %v13789_v21, %v4333_v19  ;;  %v13792_v14 = vld [vmem:[#allocation430_spill] sm:$0xff]  ;;  %v4453_v53 = vadd.f32 %v13793_v60, %v4353_v29  ;;  %v4452_v43 = vadd.f32 %v13794_v51, %v4352_v16  ;;  %v4478_v20 = vadd.f32 %v13795_v22, %v4378_v54  ;;  %v13798_v54 = vld [vmem:[#allocation436_spill] sm:$0xff]  ;;  %v13800_v23 = vld [vmem:[#allocation435_spill] sm:$0xff] }
 0x677   : > { %v11567_v3 = vpop.permute.xlu1 %5427  ;;  %v11569_v52 = vpop.permute.xlu0 %5425  ;;  %v4529_v13 = vadd.f32 %v13792_v14, %v4429_v32  ;;  %v4477_v27 = vadd.f32 %v13796_v24, %v4377_v11  ;;  %v5892_v56 = vmul.f32 %v11079_v7, %v5889_v28  ;;  %v5891_v19 = vmul.f32 %v11083_v4, %v5889_v28  ;;  %v11628_v51 = vld [vmem:[%s7802_s9 + $0x30] sm:$0xff] }
 0x678   : > { %13790 = vst [vmem:[#allocation96_spill] sm:$0xff] %v11567_v3  ;;  %v11577_v5 = vpop.permute.xlu2 %5504  ;;  %v4554_v32 = vadd.f32 %v13797_v57, %v4454_v36  ;;  %v5875_v6 = vsel %vm1072_vm1, %v5872_v55, %v5874_v46  ;;  %v5873_v29 = vsel %vm1072_vm1, %v5871_v34, %v5872_v55  ;;  %v5890_v16 = vmul.f32 %v11092_v45, %v5889_v28  ;;  %v13804_v57 = vld [vmem:[#allocation13_spill] sm:$0xff] }
 0x679   : > { %13791 = vst [vmem:[#allocation97_spill] sm:$0xff] %v11569_v52  ;;  %v4579_v63 = vadd.f32 %v13798_v54, %v4479_v40  ;;  %v4503_v18 = vadd.f32 %v13799_v30, %v4403_v58  ;;  %v4502_v11 = vadd.f32 %v13800_v23, %v4402_v47  ;;  %v4768_v62 = vstv %s11548_s26  ;;  %v13865_v52 = vld [vmem:[#allocation64_spill] sm:$0xff]  ;;  %s11914_s26 = sld [smem:[#allocation6 + $0x8d]] }
 0x67a   : > { %v4528_v44 = vadd.f32 %v10080_v49, %v4428_v48  ;;  %v4527_v21 = vadd.f32 %v10082_v9, %v4427_v33  ;;  %v4763_v4 = vmul.f32 %v11079_v7, %v4760_v17  ;;  %v4776_v36 = vstv %s11552_s27  ;;  %v11617_v33 = vld [vmem:[%s7802_s9 + $0x40] sm:$0xff]  ;;  %s11919_s27 = sld [smem:[#allocation6 + $0xd2]] }
 0x67b   : > { %v4604_v14 = vadd.f32 %v10088_v38, %v4504_v1  ;;  %v4784_v60 = vstv %s11557_s28  ;;  %v5899_v45 = vrot.slane %v5892_v56, 2  ;;  %v5897_v58 = vrot.slane %v5891_v19, 2  ;;  %s11969_s28 = sld [smem:[#allocation6 + $0xd8]] }
 0x67c   : > { %v4553_v47 = vadd.f32 %v10126_v37, %v4453_v53  ;;  %v4552_v49 = vadd.f32 %v10128_v0, %v4452_v43  ;;  %v4771_v9 = vmul.f32 %v11079_v7, %v4768_v62  ;;  %v5896_v55 = vrot.slane %v5890_v16, 2  ;;  %v13805_v16 = vld [vmem:[#allocation11_spill] sm:$0xff] }
 0x67d   : > { %5878 = vrot.lane.b32.xlu1 %v5875_v6, %s7694_s15  ;;  %5876 = vrot.lane.b32.xlu0 %v5873_v29, %s7694_s15  ;;  %v4629_v38 = vadd.f32 %v10133_v2, %v4529_v13  ;;  %v4578_v34 = vadd.f32 %v10164_v15, %v4478_v20  ;;  %v4779_v28 = vmul.f32 %v11079_v7, %v4776_v36  ;;  %v5914_v0 = vstv %s11571_s29  ;;  %v11624_v7 = vld [vmem:[%s7802_s9 + $0x38] sm:$0xff]  ;;  %s12024_s29 = sld [smem:[#allocation6 + $0x123]] }
 0x67e   : > { %5880 = vrot.lane.b32.xlu2 %v5874_v46, %s7694_s15  ;;  %v4654_v1 = vadd.f32 %v10170_v42, %v4554_v32  ;;  %v4577_v46 = vadd.f32 %v10166_v12, %v4477_v27  ;;  %v4679_v48 = vadd.f32 %v10207_v25, %v4579_v63  ;;  %v4787_v53 = vmul.f32 %v11617_v33, %v4784_v60 }
 0x67f   : > { %v11608_v40 = vpop.permute.xlu1 %5452  ;;  %v11610_v37 = vpop.permute.xlu0 %5450  ;;  %v4704_v15 = vadd.f32 %v10253_v39, %v4604_v14  ;;  %v4762_v13 = vmul.f32 %v11624_v7, %v4760_v17  ;;  %v4761_v42 = vmul.f32 %v11628_v51, %v4760_v17  ;;  %v5900_v12 = vsel %vm1072_vm1, %v5897_v58, %v5899_v45  ;;  %v13803_v17 = vld [vmem:[#allocation16_spill] sm:$0xff] }
 0x680   : > { %13801 = vst [vmem:[#allocation100_spill] sm:$0xff] %v11608_v40  ;;  %v11620_v2 = vpop.permute.xlu2 %5529  ;;  %v5898_v25 = vsel %vm1072_vm1, %v5896_v55, %v5897_v58  ;;  %v5917_v43 = vmul.f32 %v11617_v33, %v5914_v0  ;;  %v5916_v22 = vmul.f32 %v11624_v7, %v5914_v0  ;;  %v5915_v20 = vmul.f32 %v11628_v51, %v5914_v0  ;;  %v13810_v55 = vld [vmem:[#allocation19_spill] sm:$0xff] }
 0x681   : > { %13802 = vst [vmem:[#allocation98_spill] sm:$0xff] %v11610_v37  ;;  %v4603_v39 = vadd.f32 %v10202_v61, %v4503_v18  ;;  %v4602_v24 = vadd.f32 %v10204_v31, %v4502_v11  ;;  %v4770_v27 = vmul.f32 %v11624_v7, %v4768_v62  ;;  %v4769_v56 = vmul.f32 %v11628_v51, %v4768_v62  ;;  %v13806_v11 = vld [vmem:[#allocation14_spill] sm:$0xff] }
 0x682   : > { %v4628_v19 = vadd.f32 %v13803_v17, %v4528_v44  ;;  %v4627_v32 = vadd.f32 %v13804_v57, %v4527_v21  ;;  %v4766_v6 = vadd.f32 %v4763_v4, %v4679_v48  ;;  %v4778_v29 = vmul.f32 %v11624_v7, %v4776_v36  ;;  %v13807_v44 = vld [vmem:[#allocation12_spill] sm:$0xff]  ;;  %v13808_v4 = vld [vmem:[#allocation15_spill] sm:$0xff]  ;;  %v13811_v48 = vld [vmem:[#allocation18_spill] sm:$0xff] }
 0x683   : > { %v4653_v54 = vadd.f32 %v13805_v16, %v4553_v47  ;;  %v4774_v63 = vadd.f32 %v4771_v9, %v4704_v15  ;;  %v4777_v30 = vmul.f32 %v11628_v51, %v4776_v36  ;;  %v5924_v61 = vrot.slane %v5917_v43, 2  ;;  %v13809_v9 = vld [vmem:[#allocation17_spill] sm:$0xff]  ;;  %v13815_v16 = vld [vmem:[#allocation24_spill] sm:$0xff] }
 0x684   : > { %v5922_v31 = vrot.slane %v5916_v22, 2  ;;  %v5921_v18 = vrot.slane %v5915_v20, 2  ;;  %v5939_v23 = vstv %s11603_s4  ;;  %v4729_v62 = vadd.f32 %v13806_v11, %v4629_v38  ;;  %v13814_v17 = vld [vmem:[#allocation21_spill] sm:$0xff]  ;;  %s12058_s4 = sld [smem:[#allocation6 + $0x43]] }
 0x685   : > { %5903 = vrot.lane.b32.xlu1 %v5900_v12, %s7694_s15  ;;  %5901 = vrot.lane.b32.xlu0 %v5898_v25, %s7694_s15  ;;  %v4652_v21 = vadd.f32 %v13807_v44, %v4552_v49  ;;  %v4678_v14 = vadd.f32 %v13808_v4, %v4578_v34  ;;  %v4786_v58 = vmul.f32 %v11624_v7, %v4784_v60  ;;  %v13812_v34 = vld [vmem:[#allocation20_spill] sm:$0xff]  ;;  %v13813_v25 = vld [vmem:[#allocation23_spill] sm:$0xff]  ;;  %v13816_v44 = vld [vmem:[#allocation26_spill] sm:$0xff] }
 0x686   : > { %5905 = vrot.lane.b32.xlu2 %v5899_v45, %s7694_s15  ;;  %v4754_v45 = vadd.f32 %v13809_v9, %v4654_v1  ;;  %v4677_v0 = vadd.f32 %v13810_v55, %v4577_v46  ;;  %v4703_v15 = vadd.f32 %v13811_v48, %v4603_v39  ;;  %v4785_v38 = vmul.f32 %v11628_v51, %v4784_v60  ;;  %v13817_v9 = vld [vmem:[#allocation22_spill] sm:$0xff] }
 0x687   : > { %v11653_v47 = vpop.permute.xlu1 %5477  ;;  %v11655_v36 = vpop.permute.xlu0 %5475  ;;  %v4702_v12 = vadd.f32 %v13812_v34, %v4602_v24  ;;  %v4728_v43 = vadd.f32 %v13813_v25, %v4628_v19  ;;  %v5942_v22 = vmul.f32 %v11617_v33, %v5939_v23  ;;  %v5941_v20 = vmul.f32 %v11624_v7, %v5939_v23 }
 0x688   : > { %v11665_v49 = vpop.permute.xlu2 %5554  ;;  %v4727_v1 = vadd.f32 %v13814_v17, %v4627_v32  ;;  %v5925_v46 = vsel %vm1072_vm1, %v5922_v31, %v5924_v61  ;;  %v5923_v39 = vsel %vm1072_vm1, %v5921_v18, %v5922_v31  ;;  %v5940_v60 = vmul.f32 %v11628_v51, %v5939_v23  ;;  %v13818_v32 = vld [vmem:[#allocation25_spill] sm:$0xff] }
 0x689   : > { %v4782_v57 = vadd.f32 %v4779_v28, %v4729_v62  ;;  %v4753_v11 = vadd.f32 %v13815_v16, %v4653_v54  ;;  %v4752_v4 = vadd.f32 %v13816_v44, %v4652_v21  ;;  %v4765_v24 = vadd.f32 %v4762_v13, %v4678_v14  ;;  %v13819_v13 = vld [vmem:[#allocation27_spill] sm:$0xff]  ;;  %v13821_v14 = vld [vmem:[#allocation32_spill] sm:$0xff] }
 0x68a   : > { %v4810_v19 = vadd.f32 %v13817_v9, %v4766_v6  ;;  %v4790_v55 = vadd.f32 %v4787_v53, %v4754_v45  ;;  %v4764_v48 = vadd.f32 %v4761_v42, %v4677_v0  ;;  %v4773_v34 = vadd.f32 %v4770_v27, %v4703_v15  ;;  %v13822_v0 = vld [vmem:[#allocation30_spill] sm:$0xff]  ;;  %v13829_v9 = vld [vmem:[#allocation36_spill] sm:$0xff] }
 0x68b   : > { %v4830_v25 = vadd.f32 %v13818_v32, %v4774_v63  ;;  %v4772_v17 = vadd.f32 %v4769_v56, %v4702_v12  ;;  %v5949_v28 = vrot.slane %v5942_v22, 2  ;;  %v5947_v54 = vrot.slane %v5941_v20, 2  ;;  %v13820_v56 = vld [vmem:[#allocation29_spill] sm:$0xff]  ;;  %v13826_v20 = vld [vmem:[#allocation34_spill] sm:$0xff] }
 0x68c   : > { %v4850_v6 = vadd.f32 %v13819_v13, %v4782_v57  ;;  %v4781_v53 = vadd.f32 %v4778_v29, %v4728_v43  ;;  %v4780_v42 = vadd.f32 %v4777_v30, %v4727_v1  ;;  %v5946_v27 = vrot.slane %v5940_v60, 2  ;;  %v13823_v29 = vld [vmem:[#allocation33_spill] sm:$0xff]  ;;  %v13824_v43 = vld [vmem:[#allocation31_spill] sm:$0xff]  ;;  %v13831_v32 = vld [vmem:[#allocation38_spill] sm:$0xff] }
 0x68d   : > { %5928 = vrot.lane.b32.xlu1 %v5925_v46, %s7694_s15  ;;  %5926 = vrot.lane.b32.xlu0 %v5923_v39, %s7694_s15  ;;  %v4809_v63 = vadd.f32 %v13820_v56, %v4765_v24  ;;  %v4789_v31 = vadd.f32 %v4786_v58, %v4753_v11  ;;  %v4788_v18 = vadd.f32 %v4785_v38, %v4752_v4  ;;  %v5964_v21 = vstv %s11657_s6  ;;  %v13825_v38 = vld [vmem:[#allocation28_spill] sm:$0xff]  ;;  %v13827_v11 = vld [vmem:[#allocation37_spill] sm:$0xff]  ;;  %v13828_v4 = vld [vmem:[#allocation35_spill] sm:$0xff]  ;;  %s12103_s6 = sld [smem:[#allocation6 + $0x8e]] }
 0x68e   : > { %5930 = vrot.lane.b32.xlu2 %v5924_v61, %s7694_s15  ;;  %v4870_v45 = vadd.f32 %v13821_v14, %v4790_v55  ;;  %v4808_v15 = vadd.f32 %v13822_v0, %v4764_v48  ;;  %v4829_v30 = vadd.f32 %v13823_v29, %v4773_v34  ;;  %v5112_v12 = vstv %s11663_s7  ;;  %v13830_v48 = vld [vmem:[#allocation40_spill] sm:$0xff]  ;;  %v13836_v29 = vld [vmem:[#allocation46_spill] sm:$0xff]  ;;  %s7435_s7 = sld [smem:[#allocation6 + $0xd9]] }
 0x68f   : > { %v11690_v23 = vpop.permute.xlu1 %5502  ;;  %v11692_v62 = vpop.permute.xlu0 %5500  ;;  %v4890_v58 = vadd.f32 %v13824_v43, %v4810_v19  ;;  %v4828_v22 = vadd.f32 %v13825_v38, %v4772_v17  ;;  %v4849_v1 = vadd.f32 %v13826_v20, %v4781_v53  ;;  %v5950_v46 = vsel %vm1072_vm1, %v5947_v54, %v5949_v28 }
 0x690   : > { %v11701_v61 = vpop.permute.xlu2 %5579  ;;  %v5948_v39 = vsel %vm1072_vm1, %v5946_v27, %v5947_v54  ;;  %v5967_v60 = vmul.f32 %v11617_v33, %v5964_v21  ;;  %v5966_v57 = vmul.f32 %v11624_v7, %v5964_v21  ;;  %v5965_v16 = vmul.f32 %v11628_v51, %v5964_v21  ;;  %v13832_v54 = vld [vmem:[#allocation39_spill] sm:$0xff]  ;;  %v13833_v27 = vld [vmem:[#allocation42_spill] sm:$0xff]  ;;  %v13834_v21 = vld [vmem:[#allocation41_spill] sm:$0xff] }
 0x691   : > { %v4910_v44 = vadd.f32 %v13827_v11, %v4830_v25  ;;  %v4848_v24 = vadd.f32 %v13828_v4, %v4780_v42  ;;  %v4869_v19 = vadd.f32 %v13829_v9, %v4789_v31  ;;  %v11715_v55 = vmul.f32 %v11617_v33, %v5112_v12  ;;  %v13835_v25 = vld [vmem:[#allocation43_spill] sm:$0xff] }
 0x692   : > { %v4930_v34 = vadd.f32 %v13830_v48, %v4850_v6  ;;  %v4868_v17 = vadd.f32 %v13831_v32, %v4788_v18  ;;  %v4889_v13 = vadd.f32 %v13832_v54, %v4809_v63  ;;  %v5131_v53 = vstv %s11678_s8  ;;  %v13842_v54 = vld [vmem:[#allocation49_spill] sm:$0xff]  ;;  %s7436_s8 = sld [smem:[#allocation6 + $0x124]] }
 0x693   : > { %v4950_v56 = vadd.f32 %v13833_v27, %v4870_v45  ;;  %v4888_v14 = vadd.f32 %v13834_v21, %v4808_v15  ;;  %v4909_v0 = vadd.f32 %v13835_v25, %v4829_v30  ;;  %v11725_v42 = vstv %s11681_s23  ;;  %v13837_v45 = vld [vmem:[#allocation44_spill] sm:$0xff]  ;;  %s7437_s23 = sld [smem:[#allocation6 + $0x44]] }
 0x694   : > { %v5974_v6 = vrot.slane %v5967_v60, 2  ;;  %v5972_v31 = vrot.slane %v5966_v57, 2  ;;  %v5971_v18 = vrot.slane %v5965_v16, 2  ;;  %v5989_v63 = vstv %s11687_s30  ;;  %s7438_s30 = sld [smem:[#allocation6 + $0x8f]] }
 0x695   : > { %5953 = vrot.lane.b32.xlu1 %v5950_v46, %s7694_s15  ;;  %5951 = vrot.lane.b32.xlu0 %v5948_v39, %s7694_s15  ;;  %v4970_v43 = vadd.f32 %v13836_v29, %v4890_v58  ;;  %v4908_v38 = vadd.f32 %v13837_v45, %v4828_v22  ;;  %v5122_v15 = vrot.slane %v11715_v55, 1  ;;  %v11735_v30 = vmul.f32 %v11617_v33, %v5131_v53  ;;  %v13841_v22 = vld [vmem:[#allocation47_spill] sm:$0xff] }
 0x696   : > { %5955 = vrot.lane.b32.xlu2 %v5949_v28, %s7694_s15  ;;  %v13840_v28 = vld [vmem:[#allocation45_spill] sm:$0xff]  ;;  %v5150_v60 = vstv %s11699_s10  ;;  %v5114_v57 = vmul.f32 %v11624_v7, %v5112_v12  ;;  %v5113_v58 = vmul.f32 %v11628_v51, %v5112_v12  ;;  %v11750_v11 = vadd.f32 %v13841_v22, %v4848_v24  ;;  %v13843_v24 = vld [vmem:[#allocation48_spill] sm:$0xff]  ;;  %v13844_v45 = vld [vmem:[#allocation51_spill] sm:$0xff]  ;;  %s7439_s10 = sld [smem:[#allocation6 + $0xda]] }
 0x697   : > { %v11737_v20 = vpop.permute.xlu1 %5527  ;;  %v11739_v46 = vpop.permute.xlu0 %5525  ;;  %v4929_v39 = vadd.f32 %v13840_v28, %v4849_v1  ;;  %v11754_v4 = vmul.f32 %v11617_v33, %v11725_v42  ;;  %v5992_v9 = vmul.f32 %v11617_v33, %v5989_v63  ;;  %v5991_v55 = vmul.f32 %v11624_v7, %v5989_v63  ;;  %v13845_v22 = vld [vmem:[#allocation50_spill] sm:$0xff] }
 0x698   : > { %13838 = vst [vmem:[#allocation99_spill] sm:$0xff] %v11737_v20  ;;  %v11747_v16 = vpop.permute.xlu2 %5680  ;;  %v5133_v1 = vmul.f32 %v11624_v7, %v5131_v53  ;;  %v5975_v48 = vsel %vm1072_vm1, %v5972_v31, %v5974_v6  ;;  %v5973_v32 = vsel %vm1072_vm1, %v5971_v18, %v5972_v31  ;;  %v5990_v12 = vmul.f32 %v11628_v51, %v5989_v63  ;;  %v13846_v18 = vld [vmem:[#allocation54_spill] sm:$0xff] }
 0x699   : > { %13839 = vst [vmem:[#allocation101_spill] sm:$0xff] %v11739_v46  ;;  %v4990_v27 = vadd.f32 %v13842_v54, %v4910_v44  ;;  %v11764_v21 = vadd.f32 %v13843_v24, %v4869_v19  ;;  %v11768_v29 = vmul.f32 %v11617_v33, %v5150_v60  ;;  %v11771_v28 = vadd.f32 %v13844_v45, %v4930_v34  ;;  %v13847_v34 = vld [vmem:[#allocation52_spill] sm:$0xff]  ;;  %v13849_v45 = vld [vmem:[#allocation65_spill] sm:$0xff] }
 0x69a   : > { %v11774_v37 = vadd.f32 %v13845_v22, %v4868_v17  ;;  %v5120_v40 = vrot.slane %v5114_v57, 1  ;;  %v5119_v31 = vrot.slane %v5113_v58, 1  ;;  %v5030_v44 = vadd.f32 %v13846_v18, %v4950_v56  ;;  %v13848_v56 = vld [vmem:[#allocation58_spill] sm:$0xff] }
 0x69b   : > { %v5132_v19 = vmul.f32 %v11628_v51, %v5131_v53  ;;  %v5999_v63 = vrot.slane %v5992_v9, 2  ;;  %v5997_v54 = vrot.slane %v5991_v55, 2  ;;  %v11783_v24 = vadd.f32 %v13847_v34, %v4889_v13  ;;  %v13852_v55 = vld [vmem:[#allocation53_spill] sm:$0xff] }
 0x69c   : > { %v5139_v57 = vrot.slane %v5133_v1, 1  ;;  %v5996_v58 = vrot.slane %v5990_v12, 2  ;;  %v5050_v53 = vadd.f32 %v13848_v56, %v4970_v43  ;;  %v5110_v22 = vadd.f32 %v13849_v45, %v5030_v44  ;;  %v13853_v44 = vld [vmem:[#allocation55_spill] sm:$0xff]  ;;  %v13854_v56 = vld [vmem:[#allocation56_spill] sm:$0xff] }
 0x69d   : > { %5978 = vrot.lane.b32.xlu1 %v5975_v48, %s7695_s5  ;;  %5976 = vrot.lane.b32.xlu0 %v5973_v32, %s7695_s5  ;;  %v5152_v48 = vmul.f32 %v11624_v7, %v5150_v60  ;;  %v6014_v13 = vstv %s11741_s11  ;;  %v11798_v18 = vadd.f32 %v13852_v55, %v4888_v14  ;;  %v11801_v1 = vsel %vm595_vm0, %v5120_v40, %v5122_v15  ;;  %s7440_s11 = sld [smem:[#allocation6 + $0x125]] }
 0x69e   : > { %5980 = vrot.lane.b32.xlu2 %v5974_v6, %s7695_s5  ;;  %v11804_v6 = vsel %vm595_vm0, %v5119_v31, %v5120_v40  ;;  %v5151_v43 = vmul.f32 %v11628_v51, %v5150_v60  ;;  %v11810_v34 = vadd.f32 %v13853_v44, %v4909_v0  ;;  %v11813_v45 = vadd.f32 %v13854_v56, %v4908_v38 }
 0x69f   : > { %v11792_v32 = vpop.permute.xlu1 %5552  ;;  %v11794_v9 = vpop.permute.xlu0 %5550  ;;  %v5138_v25 = vrot.slane %v5132_v19, 1  ;;  %v6000_v14 = vsel %vm1072_vm1, %v5997_v54, %v5999_v63  ;;  %v5998_v55 = vsel %vm1072_vm1, %v5996_v58, %v5997_v54  ;;  %v6017_v40 = vmul.f32 %v11617_v33, %v6014_v13 }
 0x6a0   : > { %13850 = vst [vmem:[#allocation103_spill] sm:$0xff] %v11792_v32  ;;  %v11807_v12 = vpop.permute.xlu2 %5705  ;;  %v6016_v60 = vmul.f32 %v11624_v7, %v6014_v13  ;;  %v6015_v31 = vmul.f32 %v11628_v51, %v6014_v13  ;;  %v5129_v17 = vadd.f32 %v5122_v15, %v5050_v53  ;;  %v13855_v0 = vrot.slane %v11754_v4, 1  ;;  %v13858_v15 = vld [vmem:[#allocation57_spill] sm:$0xff] }
 0x6a1   : > { %13851 = vst [vmem:[#allocation102_spill] sm:$0xff] %v11794_v9  ;;  %v13856_v38 = vrot.slane %v11735_v30, 1  ;;  %v5158_v56 = vrot.slane %v5152_v48, 1  ;;  %v13857_v9 = vld [vmem:[#allocation60_spill] sm:$0xff]  ;;  %v5157_v54 = vrot.slane %v5151_v43, 1  ;;  %v11832_v58 = vmul.f32 %v11624_v7, %v11725_v42 }
 0x6a2   : > { %v5186_v44 = vadd.f32 %v13855_v0, %v5110_v22  ;;  %v5070_v32 = vadd.f32 %v13857_v9, %v4990_v27  ;;  %v11835_v46 = vstv %s11776_s12  ;;  %v11838_v53 = vadd.f32 %v13858_v15, %v4929_v39  ;;  %v13859_v39 = vld [vmem:[#allocation59_spill] sm:$0xff]  ;;  %s7425_s12 = sld [smem:[#allocation6 + $0x41]] }
 0x6a3   : > { %v11827_v19 = vsel %vm595_vm0, %v5139_v57, %v13856_v38  ;;  %v5160_v22 = vrot.slane %v11768_v29, 1  ;;  %v11843_v0 = vsel %vm595_vm0, %v5138_v25, %v5139_v57  ;;  %v6024_v27 = vrot.slane %v6017_v40, 2 }
 0x6a4   : > { %v5286_v13 = vadd.f32 %v11206_v35, %v5186_v44  ;;  %v6022_v48 = vrot.slane %v6016_v60, 2  ;;  %v6021_v9 = vrot.slane %v6015_v31, 2  ;;  %v6039_v43 = vstv %s11787_s18  ;;  %s7441_s18 = sld [smem:[#allocation6 + $0x45]] }
 0x6a5   : > { %6003 = vrot.lane.b32.xlu1 %v6000_v14, %s7695_s5  ;;  %6001 = vrot.lane.b32.xlu0 %v5998_v55, %s7695_s5  ;;  %v11851_v38 = vadd.f32 %v13859_v39, %v11750_v11  ;;  %v11854_v35 = vsel %vm595_vm0, %v5158_v56, %v5160_v22  ;;  %v13860_v14 = vrot.slane %v11735_v30, 1  ;;  %v11870_v11 = vsel %vm595_vm0, %v5157_v54, %v5158_v56  ;;  %v13864_v39 = vld [vmem:[#allocation68_spill] sm:$0xff] }
 0x6a6   : > { %6005 = vrot.lane.b32.xlu2 %v5999_v63, %s7695_s5  ;;  %v5386_v25 = vadd.f32 %v11373_v8, %v5286_v13  ;;  %v11863_v63 = vmul.f32 %v11617_v33, %v11835_v46  ;;  %13861 = vst [vmem:[#allocation106_spill] sm:$0xff] %v11870_v11  ;;  %v5177_v40 = vrot.slane %v11832_v58, 1  ;;  %v5170_v8 = vmul.f32 %v11628_v51, %v11725_v42  ;;  %v13863_v13 = vld [vmem:[#allocation61_spill] sm:$0xff] }
 0x6a7   : > { %v11857_v29 = vpop.permute.xlu1 %5577  ;;  %v11859_v57 = vpop.permute.xlu0 %5575  ;;  %v5148_v55 = vadd.f32 %v13860_v14, %v5070_v32  ;;  %v11879_v44 = vstv %s11815_s21  ;;  %v6042_v15 = vmul.f32 %v11617_v33, %v6039_v43  ;;  %v6041_v30 = vmul.f32 %v11624_v7, %v6039_v43  ;;  %v13862_v32 = vld [vmem:[#allocation67_spill] sm:$0xff]  ;;  %s7426_s21 = sld [smem:[#allocation6 + $0x8c]] }
 0x6a8   : > { %v11875_v60 = vpop.permute.xlu2 %5730  ;;  %v5486_v31 = vadd.f32 %v11536_v59, %v5386_v25  ;;  %v5090_v56 = vadd.f32 %v13862_v32, %v11771_v28  ;;  %v6025_v54 = vsel %vm1072_vm1, %v6022_v48, %v6024_v27  ;;  %v6023_v58 = vsel %vm1072_vm1, %v6021_v9, %v6022_v48  ;;  %v13866_v28 = vld [vmem:[#allocation62_spill] sm:$0xff]  ;;  %v13867_v9 = vld [vmem:[#allocation76_spill] sm:$0xff] }
 0x6a9   : > { %v6040_v42 = vmul.f32 %v11628_v51, %v6039_v43  ;;  %v5029_v59 = vadd.f32 %v13863_v13, %v11764_v21  ;;  %v5211_v25 = vadd.f32 %v13864_v39, %v5129_v17  ;;  %v5655_v20 = vrot.slane %v11863_v63, 2 }
 0x6aa   : > { %v5586_v14 = vadd.f32 %v11701_v61, %v5486_v31  ;;  %v5028_v3 = vadd.f32 %v13865_v52, %v11774_v37  ;;  %v5049_v32 = vadd.f32 %v13866_v28, %v11783_v24  ;;  %v5176_v11 = vrot.slane %v5170_v8, 1  ;;  %v13869_v61 = vld [vmem:[#allocation63_spill] sm:$0xff]  ;;  %v13870_v8 = vld [vmem:[#allocation66_spill] sm:$0xff] }
 0x6ab   : > { %v11901_v48 = vmul.f32 %v11617_v33, %v11879_v44  ;;  %v5311_v43 = vadd.f32 %v13867_v9, %v5211_v25  ;;  %v13868_v21 = vrot.slane %v11754_v4, 1  ;;  %v6049_v52 = vrot.slane %v6042_v15, 2  ;;  %v13872_v25 = vld [vmem:[#allocation91_spill] sm:$0xff] }
 0x6ac   : > { %v6047_v37 = vrot.slane %v6041_v30, 2  ;;  %v5048_v24 = vadd.f32 %v13869_v61, %v11798_v18  ;;  %v5069_v31 = vadd.f32 %v13870_v8, %v11810_v34  ;;  %v5167_v13 = vadd.f32 %v5160_v22, %v5090_v56 }
 0x6ad   : > { %v5180_v17 = vsel %vm595_vm0, %v5177_v40, %v13868_v21  ;;  %6028 = vrot.lane.b32.xlu1 %v6025_v54, %s7695_s5  ;;  %6026 = vrot.lane.b32.xlu0 %v6023_v58, %s7695_s5  ;;  %v6046_v4 = vrot.slane %v6040_v42, 2  ;;  %v13871_v54 = vld [vmem:[#allocation70_spill] sm:$0xff]  ;;  %v5411_v58 = vadd.f32 %v13872_v25, %v5311_v43  ;;  %v5662_v18 = vadd.f32 %v5655_v20, %v5586_v14  ;;  %v13875_v25 = vld [vmem:[#allocation71_spill] sm:$0xff] }
 0x6ae   : > { %6030 = vrot.lane.b32.xlu2 %v6024_v27, %s7695_s5  ;;  %v5068_v39 = vadd.f32 %v13871_v54, %v11813_v45  ;;  %v6140_v22 = vstv %s11865_s24  ;;  %v13873_v27 = vld [vmem:[#allocation72_spill] sm:$0xff]  ;;  %v5128_v56 = vadd.f32 %v11801_v1, %v5049_v32  ;;  %v5178_v42 = vsel %vm595_vm0, %v5176_v11, %v5177_v40  ;;  %v13874_v11 = vld [vmem:[#allocation73_spill] sm:$0xff]  ;;  %s7442_s24 = sld [smem:[#allocation6 + $0x90]] }
 0x6af   : > { %v11923_v15 = vpop.permute.xlu1 %5678  ;;  %v11925_v34 = vpop.permute.xlu0 %5676  ;;  %v5109_v30 = vadd.f32 %v13873_v27, %v5029_v59  ;;  %v5598_v45 = vrot.slane %v11901_v48, 2  ;;  %v5511_v9 = vadd.f32 %v11577_v5, %v5411_v58  ;;  %v11934_v43 = vstv %s11881_s25  ;;  %s7427_s25 = sld [smem:[#allocation6 + $0xd7]] }
 0x6b0   : > { %v5756_v28 = vpop.permute.xlu2 %5755  ;;  %v6050_v14 = vsel %vm1072_vm1, %v6047_v37, %v6049_v52  ;;  %v6048_v61 = vsel %vm1072_vm1, %v6046_v4, %v6047_v37  ;;  %v6143_v8 = vmul.f32 %v11617_v33, %v6140_v22  ;;  %v6142_v59 = vmul.f32 %v11624_v7, %v6140_v22  ;;  %v13876_v4 = vld [vmem:[#allocation69_spill] sm:$0xff] }
 0x6b1   : > { %v11936_v21 = vadd.f32 %v5756_v28, %v5662_v18  ;;  %v6141_v1 = vmul.f32 %v11628_v51, %v6140_v22  ;;  %v5236_v40 = vadd.f32 %v13874_v11, %v5148_v55  ;;  %v5127_v32 = vadd.f32 %v11804_v6, %v5048_v24  ;;  %v13877_v18 = vld [vmem:[#allocation74_spill] sm:$0xff]  ;;  %v13878_v55 = vld [vmem:[#allocation85_spill] sm:$0xff] }
 0x6b2   : > { %v11946_v5 = vadd.f32 %v11827_v19, %v5069_v31  ;;  %v11949_v54 = vadd.f32 %v11843_v0, %v5068_v39  ;;  %v5089_v37 = vadd.f32 %v13875_v25, %v11838_v53  ;;  %v11955_v58 = vadd.f32 %v13876_v4, %v11851_v38  ;;  %v13879_v39 = vld [vmem:[#allocation75_spill] sm:$0xff]  ;;  %v13880_v28 = vld [vmem:[#allocation93_spill] sm:$0xff] }
 0x6b3   : > { %v5108_v22 = vadd.f32 %v13877_v18, %v5028_v3  ;;  %v11960_v6 = vmul.f32 %v11617_v33, %v11934_v43  ;;  %v5336_v19 = vadd.f32 %v13878_v55, %v5236_v40  ;;  %v5185_v24 = vadd.f32 %v5180_v17, %v5109_v30 }
 0x6b4   : > { %v5605_v0 = vadd.f32 %v5598_v45, %v5511_v9  ;;  %v6150_v53 = vrot.slane %v6143_v8, 3  ;;  %v6148_v38 = vrot.slane %v6142_v59, 3  ;;  %v6147_v3 = vrot.slane %v6141_v1, 3  ;;  %v13882_v8 = vld [vmem:[#allocation83_spill] sm:$0xff] }
 0x6b5   : > { %6053 = vrot.lane.b32.xlu1 %v6050_v14, %s7695_s5  ;;  %6051 = vrot.lane.b32.xlu0 %v6048_v61, %s7695_s5  ;;  %v6165_v31 = vstv %s11914_s26  ;;  %v5261_v27 = vadd.f32 %v13879_v39, %v5167_v13  ;;  %v5436_v11 = vadd.f32 %v13880_v28, %v5336_v19  ;;  %v11975_v30 = vstv %s11919_s27  ;;  %v13881_v61 = vld [vmem:[#allocation77_spill] sm:$0xff]  ;;  %v13884_v28 = vld [vmem:[#allocation78_spill] sm:$0xff]  ;;  %s7443_s26 = sld [smem:[#allocation6 + $0xdb]] }
 0x6b6   : > { %6055 = vrot.lane.b32.xlu2 %v6049_v52, %s7695_s5  ;;  %v5687_v17 = vadd.f32 %v11747_v16, %v5605_v0  ;;  %v5210_v52 = vadd.f32 %v13881_v61, %v5128_v56  ;;  %v5285_v59 = vadd.f32 %v13882_v8, %v5185_v24  ;;  %v5184_v1 = vadd.f32 %v5178_v42, %v5108_v22  ;;  %v13886_v8 = vld [vmem:[#allocation87_spill] sm:$0xff]  ;;  %s7428_s27 = sld [smem:[#allocation6 + $0x122]] }
 0x6b7   : > { %v11977_v9 = vpop.permute.xlu1 %5703  ;;  %v11979_v14 = vpop.permute.xlu0 %5701  ;;  %v5617_v40 = vrot.slane %v11960_v6, 2  ;;  %v5536_v13 = vadd.f32 %v11620_v2, %v5436_v11  ;;  %v6168_v16 = vmul.f32 %v11617_v33, %v6165_v31  ;;  %v6167_v18 = vmul.f32 %v11624_v7, %v6165_v31  ;;  %v13883_v2 = vld [vmem:[#allocation84_spill] sm:$0xff] }
 0x6b8   : > { %v5781_v25 = vpop.permute.xlu2 %5780  ;;  %v11991_v55 = vmul.f32 %v11617_v33, %v11975_v30  ;;  %v6151_v56 = vsel %vm1549_vm2, %v6148_v38, %v6150_v53  ;;  %v6149_v19 = vsel %vm1549_vm2, %v6147_v3, %v6148_v38  ;;  %v6166_v42 = vmul.f32 %v11628_v51, %v6165_v31 }
 0x6b9   : > { %v11985_v4 = vadd.f32 %v5781_v25, %v5687_v17  ;;  %v11997_v22 = vadd.f32 %v11854_v35, %v5089_v37  ;;  %v5284_v24 = vadd.f32 %v13883_v2, %v5184_v1  ;;  %v5647_v0 = vmul.f32 %v11624_v7, %v11835_v46  ;;  %v13885_v17 = vld [vmem:[#allocation86_spill] sm:$0xff] }
 0x6ba   : > { %v5646_v39 = vmul.f32 %v11628_v51, %v11835_v46  ;;  %v5209_v11 = vadd.f32 %v13884_v28, %v5127_v32  ;;  %v5361_v61 = vadd.f32 %v13885_v17, %v5261_v27  ;;  %v5310_v38 = vadd.f32 %v13886_v8, %v5210_v52  ;;  %v13887_v46 = vld [vmem:[#allocation95_spill] sm:$0xff]  ;;  %v13888_v17 = vld [vmem:[#allocation80_spill] sm:$0xff] }
 0x6bb   : > { %v5385_v3 = vadd.f32 %v11484_v26, %v5285_v59  ;;  %v5384_v35 = vadd.f32 %v11486_v50, %v5284_v24  ;;  %v5624_v37 = vadd.f32 %v5617_v40, %v5536_v13  ;;  %v6175_v31 = vrot.slane %v6168_v16, 3 }
 0x6bc   : > { %v6173_v1 = vrot.slane %v6167_v18, 3  ;;  %v5461_v25 = vadd.f32 %v13887_v46, %v5361_v61  ;;  %v5636_v32 = vrot.slane %v11991_v55, 2  ;;  %v6172_v27 = vrot.slane %v6166_v42, 3  ;;  %v13889_v61 = vld [vmem:[#allocation88_spill] sm:$0xff] }
 0x6bd   : > { %6154 = vrot.lane.b32.xlu1 %v6151_v56, %s7692_s22  ;;  %6152 = vrot.lane.b32.xlu0 %v6149_v19, %s7692_s22  ;;  %v6190_v52 = vstv %s11969_s28  ;;  %v5712_v26 = vadd.f32 %v11807_v12, %v5624_v37  ;;  %v5590_v50 = vmul.f32 %v11624_v7, %v11879_v44  ;;  %v5653_v56 = vrot.slane %v5647_v0, 2  ;;  %v13890_v37 = vld [vmem:[#allocation81_spill] sm:$0xff]  ;;  %s7444_s28 = sld [smem:[#allocation6 + $0x126]] }
 0x6be   : > { %6156 = vrot.lane.b32.xlu2 %v6150_v53, %s7692_s22  ;;  %v5652_v16 = vrot.slane %v5646_v39, 2  ;;  %v5561_v18 = vadd.f32 %v11665_v49, %v5461_v25  ;;  %v5485_v19 = vadd.f32 %v11653_v47, %v5385_v3  ;;  %v5484_v53 = vadd.f32 %v11655_v36, %v5384_v35 }
 0x6bf   : > { %v12020_v59 = vpop.permute.xlu1 %5728  ;;  %v12022_v13 = vpop.permute.xlu0 %5726  ;;  %v5589_v12 = vmul.f32 %v11628_v51, %v11879_v44  ;;  %v6176_v24 = vsel %vm1549_vm2, %v6173_v1, %v6175_v31  ;;  %v6193_v28 = vmul.f32 %v11617_v33, %v6190_v52  ;;  %v6192_v0 = vmul.f32 %v11624_v7, %v6190_v52 }
 0x6c0   : > { %v5806_v42 = vpop.permute.xlu2 %5805  ;;  %v5585_v39 = vadd.f32 %v11857_v29, %v5485_v19  ;;  %v5584_v49 = vadd.f32 %v11859_v57, %v5484_v53  ;;  %v6174_v47 = vsel %vm1549_vm2, %v6172_v27, %v6173_v1  ;;  %v6191_v36 = vmul.f32 %v11628_v51, %v6190_v52 }
 0x6c1   : > { %v12031_v2 = vadd.f32 %v5806_v42, %v5712_v26  ;;  %v5235_v44 = vadd.f32 %v13888_v17, %v11946_v5  ;;  %v5309_v8 = vadd.f32 %v13889_v61, %v5209_v11  ;;  %v5656_v3 = vsel %vm1072_vm1, %v5653_v56, %v5655_v20 }
 0x6c2   : > { %v5654_v35 = vsel %vm1072_vm1, %v5652_v16, %v5653_v56  ;;  %v5234_v29 = vadd.f32 %v13890_v37, %v11949_v54  ;;  %v5410_v57 = vadd.f32 %v11529_v10, %v5310_v38  ;;  %v5596_v46 = vrot.slane %v5590_v50, 2 }
 0x6c3   : > { %v5595_v1 = vrot.slane %v5589_v12, 2  ;;  %v5409_v25 = vadd.f32 %v11531_v41, %v5309_v8  ;;  %v5643_v5 = vadd.f32 %v5636_v32, %v5561_v18  ;;  %v6200_v20 = vrot.slane %v6193_v28, 3  ;;  %v13891_v12 = vld [vmem:[#allocation89_spill] sm:$0xff]  ;;  %v13895_v8 = vld [vmem:[#allocation96_spill] sm:$0xff] }
 0x6c4   : > { %v6198_v63 = vrot.slane %v6192_v0, 3  ;;  %v5609_v11 = vmul.f32 %v11624_v7, %v11934_v43  ;;  %v5661_v10 = vadd.f32 %v5656_v3, %v5585_v39  ;;  %v5660_v54 = vadd.f32 %v5654_v35, %v5584_v49  ;;  %v13892_v0 = vld [vmem:[#allocation90_spill] sm:$0xff]  ;;  %v13896_v35 = vld [vmem:[#allocation97_spill] sm:$0xff] }
 0x6c5   : > { %6179 = vrot.lane.b32.xlu1 %v6176_v24, %s7692_s22  ;;  %6177 = vrot.lane.b32.xlu0 %v6174_v47, %s7692_s22  ;;  %v6197_v38 = vrot.slane %v6191_v36, 3  ;;  %v5510_v41 = vadd.f32 %v11690_v23, %v5410_v57  ;;  %v5509_v27 = vadd.f32 %v11692_v62, %v5409_v25  ;;  %v5737_v52 = vadd.f32 %v11875_v60, %v5643_v5 }
 0x6c6   : > { %6181 = vrot.lane.b32.xlu2 %v6175_v31, %s7692_s22  ;;  %v6215_v56 = vstv %s12024_s29  ;;  %v5599_v16 = vsel %vm1072_vm1, %v5596_v46, %v5598_v45  ;;  %v5597_v31 = vsel %vm1072_vm1, %v5595_v1, %v5596_v46  ;;  %v5335_v23 = vadd.f32 %v13891_v12, %v5235_v44  ;;  %v13894_v44 = vld [vmem:[#allocation106_spill] sm:$0xff]  ;;  %s7449_s29 = sld [smem:[#allocation6 + $0x47]] }
 0x6c7   : > { %v5754_v26 = vpop.permute.xlu1 %5753  ;;  %v5752_v50 = vpop.permute.xlu0 %5751  ;;  %v5608_v62 = vmul.f32 %v11628_v51, %v11934_v43  ;;  %v6201_v42 = vsel %vm1549_vm2, %v6198_v63, %v6200_v20  ;;  %v6199_v48 = vsel %vm1549_vm2, %v6197_v38, %v6198_v63  ;;  %v6218_v45 = vmul.f32 %v11617_v33, %v6215_v56  ;;  %v13893_v43 = vld [vmem:[#allocation79_spill] sm:$0xff]  ;;  %v13900_v12 = vld [vmem:[#allocation94_spill] sm:$0xff] }
 0x6c8   : > { %v5831_v18 = vpop.permute.xlu2 %5830  ;;  %v12068_v19 = vadd.f32 %v5754_v26, %v5661_v10  ;;  %v12070_v53 = vadd.f32 %v5752_v50, %v5660_v54  ;;  %v6217_v24 = vmul.f32 %v11624_v7, %v6215_v56  ;;  %v6216_v28 = vmul.f32 %v11628_v51, %v6215_v56 }
 0x6c9   : > { %v12075_v60 = vadd.f32 %v5831_v18, %v5737_v52  ;;  %v5334_v39 = vadd.f32 %v13892_v0, %v5234_v29  ;;  %v5604_v49 = vadd.f32 %v5599_v16, %v5510_v41  ;;  %v5603_v47 = vadd.f32 %v5597_v31, %v5509_v27  ;;  %v13899_v41 = vld [vmem:[#allocation101_spill] sm:$0xff] }
 0x6ca   : > { %v5615_v36 = vrot.slane %v5609_v11, 2  ;;  %v5260_v17 = vadd.f32 %v13893_v43, %v11997_v22  ;;  %v5165_v61 = vadd.f32 %v13894_v44, %v11955_v58  ;;  %v5435_v3 = vadd.f32 %v13895_v8, %v5335_v23  ;;  %v13897_v58 = vld [vmem:[#allocation82_spill] sm:$0xff] }
 0x6cb   : > { %v5434_v37 = vadd.f32 %v13896_v35, %v5334_v39  ;;  %v5686_v57 = vadd.f32 %v11923_v15, %v5604_v49  ;;  %v5685_v46 = vadd.f32 %v11925_v34, %v5603_v47  ;;  %v5614_v1 = vrot.slane %v5608_v62, 2  ;;  %v13901_v62 = vld [vmem:[#allocation92_spill] sm:$0xff]  ;;  %v13903_v39 = vld [vmem:[#allocation98_spill] sm:$0xff] }
 0x6cc   : > { %v6225_v29 = vrot.slane %v6218_v45, 3  ;;  %v6223_v22 = vrot.slane %v6217_v24, 3  ;;  %v6222_v25 = vrot.slane %v6216_v28, 3  ;;  %v6240_v5 = vstv %s12058_s4  ;;  %s7450_s4 = sld [smem:[#allocation6 + $0x92]] }
 0x6cd   : > { %6204 = vrot.lane.b32.xlu1 %v6201_v42, %s7692_s22  ;;  %6202 = vrot.lane.b32.xlu0 %v6199_v48, %s7692_s22  ;;  %v5259_v63 = vadd.f32 %v13897_v58, %v5165_v61  ;;  %v5618_v11 = vsel %vm1072_vm1, %v5615_v36, %v5617_v40  ;;  %v5628_v15 = vmul.f32 %v11624_v7, %v11975_v30  ;;  %v13904_v61 = vld [vmem:[#allocation103_spill] sm:$0xff] }
 0x6ce   : > { %6206 = vrot.lane.b32.xlu2 %v6200_v20, %s7692_s22  ;;  %v5627_v34 = vmul.f32 %v11628_v51, %v11975_v30  ;;  %v13898_v20 = vld [vmem:[#allocation99_spill] sm:$0xff]  ;;  %v5534_v27 = vadd.f32 %v13899_v41, %v5434_v37  ;;  %v5616_v40 = vsel %vm1072_vm1, %v5614_v1, %v5615_v36  ;;  %v6243_v30 = vmul.f32 %v11617_v33, %v6240_v5 }
 0x6cf   : > { %v5779_v10 = vpop.permute.xlu1 %5778  ;;  %v5777_v54 = vpop.permute.xlu0 %5776  ;;  %v5535_v38 = vadd.f32 %v13898_v20, %v5435_v3  ;;  %v6242_v56 = vmul.f32 %v11624_v7, %v6240_v5  ;;  %v6226_v16 = vsel %vm1549_vm2, %v6223_v22, %v6225_v29  ;;  %v6224_v31 = vsel %vm1549_vm2, %v6222_v25, %v6223_v22  ;;  %v13905_v3 = vld [vmem:[#allocation102_spill] sm:$0xff] }
 0x6d0   : > { %v5856_v52 = vpop.permute.xlu2 %5855  ;;  %v12107_v26 = vadd.f32 %v5779_v10, %v5686_v57  ;;  %v12109_v6 = vadd.f32 %v5777_v54, %v5685_v46  ;;  %v6241_v18 = vmul.f32 %v11628_v51, %v6240_v5  ;;  %v5360_v23 = vadd.f32 %v13900_v12, %v5260_v17 }
 0x6d1   : > { %v12113_v50 = vadd.f32 %v5856_v52, %v11936_v21  ;;  %v5359_v42 = vadd.f32 %v13901_v62, %v5259_v63  ;;  %v5623_v48 = vadd.f32 %v5618_v11, %v5535_v38  ;;  %v5622_v45 = vadd.f32 %v5616_v40, %v5534_v27  ;;  %v13902_v21 = vld [vmem:[#allocation100_spill] sm:$0xff] }
 0x6d2   : > { %v5634_v24 = vrot.slane %v5628_v15, 2  ;;  %v5633_v28 = vrot.slane %v5627_v34, 2  ;;  %v5460_v0 = vadd.f32 %v13902_v21, %v5360_v23  ;;  %v6250_v47 = vrot.slane %v6243_v30, 3 }
 0x6d3   : > { %v5459_v49 = vadd.f32 %v13903_v39, %v5359_v42  ;;  %v6248_v36 = vrot.slane %v6242_v56, 3  ;;  %v5711_v43 = vadd.f32 %v11977_v9, %v5623_v48  ;;  %v5710_v17 = vadd.f32 %v11979_v14, %v5622_v45 }
 0x6d4   : > { %v6247_v44 = vrot.slane %v6241_v18, 3  ;;  %v5560_v8 = vadd.f32 %v13904_v61, %v5460_v0  ;;  %v6265_v46 = vstv %s12103_s6  ;;  %v5637_v1 = vsel %vm1072_vm1, %v5634_v24, %v5636_v32  ;;  %s7451_s6 = sld [smem:[#allocation6 + $0xdd]] }
 0x6d5   : > { %6229 = vrot.lane.b32.xlu1 %v6226_v16, %s7692_s22  ;;  %6227 = vrot.lane.b32.xlu0 %v6224_v31, %s7692_s22  ;;  %v5559_v35 = vadd.f32 %v13905_v3, %v5459_v49  ;;  %v5635_v22 = vsel %vm1072_vm1, %v5633_v28, %v5634_v24  ;;  %v6251_v5 = vsel %vm1549_vm2, %v6248_v36, %v6250_v47  ;;  %v6290_v38 = vstv %s7435_s7  ;;  %s7452_s7 = sld [smem:[#allocation6 + $0x128]] }
 0x6d6   : > { %6231 = vrot.lane.b32.xlu2 %v6225_v29, %s7692_s22  ;;  %v6249_v58 = vsel %vm1549_vm2, %v6247_v44, %v6248_v36  ;;  %v6268_v63 = vmul.f32 %v11617_v33, %v6265_v46  ;;  %v6267_v55 = vmul.f32 %v11624_v7, %v6265_v46  ;;  %v6266_v32 = vmul.f32 %v11628_v51, %v6265_v46 }
 0x6d7   : > { %v5804_v37 = vpop.permute.xlu1 %5803  ;;  %v5802_v57 = vpop.permute.xlu0 %5801  ;;  %v5642_v11 = vadd.f32 %v5637_v1, %v5560_v8  ;;  %v5641_v15 = vadd.f32 %v5635_v22, %v5559_v35  ;;  %v6292_v56 = vmul.f32 %v11624_v7, %v6290_v38  ;;  %v6291_v18 = vmul.f32 %v11628_v51, %v6290_v38 }
 0x6d8   : > { %v5881_v9 = vpop.permute.xlu2 %5880  ;;  %v12136_v25 = vadd.f32 %v5804_v37, %v5711_v43  ;;  %v12138_v14 = vadd.f32 %v5802_v57, %v5710_v17  ;;  %v6273_v54 = vrot.slane %v6267_v55, 3  ;;  %v6272_v20 = vrot.slane %v6266_v32, 3 }
 0x6d9   : > { %v12141_v29 = vadd.f32 %v5881_v9, %v11985_v4  ;;  %v5736_v34 = vadd.f32 %v12020_v59, %v5642_v11  ;;  %v5735_v10 = vadd.f32 %v12022_v13, %v5641_v15  ;;  %v6275_v4 = vrot.slane %v6268_v63, 3  ;;  %v12214_v11 = vld [vmem:[%s7802_s9 + $0x40] sm:$0xff] }
 0x6da   : > { %v6293_v13 = vmul.f32 %v11617_v33, %v6290_v38  ;;  %v6274_v31 = vsel %vm1549_vm2, %v6272_v20, %v6273_v54  ;;  %v6298_v23 = vrot.slane %v6292_v56, 3  ;;  %v6315_v48 = vstv %s7436_s8  ;;  %s7453_s8 = sld [smem:[#allocation6 + $0x48]] }
 0x6db   : > { %v6276_v16 = vsel %vm1549_vm2, %v6273_v54, %v6275_v4  ;;  %v6318_v49 = vmul.f32 %v11617_v33, %v6315_v48  ;;  %v6316_v36 = vmul.f32 %v11628_v51, %v6315_v48  ;;  %v6340_v43 = vstv %s7437_s23  ;;  %s7454_s23 = sld [smem:[#allocation6 + $0x93]] }
 0x6dc   : > { %v6300_v12 = vrot.slane %v6293_v13, 3  ;;  %v6343_v37 = vmul.f32 %v11617_v33, %v6340_v43  ;;  %v6342_v57 = vmul.f32 %v11624_v7, %v6340_v43  ;;  %v6341_v22 = vmul.f32 %v11628_v51, %v6340_v43 }
 0x6dd   : > { %6254 = vrot.lane.b32.xlu1 %v6251_v5, %s7693_s19  ;;  %6252 = vrot.lane.b32.xlu0 %v6249_v58, %s7693_s19  ;;  %v6365_v9 = vstv %s7438_s30  ;;  %v6390_v20 = vstv %s7439_s10  ;;  %s7455_s30 = sld [smem:[#allocation6 + $0xde]] }
 0x6de   : > { %6256 = vrot.lane.b32.xlu2 %v6250_v47, %s7693_s19  ;;  %v6301_v0 = vsel %vm1549_vm2, %v6298_v23, %v6300_v12  ;;  %v6317_v47 = vmul.f32 %v11624_v7, %v6315_v48  ;;  %v6347_v33 = vrot.slane %v6341_v22, 3  ;;  %v6368_v15 = vmul.f32 %v12214_v11, %v6365_v9  ;;  %s7457_s10 = sld [smem:[#allocation6 + $0x49]] }
 0x6df   : > { %v5829_v41 = vpop.permute.xlu1 %5828  ;;  %v5827_v27 = vpop.permute.xlu0 %5826  ;;  %v6440_v43 = vstv %s7441_s18  ;;  %s7445_s18 = sld [smem:[#allocation6 + $0x46]] }
 0x6e0   : > { %v5906_v52 = vpop.permute.xlu2 %5905  ;;  %v12153_v40 = vadd.f32 %v5829_v41, %v5736_v34  ;;  %v12155_v30 = vadd.f32 %v5827_v27, %v5735_v10  ;;  %v12218_v34 = vld [vmem:[%s7802_s9 + $0x38] sm:$0xff]  ;;  %v6443_v22 = vmul.f32 %v12214_v11, %v6440_v43 }
 0x6e1   : > { %v12158_v59 = vadd.f32 %v5906_v52, %v12031_v2  ;;  %v6297_v2 = vrot.slane %v6291_v18, 3  ;;  %v6367_v10 = vmul.f32 %v12218_v34, %v6365_v9 }
 0x6e3   : > { %v6299_v39 = vsel %vm1549_vm2, %v6297_v2, %v6298_v23 }
 0x6e5   : > { %6279 = vrot.lane.b32.xlu1 %v6276_v16, %s7693_s19  ;;  %6277 = vrot.lane.b32.xlu0 %v6274_v31, %s7693_s19  ;;  %v6393_v16 = vmul.f32 %v12214_v11, %v6390_v20  ;;  %v6392_v31 = vmul.f32 %v12218_v34, %v6390_v20 }
 0x6e6   : > { %6281 = vrot.lane.b32.xlu2 %v6275_v4, %s7693_s19  ;;  %v6373_v4 = vrot.slane %v6367_v10, 3  ;;  %v6465_v10 = vstv %s7442_s24  ;;  %s7446_s24 = sld [smem:[#allocation6 + $0x91]] }
 0x6e7   : > { %v5854_v62 = vpop.permute.xlu1 %5853  ;;  %v5852_v42 = vpop.permute.xlu0 %5851 }
 0x6e8   : > { %v5931_v45 = vpop.permute.xlu2 %5930  ;;  %v12169_v24 = vadd.f32 %v5854_v62, %v12068_v19  ;;  %v12172_v28 = vadd.f32 %v5852_v42, %v12070_v53  ;;  %v6325_v19 = vrot.slane %v6318_v49, 3  ;;  %v6323_v53 = vrot.slane %v6317_v47, 3 }
 0x6e9   : > { %v12175_v21 = vadd.f32 %v5931_v45, %v12075_v60  ;;  %v6322_v60 = vrot.slane %v6316_v36, 3  ;;  %v6415_v42 = vstv %s7440_s11  ;;  %s7458_s11 = sld [smem:[#allocation6 + $0x94]] }
 0x6ea   : > { %v6326_v46 = vsel %vm1549_vm2, %v6323_v53, %v6325_v19  ;;  %v6418_v36 = vmul.f32 %v12214_v11, %v6415_v42 }
 0x6eb   : > { %v6324_v1 = vsel %vm1549_vm2, %v6322_v60, %v6323_v53  ;;  %v12259_v60 = vstv %s7425_s12  ;;  %s7459_s12 = sld [smem:[#allocation6 + $0xdf]] }
 0x6ed   : > { %6304 = vrot.lane.b32.xlu1 %v6301_v0, %s7693_s19  ;;  %6302 = vrot.lane.b32.xlu0 %v6299_v39, %s7693_s19 }
 0x6ee   : > { %6306 = vrot.lane.b32.xlu2 %v6300_v12, %s7693_s19 }
 0x6ef   : > { %v5879_v17 = vpop.permute.xlu1 %5878  ;;  %v5877_v44 = vpop.permute.xlu0 %5876 }
 0x6f0   : > { %v5956_v61 = vpop.permute.xlu2 %5955  ;;  %v12186_v8 = vadd.f32 %v5879_v17, %v12107_v26  ;;  %v12189_v3 = vadd.f32 %v5877_v44, %v12109_v6  ;;  %v6350_v26 = vrot.slane %v6343_v37, 3  ;;  %v6348_v6 = vrot.slane %v6342_v57, 3 }
 0x6f1   : > { %v12192_v35 = vadd.f32 %v5956_v61, %v12113_v50  ;;  %v12266_v61 = vmul.f32 %v12214_v11, %v12259_v60 }
 0x6f2   : > { %v6351_v55 = vsel %vm1549_vm2, %v6348_v6, %v6350_v26  ;;  %v6349_v32 = vsel %vm1549_vm2, %v6347_v33, %v6348_v6 }
 0x6f5   : > { %6329 = vrot.lane.b32.xlu1 %v6326_v46, %s7693_s19  ;;  %6327 = vrot.lane.b32.xlu0 %v6324_v1, %s7693_s19 }
 0x6f6   : > { %6331 = vrot.lane.b32.xlu2 %v6325_v19, %s7693_s19  ;;  %v6417_v19 = vmul.f32 %v12218_v34, %v6415_v42 }
 0x6f7   : > { %v5904_v7 = vpop.permute.xlu1 %5903  ;;  %v5902_v50 = vpop.permute.xlu0 %5901 }
 0x6f8   : > { %v5981_v5 = vpop.permute.xlu2 %5980  ;;  %v12203_v58 = vadd.f32 %v5904_v7, %v12136_v25  ;;  %v12206_v51 = vadd.f32 %v5902_v50, %v12138_v14  ;;  %v12222_v25 = vld [vmem:[%s7802_s9 + $0x30] sm:$0xff]  ;;  %v6074_v50 = vrot.slane %v12266_v61, 3 }
 0x6f9   : > { %v12209_v63 = vadd.f32 %v5981_v5, %v12141_v29  ;;  %v6366_v14 = vmul.f32 %v12222_v25, %v6365_v9  ;;  %v6375_v29 = vrot.slane %v6368_v15, 3  ;;  %v6391_v23 = vmul.f32 %v12222_v25, %v6390_v20 }
 0x6fa   : > { %v6416_v53 = vmul.f32 %v12222_v25, %v6415_v42  ;;  %v6441_v7 = vmul.f32 %v12222_v25, %v6440_v43 }
 0x6fb   : > { %v6372_v54 = vrot.slane %v6366_v14, 3  ;;  %v6376_v18 = vsel %vm1549_vm2, %v6373_v4, %v6375_v29  ;;  %v6081_v5 = vadd.f32 %v6074_v50, %v12209_v63 }
 0x6fc   : > { %v6447_v9 = vrot.slane %v6441_v7, 3 }
 0x6fd   : > { %6354 = vrot.lane.b32.xlu1 %v6351_v55, %s7694_s15  ;;  %6352 = vrot.lane.b32.xlu0 %v6349_v32, %s7694_s15  ;;  %v6374_v12 = vsel %vm1549_vm2, %v6372_v54, %v6373_v4 }
 0x6fe   : > { %6356 = vrot.lane.b32.xlu2 %v6350_v26, %s7694_s15  ;;  %v6442_v26 = vmul.f32 %v12218_v34, %v6440_v43 }
 0x6ff   : > { %v5929_v38 = vpop.permute.xlu1 %5928  ;;  %v5927_v41 = vpop.permute.xlu0 %5926 }
 0x700   : > { %v6006_v27 = vpop.permute.xlu2 %6005  ;;  %v12229_v52 = vadd.f32 %v5929_v38, %v12153_v40  ;;  %v12232_v13 = vadd.f32 %v5927_v41, %v12155_v30  ;;  %v6400_v40 = vrot.slane %v6393_v16, 3  ;;  %v6398_v30 = vrot.slane %v6392_v31, 3 }
 0x701   : > { %v12235_v56 = vadd.f32 %v6006_v27, %v12158_v59  ;;  %v6397_v59 = vrot.slane %v6391_v23, 3  ;;  %v6468_v38 = vmul.f32 %v12214_v11, %v6465_v10  ;;  %v6467_v41 = vmul.f32 %v12218_v34, %v6465_v10 }
 0x702   : > { %v6401_v49 = vsel %vm1549_vm2, %v6398_v30, %v6400_v40  ;;  %v6466_v27 = vmul.f32 %v12222_v25, %v6465_v10  ;;  %v12309_v31 = vstv %s7427_s25  ;;  %s7462_s25 = sld [smem:[#allocation6 + $0x95]] }
 0x703   : > { %v6399_v47 = vsel %vm1549_vm2, %v6397_v59, %v6398_v30  ;;  %v12319_v59 = vmul.f32 %v12214_v11, %v12309_v31 }
 0x705   : > { %6379 = vrot.lane.b32.xlu1 %v6376_v18, %s7694_s15  ;;  %6377 = vrot.lane.b32.xlu0 %v6374_v12, %s7694_s15  ;;  %v6472_v18 = vrot.slane %v6466_v27, 3  ;;  %v6490_v12 = vstv %s7443_s26  ;;  %v6616_v27 = vstv %s7449_s29  ;;  %s7447_s26 = sld [smem:[#allocation6 + $0xdc]] }
 0x706   : > { %6381 = vrot.lane.b32.xlu2 %v6375_v29, %s7694_s15 }
 0x707   : > { %v5954_v2 = vpop.permute.xlu1 %5953  ;;  %v5952_v62 = vpop.permute.xlu0 %5951 }
 0x708   : > { %v6031_v48 = vpop.permute.xlu2 %6030  ;;  %v12246_v45 = vadd.f32 %v5954_v2, %v12169_v24  ;;  %v12249_v0 = vadd.f32 %v5952_v62, %v12172_v28  ;;  %v6425_v24 = vrot.slane %v6418_v36, 3  ;;  %v6423_v28 = vrot.slane %v6417_v19, 3 }
 0x709   : > { %v12252_v39 = vadd.f32 %v6031_v48, %v12175_v21  ;;  %v6422_v21 = vrot.slane %v6416_v53, 3  ;;  %v6066_v48 = vmul.f32 %v12218_v34, %v12259_v60  ;;  %v6065_v36 = vmul.f32 %v12222_v25, %v12259_v60 }
 0x70a   : > { %v6426_v6 = vsel %vm1549_vm2, %v6423_v28, %v6425_v24  ;;  %v6491_v53 = vmul.f32 %v12222_v25, %v6490_v12 }
 0x70b   : > { %v6424_v33 = vsel %vm1549_vm2, %v6422_v21, %v6423_v28  ;;  %v6072_v43 = vrot.slane %v6066_v48, 3  ;;  %v6618_v48 = vmul.f32 %v12218_v34, %v6616_v27 }
 0x70c   : > { %v6497_v60 = vrot.slane %v6491_v53, 3 }
 0x70d   : > { %6404 = vrot.lane.b32.xlu1 %v6401_v49, %s7694_s15  ;;  %6402 = vrot.lane.b32.xlu0 %v6399_v47, %s7694_s15  ;;  %v6492_v47 = vmul.f32 %v12218_v34, %v6490_v12 }
 0x70e   : > { %6406 = vrot.lane.b32.xlu2 %v6400_v40, %s7694_s15 }
 0x70f   : > { %v5979_v17 = vpop.permute.xlu1 %5978  ;;  %v5977_v44 = vpop.permute.xlu0 %5976  ;;  %v6498_v21 = vrot.slane %v6492_v47, 3 }
 0x710   : > { %v6056_v37 = vpop.permute.xlu2 %6055  ;;  %v12269_v57 = vadd.f32 %v5979_v17, %v12186_v8  ;;  %v12272_v46 = vadd.f32 %v5977_v44, %v12189_v3  ;;  %v12283_v8 = vstv %s7426_s21  ;;  %v6450_v3 = vrot.slane %v6443_v22, 3  ;;  %s7461_s21 = sld [smem:[#allocation6 + $0x4a]] }
 0x711   : > { %v12275_v1 = vadd.f32 %v6056_v37, %v12192_v35  ;;  %v6448_v35 = vrot.slane %v6442_v26, 3  ;;  %v12293_v15 = vmul.f32 %v12214_v11, %v12283_v8  ;;  %v6071_v17 = vrot.slane %v6065_v36, 3 }
 0x712   : > { %v6084_v61 = vmul.f32 %v12222_v25, %v12283_v8  ;;  %v6617_v36 = vmul.f32 %v12222_v25, %v6616_v27 }
 0x713   : > { %v6451_v20 = vsel %vm1549_vm2, %v6448_v35, %v6450_v3  ;;  %v6449_v63 = vsel %vm1549_vm2, %v6447_v9, %v6448_v35  ;;  %v6093_v16 = vrot.slane %v12293_v15, 3 }
 0x715   : > { %6429 = vrot.lane.b32.xlu1 %v6426_v6, %s7694_s15  ;;  %6427 = vrot.lane.b32.xlu0 %v6424_v33, %s7694_s15  ;;  %v6100_v23 = vadd.f32 %v6093_v16, %v12235_v56  ;;  %v6493_v56 = vmul.f32 %v12214_v11, %v6490_v12  ;;  %v6515_v6 = vstv %s7444_s28  ;;  %v6090_v12 = vrot.slane %v6084_v61, 3  ;;  %s7464_s28 = sld [smem:[#allocation6 + $0x12b]] }
 0x716   : > { %6431 = vrot.lane.b32.xlu2 %v6425_v24, %s7694_s15  ;;  %v12339_v24 = vstv %s7428_s27  ;;  %v6516_v10 = vmul.f32 %v12222_v25, %v6515_v6  ;;  %s7463_s27 = sld [smem:[#allocation6 + $0xe0]] }
 0x717   : > { %v6004_v55 = vpop.permute.xlu1 %6003  ;;  %v6002_v32 = vpop.permute.xlu0 %6001  ;;  %v6500_v28 = vrot.slane %v6493_v56, 3  ;;  %v12349_v26 = vmul.f32 %v12214_v11, %v12339_v24 }
 0x718   : > { %v6157_v14 = vpop.permute.xlu2 %6156  ;;  %v12296_v29 = vadd.f32 %v6004_v55, %v12203_v58  ;;  %v12299_v4 = vadd.f32 %v6002_v32, %v12206_v51  ;;  %v6475_v58 = vrot.slane %v6468_v38, 3  ;;  %v6473_v51 = vrot.slane %v6467_v41, 3 }
 0x719   : > { %v12301_v54 = vadd.f32 %v6157_v14, %v6081_v5  ;;  %v6501_v9 = vsel %vm1549_vm2, %v6498_v21, %v6500_v28  ;;  %v6073_v5 = vsel %vm1549_vm2, %v6071_v17, %v6072_v43  ;;  %v6499_v55 = vsel %vm1549_vm2, %v6497_v60, %v6498_v21 }
 0x71a   : > { %v6476_v19 = vsel %vm1549_vm2, %v6473_v51, %v6475_v58  ;;  %v6518_v32 = vmul.f32 %v12214_v11, %v6515_v6  ;;  %v6085_v14 = vmul.f32 %v12218_v34, %v12283_v8  ;;  %v6522_v41 = vrot.slane %v6516_v10, 3 }
 0x71b   : > { %v6623_v60 = vrot.slane %v6617_v36, 4  ;;  %v6691_v36 = vstv %s7452_s7 }
 0x71d   : > { %6454 = vrot.lane.b32.xlu1 %v6451_v20, %s7695_s5  ;;  %6452 = vrot.lane.b32.xlu0 %v6449_v63, %s7695_s5  ;;  %v6079_v20 = vadd.f32 %v6073_v5, %v12272_v46  ;;  %v6525_v63 = vrot.slane %v6518_v32, 3  ;;  %v6104_v46 = vmul.f32 %v12218_v34, %v12309_v31 }
 0x71e   : > { %6456 = vrot.lane.b32.xlu2 %v6450_v3, %s7695_s5 }
 0x71f   : > { %v6029_v40 = vpop.permute.xlu1 %6028  ;;  %v6027_v30 = vpop.permute.xlu0 %6026  ;;  %v6110_v21 = vrot.slane %v6104_v46, 3 }
 0x720   : > { %v6182_v2 = vpop.permute.xlu2 %6181  ;;  %v12322_v62 = vadd.f32 %v6029_v40, %v12229_v52  ;;  %v12325_v42 = vadd.f32 %v6027_v30, %v12232_v13  ;;  %v6474_v52 = vsel %vm1549_vm2, %v6472_v18, %v6473_v51  ;;  %v6112_v13 = vrot.slane %v12319_v59, 3 }
 0x721   : > { %v12329_v49 = vadd.f32 %v6182_v2, %v6100_v23  ;;  %v6091_v18 = vrot.slane %v6085_v14, 3  ;;  %v6619_v2 = vmul.f32 %v12214_v11, %v6616_v27 }
 0x722   : > { %v6119_v44 = vadd.f32 %v6112_v13, %v12252_v39  ;;  %v6075_v39 = vsel %vm1549_vm2, %v6072_v43, %v6074_v50 }
 0x723   : > { %v6080_v50 = vadd.f32 %v6075_v39, %v12269_v57  ;;  %v6626_v53 = vrot.slane %v6619_v2, 4 }
 0x725   : > { %6479 = vrot.lane.b32.xlu1 %v6476_v19, %s7695_s5  ;;  %6477 = vrot.lane.b32.xlu0 %v6474_v52, %s7695_s5  ;;  %v6094_v19 = vsel %vm1549_vm2, %v6091_v18, %v6093_v16  ;;  %v6092_v52 = vsel %vm1549_vm2, %v6090_v12, %v6091_v18 }
 0x726   : > { %6481 = vrot.lane.b32.xlu2 %v6475_v58, %s7695_s5  ;;  %v6099_v43 = vadd.f32 %v6094_v19, %v12296_v29  ;;  %v6098_v17 = vadd.f32 %v6092_v52, %v12299_v4  ;;  %v6113_v29 = vsel %vm1549_vm2, %v6110_v21, %v6112_v13 }
 0x727   : > { %v6054_v37 = vpop.permute.xlu1 %6053  ;;  %v6052_v22 = vpop.permute.xlu0 %6051  ;;  %v6118_v59 = vadd.f32 %v6113_v29, %v12322_v62 }
 0x728   : > { %v6207_v33 = vpop.permute.xlu2 %6206  ;;  %v12352_v7 = vadd.f32 %v6054_v37, %v12246_v45  ;;  %v12355_v3 = vadd.f32 %v6052_v22, %v12249_v0  ;;  %v6517_v45 = vmul.f32 %v12218_v34, %v6515_v6  ;;  %v6131_v0 = vrot.slane %v12349_v26, 3 }
 0x729   : > { %v12357_v35 = vadd.f32 %v6207_v33, %v6119_v44  ;;  %v6641_v44 = vstv %s7450_s4 }
 0x72a   : > { %v6523_v38 = vrot.slane %v6517_v45, 3  ;;  %v6138_v58 = vadd.f32 %v6131_v0, %v12275_v1  ;;  %v6103_v1 = vmul.f32 %v12222_v25, %v12309_v31  ;;  %v6644_v5 = vmul.f32 %v12214_v11, %v6641_v44 }
 0x72b   : > { %v6642_v32 = vmul.f32 %v12222_v25, %v6641_v44  ;;  %v6122_v45 = vmul.f32 %v12222_v25, %v12339_v24 }
 0x72c   : > { %v6526_v56 = vsel %vm1549_vm2, %v6523_v38, %v6525_v63  ;;  %v6524_v47 = vsel %vm1549_vm2, %v6522_v41, %v6523_v38  ;;  %v6109_v31 = vrot.slane %v6103_v1, 3  ;;  %v6651_v10 = vrot.slane %v6644_v5, 4 }
 0x72d   : > { %6504 = vrot.lane.b32.xlu1 %v6501_v9, %s7695_s5  ;;  %6502 = vrot.lane.b32.xlu0 %v6499_v55, %s7695_s5  ;;  %v6643_v55 = vmul.f32 %v12218_v34, %v6641_v44  ;;  %v6648_v61 = vrot.slane %v6642_v32, 4  ;;  %v6128_v41 = vrot.slane %v6122_v45, 3 }
 0x72e   : > { %6506 = vrot.lane.b32.xlu2 %v6500_v28, %s7695_s5  ;;  %v6624_v28 = vrot.slane %v6618_v48, 4  ;;  %v6111_v4 = vsel %vm1549_vm2, %v6109_v31, %v6110_v21  ;;  %v6692_v31 = vmul.f32 %v12222_v25, %v6691_v36 }
 0x72f   : > { %v6155_v51 = vpop.permute.xlu1 %6154  ;;  %v6153_v8 = vpop.permute.xlu0 %6152  ;;  %v6117_v13 = vadd.f32 %v6111_v4, %v12325_v42  ;;  %v6649_v14 = vrot.slane %v6643_v55, 4 }
 0x730   : > { %v6232_v23 = vpop.permute.xlu2 %6231  ;;  %v12381_v40 = vadd.f32 %v6155_v51, %v6080_v50  ;;  %v12383_v57 = vadd.f32 %v6153_v8, %v6079_v20  ;;  %v6627_v9 = vsel %vm2026_vm3, %v6624_v28, %v6626_v53  ;;  %v6625_v39 = vsel %vm2026_vm3, %v6623_v60, %v6624_v28 }
 0x731   : > { %v12387_v30 = vadd.f32 %v6232_v23, %v6138_v58  ;;  %v6666_v50 = vstv %s7451_s6  ;;  %v6652_v8 = vsel %vm2026_vm3, %v6649_v14, %v6651_v10  ;;  %v6650_v18 = vsel %vm2026_vm3, %v6648_v61, %v6649_v14 }
 0x732   : > { %v6669_v42 = vmul.f32 %v12214_v11, %v6666_v50  ;;  %v6668_v51 = vmul.f32 %v12218_v34, %v6666_v50  ;;  %v6667_v12 = vmul.f32 %v12222_v25, %v6666_v50  ;;  %v6716_v60 = vstv %s7453_s8 }
 0x733   : > { %v6719_v4 = vmul.f32 %v12214_v11, %v6716_v60  ;;  %v6717_v32 = vmul.f32 %v12222_v25, %v6716_v60 }
 0x734   : > { %v6674_v2 = vrot.slane %v6668_v51, 4 }
 0x735   : > { %6529 = vrot.lane.b32.xlu1 %v6526_v56, %s7695_s5  ;;  %6527 = vrot.lane.b32.xlu0 %v6524_v47, %s7695_s5  ;;  %v6673_v56 = vrot.slane %v6667_v12, 4 }
 0x736   : > { %6531 = vrot.lane.b32.xlu2 %v6525_v63, %s7695_s5 }
 0x737   : > { %v6180_v15 = vpop.permute.xlu1 %6179  ;;  %v6178_v16 = vpop.permute.xlu0 %6177  ;;  %v6675_v21 = vsel %vm2026_vm3, %v6673_v56, %v6674_v2 }
 0x738   : > { %v6257_v37 = vpop.permute.xlu2 %6256  ;;  %v12405_v22 = vadd.f32 %v6180_v15, %v6099_v43  ;;  %v12407_v6 = vadd.f32 %v6178_v16, %v6098_v17 }
 0x739   : > { %v12410_v33 = vadd.f32 %v6257_v37, %v12301_v54  ;;  %v6123_v54 = vmul.f32 %v12218_v34, %v12339_v24 }
 0x73b   : > { %v6129_v38 = vrot.slane %v6123_v54, 3 }
 0x73d   : > { %6630 = vrot.lane.b32.xlu1 %v6627_v9, %s7692_s22  ;;  %6628 = vrot.lane.b32.xlu0 %v6625_v39, %s7692_s22  ;;  %v6132_v23 = vsel %vm1549_vm2, %v6129_v38, %v6131_v0  ;;  %v6130_v46 = vsel %vm1549_vm2, %v6128_v41, %v6129_v38  ;;  %v6718_v39 = vmul.f32 %v12218_v34, %v6716_v60 }
 0x73e   : > { %6632 = vrot.lane.b32.xlu2 %v6626_v53, %s7692_s22  ;;  %v6137_v48 = vadd.f32 %v6132_v23, %v12352_v7  ;;  %v6136_v1 = vadd.f32 %v6130_v46, %v12355_v3  ;;  %v6694_v7 = vmul.f32 %v12214_v11, %v6691_v36  ;;  %v6693_v3 = vmul.f32 %v12218_v34, %v6691_v36 }
 0x73f   : > { %v6205_v20 = vpop.permute.xlu1 %6204  ;;  %v6203_v63 = vpop.permute.xlu0 %6202 }
 0x740   : > { %v6282_v24 = vpop.permute.xlu2 %6281  ;;  %v12430_v27 = vadd.f32 %v6205_v20, %v6118_v59  ;;  %v12432_v58 = vadd.f32 %v6203_v63, %v6117_v13  ;;  %v6701_v43 = vrot.slane %v6694_v7, 4  ;;  %v6699_v17 = vrot.slane %v6693_v3, 4 }
 0x741   : > { %v12435_v62 = vadd.f32 %v6282_v24, %v12329_v49  ;;  %v6676_v49 = vrot.slane %v6669_v42, 4  ;;  %v6741_v59 = vstv %s7454_s23  ;;  %v6766_v24 = vstv %s7455_s30 }
 0x742   : > { %v6702_v5 = vsel %vm2026_vm3, %v6699_v17, %v6701_v43  ;;  %v6744_v63 = vmul.f32 %v12214_v11, %v6741_v59  ;;  %v6743_v38 = vmul.f32 %v12218_v34, %v6741_v59  ;;  %v6742_v41 = vmul.f32 %v12222_v25, %v6741_v59 }
 0x743   : > { %v6677_v28 = vsel %vm2026_vm3, %v6674_v2, %v6676_v49  ;;  %v6769_v46 = vmul.f32 %v12214_v11, %v6766_v24 }
 0x745   : > { %6655 = vrot.lane.b32.xlu1 %v6652_v8, %s7692_s22  ;;  %6653 = vrot.lane.b32.xlu0 %v6650_v18, %s7692_s22 }
 0x746   : > { %6657 = vrot.lane.b32.xlu2 %v6651_v10, %s7692_s22 }
 0x747   : > { %v6230_v47 = vpop.permute.xlu1 %6229  ;;  %v6228_v26 = vpop.permute.xlu0 %6227 }
 0x748   : > { %v6307_v0 = vpop.permute.xlu2 %6306  ;;  %v12451_v19 = vadd.f32 %v6230_v47, %v6137_v48  ;;  %v12453_v52 = vadd.f32 %v6228_v26, %v6136_v1  ;;  %v6767_v1 = vmul.f32 %v12222_v25, %v6766_v24 }
 0x749   : > { %v12456_v53 = vadd.f32 %v6307_v0, %v12357_v35  ;;  %v6698_v35 = vrot.slane %v6692_v31, 4 }
 0x74b   : > { %v6700_v55 = vsel %vm2026_vm3, %v6698_v35, %v6699_v17  ;;  %v6816_v35 = vstv %s7457_s10 }
 0x74d   : > { %6680 = vrot.lane.b32.xlu1 %v6677_v28, %s7692_s22  ;;  %6678 = vrot.lane.b32.xlu0 %v6675_v21, %s7692_s22 }
 0x74e   : > { %6682 = vrot.lane.b32.xlu2 %v6676_v49, %s7692_s22  ;;  %v6768_v49 = vmul.f32 %v12218_v34, %v6766_v24 }
 0x74f   : > { %v6255_v15 = vpop.permute.xlu1 %6254  ;;  %v6253_v16 = vpop.permute.xlu0 %6252 }
 0x750   : > { %v6332_v44 = vpop.permute.xlu2 %6331  ;;  %v12467_v37 = vadd.f32 %v6255_v15, %v12381_v40  ;;  %v12470_v9 = vadd.f32 %v6253_v16, %v12383_v57  ;;  %v6726_v40 = vrot.slane %v6719_v4, 4  ;;  %v6724_v57 = vrot.slane %v6718_v39, 4 }
 0x751   : > { %v12473_v29 = vadd.f32 %v6332_v44, %v12387_v30  ;;  %v6723_v30 = vrot.slane %v6717_v32, 4 }
 0x752   : > { %v6727_v50 = vsel %vm2026_vm3, %v6724_v57, %v6726_v40 }
 0x753   : > { %v6725_v20 = vsel %vm2026_vm3, %v6723_v30, %v6724_v57  ;;  %v6817_v57 = vmul.f32 %v12222_v25, %v6816_v35 }
 0x755   : > { %6705 = vrot.lane.b32.xlu1 %v6702_v5, %s7692_s22  ;;  %6703 = vrot.lane.b32.xlu0 %v6700_v55, %s7692_s22  ;;  %v6819_v5 = vmul.f32 %v12214_v11, %v6816_v35  ;;  %v6818_v55 = vmul.f32 %v12218_v34, %v6816_v35  ;;  %v6916_v35 = vstv %s7461_s21 }
 0x756   : > { %6707 = vrot.lane.b32.xlu2 %v6701_v43, %s7692_s22  ;;  %s7456_s22 = sld [smem:[#allocation6 + $0x129]] }
 0x757   : > { %v6280_v54 = vpop.permute.xlu1 %6279  ;;  %v6278_v45 = vpop.permute.xlu0 %6277 }
 0x758   : > { %v6357_v13 = vpop.permute.xlu2 %6356  ;;  %v12484_v10 = vadd.f32 %v6280_v54, %v12405_v22  ;;  %v12487_v14 = vadd.f32 %v6278_v45, %v12407_v6  ;;  %v6751_v22 = vrot.slane %v6744_v63, 4  ;;  %v6749_v6 = vrot.slane %v6743_v38, 4 }
 0x759   : > { %v12490_v61 = vadd.f32 %v6357_v13, %v12410_v33  ;;  %v6748_v33 = vrot.slane %v6742_v41, 4  ;;  %v6841_v45 = vstv %s7458_s11 }
 0x75a   : > { %v6752_v2 = vsel %vm2026_vm3, %v6749_v6, %v6751_v22  ;;  %v6844_v41 = vmul.f32 %v12214_v11, %v6841_v45 }
 0x75b   : > { %v6750_v48 = vsel %vm2026_vm3, %v6748_v33, %v6749_v6  ;;  %v6842_v6 = vmul.f32 %v12222_v25, %v6841_v45  ;;  %v6866_v33 = vstv %s7459_s12 }
 0x75c   : > { %v6791_v26 = vstv %s7456_s22 }
 0x75d   : > { %6730 = vrot.lane.b32.xlu1 %v6727_v50, %s7693_s19  ;;  %6728 = vrot.lane.b32.xlu0 %v6725_v20, %s7693_s19  ;;  %v6794_v31 = vmul.f32 %v12214_v11, %v6791_v26  ;;  %v6793_v43 = vmul.f32 %v12218_v34, %v6791_v26  ;;  %v6792_v17 = vmul.f32 %v12222_v25, %v6791_v26 }
 0x75e   : > { %6732 = vrot.lane.b32.xlu2 %v6726_v40, %s7693_s19 }
 0x75f   : > { %v6305_v42 = vpop.permute.xlu1 %6304  ;;  %v6303_v51 = vpop.permute.xlu0 %6302 }
 0x760   : > { %v6382_v8 = vpop.permute.xlu2 %6381  ;;  %v12501_v18 = vadd.f32 %v6305_v42, %v12430_v27  ;;  %v12504_v12 = vadd.f32 %v6303_v51, %v12432_v58  ;;  %v6776_v27 = vrot.slane %v6769_v46, 4  ;;  %v6774_v58 = vrot.slane %v6768_v49, 4 }
 0x761   : > { %v12507_v23 = vadd.f32 %v6382_v8, %v12435_v62  ;;  %v6773_v62 = vrot.slane %v6767_v1, 4 }
 0x762   : > { %v6777_v7 = vsel %vm2026_vm3, %v6774_v58, %v6776_v27 }
 0x763   : > { %v6775_v3 = vsel %vm2026_vm3, %v6773_v62, %v6774_v58  ;;  %v6867_v58 = vmul.f32 %v12222_v25, %v6866_v33 }
 0x765   : > { %6755 = vrot.lane.b32.xlu1 %v6752_v2, %s7693_s19  ;;  %6753 = vrot.lane.b32.xlu0 %v6750_v48, %s7693_s19  ;;  %v6869_v2 = vmul.f32 %v12214_v11, %v6866_v33  ;;  %v6868_v48 = vmul.f32 %v12218_v34, %v6866_v33 }
 0x766   : > { %6757 = vrot.lane.b32.xlu2 %v6751_v22, %s7693_s19  ;;  %v6843_v22 = vmul.f32 %v12218_v34, %v6841_v45 }
 0x767   : > { %v6330_v56 = vpop.permute.xlu1 %6329  ;;  %v6328_v47 = vpop.permute.xlu0 %6327 }
 0x768   : > { %v6407_v36 = vpop.permute.xlu2 %6406  ;;  %v12518_v0 = vadd.f32 %v6330_v56, %v12451_v19  ;;  %v12521_v28 = vadd.f32 %v6328_v47, %v12453_v52  ;;  %v6801_v19 = vrot.slane %v6794_v31, 4  ;;  %v6799_v52 = vrot.slane %v6793_v43, 4 }
 0x769   : > { %v12524_v21 = vadd.f32 %v6407_v36, %v12456_v53  ;;  %v6798_v53 = vrot.slane %v6792_v17, 4 }
 0x76a   : > { %v6802_v32 = vsel %vm2026_vm3, %v6799_v52, %v6801_v19 }
 0x76b   : > { %v6800_v40 = vsel %vm2026_vm3, %v6798_v53, %v6799_v52  ;;  %v12599_v53 = vstv %s7445_s18 }
 0x76d   : > { %6780 = vrot.lane.b32.xlu1 %v6777_v7, %s7693_s19  ;;  %6778 = vrot.lane.b32.xlu0 %v6775_v3, %s7693_s19 }
 0x76e   : > { %6782 = vrot.lane.b32.xlu2 %v6776_v27, %s7693_s19 }
 0x76f   : > { %v6355_v60 = vpop.permute.xlu1 %6354  ;;  %v6353_v15 = vpop.permute.xlu0 %6352 }
 0x770   : > { %v6432_v16 = vpop.permute.xlu2 %6431  ;;  %v12535_v44 = vadd.f32 %v6355_v60, %v12467_v37  ;;  %v12538_v4 = vadd.f32 %v6353_v15, %v12470_v9  ;;  %v6826_v37 = vrot.slane %v6819_v5, 4  ;;  %v6824_v9 = vrot.slane %v6818_v55, 4 }
 0x771   : > { %v12541_v39 = vadd.f32 %v6432_v16, %v12473_v29  ;;  %v6823_v29 = vrot.slane %v6817_v57, 4  ;;  %v12606_v16 = vmul.f32 %v12214_v11, %v12599_v53  ;;  %v6919_v57 = vmul.f32 %v12214_v11, %v6916_v35 }
 0x772   : > { %v6827_v63 = vsel %vm2026_vm3, %v6824_v9, %v6826_v37 }
 0x773   : > { %v6825_v38 = vsel %vm2026_vm3, %v6823_v29, %v6824_v9 }
 0x775   : > { %6805 = vrot.lane.b32.xlu1 %v6802_v32, %s7693_s19  ;;  %6803 = vrot.lane.b32.xlu0 %v6800_v40, %s7693_s19 }
 0x776   : > { %6807 = vrot.lane.b32.xlu2 %v6801_v19, %s7693_s19  ;;  %s7460_s19 = sld [smem:[#allocation6 + $0x12a]] }
 0x777   : > { %v6380_v30 = vpop.permute.xlu1 %6379  ;;  %v6378_v54 = vpop.permute.xlu0 %6377 }
 0x778   : > { %v6457_v59 = vpop.permute.xlu2 %6456  ;;  %v12552_v13 = vadd.f32 %v6380_v30, %v12484_v10  ;;  %v12555_v50 = vadd.f32 %v6378_v54, %v12487_v14  ;;  %v6851_v10 = vrot.slane %v6844_v41, 4  ;;  %v6849_v14 = vrot.slane %v6843_v22, 4 }
 0x779   : > { %v12558_v20 = vadd.f32 %v6457_v59, %v12490_v61  ;;  %v6848_v61 = vrot.slane %v6842_v6, 4  ;;  %v6917_v30 = vmul.f32 %v12222_v25, %v6916_v35  ;;  %v6550_v54 = vrot.slane %v12606_v16, 4 }
 0x77a   : > { %v6852_v1 = vsel %vm2026_vm3, %v6849_v14, %v6851_v10  ;;  %v6941_v22 = vstv %s7462_s25 }
 0x77b   : > { %v6850_v27 = vsel %vm2026_vm3, %v6848_v61, %v6849_v14  ;;  %v6923_v45 = vrot.slane %v6917_v30, 4  ;;  %v6557_v59 = vadd.f32 %v6550_v54, %v12558_v20 }
 0x77c   : > { %v6891_v47 = vstv %s7460_s19 }
 0x77d   : > { %6830 = vrot.lane.b32.xlu1 %v6827_v63, %s7694_s15  ;;  %6828 = vrot.lane.b32.xlu0 %v6825_v38, %s7694_s15  ;;  %v6894_v17 = vmul.f32 %v12214_v11, %v6891_v47  ;;  %v6893_v19 = vmul.f32 %v12218_v34, %v6891_v47  ;;  %v6892_v52 = vmul.f32 %v12222_v25, %v6891_v47 }
 0x77e   : > { %6832 = vrot.lane.b32.xlu2 %v6826_v37, %s7694_s15  ;;  %v6918_v37 = vmul.f32 %v12218_v34, %v6916_v35 }
 0x77f   : > { %v6405_v24 = vpop.permute.xlu1 %6404  ;;  %v6403_v42 = vpop.permute.xlu0 %6402 }
 0x780   : > { %v6482_v51 = vpop.permute.xlu2 %6481  ;;  %v12569_v8 = vadd.f32 %v6405_v24, %v12501_v18  ;;  %v12572_v46 = vadd.f32 %v6403_v42, %v12504_v12  ;;  %v6876_v18 = vrot.slane %v6869_v2, 4  ;;  %v6874_v12 = vrot.slane %v6868_v48, 4 }
 0x781   : > { %v12575_v49 = vadd.f32 %v6482_v51, %v12507_v23  ;;  %v6873_v23 = vrot.slane %v6867_v58, 4  ;;  %v6944_v24 = vmul.f32 %v12214_v11, %v6941_v22  ;;  %v6943_v42 = vmul.f32 %v12218_v34, %v6941_v22 }
 0x782   : > { %v6877_v31 = vsel %vm2026_vm3, %v6874_v12, %v6876_v18  ;;  %v6942_v51 = vmul.f32 %v12222_v25, %v6941_v22  ;;  %v12649_v48 = vstv %s7447_s26 }
 0x783   : > { %v6875_v43 = vsel %vm2026_vm3, %v6873_v23, %v6874_v12  ;;  %v12659_v23 = vmul.f32 %v12214_v11, %v12649_v48 }
 0x785   : > { %6855 = vrot.lane.b32.xlu1 %v6852_v1, %s7694_s15  ;;  %6853 = vrot.lane.b32.xlu0 %v6850_v27, %s7694_s15  ;;  %v6948_v1 = vrot.slane %v6942_v51, 4  ;;  %v6966_v27 = vstv %s7463_s27 }
 0x786   : > { %6857 = vrot.lane.b32.xlu2 %v6851_v10, %s7694_s15 }
 0x787   : > { %v6430_v62 = vpop.permute.xlu1 %6429  ;;  %v6428_v56 = vpop.permute.xlu0 %6427 }
 0x788   : > { %v6507_v26 = vpop.permute.xlu2 %6506  ;;  %v12586_v36 = vadd.f32 %v6430_v62, %v12518_v0  ;;  %v12589_v7 = vadd.f32 %v6428_v56, %v12521_v28  ;;  %v6901_v0 = vrot.slane %v6894_v17, 4  ;;  %v6899_v28 = vrot.slane %v6893_v19, 4 }
 0x789   : > { %v12592_v3 = vadd.f32 %v6507_v26, %v12524_v21  ;;  %v6898_v21 = vrot.slane %v6892_v52, 4  ;;  %v6967_v52 = vmul.f32 %v12222_v25, %v6966_v27 }
 0x78a   : > { %v6902_v9 = vsel %vm2026_vm3, %v6899_v28, %v6901_v0 }
 0x78b   : > { %v6900_v29 = vsel %vm2026_vm3, %v6898_v21, %v6899_v28 }
 0x78d   : > { %6880 = vrot.lane.b32.xlu1 %v6877_v31, %s7694_s15  ;;  %6878 = vrot.lane.b32.xlu0 %v6875_v43, %s7694_s15  ;;  %v6969_v31 = vmul.f32 %v12214_v11, %v6966_v27  ;;  %v6542_v43 = vmul.f32 %v12218_v34, %v12599_v53 }
 0x78e   : > { %6882 = vrot.lane.b32.xlu2 %v6876_v18, %s7694_s15 }
 0x78f   : > { %v6455_v60 = vpop.permute.xlu1 %6454  ;;  %v6453_v15 = vpop.permute.xlu0 %6452  ;;  %v6976_v28 = vrot.slane %v6969_v31, 4  ;;  %v6548_v35 = vrot.slane %v6542_v43, 4 }
 0x790   : > { %v6532_v5 = vpop.permute.xlu2 %6531  ;;  %v12609_v55 = vadd.f32 %v6455_v60, %v12535_v44  ;;  %v12612_v32 = vadd.f32 %v6453_v15, %v12538_v4  ;;  %v12623_v44 = vstv %s7446_s24  ;;  %v6926_v4 = vrot.slane %v6919_v57, 4 }
 0x791   : > { %v12615_v40 = vadd.f32 %v6532_v5, %v12541_v39  ;;  %v6924_v39 = vrot.slane %v6918_v37, 4  ;;  %v12633_v41 = vmul.f32 %v12214_v11, %v12623_v44  ;;  %v6973_v60 = vrot.slane %v6967_v52, 4 }
 0x792   : > { %v6560_v16 = vmul.f32 %v12222_v25, %v12623_v44 }
 0x793   : > { %v6927_v33 = vsel %vm2026_vm3, %v6924_v39, %v6926_v4  ;;  %v6925_v20 = vsel %vm2026_vm3, %v6923_v45, %v6924_v39  ;;  %v6569_v2 = vrot.slane %v12633_v41, 4 }
 0x795   : > { %6905 = vrot.lane.b32.xlu1 %v6902_v9, %s7694_s15  ;;  %6903 = vrot.lane.b32.xlu0 %v6900_v29, %s7694_s15  ;;  %v6576_v58 = vadd.f32 %v6569_v2, %v12575_v49  ;;  %v6968_v49 = vmul.f32 %v12218_v34, %v6966_v27  ;;  %v6991_v9 = vstv %s7464_s28 }
 0x796   : > { %6907 = vrot.lane.b32.xlu2 %v6901_v0, %s7694_s15  ;;  %s7448_s15 = sld [smem:[#allocation6 + $0x127]] }
 0x797   : > { %v6480_v63 = vpop.permute.xlu1 %6479  ;;  %v6478_v38 = vpop.permute.xlu0 %6477  ;;  %v6974_v21 = vrot.slane %v6968_v49, 4 }
 0x798   : > { %v6633_v6 = vpop.permute.xlu2 %6632  ;;  %v12636_v10 = vadd.f32 %v6480_v63, %v12552_v13  ;;  %v12639_v14 = vadd.f32 %v6478_v38, %v12555_v50  ;;  %v6951_v13 = vrot.slane %v6944_v24, 4  ;;  %v6949_v50 = vrot.slane %v6943_v42, 4 }
 0x799   : > { %v12641_v61 = vadd.f32 %v6633_v6, %v6557_v59  ;;  %v6977_v45 = vsel %vm2026_vm3, %v6974_v21, %v6976_v28  ;;  %v6975_v59 = vsel %vm2026_vm3, %v6973_v60, %v6974_v21  ;;  %v6994_v63 = vmul.f32 %v12214_v11, %v6991_v9 }
 0x79a   : > { %v6952_v17 = vsel %vm2026_vm3, %v6949_v50, %v6951_v13  ;;  %v6950_v19 = vsel %vm2026_vm3, %v6948_v1, %v6949_v50  ;;  %v6993_v38 = vmul.f32 %v12218_v34, %v6991_v9  ;;  %v6561_v6 = vmul.f32 %v12218_v34, %v12623_v44 }
 0x79b   : > { %v6566_v44 = vrot.slane %v6560_v16, 4 }
 0x79c   : > { %v12679_v0 = vstv %s7448_s15 }
 0x79d   : > { %6930 = vrot.lane.b32.xlu1 %v6927_v33, %s7695_s5  ;;  %6928 = vrot.lane.b32.xlu0 %v6925_v20, %s7695_s5  ;;  %v7001_v33 = vrot.slane %v6994_v63, 4  ;;  %v6999_v20 = vrot.slane %v6993_v38, 4 }
 0x79e   : > { %6932 = vrot.lane.b32.xlu2 %v6926_v4, %s7695_s5 }
 0x79f   : > { %v6505_v18 = vpop.permute.xlu1 %6504  ;;  %v6503_v12 = vpop.permute.xlu0 %6502 }
 0x7a0   : > { %v6658_v62 = vpop.permute.xlu2 %6657  ;;  %v12662_v56 = vadd.f32 %v6505_v18, %v12569_v8  ;;  %v12665_v47 = vadd.f32 %v6503_v12, %v12572_v46  ;;  %v6588_v8 = vrot.slane %v12659_v23, 4  ;;  %v6541_v46 = vmul.f32 %v12222_v25, %v12599_v53  ;;  %v7582_v18 = vld [vmem:[%s7802_s9 + $0x38] sm:$0xff] }
 0x7a1   : > { %v12667_v26 = vadd.f32 %v6658_v62, %v6576_v58  ;;  %v12689_v53 = vmul.f32 %v12214_v11, %v12679_v0  ;;  %v6580_v12 = vmul.f32 %v7582_v18, %v12649_v48  ;;  %v7583_v62 = vld [vmem:[%s7802_s9 + $0x30] sm:$0xff]  ;;  %s7479_s9 = smul.u32 96, %s13911_s16 }
 0x7a2   : > { %v6595_v15 = vadd.f32 %v6588_v8, %v12592_v3  ;;  %v6547_v37 = vrot.slane %v6541_v46, 4  ;;  %v6551_v3 = vsel %vm2026_vm3, %v6548_v35, %v6550_v54  ;;  %v6579_v31 = vmul.f32 %v7583_v62, %v12649_v48 }
 0x7a3   : > { %v6607_v22 = vrot.slane %v12689_v53, 4  ;;  %v6556_v11 = vadd.f32 %v6551_v3, %v12609_v55  ;;  %s12778_s4 = scalar_lea.vmem %s12835_s3, %s7479_s9 }
 0x7a5   : > { %6955 = vrot.lane.b32.xlu1 %v6952_v17, %s7695_s5  ;;  %6953 = vrot.lane.b32.xlu0 %v6950_v19, %s7695_s5  ;;  %v6614_v34 = vadd.f32 %v6607_v22, %v12615_v40  ;;  %v6586_v17 = vrot.slane %v6580_v12, 4  ;;  %v6585_v19 = vrot.slane %v6579_v31, 4 }
 0x7a6   : > { %6957 = vrot.lane.b32.xlu2 %v6951_v13, %s7695_s5 }
 0x7a7   : > { %v6530_v5 = vpop.permute.xlu1 %6529  ;;  %v6528_v57 = vpop.permute.xlu0 %6527  ;;  %v6589_v48 = vsel %vm2026_vm3, %v6586_v17, %v6588_v8  ;;  %v6587_v21 = vsel %vm2026_vm3, %v6585_v19, %v6586_v17 }
 0x7a8   : > { %v6683_v29 = vpop.permute.xlu2 %6682  ;;  %v12692_v30 = vadd.f32 %v6530_v5, %v12586_v36  ;;  %v12695_v4 = vadd.f32 %v6528_v57, %v12589_v7  ;;  %v6992_v36 = vmul.f32 %v12222_v25, %v6991_v9  ;;  %v6549_v7 = vsel %vm2026_vm3, %v6547_v37, %v6548_v35 }
 0x7a9   : > { %v12697_v39 = vadd.f32 %v6683_v29, %v6595_v15  ;;  %v6555_v54 = vadd.f32 %v6549_v7, %v12612_v32  ;;  %v6567_v25 = vrot.slane %v6561_v6, 4  ;;  %v7002_v32 = vsel %vm2026_vm3, %v6999_v20, %v7001_v33 }
 0x7aa   : > { %v6998_v24 = vrot.slane %v6992_v36, 4  ;;  %v6599_v35 = vmul.f32 %v7582_v18, %v12679_v0  ;;  %v6593_v60 = vadd.f32 %v6587_v21, %v12665_v47 }
 0x7ab   : > { %v6570_v58 = vsel %vm2026_vm3, %v6567_v25, %v6569_v2  ;;  %v6568_v40 = vsel %vm2026_vm3, %v6566_v44, %v6567_v25 }
 0x7ac   : > { %v7000_v27 = vsel %vm2026_vm3, %v6998_v24, %v6999_v20  ;;  %v6575_v49 = vadd.f32 %v6570_v58, %v12636_v10  ;;  %v6574_v41 = vadd.f32 %v6568_v40, %v12639_v14  ;;  %v6598_v10 = vmul.f32 %v7583_v62, %v12679_v0 }
 0x7ad   : > { %6980 = vrot.lane.b32.xlu1 %v6977_v45, %s7695_s5  ;;  %6978 = vrot.lane.b32.xlu0 %v6975_v59, %s7695_s5  ;;  %v6594_v14 = vadd.f32 %v6589_v48, %v12662_v56  ;;  %v6605_v57 = vrot.slane %v6599_v35, 4 }
 0x7ae   : > { %6982 = vrot.lane.b32.xlu2 %v6976_v28, %s7695_s5  ;;  %v6604_v53 = vrot.slane %v6598_v10, 4 }
 0x7af   : > { %v6631_v42 = vpop.permute.xlu1 %6630  ;;  %v6629_v51 = vpop.permute.xlu0 %6628  ;;  %v6608_v8 = vsel %vm2026_vm3, %v6605_v57, %v6607_v22 }
 0x7b0   : > { %v6708_v13 = vpop.permute.xlu2 %6707  ;;  %v12719_v50 = vadd.f32 %v6631_v42, %v6556_v11  ;;  %v12721_v1 = vadd.f32 %v6629_v51, %v6555_v54  ;;  %v6606_v29 = vsel %vm2026_vm3, %v6604_v53, %v6605_v57  ;;  %v6613_v45 = vadd.f32 %v6608_v8, %v12692_v30 }
 0x7b1   : > { %v12723_v55 = vadd.f32 %v6708_v13, %v6614_v34  ;;  %v6612_v0 = vadd.f32 %v6606_v29, %v12695_v4 }
 0x7b5   : > { %7005 = vrot.lane.b32.xlu1 %v7002_v32, %s7695_s5  ;;  %7003 = vrot.lane.b32.xlu0 %v7000_v27, %s7695_s5 }
 0x7b6   : > { %7007 = vrot.lane.b32.xlu2 %v7001_v33, %s7695_s5 }
 0x7b7   : > { %v6656_v43 = vpop.permute.xlu1 %6655  ;;  %v6654_v2 = vpop.permute.xlu0 %6653 }
 0x7b8   : > { %v6733_v52 = vpop.permute.xlu2 %6732  ;;  %v12740_v46 = vadd.f32 %v6656_v43, %v6575_v49  ;;  %v12742_v28 = vadd.f32 %v6654_v2, %v6574_v41 }
 0x7b9   : > { %v6739_v51 = vadd.f32 %v6733_v52, %v12641_v61 }
 0x7bf   : > { %v6681_v15 = vpop.permute.xlu1 %6680  ;;  %v6679_v5 = vpop.permute.xlu0 %6678 }
 0x7c0   : > { %v6758_v37 = vpop.permute.xlu2 %6757  ;;  %v12752_v9 = vadd.f32 %v6681_v15, %v6594_v14  ;;  %v12754_v23 = vadd.f32 %v6679_v5, %v6593_v60 }
 0x7c1   : > { %v6764_v40 = vadd.f32 %v6758_v37, %v12667_v26 }
 0x7c7   : > { %v6706_v56 = vpop.permute.xlu1 %6705  ;;  %v6704_v3 = vpop.permute.xlu0 %6703 }
 0x7c8   : > { %v6783_v47 = vpop.permute.xlu2 %6782  ;;  %v12760_v59 = vadd.f32 %v6706_v56, %v6613_v45  ;;  %v12762_v63 = vadd.f32 %v6704_v3, %v6612_v0 }
 0x7c9   : > { %v6789_v43 = vadd.f32 %v6783_v47, %v12697_v39 }
 0x7cf   : > { %v6731_v38 = vpop.permute.xlu1 %6730  ;;  %v6729_v36 = vpop.permute.xlu0 %6728 }
 0x7d0   : > { %v6808_v7 = vpop.permute.xlu2 %6807  ;;  %v6738_v35 = vadd.f32 %v6731_v38, %v12719_v50  ;;  %v6737_v10 = vadd.f32 %v6729_v36, %v12721_v1 }
 0x7d1   : > { %v6814_v14 = vadd.f32 %v6808_v7, %v12723_v55 }
 0x7d7   : > { %v6756_v6 = vpop.permute.xlu1 %6755  ;;  %v6754_v22 = vpop.permute.xlu0 %6753 }
 0x7d8   : > { %v6833_v16 = vpop.permute.xlu2 %6832  ;;  %v6763_v55 = vadd.f32 %v6756_v6, %v12740_v46  ;;  %v6762_v56 = vadd.f32 %v6754_v22, %v12742_v28 }
 0x7d9   : > { %v6839_v25 = vadd.f32 %v6833_v16, %v6739_v51 }
 0x7df   : > { %v12764_v11 = vpop.permute.xlu1 %6780  ;;  %v12766_v30 = vpop.permute.xlu0 %6778 }
 0x7e0   : > { %v6858_v4 = vpop.permute.xlu2 %6857  ;;  %v6788_v28 = vadd.f32 %v12764_v11, %v12752_v9  ;;  %v6787_v22 = vadd.f32 %v12766_v30, %v12754_v23 }
 0x7e1   : > { %v6864_v12 = vadd.f32 %v6858_v4, %v6764_v40 }
 0x7e7   : > { %v12768_v54 = vpop.permute.xlu1 %6805  ;;  %v12770_v33 = vpop.permute.xlu0 %6803 }
 0x7e8   : > { %v6883_v20 = vpop.permute.xlu2 %6882  ;;  %v6813_v9 = vadd.f32 %v12768_v54, %v12760_v59  ;;  %v6812_v23 = vadd.f32 %v12770_v33, %v12762_v63 }
 0x7e9   : > { %v6889_v17 = vadd.f32 %v6883_v20, %v6789_v43 }
 0x7ef   : > { %v6831_v24 = vpop.permute.xlu1 %6830  ;;  %v6829_v34 = vpop.permute.xlu0 %6828 }
 0x7f0   : > { %v6908_v42 = vpop.permute.xlu2 %6907  ;;  %v6838_v15 = vadd.f32 %v6831_v24, %v6738_v35  ;;  %v6837_v5 = vadd.f32 %v6829_v34, %v6737_v10 }
 0x7f1   : > { %v6914_v39 = vadd.f32 %v6908_v42, %v6814_v14 }
 0x7f7   : > { %v6856_v44 = vpop.permute.xlu1 %6855  ;;  %v6854_v13 = vpop.permute.xlu0 %6853 }
 0x7f8   : > { %v6933_v32 = vpop.permute.xlu2 %6932  ;;  %v6863_v36 = vadd.f32 %v6856_v44, %v6763_v55  ;;  %v6862_v7 = vadd.f32 %v6854_v13, %v6762_v56 }
 0x7f9   : > { %v6939_v27 = vadd.f32 %v6933_v32, %v6839_v25 }
 0x7fb   : > { %v7017_v58 = vmax.f32 %v6939_v27, 0.0 }
 0x7fd   : > { %v7020_v18 = vmin.f32 %v7017_v58, 1.8 }
 0x7ff   : > { %7025 = vst.msk [vmem:[%s12778_s4 + $0x10] sm:$0xf] %vm7024_vm4, %v7020_v18  ;;  %v6881_v61 = vpop.permute.xlu1 %6880  ;;  %v6879_v62 = vpop.permute.xlu0 %6878 }
 0x800   : > { %v6958_v31 = vpop.permute.xlu2 %6957  ;;  %v6888_v51 = vadd.f32 %v6881_v61, %v6788_v28  ;;  %v6887_v25 = vadd.f32 %v6879_v62, %v6787_v22 }
 0x801   : > { %v6964_v49 = vadd.f32 %v6958_v31, %v6864_v12 }
 0x803   : > { %v7028_v41 = vmax.f32 %v6964_v49, 0.0 }
 0x805   : > { %v7031_v2 = vmin.f32 %v7028_v41, 1.8 }
 0x807   : > { %7467 = vst.msk [vmem:[%s12778_s4 + $0x28] sm:$0xf] %vm7024_vm4, %v7031_v2  ;;  %v6906_v19 = vpop.permute.xlu1 %6905  ;;  %v6904_v52 = vpop.permute.xlu0 %6903 }
 0x808   : > { %v6983_v48 = vpop.permute.xlu2 %6982  ;;  %v6913_v18 = vadd.f32 %v6906_v19, %v6813_v9  ;;  %v6912_v12 = vadd.f32 %v6904_v52, %v6812_v23 }
 0x809   : > { %v6989_v26 = vadd.f32 %v6983_v48, %v6889_v17 }
 0x80b   : > { %v7038_v21 = vmax.f32 %v6989_v26, 0.0 }
 0x80d   : > { %v7041_v60 = vmin.f32 %v7038_v21, 1.8 }
 0x80f   : > { %7470 = vst.msk [vmem:[%s12778_s4 + $0x40] sm:$0xf] %vm7024_vm4, %v7041_v60  ;;  %v6931_v57 = vpop.permute.xlu1 %6930  ;;  %v6929_v53 = vpop.permute.xlu0 %6928 }
 0x810   : > { %v7008_v37 = vpop.permute.xlu2 %7007  ;;  %v6938_v8 = vadd.f32 %v6931_v57, %v6838_v15  ;;  %v6937_v29 = vadd.f32 %v6929_v53, %v6837_v5 }
 0x811   : > { %v7014_v45 = vadd.f32 %v7008_v37, %v6914_v39 }
 0x812   : > { %v7016_v50 = vmax.f32 %v6938_v8, 0.0  ;;  %v7015_v0 = vmax.f32 %v6937_v29, 0.0 }
 0x813   : > { %v7048_v1 = vmax.f32 %v7014_v45, 0.0 }
 0x814   : > { %v7019_v3 = vmin.f32 %v7016_v50, 1.8  ;;  %v7018_v47 = vmin.f32 %v7015_v0, 1.8 }
 0x815   : > { %v7051_v38 = vmin.f32 %v7048_v1, 1.8 }
 0x816   : > { %7023 = vst.msk [vmem:[%s12778_s4 + $0x8] sm:$0xff] %vm7021_vm5, %v7019_v3 }
 0x817   : > { %7473 = vst.msk [vmem:[%s12778_s4 + $0x58] sm:$0xf] %vm7024_vm4, %v7051_v38  ;;  %v6956_v16 = vpop.permute.xlu1 %6955  ;;  %v6954_v4 = vpop.permute.xlu0 %6953 }
 0x818   : > { %7022 = vst.msk [vmem:[%s12778_s4] sm:$0xff] %vm7021_vm5, %v7018_v47  ;;  %v6963_v20 = vadd.f32 %v6956_v16, %v6863_v36  ;;  %v6962_v24 = vadd.f32 %v6954_v4, %v6862_v7 }
 0x81a   : > { %v7027_v46 = vmax.f32 %v6963_v20, 0.0  ;;  %v7026_v6 = vmax.f32 %v6962_v24, 0.0 }
 0x81c   : > { %v7030_v34 = vmin.f32 %v7027_v46, 1.8  ;;  %v7029_v42 = vmin.f32 %v7026_v6, 1.8 }
 0x81e   : > { %7466 = vst.msk [vmem:[%s12778_s4 + $0x20] sm:$0xff] %vm7021_vm5, %v7030_v34 }
 0x81f   : > { %7465 = vst.msk [vmem:[%s12778_s4 + $0x18] sm:$0xff] %vm7021_vm5, %v7029_v42  ;;  %v6981_v44 = vpop.permute.xlu1 %6980  ;;  %v6979_v13 = vpop.permute.xlu0 %6978 }
 0x820   : > { %v6988_v32 = vadd.f32 %v6981_v44, %v6888_v51  ;;  %v6987_v27 = vadd.f32 %v6979_v13, %v6887_v25 }
 0x822   : > { %v7037_v58 = vmax.f32 %v6988_v32, 0.0  ;;  %v7036_v40 = vmax.f32 %v6987_v27, 0.0 }
 0x824   : > { %v7040_v11 = vmin.f32 %v7037_v58, 1.8  ;;  %v7039_v30 = vmin.f32 %v7036_v40, 1.8 }
 0x826   : > { %7469 = vst.msk [vmem:[%s12778_s4 + $0x38] sm:$0xff] %vm7021_vm5, %v7040_v11 }
 0x827   : > { %7468 = vst.msk [vmem:[%s12778_s4 + $0x30] sm:$0xff] %vm7021_vm5, %v7039_v30  ;;  %v7006_v61 = vpop.permute.xlu1 %7005  ;;  %v7004_v62 = vpop.permute.xlu0 %7003 }
 0x828   : > { %v7013_v31 = vadd.f32 %v7006_v61, %v6913_v18  ;;  %v7012_v49 = vadd.f32 %v7004_v62, %v6912_v12 }
 0x82a   : > { %v7047_v41 = vmax.f32 %v7013_v31, 0.0  ;;  %v7046_v43 = vmax.f32 %v7012_v49, 0.0 }
 0x82c   : > { %v7050_v59 = vmin.f32 %v7047_v41, 1.8  ;;  %v7049_v54 = vmin.f32 %v7046_v43, 1.8 }
 0x82e   : > { %7472 = vst.msk [vmem:[%s12778_s4 + $0x50] sm:$0xff] %vm7021_vm5, %v7050_v59 }
 0x82f   : > { %7471 = vst.msk [vmem:[%s12778_s4 + $0x48] sm:$0xff] %vm7021_vm5, %v7049_v54 }
 0x830 PF: > { %p15_p8 = scmp.ge.s32.totalorder %s7738_s17, 4   ;;  %s13906_s12 = smov %s7678_s13 }
 0x831   : > { %s13907_s13 = smov %s7682_s14  ;;  %s13908_s14 = smov %s7748_s20 }
 0x832   : > { %s13909_s15 = smov %s7738_s17  ;;  %17 = sbr.rel (!%p15_p8) target bundleno = 5 (0x5), region = 87 }
 0x837   :  { %7077 = vsyncpa [#allocation3], 1 }
 0x838   :  { %7079 = vsyncpa [#allocation3 + $0x1], 1 }
 0x839   :  { %7080 = vsyncpa [#allocation4], 1 }
 0x83a   :  { %7082 = vsyncpa [#allocation4 + $0x1], 1 }
 0x83b   :  { %7083 = vsyncpa [#allocation5], 1 }
 0x83c   :  { %7085 = vsyncpa [#allocation5 + $0x1], 1 }

</bundles_post_ra>
